<compile_context>
chip_gen: v7x
topology: tpu7x:2x2x1
jax: 0.10.0
libtpu: 0.0.40
codegen_flags: <defaults>
</compile_context>

<pallas_src>
from functools import partial

import jax
import jax.numpy as jnp
from jax.experimental import pallas as pl
from jax.experimental.pallas import tpu as pltpu

# ----------------------- config (consistent with the module) -----------------
IMG_SIZE = 16
PATCH_SIZE = 4
IN_CHANS = 4
EMBED_DIM = 32
DEPTH = 2
NUM_HEADS = 4
DEC_DIM = 32
DEC_DEPTH = 2
DEC_HEADS = 4
MLP_RATIO = 4.0
INTER_DIM = 16
TIME_STAMP = 1
MASK_RATIO = 0.75
NUM_PATCHES = (IMG_SIZE // PATCH_SIZE) ** 2
PATCH_DIM = IN_CHANS * PATCH_SIZE * PATCH_SIZE
LN_EPS = 1e-5  # torch nn.LayerNorm default

_SQRT_HALF = 0.7071067811865476
_NEG_BIG = -1e30  # additive mask for cross-batch attention (exp underflows to 0)

PACKED_BLOCK_KEYS = (
    "q_w", "k_w", "v_w", "q_b", "k_b", "v_b",
    "proj_w", "proj_b",
    "ln1_g", "ln1_b", "ln2_g", "ln2_b",
    "fc1_w", "fc1_b", "fc2_w", "fc2_b",
)
N_BLOCK_REFS = len(PACKED_BLOCK_KEYS)


# --------------------------- in-kernel math helpers ---------------------------
def _layernorm(x, g, b, eps=LN_EPS):
    mean = jnp.mean(x, axis=-1, keepdims=True)
    xc = x - mean
    var = jnp.mean(xc * xc, axis=-1, keepdims=True)
    return xc * jax.lax.rsqrt(var + eps) * g + b


def _erf_poly(x):
    # Abramowitz & Stegun 7.1.26 (|err| < 1.5e-7) with the divide moved to the
    # EUP via pl.reciprocal(approx=True); total GELU error stays < ~1e-3 abs,
    # below the bf16-weight quantization noise already present in the matmuls.
    a1, a2, a3, a4, a5 = 0.254829592, -0.284496736, 1.421413741, -1.453152027, 1.061405429
    p = 0.3275911
    z = jnp.abs(x)
    t = pl.reciprocal(1.0 + p * z, approx=True)
    poly = ((((a5 * t + a4) * t + a3) * t + a2) * t + a1) * t
    y = 1.0 - poly * jnp.exp(-z * z)
    return jnp.where(x < 0.0, -y, y)


def _gelu(x):
    # TODO(synk): exact-erf GELU approximated in-kernel (not bit-identical to torch).
    return 0.5 * x * (1.0 + _erf_poly(x * _SQRT_HALF))


def _affine16(x, w_ref, b_ref):
    # bf16 inputs, f32 accumulate + f32 bias.
    return jnp.dot(x.astype(jnp.bfloat16), w_ref[...],
                   preferred_element_type=jnp.float32) + b_ref[...]


def _run_blocks(x, blk_refs, attn_mask, hmask_ref, depth, num_heads):
    """Run `depth` transformer blocks on a (B*T, D) value (whole batch fused).

    attn_mask : (BT, BT) additive mask, 0 within a batch item, -1e30 across items.
    hmask_ref : (H, 1, D) bf16 per-head column masks; masking q (resp. v) by head
                h's columns makes (q*mh)@k^T == q_h@k_h^T and  p@(v*mh) land head
                h's output in its own column block, so heads re-assemble with VPU
                adds and a single fused output projection (no lane concat).
    """
    (qw, kw, vw, qb, kb, vb, pw, pb,
     ln1g, ln1b, ln2g, ln2b, f1w, f1b, f2w, f2b) = blk_refs
    for l in range(depth):
        # ---- attention ----
        h = _layernorm(x, ln1g[l], ln1b[l])
        h16 = h.astype(jnp.bfloat16)
        q = jnp.dot(h16, qw[l], preferred_element_type=jnp.float32) + qb[l]  # scale pre-folded
        k = jnp.dot(h16, kw[l], preferred_element_type=jnp.float32) + kb[l]
        v = jnp.dot(h16, vw[l], preferred_element_type=jnp.float32) + vb[l]
        q16 = q.astype(jnp.bfloat16)
        k16 = k.astype(jnp.bfloat16)
        v16 = v.astype(jnp.bfloat16)
        o_all = jnp.zeros(v.shape, jnp.float32)
        for hd in range(num_heads):
            hm = hmask_ref[hd]                                   # (1, D) bf16 0/1
            s = jax.lax.dot_general(q16 * hm, k16, (((1,), (1,)), ((), ())),
                                    preferred_element_type=jnp.float32)
            s = s + attn_mask
            s = s - jnp.max(s, axis=-1, keepdims=True)
            p = jnp.exp(s)
            p = p * pl.reciprocal(jnp.sum(p, axis=-1, keepdims=True), approx=True)
            o_all = o_all + jnp.dot(p.astype(jnp.bfloat16), v16 * hm,
                                    preferred_element_type=jnp.float32)
        attn = jnp.dot(o_all.astype(jnp.bfloat16), pw[l],
                       preferred_element_type=jnp.float32) + pb[l]
        x = x + attn
        # ---- MLP ----
        h = _layernorm(x, ln2g[l], ln2b[l])
        h = jnp.dot(h.astype(jnp.bfloat16), f1w[l], preferred_element_type=jnp.float32) + f1b[l]
        h = _gelu(h)
        h = jnp.dot(h.astype(jnp.bfloat16), f2w[l], preferred_element_type=jnp.float32) + f2b[l]
        x = x + h
    return x


# ------------------------------- Pallas kernels ------------------------------
def _encoder_kernel(*refs, depth, num_heads):
    x_ref, amask_ref, hmask_ref = refs[:3]
    blk = refs[3:3 + N_BLOCK_REFS]
    ng, nb, cw, cb, dw, db, ew, eb = refs[3 + N_BLOCK_REFS:3 + N_BLOCK_REFS + 8]
    o_ref = refs[3 + N_BLOCK_REFS + 8]

    x = x_ref[...]                                     # (B*T, D)
    x = _run_blocks(x, blk, amask_ref[...], hmask_ref, depth, num_heads)
    x = _layernorm(x, ng[...], nb[...])                # final encoder norm
    x = jnp.maximum(_affine16(x, cw, cb), 0.0)         # compressor: Linear + ReLU
    x = _affine16(x, dw, db)                           # decompressor
    x = _affine16(x, ew, eb)                           # decoder_embed
    o_ref[...] = x.astype(o_ref.dtype)


def _decoder_kernel(*refs, depth, num_heads):
    x_ref, amask_ref, hmask_ref = refs[:3]
    blk = refs[3:3 + N_BLOCK_REFS]
    ng, nb, pw, pb, tgt_ref, lmask_ref = refs[3 + N_BLOCK_REFS:3 + N_BLOCK_REFS + 6]
    pred_ref, loss_ref = refs[3 + N_BLOCK_REFS + 6], refs[3 + N_BLOCK_REFS + 7]

    x = x_ref[...]                                     # (B*(L+1), Ddec)
    x = _run_blocks(x, blk, amask_ref[...], hmask_ref, depth, num_heads)
    x = _layernorm(x, ng[...], nb[...])                # decoder norm
    pred = _affine16(x, pw, pb)                        # decoder_pred head
    pred_ref[...] = pred.astype(pred_ref.dtype)

    # ---- fused MAE loss (cls rows carry lmask == 0, target padded with zeros) --
    d = pred - tgt_ref[...]
    per_row = jnp.sum(d * d, axis=-1, keepdims=True)   # reference: loss.sum(dim=-1)
    lm = lmask_ref[...]
    loss_ref[...] = jnp.sum(per_row * lm, keepdims=True) / jnp.sum(lm)


# ------------------------------ kernel wrappers -------------------------------
_VMEM = pl.BlockSpec(memory_space=pltpu.MemorySpace.VMEM)


def pallas_encoder(x2, amask, hmask, params):
    BT, _ = x2.shape
    blk = params["enc_blocks"]
    ops = [blk[k] for k in PACKED_BLOCK_KEYS] + [
        params["norm_g"], params["norm_b"],
        params["comp_w"], params["comp_b"],
        params["decomp_w"], params["decomp_b"],
        params["dec_embed_w"], params["dec_embed_b"],
    ]
    return pl.pallas_call(
        partial(_encoder_kernel, depth=DEPTH, num_heads=NUM_HEADS),
        out_shape=jax.ShapeDtypeStruct((BT, DEC_DIM), jnp.float32),
        in_specs=[_VMEM] * (3 + len(ops)),
        out_specs=_VMEM,
    )(x2, amask, hmask, *ops)


def pallas_decoder(x2, amask, hmask, tgt_pad, lmask, params):
    BT, _ = x2.shape
    blk = params["dec_blocks"]
    out_dim = params["pred_w"].shape[1]
    ops = [blk[k] for k in PACKED_BLOCK_KEYS] + [
        params["dec_norm_g"], params["dec_norm_b"],
        params["pred_w"], params["pred_b"],
    ]
    return pl.pallas_call(
        partial(_decoder_kernel, depth=DEC_DEPTH, num_heads=DEC_HEADS),
        out_shape=(jax.ShapeDtypeStruct((BT, out_dim), jnp.float32),
                   jax.ShapeDtypeStruct((1, 1), jnp.float32)),
        in_specs=[_VMEM] * (3 + len(ops) + 2),
        out_specs=(_VMEM, _VMEM),
    )(x2, amask, hmask, *ops, tgt_pad, lmask)


# ------------------------------ parameters -----------------------------------
def _init_block(key, dim, mlp_ratio):
    hidden = int(dim * mlp_ratio)
    ks = jax.random.split(key, 4)
    std = 0.02
    return {
        "ln1_g": jnp.ones((dim,), jnp.float32),
        "ln1_b": jnp.zeros((dim,), jnp.float32),
        "qkv_w": std * jax.random.normal(ks[0], (dim, 3 * dim), jnp.float32),
        "qkv_b": jnp.zeros((3 * dim,), jnp.float32),
        "proj_w": std * jax.random.normal(ks[1], (dim, dim), jnp.float32),
        "proj_b": jnp.zeros((dim,), jnp.float32),
        "ln2_g": jnp.ones((dim,), jnp.float32),
        "ln2_b": jnp.zeros((dim,), jnp.float32),
        "fc1_w": std * jax.random.normal(ks[2], (dim, hidden), jnp.float32),
        "fc1_b": jnp.zeros((hidden,), jnp.float32),
        "fc2_w": std * jax.random.normal(ks[3], (hidden, dim), jnp.float32),
        "fc2_b": jnp.zeros((dim,), jnp.float32),
    }


def init_params(key):
    std = 0.02
    ks = iter(jax.random.split(key, 16 + DEPTH + DEC_DEPTH))
    p = {}
    p["patch_w"] = std * jax.random.normal(next(ks), (PATCH_DIM, EMBED_DIM), jnp.float32)
    p["patch_b"] = jnp.zeros((EMBED_DIM,), jnp.float32)
    p["cls_token"] = std * jax.random.normal(next(ks), (1, 1, EMBED_DIM), jnp.float32)
    p["pos_embed"] = std * jax.random.normal(next(ks), (1, NUM_PATCHES + 1, EMBED_DIM), jnp.float32)
    p["temp_embed"] = std * jax.random.normal(next(ks), (1, TIME_STAMP, EMBED_DIM), jnp.float32)
    p["blocks"] = [_init_block(next(ks), EMBED_DIM, MLP_RATIO) for _ in range(DEPTH)]
    p["norm_g"] = jnp.ones((EMBED_DIM,), jnp.float32)
    p["norm_b"] = jnp.zeros((EMBED_DIM,), jnp.float32)
    p["comp_w"] = std * jax.random.normal(next(ks), (EMBED_DIM, INTER_DIM), jnp.float32)
    p["comp_b"] = jnp.zeros((INTER_DIM,), jnp.float32)
    p["decomp_w"] = std * jax.random.normal(next(ks), (INTER_DIM, EMBED_DIM), jnp.float32)
    p["decomp_b"] = jnp.zeros((EMBED_DIM,), jnp.float32)
    p["dec_embed_w"] = std * jax.random.normal(next(ks), (EMBED_DIM, DEC_DIM), jnp.float32)
    p["dec_embed_b"] = jnp.zeros((DEC_DIM,), jnp.float32)
    p["mask_token"] = std * jax.random.normal(next(ks), (1, 1, DEC_DIM), jnp.float32)
    p["dec_pos_embed"] = std * jax.random.normal(next(ks), (1, NUM_PATCHES + 1, DEC_DIM), jnp.float32)
    p["dec_blocks"] = [_init_block(next(ks), DEC_DIM, MLP_RATIO) for _ in range(DEC_DEPTH)]
    p["dec_norm_g"] = jnp.ones((DEC_DIM,), jnp.float32)
    p["dec_norm_b"] = jnp.zeros((DEC_DIM,), jnp.float32)
    p["pred_w"] = std * jax.random.normal(next(ks), (DEC_DIM, PATCH_SIZE ** 2 * IN_CHANS), jnp.float32)
    p["pred_b"] = jnp.zeros((PATCH_SIZE ** 2 * IN_CHANS,), jnp.float32)
    return p


def _pack_blocks(blocks, dim, num_heads):
    """Pack per-block torch-like params into kernel-ready layouts.

    qkv columns are ordered (which, head, dh) exactly like timm's
    qkv(x).reshape(B,N,3,H,dh); the attention scale dh**-0.5 is folded into the
    Q weight/bias; matmul weights are cast to bf16 (f32-accumulated in kernel).
    NOTE: weights are consumed as (in, out); loading real torch checkpoints
    ((out, in)) would require a transpose here.
    """
    depth = len(blocks)
    dh = dim // num_heads
    scale = dh ** -0.5
    hidden = blocks[0]["fc1_w"].shape[1]
    st = lambda k: jnp.stack([b[k] for b in blocks])
    bf = lambda a: a.astype(jnp.bfloat16)
    qkv_w = st("qkv_w")                                   # (depth, D, 3D)
    qkv_b = st("qkv_b")                                   # (depth, 3D)
    return {
        "q_w": bf(qkv_w[:, :, 0 * dim:1 * dim] * scale),
        "k_w": bf(qkv_w[:, :, 1 * dim:2 * dim]),
        "v_w": bf(qkv_w[:, :, 2 * dim:3 * dim]),
        "q_b": (qkv_b[:, 0 * dim:1 * dim] * scale).reshape(depth, 1, dim),
        "k_b": qkv_b[:, 1 * dim:2 * dim].reshape(depth, 1, dim),
        "v_b": qkv_b[:, 2 * dim:3 * dim].reshape(depth, 1, dim),
        "proj_w": bf(st("proj_w")),
        "proj_b": st("proj_b").reshape(depth, 1, dim),
        "ln1_g": st("ln1_g").reshape(depth, 1, dim),
        "ln1_b": st("ln1_b").reshape(depth, 1, dim),
        "ln2_g": st("ln2_g").reshape(depth, 1, dim),
        "ln2_b": st("ln2_b").reshape(depth, 1, dim),
        "fc1_w": bf(st("fc1_w")),
        "fc1_b": st("fc1_b").reshape(depth, 1, hidden),
        "fc2_w": bf(st("fc2_w")),
        "fc2_b": st("fc2_b").reshape(depth, 1, dim),
    }


def pack_params(p):
    bf = lambda a: a.astype(jnp.bfloat16)
    r1 = lambda a: a.reshape(1, -1)
    return {
        "patch_w": p["patch_w"],                      # patch embed stays in XLA
        "patch_b": p["patch_b"],
        "cls_token": p["cls_token"],
        "pos_embed": p["pos_embed"],
        "temp_embed": p["temp_embed"],
        "enc_blocks": _pack_blocks(p["blocks"], EMBED_DIM, NUM_HEADS),
        "norm_g": r1(p["norm_g"]), "norm_b": r1(p["norm_b"]),
        "comp_w": bf(p["comp_w"]), "comp_b": r1(p["comp_b"]),
        "decomp_w": bf(p["decomp_w"]), "decomp_b": r1(p["decomp_b"]),
        "dec_embed_w": bf(p["dec_embed_w"]), "dec_embed_b": r1(p["dec_embed_b"]),
        "mask_token": p["mask_token"],
        "dec_pos_embed": p["dec_pos_embed"],
        "dec_blocks": _pack_blocks(p["dec_blocks"], DEC_DIM, DEC_HEADS),
        "dec_norm_g": r1(p["dec_norm_g"]), "dec_norm_b": r1(p["dec_norm_b"]),
        "pred_w": bf(p["pred_w"]), "pred_b": r1(p["pred_b"]),
    }


# ----------------------------- XLA glue / model --------------------------------
def _batch_attn_mask(B, T):
    """(B*T, B*T) additive mask: 0 within a batch item, -1e30 across items."""
    bid = jnp.repeat(jnp.arange(B), T)
    same = bid[:, None] == bid[None, :]
    return jnp.where(same, 0.0, _NEG_BIG).astype(jnp.float32)


def _head_masks(num_heads, dim):
    """(H, 1, D) bf16 0/1 masks selecting each head's column block."""
    col = jnp.arange(dim)
    m = (col[None, :] // (dim // num_heads)) == jnp.arange(num_heads)[:, None]
    return m.astype(jnp.bfloat16)[:, None, :]


def _patch_flatten(imgs):
    """(N, C, H, W) -> (N*L, C*p*p) in Conv2d(k=p, stride=p) channel-major order."""
    N, C, H, W = imgs.shape
    p = PATCH_SIZE
    h, w = H // p, W // p
    x = imgs.reshape(N, C, h, p, w, p).transpose(0, 2, 4, 1, 3, 5)
    return x.reshape(N * h * w, C * p * p)


def patch_embed(params, imgs):
    # Tiny (B*L, 64)@(64, 32) matmul: left to XLA (not worth a pallas_call launch).
    N = imgs.shape[0]
    y = jnp.dot(_patch_flatten(imgs), params["patch_w"]) + params["patch_b"]
    return y.reshape(N, NUM_PATCHES, EMBED_DIM)


def patchify(imgs):
    N, C, H, W = imgs.shape
    p = PATCH_SIZE
    h = w = H // p
    x = imgs.reshape(N, C, h, p, w, p).transpose(0, 2, 4, 3, 5, 1)   # nchpwq->nhwpqc
    return x.reshape(N, h * w, p * p * C)


def unpatchify(x):
    N, L, _ = x.shape
    p = PATCH_SIZE
    h = w = int(L ** 0.5)
    C = x.shape[-1] // (p * p)
    x = x.reshape(N, h, w, p, p, C).transpose(0, 5, 1, 3, 2, 4)      # nhwpqc->nchpwq
    return x.reshape(N, C, h * p, w * p)


def random_masking(x, mask_ratio, key):
    N, L, _ = x.shape
    len_keep = int(L * (1 - mask_ratio))
    noise = jax.random.uniform(key, (N, L))
    ids_shuffle = jnp.argsort(noise, axis=1)
    ids_restore = jnp.argsort(ids_shuffle, axis=1)
    ids_keep = ids_shuffle[:, :len_keep]
    x_masked = jnp.take_along_axis(x, ids_keep[:, :, None], axis=1)
    mask = jnp.ones((N, L), jnp.float32).at[:, :len_keep].set(0.0)
    mask = jnp.take_along_axis(mask, ids_restore, axis=1)
    return x_masked, mask, ids_restore


def forward_encoder(params, x1, x_next, mask_ratio, key):
    x1 = patch_embed(params, x1)
    x1 = x1 + params["pos_embed"][:, 1:, :] + params["temp_embed"][:, 0, :]
    xs = []
    for ts in range(TIME_STAMP - 1):
        xt = patch_embed(params, x_next[:, ts])
        xt = xt + params["pos_embed"][:, 1:, :] + params["temp_embed"][:, ts + 1, :]
        xs.append(xt)
    # TODO(synk): masking_handle is not defined in the reference snippet; for
    # time_stamp == 1 with mask_method='random' it reduces to random_masking.
    x_masked, mask1, ids_restore1 = random_masking(x1, mask_ratio, key)
    x1len = x_masked.shape[1]
    for i, xt in enumerate(xs):
        xt_masked, _, _ = random_masking(xt, mask_ratio, jax.random.fold_in(key, i + 1))
        x_masked = jnp.concatenate([x_masked, xt_masked], axis=1)

    cls_tok = params["cls_token"] + params["pos_embed"][:, :1, :]
    cls_tokens = jnp.broadcast_to(cls_tok, (x_masked.shape[0], 1, EMBED_DIM))
    x = jnp.concatenate([cls_tokens, x_masked], axis=1)               # (B, T, D)
    B, T, D = x.shape
    amask = _batch_attn_mask(B, T)
    hmask = _head_masks(NUM_HEADS, D)
    # One fused pallas_call (whole batch, one grid step): DEPTH blocks + norm +
    # compressor(ReLU) + decompressor + decoder_embed.  TODO(synk): fusing
    # decomp/dec_embed here assumes TIME_STAMP == 1 (latent[:, :1+x1len] is the
    # whole latent for this config).
    y = pallas_encoder(x.reshape(B * T, D), amask, hmask, params)
    return y.reshape(B, T, DEC_DIM), mask1, ids_restore1, x1len


def forward_decoder_and_loss(params, x, ids_restore, target, mask):
    B, T, _ = x.shape
    L = ids_restore.shape[1]
    out_dim = params["pred_w"].shape[1]
    # token-restore glue stays in XLA (data-dependent gather).
    # TODO(synk): could be fused via PrefetchScalarGridSpec (ids_restore in SMEM).
    mask_tokens = jnp.broadcast_to(params["mask_token"], (B, L + 1 - T, DEC_DIM))
    x_ = jnp.concatenate([x[:, 1:, :], mask_tokens], axis=1)
    x_ = jnp.take_along_axis(x_, ids_restore[:, :, None], axis=1)
    x = jnp.concatenate([x[:, :1, :], x_], axis=1)
    x = x + params["dec_pos_embed"]                                   # (B, L+1, Ddec)

    Td = L + 1
    BT = B * Td
    amask = _batch_attn_mask(B, Td)
    hmask = _head_masks(DEC_HEADS, DEC_DIM)
    # pad target/mask with a zero cls row so the MAE loss can be fused in-kernel
    tgt_pad = jnp.concatenate([jnp.zeros((B, 1, target.shape[-1]), target.dtype), target], axis=1)
    lmask = jnp.concatenate([jnp.zeros((B, 1), mask.dtype), mask], axis=1)
    # One fused pallas_call: DEC_DEPTH blocks + decoder norm + pred head + loss.
    # TODO(synk): reference calls self.decoder_pred which is never defined in
    # __init__ (only decoder_pred_occ/free); using the single 'mlp' Linear head.
    pred_full, loss = pallas_decoder(
        x.reshape(BT, DEC_DIM), amask, hmask,
        tgt_pad.reshape(BT, -1), lmask.reshape(BT, 1), params)
    pred = pred_full.reshape(B, Td, out_dim)[:, 1:, :]
    return pred, loss[0, 0]


def forward(params, imgs1, imgs2, key, mask_ratio=0.75):
    dec_tokens, mask1, ids_restore, size1 = forward_encoder(params, imgs1, imgs2, mask_ratio, key)
    latent_to_decode = dec_tokens[:, :1 + size1, :]     # identity for TIME_STAMP == 1
    target = patchify(imgs1)                            # norm_pix_loss=False
    pred, loss = forward_decoder_and_loss(params, latent_to_decode, ids_restore, target, mask1)
    result = unpatchify(pred)
    return loss, pred, mask1, result


# ---------------------------------- main --------------------------------------
if __name__ == "__main__":
    root = jax.random.PRNGKey(0)
    k_params, k_img1, k_img2, k_mask = jax.random.split(root, 4)
    params = pack_params(init_params(k_params))
    imgs1 = jax.random.normal(k_img1, (2, IN_CHANS, IMG_SIZE, IMG_SIZE), jnp.float32)
    imgs2 = jax.random.normal(
        k_img2, (2, max(TIME_STAMP - 1, 0), IN_CHANS, IMG_SIZE, IMG_SIZE), jnp.float32)

    fwd = jax.jit(partial(forward, mask_ratio=MASK_RATIO))
    loss, pred, mask1, result = fwd(params, imgs1, imgs2, k_mask)
    jax.block_until_ready((loss, pred, mask1, result))

    assert pred.shape == (2, NUM_PATCHES, PATCH_SIZE ** 2 * IN_CHANS)
    assert mask1.shape == (2, NUM_PATCHES)
    assert result.shape == (2, IN_CHANS, IMG_SIZE, IMG_SIZE)
    assert loss.shape == ()
    assert bool(jnp.isfinite(loss))
    print("KERNEL_OK")
</pallas_src>

<mosaic_0001>
module attributes {stable_mosaic.version = 11 : i64} {
  func.func @_encoder_kernel(%arg0: memref<10x32xf32, #tpu.memory_space<vmem>>, %arg1: memref<10x10xf32, #tpu.memory_space<vmem>>, %arg2: memref<4x1x32xbf16, #tpu.memory_space<vmem>>, %arg3: memref<2x32x32xbf16, #tpu.memory_space<vmem>>, %arg4: memref<2x32x32xbf16, #tpu.memory_space<vmem>>, %arg5: memref<2x32x32xbf16, #tpu.memory_space<vmem>>, %arg6: memref<2x1x32xf32, #tpu.memory_space<vmem>>, %arg7: memref<2x1x32xf32, #tpu.memory_space<vmem>>, %arg8: memref<2x1x32xf32, #tpu.memory_space<vmem>>, %arg9: memref<2x32x32xbf16, #tpu.memory_space<vmem>>, %arg10: memref<2x1x32xf32, #tpu.memory_space<vmem>>, %arg11: memref<2x1x32xf32, #tpu.memory_space<vmem>>, %arg12: memref<2x1x32xf32, #tpu.memory_space<vmem>>, %arg13: memref<2x1x32xf32, #tpu.memory_space<vmem>>, %arg14: memref<2x1x32xf32, #tpu.memory_space<vmem>>, %arg15: memref<2x32x128xbf16, #tpu.memory_space<vmem>>, %arg16: memref<2x1x128xf32, #tpu.memory_space<vmem>>, %arg17: memref<2x128x32xbf16, #tpu.memory_space<vmem>>, %arg18: memref<2x1x32xf32, #tpu.memory_space<vmem>>, %arg19: memref<1x32xf32, #tpu.memory_space<vmem>>, %arg20: memref<1x32xf32, #tpu.memory_space<vmem>>, %arg21: memref<32x16xbf16, #tpu.memory_space<vmem>>, %arg22: memref<1x16xf32, #tpu.memory_space<vmem>>, %arg23: memref<16x32xbf16, #tpu.memory_space<vmem>>, %arg24: memref<1x32xf32, #tpu.memory_space<vmem>>, %arg25: memref<32x32xbf16, #tpu.memory_space<vmem>>, %arg26: memref<1x32xf32, #tpu.memory_space<vmem>>, %arg27: memref<10x32xf32, #tpu.memory_space<vmem>>) attributes {dimension_semantics = [], scalar_prefetch = 0 : i64, scratch_operands = 0 : i64, tpu.core_type = #tpu.core_type<tc>} {
    %c0 = arith.constant 0 : index
    %c0_0 = arith.constant 0 : index
    %0 = vector.load %arg0[%c0, %c0_0] : memref<10x32xf32, #tpu.memory_space<vmem>>, vector<10x32xf32>
    %c0_1 = arith.constant 0 : index
    %c0_2 = arith.constant 0 : index
    %1 = vector.load %arg1[%c0_1, %c0_2] : memref<10x10xf32, #tpu.memory_space<vmem>>, vector<10x10xf32>
    %c0_3 = arith.constant 0 : index
    %c0_4 = arith.constant 0 : index
    %c0_5 = arith.constant 0 : index
    %2 = vector.load %arg11[%c0_3, %c0_4, %c0_5] : memref<2x1x32xf32, #tpu.memory_space<vmem>>, vector<1x1x32xf32>
    %3 = vector.shape_cast %2 : vector<1x1x32xf32> to vector<1x32xf32>
    %c0_6 = arith.constant 0 : index
    %c0_7 = arith.constant 0 : index
    %c0_8 = arith.constant 0 : index
    %4 = vector.load %arg12[%c0_6, %c0_7, %c0_8] : memref<2x1x32xf32, #tpu.memory_space<vmem>>, vector<1x1x32xf32>
    %5 = vector.shape_cast %4 : vector<1x1x32xf32> to vector<1x32xf32>
    %cst = arith.constant dense<0.000000e+00> : vector<10xf32>
    %6 = vector.multi_reduction <add>, %0, %cst [1] : vector<10x32xf32> to vector<10xf32>
    %7 = vector.shape_cast %6 : vector<10xf32> to vector<10x1xf32>
    %cst_9 = arith.constant 3.200000e+01 : f32
    %8 = vector.broadcast %cst_9 : f32 to vector<10x1xf32>
    %9 = arith.divf %7, %8 : vector<10x1xf32>
    %10 = vector.broadcast %9 : vector<10x1xf32> to vector<10x32xf32>
    %11 = arith.subf %0, %10 : vector<10x32xf32>
    %12 = arith.mulf %11, %11 : vector<10x32xf32>
    %cst_10 = arith.constant dense<0.000000e+00> : vector<10xf32>
    %13 = vector.multi_reduction <add>, %12, %cst_10 [1] : vector<10x32xf32> to vector<10xf32>
    %14 = vector.shape_cast %13 : vector<10xf32> to vector<10x1xf32>
    %cst_11 = arith.constant 3.200000e+01 : f32
    %15 = vector.broadcast %cst_11 : f32 to vector<10x1xf32>
    %16 = arith.divf %14, %15 : vector<10x1xf32>
    %cst_12 = arith.constant 9.99999974E-6 : f32
    %17 = vector.broadcast %cst_12 : f32 to vector<10x1xf32>
    %18 = arith.addf %16, %17 : vector<10x1xf32>
    %19 = math.rsqrt %18 : vector<10x1xf32>
    %20 = vector.broadcast %19 : vector<10x1xf32> to vector<10x32xf32>
    %21 = arith.mulf %11, %20 : vector<10x32xf32>
    %22 = vector.broadcast %3 : vector<1x32xf32> to vector<10x32xf32>
    %23 = arith.mulf %21, %22 : vector<10x32xf32>
    %24 = vector.broadcast %5 : vector<1x32xf32> to vector<10x32xf32>
    %25 = arith.addf %23, %24 : vector<10x32xf32>
    %26 = arith.truncf %25 : vector<10x32xf32> to vector<10x32xbf16>
    %c0_13 = arith.constant 0 : index
    %c0_14 = arith.constant 0 : index
    %c0_15 = arith.constant 0 : index
    %27 = vector.load %arg3[%c0_13, %c0_14, %c0_15] : memref<2x32x32xbf16, #tpu.memory_space<vmem>>, vector<1x32x32xbf16>
    %28 = vector.shape_cast %27 : vector<1x32x32xbf16> to vector<32x32xbf16>
    %cst_16 = arith.constant dense<0.000000e+00> : vector<10x32xf32>
    %29 = tpu.matmul %26, %28, %cst_16 {dimension_numbers = #tpu.dot_dimension_numbers<[1], [0], [0], [1], [0, 0, 1, 1], [], []>} : vector<10x32xbf16>, vector<32x32xbf16>, vector<10x32xf32> -> vector<10x32xf32>
    %c0_17 = arith.constant 0 : index
    %c0_18 = arith.constant 0 : index
    %c0_19 = arith.constant 0 : index
    %30 = vector.load %arg6[%c0_17, %c0_18, %c0_19] : memref<2x1x32xf32, #tpu.memory_space<vmem>>, vector<1x1x32xf32>
    %31 = vector.shape_cast %30 : vector<1x1x32xf32> to vector<1x32xf32>
    %32 = vector.broadcast %31 : vector<1x32xf32> to vector<10x32xf32>
    %33 = arith.addf %29, %32 : vector<10x32xf32>
    %c0_20 = arith.constant 0 : index
    %c0_21 = arith.constant 0 : index
    %c0_22 = arith.constant 0 : index
    %34 = vector.load %arg4[%c0_20, %c0_21, %c0_22] : memref<2x32x32xbf16, #tpu.memory_space<vmem>>, vector<1x32x32xbf16>
    %35 = vector.shape_cast %34 : vector<1x32x32xbf16> to vector<32x32xbf16>
    %cst_23 = arith.constant dense<0.000000e+00> : vector<10x32xf32>
    %36 = tpu.matmul %26, %35, %cst_23 {dimension_numbers = #tpu.dot_dimension_numbers<[1], [0], [0], [1], [0, 0, 1, 1], [], []>} : vector<10x32xbf16>, vector<32x32xbf16>, vector<10x32xf32> -> vector<10x32xf32>
    %c0_24 = arith.constant 0 : index
    %c0_25 = arith.constant 0 : index
    %c0_26 = arith.constant 0 : index
    %37 = vector.load %arg7[%c0_24, %c0_25, %c0_26] : memref<2x1x32xf32, #tpu.memory_space<vmem>>, vector<1x1x32xf32>
    %38 = vector.shape_cast %37 : vector<1x1x32xf32> to vector<1x32xf32>
    %39 = vector.broadcast %38 : vector<1x32xf32> to vector<10x32xf32>
    %40 = arith.addf %36, %39 : vector<10x32xf32>
    %c0_27 = arith.constant 0 : index
    %c0_28 = arith.constant 0 : index
    %c0_29 = arith.constant 0 : index
    %41 = vector.load %arg5[%c0_27, %c0_28, %c0_29] : memref<2x32x32xbf16, #tpu.memory_space<vmem>>, vector<1x32x32xbf16>
    %42 = vector.shape_cast %41 : vector<1x32x32xbf16> to vector<32x32xbf16>
    %cst_30 = arith.constant dense<0.000000e+00> : vector<10x32xf32>
    %43 = tpu.matmul %26, %42, %cst_30 {dimension_numbers = #tpu.dot_dimension_numbers<[1], [0], [0], [1], [0, 0, 1, 1], [], []>} : vector<10x32xbf16>, vector<32x32xbf16>, vector<10x32xf32> -> vector<10x32xf32>
    %c0_31 = arith.constant 0 : index
    %c0_32 = arith.constant 0 : index
    %c0_33 = arith.constant 0 : index
    %44 = vector.load %arg8[%c0_31, %c0_32, %c0_33] : memref<2x1x32xf32, #tpu.memory_space<vmem>>, vector<1x1x32xf32>
    %45 = vector.shape_cast %44 : vector<1x1x32xf32> to vector<1x32xf32>
    %46 = vector.broadcast %45 : vector<1x32xf32> to vector<10x32xf32>
    %47 = arith.addf %43, %46 : vector<10x32xf32>
    %48 = arith.truncf %33 : vector<10x32xf32> to vector<10x32xbf16>
    %49 = arith.truncf %40 : vector<10x32xf32> to vector<10x32xbf16>
    %50 = arith.truncf %47 : vector<10x32xf32> to vector<10x32xbf16>
    %cst_34 = arith.constant 0.000000e+00 : f32
    %51 = vector.broadcast %cst_34 : f32 to vector<10x32xf32>
    %c0_35 = arith.constant 0 : index
    %c0_36 = arith.constant 0 : index
    %c0_37 = arith.constant 0 : index
    %52 = vector.load %arg2[%c0_35, %c0_36, %c0_37] : memref<4x1x32xbf16, #tpu.memory_space<vmem>>, vector<1x1x32xbf16>
    %53 = vector.shape_cast %52 : vector<1x1x32xbf16> to vector<1x32xbf16>
    %54 = vector.broadcast %53 : vector<1x32xbf16> to vector<10x32xbf16>
    %55 = arith.mulf %48, %54 : vector<10x32xbf16>
    %cst_38 = arith.constant dense<0.000000e+00> : vector<10x10xf32>
    %56 = tpu.matmul %55, %49, %cst_38 {dimension_numbers = #tpu.dot_dimension_numbers<[1], [1], [0], [0], [0, 0, 1, 0], [], []>} : vector<10x32xbf16>, vector<10x32xbf16>, vector<10x10xf32> -> vector<10x10xf32>
    %57 = arith.addf %56, %1 : vector<10x10xf32>
    %cst_39 = arith.constant dense<0xFF800000> : vector<10xf32>
    %58 = vector.multi_reduction <maximumf>, %57, %cst_39 [1] : vector<10x10xf32> to vector<10xf32>
    %59 = vector.shape_cast %58 : vector<10xf32> to vector<10x1xf32>
    %60 = vector.broadcast %59 : vector<10x1xf32> to vector<10x10xf32>
    %61 = arith.subf %57, %60 : vector<10x10xf32>
    %62 = math.exp %61 : vector<10x10xf32>
    %cst_40 = arith.constant dense<0.000000e+00> : vector<10xf32>
    %63 = vector.multi_reduction <add>, %62, %cst_40 [1] : vector<10x10xf32> to vector<10xf32>
    %64 = vector.shape_cast %63 : vector<10xf32> to vector<10x1xf32>
    %65 = tpu.reciprocal %64 {approx = true} : vector<10x1xf32> -> vector<10x1xf32>
    %66 = vector.broadcast %65 : vector<10x1xf32> to vector<10x10xf32>
    %67 = arith.mulf %62, %66 : vector<10x10xf32>
    %68 = arith.truncf %67 : vector<10x10xf32> to vector<10x10xbf16>
    %69 = vector.broadcast %53 : vector<1x32xbf16> to vector<10x32xbf16>
    %70 = arith.mulf %50, %69 : vector<10x32xbf16>
    %cst_41 = arith.constant dense<0.000000e+00> : vector<10x32xf32>
    %71 = tpu.matmul %68, %70, %cst_41 {dimension_numbers = #tpu.dot_dimension_numbers<[1], [0], [0], [1], [0, 0, 1, 1], [], []>} : vector<10x10xbf16>, vector<10x32xbf16>, vector<10x32xf32> -> vector<10x32xf32>
    %72 = arith.addf %51, %71 : vector<10x32xf32>
    %c1 = arith.constant 1 : index
    %c0_42 = arith.constant 0 : index
    %c0_43 = arith.constant 0 : index
    %73 = vector.load %arg2[%c1, %c0_42, %c0_43] : memref<4x1x32xbf16, #tpu.memory_space<vmem>>, vector<1x1x32xbf16>
    %74 = vector.shape_cast %73 : vector<1x1x32xbf16> to vector<1x32xbf16>
    %75 = vector.broadcast %74 : vector<1x32xbf16> to vector<10x32xbf16>
    %76 = arith.mulf %48, %75 : vector<10x32xbf16>
    %cst_44 = arith.constant dense<0.000000e+00> : vector<10x10xf32>
    %77 = tpu.matmul %76, %49, %cst_44 {dimension_numbers = #tpu.dot_dimension_numbers<[1], [1], [0], [0], [0, 0, 1, 0], [], []>} : vector<10x32xbf16>, vector<10x32xbf16>, vector<10x10xf32> -> vector<10x10xf32>
    %78 = arith.addf %77, %1 : vector<10x10xf32>
    %cst_45 = arith.constant dense<0xFF800000> : vector<10xf32>
    %79 = vector.multi_reduction <maximumf>, %78, %cst_45 [1] : vector<10x10xf32> to vector<10xf32>
    %80 = vector.shape_cast %79 : vector<10xf32> to vector<10x1xf32>
    %81 = vector.broadcast %80 : vector<10x1xf32> to vector<10x10xf32>
    %82 = arith.subf %78, %81 : vector<10x10xf32>
    %83 = math.exp %82 : vector<10x10xf32>
    %cst_46 = arith.constant dense<0.000000e+00> : vector<10xf32>
    %84 = vector.multi_reduction <add>, %83, %cst_46 [1] : vector<10x10xf32> to vector<10xf32>
    %85 = vector.shape_cast %84 : vector<10xf32> to vector<10x1xf32>
    %86 = tpu.reciprocal %85 {approx = true} : vector<10x1xf32> -> vector<10x1xf32>
    %87 = vector.broadcast %86 : vector<10x1xf32> to vector<10x10xf32>
    %88 = arith.mulf %83, %87 : vector<10x10xf32>
    %89 = arith.truncf %88 : vector<10x10xf32> to vector<10x10xbf16>
    %90 = vector.broadcast %74 : vector<1x32xbf16> to vector<10x32xbf16>
    %91 = arith.mulf %50, %90 : vector<10x32xbf16>
    %cst_47 = arith.constant dense<0.000000e+00> : vector<10x32xf32>
    %92 = tpu.matmul %89, %91, %cst_47 {dimension_numbers = #tpu.dot_dimension_numbers<[1], [0], [0], [1], [0, 0, 1, 1], [], []>} : vector<10x10xbf16>, vector<10x32xbf16>, vector<10x32xf32> -> vector<10x32xf32>
    %93 = arith.addf %72, %92 : vector<10x32xf32>
    %c2 = arith.constant 2 : index
    %c0_48 = arith.constant 0 : index
    %c0_49 = arith.constant 0 : index
    %94 = vector.load %arg2[%c2, %c0_48, %c0_49] : memref<4x1x32xbf16, #tpu.memory_space<vmem>>, vector<1x1x32xbf16>
    %95 = vector.shape_cast %94 : vector<1x1x32xbf16> to vector<1x32xbf16>
    %96 = vector.broadcast %95 : vector<1x32xbf16> to vector<10x32xbf16>
    %97 = arith.mulf %48, %96 : vector<10x32xbf16>
    %cst_50 = arith.constant dense<0.000000e+00> : vector<10x10xf32>
    %98 = tpu.matmul %97, %49, %cst_50 {dimension_numbers = #tpu.dot_dimension_numbers<[1], [1], [0], [0], [0, 0, 1, 0], [], []>} : vector<10x32xbf16>, vector<10x32xbf16>, vector<10x10xf32> -> vector<10x10xf32>
    %99 = arith.addf %98, %1 : vector<10x10xf32>
    %cst_51 = arith.constant dense<0xFF800000> : vector<10xf32>
    %100 = vector.multi_reduction <maximumf>, %99, %cst_51 [1] : vector<10x10xf32> to vector<10xf32>
    %101 = vector.shape_cast %100 : vector<10xf32> to vector<10x1xf32>
    %102 = vector.broadcast %101 : vector<10x1xf32> to vector<10x10xf32>
    %103 = arith.subf %99, %102 : vector<10x10xf32>
    %104 = math.exp %103 : vector<10x10xf32>
    %cst_52 = arith.constant dense<0.000000e+00> : vector<10xf32>
    %105 = vector.multi_reduction <add>, %104, %cst_52 [1] : vector<10x10xf32> to vector<10xf32>
    %106 = vector.shape_cast %105 : vector<10xf32> to vector<10x1xf32>
    %107 = tpu.reciprocal %106 {approx = true} : vector<10x1xf32> -> vector<10x1xf32>
    %108 = vector.broadcast %107 : vector<10x1xf32> to vector<10x10xf32>
    %109 = arith.mulf %104, %108 : vector<10x10xf32>
    %110 = arith.truncf %109 : vector<10x10xf32> to vector<10x10xbf16>
    %111 = vector.broadcast %95 : vector<1x32xbf16> to vector<10x32xbf16>
    %112 = arith.mulf %50, %111 : vector<10x32xbf16>
    %cst_53 = arith.constant dense<0.000000e+00> : vector<10x32xf32>
    %113 = tpu.matmul %110, %112, %cst_53 {dimension_numbers = #tpu.dot_dimension_numbers<[1], [0], [0], [1], [0, 0, 1, 1], [], []>} : vector<10x10xbf16>, vector<10x32xbf16>, vector<10x32xf32> -> vector<10x32xf32>
    %114 = arith.addf %93, %113 : vector<10x32xf32>
    %c3 = arith.constant 3 : index
    %c0_54 = arith.constant 0 : index
    %c0_55 = arith.constant 0 : index
    %115 = vector.load %arg2[%c3, %c0_54, %c0_55] : memref<4x1x32xbf16, #tpu.memory_space<vmem>>, vector<1x1x32xbf16>
    %116 = vector.shape_cast %115 : vector<1x1x32xbf16> to vector<1x32xbf16>
    %117 = vector.broadcast %116 : vector<1x32xbf16> to vector<10x32xbf16>
    %118 = arith.mulf %48, %117 : vector<10x32xbf16>
    %cst_56 = arith.constant dense<0.000000e+00> : vector<10x10xf32>
    %119 = tpu.matmul %118, %49, %cst_56 {dimension_numbers = #tpu.dot_dimension_numbers<[1], [1], [0], [0], [0, 0, 1, 0], [], []>} : vector<10x32xbf16>, vector<10x32xbf16>, vector<10x10xf32> -> vector<10x10xf32>
    %120 = arith.addf %119, %1 : vector<10x10xf32>
    %cst_57 = arith.constant dense<0xFF800000> : vector<10xf32>
    %121 = vector.multi_reduction <maximumf>, %120, %cst_57 [1] : vector<10x10xf32> to vector<10xf32>
    %122 = vector.shape_cast %121 : vector<10xf32> to vector<10x1xf32>
    %123 = vector.broadcast %122 : vector<10x1xf32> to vector<10x10xf32>
    %124 = arith.subf %120, %123 : vector<10x10xf32>
    %125 = math.exp %124 : vector<10x10xf32>
    %cst_58 = arith.constant dense<0.000000e+00> : vector<10xf32>
    %126 = vector.multi_reduction <add>, %125, %cst_58 [1] : vector<10x10xf32> to vector<10xf32>
    %127 = vector.shape_cast %126 : vector<10xf32> to vector<10x1xf32>
    %128 = tpu.reciprocal %127 {approx = true} : vector<10x1xf32> -> vector<10x1xf32>
    %129 = vector.broadcast %128 : vector<10x1xf32> to vector<10x10xf32>
    %130 = arith.mulf %125, %129 : vector<10x10xf32>
    %131 = arith.truncf %130 : vector<10x10xf32> to vector<10x10xbf16>
    %132 = vector.broadcast %116 : vector<1x32xbf16> to vector<10x32xbf16>
    %133 = arith.mulf %50, %132 : vector<10x32xbf16>
    %cst_59 = arith.constant dense<0.000000e+00> : vector<10x32xf32>
    %134 = tpu.matmul %131, %133, %cst_59 {dimension_numbers = #tpu.dot_dimension_numbers<[1], [0], [0], [1], [0, 0, 1, 1], [], []>} : vector<10x10xbf16>, vector<10x32xbf16>, vector<10x32xf32> -> vector<10x32xf32>
    %135 = arith.addf %114, %134 : vector<10x32xf32>
    %136 = arith.truncf %135 : vector<10x32xf32> to vector<10x32xbf16>
    %c0_60 = arith.constant 0 : index
    %c0_61 = arith.constant 0 : index
    %c0_62 = arith.constant 0 : index
    %137 = vector.load %arg9[%c0_60, %c0_61, %c0_62] : memref<2x32x32xbf16, #tpu.memory_space<vmem>>, vector<1x32x32xbf16>
    %138 = vector.shape_cast %137 : vector<1x32x32xbf16> to vector<32x32xbf16>
    %cst_63 = arith.constant dense<0.000000e+00> : vector<10x32xf32>
    %139 = tpu.matmul %136, %138, %cst_63 {dimension_numbers = #tpu.dot_dimension_numbers<[1], [0], [0], [1], [0, 0, 1, 1], [], []>} : vector<10x32xbf16>, vector<32x32xbf16>, vector<10x32xf32> -> vector<10x32xf32>
    %c0_64 = arith.constant 0 : index
    %c0_65 = arith.constant 0 : index
    %c0_66 = arith.constant 0 : index
    %140 = vector.load %arg10[%c0_64, %c0_65, %c0_66] : memref<2x1x32xf32, #tpu.memory_space<vmem>>, vector<1x1x32xf32>
    %141 = vector.shape_cast %140 : vector<1x1x32xf32> to vector<1x32xf32>
    %142 = vector.broadcast %141 : vector<1x32xf32> to vector<10x32xf32>
    %143 = arith.addf %139, %142 : vector<10x32xf32>
    %144 = arith.addf %0, %143 : vector<10x32xf32>
    %c0_67 = arith.constant 0 : index
    %c0_68 = arith.constant 0 : index
    %c0_69 = arith.constant 0 : index
    %145 = vector.load %arg13[%c0_67, %c0_68, %c0_69] : memref<2x1x32xf32, #tpu.memory_space<vmem>>, vector<1x1x32xf32>
    %146 = vector.shape_cast %145 : vector<1x1x32xf32> to vector<1x32xf32>
    %c0_70 = arith.constant 0 : index
    %c0_71 = arith.constant 0 : index
    %c0_72 = arith.constant 0 : index
    %147 = vector.load %arg14[%c0_70, %c0_71, %c0_72] : memref<2x1x32xf32, #tpu.memory_space<vmem>>, vector<1x1x32xf32>
    %148 = vector.shape_cast %147 : vector<1x1x32xf32> to vector<1x32xf32>
    %cst_73 = arith.constant dense<0.000000e+00> : vector<10xf32>
    %149 = vector.multi_reduction <add>, %144, %cst_73 [1] : vector<10x32xf32> to vector<10xf32>
    %150 = vector.shape_cast %149 : vector<10xf32> to vector<10x1xf32>
    %cst_74 = arith.constant 3.200000e+01 : f32
    %151 = vector.broadcast %cst_74 : f32 to vector<10x1xf32>
    %152 = arith.divf %150, %151 : vector<10x1xf32>
    %153 = vector.broadcast %152 : vector<10x1xf32> to vector<10x32xf32>
    %154 = arith.subf %144, %153 : vector<10x32xf32>
    %155 = arith.mulf %154, %154 : vector<10x32xf32>
    %cst_75 = arith.constant dense<0.000000e+00> : vector<10xf32>
    %156 = vector.multi_reduction <add>, %155, %cst_75 [1] : vector<10x32xf32> to vector<10xf32>
    %157 = vector.shape_cast %156 : vector<10xf32> to vector<10x1xf32>
    %cst_76 = arith.constant 3.200000e+01 : f32
    %158 = vector.broadcast %cst_76 : f32 to vector<10x1xf32>
    %159 = arith.divf %157, %158 : vector<10x1xf32>
    %cst_77 = arith.constant 9.99999974E-6 : f32
    %160 = vector.broadcast %cst_77 : f32 to vector<10x1xf32>
    %161 = arith.addf %159, %160 : vector<10x1xf32>
    %162 = math.rsqrt %161 : vector<10x1xf32>
    %163 = vector.broadcast %162 : vector<10x1xf32> to vector<10x32xf32>
    %164 = arith.mulf %154, %163 : vector<10x32xf32>
    %165 = vector.broadcast %146 : vector<1x32xf32> to vector<10x32xf32>
    %166 = arith.mulf %164, %165 : vector<10x32xf32>
    %167 = vector.broadcast %148 : vector<1x32xf32> to vector<10x32xf32>
    %168 = arith.addf %166, %167 : vector<10x32xf32>
    %169 = arith.truncf %168 : vector<10x32xf32> to vector<10x32xbf16>
    %c0_78 = arith.constant 0 : index
    %c0_79 = arith.constant 0 : index
    %c0_80 = arith.constant 0 : index
    %170 = vector.load %arg15[%c0_78, %c0_79, %c0_80] : memref<2x32x128xbf16, #tpu.memory_space<vmem>>, vector<1x32x128xbf16>
    %171 = vector.shape_cast %170 : vector<1x32x128xbf16> to vector<32x128xbf16>
    %cst_81 = arith.constant dense<0.000000e+00> : vector<10x128xf32>
    %172 = tpu.matmul %169, %171, %cst_81 {dimension_numbers = #tpu.dot_dimension_numbers<[1], [0], [0], [1], [0, 0, 1, 1], [], []>} : vector<10x32xbf16>, vector<32x128xbf16>, vector<10x128xf32> -> vector<10x128xf32>
    %c0_82 = arith.constant 0 : index
    %c0_83 = arith.constant 0 : index
    %c0_84 = arith.constant 0 : index
    %173 = vector.load %arg16[%c0_82, %c0_83, %c0_84] : memref<2x1x128xf32, #tpu.memory_space<vmem>>, vector<1x1x128xf32>
    %174 = vector.shape_cast %173 : vector<1x1x128xf32> to vector<1x128xf32>
    %175 = vector.broadcast %174 : vector<1x128xf32> to vector<10x128xf32>
    %176 = arith.addf %172, %175 : vector<10x128xf32>
    %cst_85 = arith.constant 5.000000e-01 : f32
    %177 = vector.broadcast %cst_85 : f32 to vector<10x128xf32>
    %178 = arith.mulf %177, %176 : vector<10x128xf32>
    %cst_86 = arith.constant 0.707106769 : f32
    %179 = vector.broadcast %cst_86 : f32 to vector<10x128xf32>
    %180 = arith.mulf %176, %179 : vector<10x128xf32>
    %181 = math.absf %180 : vector<10x128xf32>
    %cst_87 = arith.constant 0.327591091 : f32
    %182 = vector.broadcast %cst_87 : f32 to vector<10x128xf32>
    %183 = arith.mulf %182, %181 : vector<10x128xf32>
    %cst_88 = arith.constant 1.000000e+00 : f32
    %184 = vector.broadcast %cst_88 : f32 to vector<10x128xf32>
    %185 = arith.addf %184, %183 : vector<10x128xf32>
    %186 = tpu.reciprocal %185 {approx = true} : vector<10x128xf32> -> vector<10x128xf32>
    %cst_89 = arith.constant 1.06140542 : f32
    %187 = vector.broadcast %cst_89 : f32 to vector<10x128xf32>
    %188 = arith.mulf %187, %186 : vector<10x128xf32>
    %cst_90 = arith.constant -1.45315206 : f32
    %189 = vector.broadcast %cst_90 : f32 to vector<10x128xf32>
    %190 = arith.addf %188, %189 : vector<10x128xf32>
    %191 = arith.mulf %190, %186 : vector<10x128xf32>
    %cst_91 = arith.constant 1.42141378 : f32
    %192 = vector.broadcast %cst_91 : f32 to vector<10x128xf32>
    %193 = arith.addf %191, %192 : vector<10x128xf32>
    %194 = arith.mulf %193, %186 : vector<10x128xf32>
    %cst_92 = arith.constant -0.284496725 : f32
    %195 = vector.broadcast %cst_92 : f32 to vector<10x128xf32>
    %196 = arith.addf %194, %195 : vector<10x128xf32>
    %197 = arith.mulf %196, %186 : vector<10x128xf32>
    %cst_93 = arith.constant 0.254829586 : f32
    %198 = vector.broadcast %cst_93 : f32 to vector<10x128xf32>
    %199 = arith.addf %197, %198 : vector<10x128xf32>
    %200 = arith.mulf %199, %186 : vector<10x128xf32>
    %cst_94 = arith.constant 0.000000e+00 : f32
    %201 = vector.broadcast %cst_94 : f32 to vector<10x128xf32>
    %202 = arith.subf %201, %181 : vector<10x128xf32>
    %203 = arith.mulf %202, %181 : vector<10x128xf32>
    %204 = math.exp %203 : vector<10x128xf32>
    %205 = arith.mulf %200, %204 : vector<10x128xf32>
    %cst_95 = arith.constant 1.000000e+00 : f32
    %206 = vector.broadcast %cst_95 : f32 to vector<10x128xf32>
    %207 = arith.subf %206, %205 : vector<10x128xf32>
    %cst_96 = arith.constant 0.000000e+00 : f32
    %208 = vector.broadcast %cst_96 : f32 to vector<10x128xf32>
    %209 = arith.cmpf olt, %180, %208 : vector<10x128xf32>
    %cst_97 = arith.constant 0.000000e+00 : f32
    %210 = vector.broadcast %cst_97 : f32 to vector<10x128xf32>
    %211 = arith.subf %210, %207 : vector<10x128xf32>
    %212 = arith.select %209, %211, %207 : vector<10x128xi1>, vector<10x128xf32>
    %cst_98 = arith.constant 1.000000e+00 : f32
    %213 = vector.broadcast %cst_98 : f32 to vector<10x128xf32>
    %214 = arith.addf %213, %212 : vector<10x128xf32>
    %215 = arith.mulf %178, %214 : vector<10x128xf32>
    %216 = arith.truncf %215 : vector<10x128xf32> to vector<10x128xbf16>
    %c0_99 = arith.constant 0 : index
    %c0_100 = arith.constant 0 : index
    %c0_101 = arith.constant 0 : index
    %217 = vector.load %arg17[%c0_99, %c0_100, %c0_101] : memref<2x128x32xbf16, #tpu.memory_space<vmem>>, vector<1x128x32xbf16>
    %218 = vector.shape_cast %217 : vector<1x128x32xbf16> to vector<128x32xbf16>
    %cst_102 = arith.constant dense<0.000000e+00> : vector<10x32xf32>
    %219 = tpu.matmul %216, %218, %cst_102 {dimension_numbers = #tpu.dot_dimension_numbers<[1], [0], [0], [1], [0, 0, 1, 1], [], []>} : vector<10x128xbf16>, vector<128x32xbf16>, vector<10x32xf32> -> vector<10x32xf32>
    %c0_103 = arith.constant 0 : index
    %c0_104 = arith.constant 0 : index
    %c0_105 = arith.constant 0 : index
    %220 = vector.load %arg18[%c0_103, %c0_104, %c0_105] : memref<2x1x32xf32, #tpu.memory_space<vmem>>, vector<1x1x32xf32>
    %221 = vector.shape_cast %220 : vector<1x1x32xf32> to vector<1x32xf32>
    %222 = vector.broadcast %221 : vector<1x32xf32> to vector<10x32xf32>
    %223 = arith.addf %219, %222 : vector<10x32xf32>
    %224 = arith.addf %144, %223 : vector<10x32xf32>
    %c1_106 = arith.constant 1 : index
    %c0_107 = arith.constant 0 : index
    %c0_108 = arith.constant 0 : index
    %225 = vector.load %arg11[%c1_106, %c0_107, %c0_108] : memref<2x1x32xf32, #tpu.memory_space<vmem>>, vector<1x1x32xf32>
    %226 = vector.shape_cast %225 : vector<1x1x32xf32> to vector<1x32xf32>
    %c1_109 = arith.constant 1 : index
    %c0_110 = arith.constant 0 : index
    %c0_111 = arith.constant 0 : index
    %227 = vector.load %arg12[%c1_109, %c0_110, %c0_111] : memref<2x1x32xf32, #tpu.memory_space<vmem>>, vector<1x1x32xf32>
    %228 = vector.shape_cast %227 : vector<1x1x32xf32> to vector<1x32xf32>
    %cst_112 = arith.constant dense<0.000000e+00> : vector<10xf32>
    %229 = vector.multi_reduction <add>, %224, %cst_112 [1] : vector<10x32xf32> to vector<10xf32>
    %230 = vector.shape_cast %229 : vector<10xf32> to vector<10x1xf32>
    %cst_113 = arith.constant 3.200000e+01 : f32
    %231 = vector.broadcast %cst_113 : f32 to vector<10x1xf32>
    %232 = arith.divf %230, %231 : vector<10x1xf32>
    %233 = vector.broadcast %232 : vector<10x1xf32> to vector<10x32xf32>
    %234 = arith.subf %224, %233 : vector<10x32xf32>
    %235 = arith.mulf %234, %234 : vector<10x32xf32>
    %cst_114 = arith.constant dense<0.000000e+00> : vector<10xf32>
    %236 = vector.multi_reduction <add>, %235, %cst_114 [1] : vector<10x32xf32> to vector<10xf32>
    %237 = vector.shape_cast %236 : vector<10xf32> to vector<10x1xf32>
    %cst_115 = arith.constant 3.200000e+01 : f32
    %238 = vector.broadcast %cst_115 : f32 to vector<10x1xf32>
    %239 = arith.divf %237, %238 : vector<10x1xf32>
    %cst_116 = arith.constant 9.99999974E-6 : f32
    %240 = vector.broadcast %cst_116 : f32 to vector<10x1xf32>
    %241 = arith.addf %239, %240 : vector<10x1xf32>
    %242 = math.rsqrt %241 : vector<10x1xf32>
    %243 = vector.broadcast %242 : vector<10x1xf32> to vector<10x32xf32>
    %244 = arith.mulf %234, %243 : vector<10x32xf32>
    %245 = vector.broadcast %226 : vector<1x32xf32> to vector<10x32xf32>
    %246 = arith.mulf %244, %245 : vector<10x32xf32>
    %247 = vector.broadcast %228 : vector<1x32xf32> to vector<10x32xf32>
    %248 = arith.addf %246, %247 : vector<10x32xf32>
    %249 = arith.truncf %248 : vector<10x32xf32> to vector<10x32xbf16>
    %c1_117 = arith.constant 1 : index
    %c0_118 = arith.constant 0 : index
    %c0_119 = arith.constant 0 : index
    %250 = vector.load %arg3[%c1_117, %c0_118, %c0_119] : memref<2x32x32xbf16, #tpu.memory_space<vmem>>, vector<1x32x32xbf16>
    %251 = vector.shape_cast %250 : vector<1x32x32xbf16> to vector<32x32xbf16>
    %cst_120 = arith.constant dense<0.000000e+00> : vector<10x32xf32>
    %252 = tpu.matmul %249, %251, %cst_120 {dimension_numbers = #tpu.dot_dimension_numbers<[1], [0], [0], [1], [0, 0, 1, 1], [], []>} : vector<10x32xbf16>, vector<32x32xbf16>, vector<10x32xf32> -> vector<10x32xf32>
    %c1_121 = arith.constant 1 : index
    %c0_122 = arith.constant 0 : index
    %c0_123 = arith.constant 0 : index
    %253 = vector.load %arg6[%c1_121, %c0_122, %c0_123] : memref<2x1x32xf32, #tpu.memory_space<vmem>>, vector<1x1x32xf32>
    %254 = vector.shape_cast %253 : vector<1x1x32xf32> to vector<1x32xf32>
    %255 = vector.broadcast %254 : vector<1x32xf32> to vector<10x32xf32>
    %256 = arith.addf %252, %255 : vector<10x32xf32>
    %c1_124 = arith.constant 1 : index
    %c0_125 = arith.constant 0 : index
    %c0_126 = arith.constant 0 : index
    %257 = vector.load %arg4[%c1_124, %c0_125, %c0_126] : memref<2x32x32xbf16, #tpu.memory_space<vmem>>, vector<1x32x32xbf16>
    %258 = vector.shape_cast %257 : vector<1x32x32xbf16> to vector<32x32xbf16>
    %cst_127 = arith.constant dense<0.000000e+00> : vector<10x32xf32>
    %259 = tpu.matmul %249, %258, %cst_127 {dimension_numbers = #tpu.dot_dimension_numbers<[1], [0], [0], [1], [0, 0, 1, 1], [], []>} : vector<10x32xbf16>, vector<32x32xbf16>, vector<10x32xf32> -> vector<10x32xf32>
    %c1_128 = arith.constant 1 : index
    %c0_129 = arith.constant 0 : index
    %c0_130 = arith.constant 0 : index
    %260 = vector.load %arg7[%c1_128, %c0_129, %c0_130] : memref<2x1x32xf32, #tpu.memory_space<vmem>>, vector<1x1x32xf32>
    %261 = vector.shape_cast %260 : vector<1x1x32xf32> to vector<1x32xf32>
    %262 = vector.broadcast %261 : vector<1x32xf32> to vector<10x32xf32>
    %263 = arith.addf %259, %262 : vector<10x32xf32>
    %c1_131 = arith.constant 1 : index
    %c0_132 = arith.constant 0 : index
    %c0_133 = arith.constant 0 : index
    %264 = vector.load %arg5[%c1_131, %c0_132, %c0_133] : memref<2x32x32xbf16, #tpu.memory_space<vmem>>, vector<1x32x32xbf16>
    %265 = vector.shape_cast %264 : vector<1x32x32xbf16> to vector<32x32xbf16>
    %cst_134 = arith.constant dense<0.000000e+00> : vector<10x32xf32>
    %266 = tpu.matmul %249, %265, %cst_134 {dimension_numbers = #tpu.dot_dimension_numbers<[1], [0], [0], [1], [0, 0, 1, 1], [], []>} : vector<10x32xbf16>, vector<32x32xbf16>, vector<10x32xf32> -> vector<10x32xf32>
    %c1_135 = arith.constant 1 : index
    %c0_136 = arith.constant 0 : index
    %c0_137 = arith.constant 0 : index
    %267 = vector.load %arg8[%c1_135, %c0_136, %c0_137] : memref<2x1x32xf32, #tpu.memory_space<vmem>>, vector<1x1x32xf32>
    %268 = vector.shape_cast %267 : vector<1x1x32xf32> to vector<1x32xf32>
    %269 = vector.broadcast %268 : vector<1x32xf32> to vector<10x32xf32>
    %270 = arith.addf %266, %269 : vector<10x32xf32>
    %271 = arith.truncf %256 : vector<10x32xf32> to vector<10x32xbf16>
    %272 = arith.truncf %263 : vector<10x32xf32> to vector<10x32xbf16>
    %273 = arith.truncf %270 : vector<10x32xf32> to vector<10x32xbf16>
    %cst_138 = arith.constant 0.000000e+00 : f32
    %274 = vector.broadcast %cst_138 : f32 to vector<10x32xf32>
    %c0_139 = arith.constant 0 : index
    %c0_140 = arith.constant 0 : index
    %c0_141 = arith.constant 0 : index
    %275 = vector.load %arg2[%c0_139, %c0_140, %c0_141] : memref<4x1x32xbf16, #tpu.memory_space<vmem>>, vector<1x1x32xbf16>
    %276 = vector.shape_cast %275 : vector<1x1x32xbf16> to vector<1x32xbf16>
    %277 = vector.broadcast %276 : vector<1x32xbf16> to vector<10x32xbf16>
    %278 = arith.mulf %271, %277 : vector<10x32xbf16>
    %cst_142 = arith.constant dense<0.000000e+00> : vector<10x10xf32>
    %279 = tpu.matmul %278, %272, %cst_142 {dimension_numbers = #tpu.dot_dimension_numbers<[1], [1], [0], [0], [0, 0, 1, 0], [], []>} : vector<10x32xbf16>, vector<10x32xbf16>, vector<10x10xf32> -> vector<10x10xf32>
    %280 = arith.addf %279, %1 : vector<10x10xf32>
    %cst_143 = arith.constant dense<0xFF800000> : vector<10xf32>
    %281 = vector.multi_reduction <maximumf>, %280, %cst_143 [1] : vector<10x10xf32> to vector<10xf32>
    %282 = vector.shape_cast %281 : vector<10xf32> to vector<10x1xf32>
    %283 = vector.broadcast %282 : vector<10x1xf32> to vector<10x10xf32>
    %284 = arith.subf %280, %283 : vector<10x10xf32>
    %285 = math.exp %284 : vector<10x10xf32>
    %cst_144 = arith.constant dense<0.000000e+00> : vector<10xf32>
    %286 = vector.multi_reduction <add>, %285, %cst_144 [1] : vector<10x10xf32> to vector<10xf32>
    %287 = vector.shape_cast %286 : vector<10xf32> to vector<10x1xf32>
    %288 = tpu.reciprocal %287 {approx = true} : vector<10x1xf32> -> vector<10x1xf32>
    %289 = vector.broadcast %288 : vector<10x1xf32> to vector<10x10xf32>
    %290 = arith.mulf %285, %289 : vector<10x10xf32>
    %291 = arith.truncf %290 : vector<10x10xf32> to vector<10x10xbf16>
    %292 = vector.broadcast %276 : vector<1x32xbf16> to vector<10x32xbf16>
    %293 = arith.mulf %273, %292 : vector<10x32xbf16>
    %cst_145 = arith.constant dense<0.000000e+00> : vector<10x32xf32>
    %294 = tpu.matmul %291, %293, %cst_145 {dimension_numbers = #tpu.dot_dimension_numbers<[1], [0], [0], [1], [0, 0, 1, 1], [], []>} : vector<10x10xbf16>, vector<10x32xbf16>, vector<10x32xf32> -> vector<10x32xf32>
    %295 = arith.addf %274, %294 : vector<10x32xf32>
    %c1_146 = arith.constant 1 : index
    %c0_147 = arith.constant 0 : index
    %c0_148 = arith.constant 0 : index
    %296 = vector.load %arg2[%c1_146, %c0_147, %c0_148] : memref<4x1x32xbf16, #tpu.memory_space<vmem>>, vector<1x1x32xbf16>
    %297 = vector.shape_cast %296 : vector<1x1x32xbf16> to vector<1x32xbf16>
    %298 = vector.broadcast %297 : vector<1x32xbf16> to vector<10x32xbf16>
    %299 = arith.mulf %271, %298 : vector<10x32xbf16>
    %cst_149 = arith.constant dense<0.000000e+00> : vector<10x10xf32>
    %300 = tpu.matmul %299, %272, %cst_149 {dimension_numbers = #tpu.dot_dimension_numbers<[1], [1], [0], [0], [0, 0, 1, 0], [], []>} : vector<10x32xbf16>, vector<10x32xbf16>, vector<10x10xf32> -> vector<10x10xf32>
    %301 = arith.addf %300, %1 : vector<10x10xf32>
    %cst_150 = arith.constant dense<0xFF800000> : vector<10xf32>
    %302 = vector.multi_reduction <maximumf>, %301, %cst_150 [1] : vector<10x10xf32> to vector<10xf32>
    %303 = vector.shape_cast %302 : vector<10xf32> to vector<10x1xf32>
    %304 = vector.broadcast %303 : vector<10x1xf32> to vector<10x10xf32>
    %305 = arith.subf %301, %304 : vector<10x10xf32>
    %306 = math.exp %305 : vector<10x10xf32>
    %cst_151 = arith.constant dense<0.000000e+00> : vector<10xf32>
    %307 = vector.multi_reduction <add>, %306, %cst_151 [1] : vector<10x10xf32> to vector<10xf32>
    %308 = vector.shape_cast %307 : vector<10xf32> to vector<10x1xf32>
    %309 = tpu.reciprocal %308 {approx = true} : vector<10x1xf32> -> vector<10x1xf32>
    %310 = vector.broadcast %309 : vector<10x1xf32> to vector<10x10xf32>
    %311 = arith.mulf %306, %310 : vector<10x10xf32>
    %312 = arith.truncf %311 : vector<10x10xf32> to vector<10x10xbf16>
    %313 = vector.broadcast %297 : vector<1x32xbf16> to vector<10x32xbf16>
    %314 = arith.mulf %273, %313 : vector<10x32xbf16>
    %cst_152 = arith.constant dense<0.000000e+00> : vector<10x32xf32>
    %315 = tpu.matmul %312, %314, %cst_152 {dimension_numbers = #tpu.dot_dimension_numbers<[1], [0], [0], [1], [0, 0, 1, 1], [], []>} : vector<10x10xbf16>, vector<10x32xbf16>, vector<10x32xf32> -> vector<10x32xf32>
    %316 = arith.addf %295, %315 : vector<10x32xf32>
    %c2_153 = arith.constant 2 : index
    %c0_154 = arith.constant 0 : index
    %c0_155 = arith.constant 0 : index
    %317 = vector.load %arg2[%c2_153, %c0_154, %c0_155] : memref<4x1x32xbf16, #tpu.memory_space<vmem>>, vector<1x1x32xbf16>
    %318 = vector.shape_cast %317 : vector<1x1x32xbf16> to vector<1x32xbf16>
    %319 = vector.broadcast %318 : vector<1x32xbf16> to vector<10x32xbf16>
    %320 = arith.mulf %271, %319 : vector<10x32xbf16>
    %cst_156 = arith.constant dense<0.000000e+00> : vector<10x10xf32>
    %321 = tpu.matmul %320, %272, %cst_156 {dimension_numbers = #tpu.dot_dimension_numbers<[1], [1], [0], [0], [0, 0, 1, 0], [], []>} : vector<10x32xbf16>, vector<10x32xbf16>, vector<10x10xf32> -> vector<10x10xf32>
    %322 = arith.addf %321, %1 : vector<10x10xf32>
    %cst_157 = arith.constant dense<0xFF800000> : vector<10xf32>
    %323 = vector.multi_reduction <maximumf>, %322, %cst_157 [1] : vector<10x10xf32> to vector<10xf32>
    %324 = vector.shape_cast %323 : vector<10xf32> to vector<10x1xf32>
    %325 = vector.broadcast %324 : vector<10x1xf32> to vector<10x10xf32>
    %326 = arith.subf %322, %325 : vector<10x10xf32>
    %327 = math.exp %326 : vector<10x10xf32>
    %cst_158 = arith.constant dense<0.000000e+00> : vector<10xf32>
    %328 = vector.multi_reduction <add>, %327, %cst_158 [1] : vector<10x10xf32> to vector<10xf32>
    %329 = vector.shape_cast %328 : vector<10xf32> to vector<10x1xf32>
    %330 = tpu.reciprocal %329 {approx = true} : vector<10x1xf32> -> vector<10x1xf32>
    %331 = vector.broadcast %330 : vector<10x1xf32> to vector<10x10xf32>
    %332 = arith.mulf %327, %331 : vector<10x10xf32>
    %333 = arith.truncf %332 : vector<10x10xf32> to vector<10x10xbf16>
    %334 = vector.broadcast %318 : vector<1x32xbf16> to vector<10x32xbf16>
    %335 = arith.mulf %273, %334 : vector<10x32xbf16>
    %cst_159 = arith.constant dense<0.000000e+00> : vector<10x32xf32>
    %336 = tpu.matmul %333, %335, %cst_159 {dimension_numbers = #tpu.dot_dimension_numbers<[1], [0], [0], [1], [0, 0, 1, 1], [], []>} : vector<10x10xbf16>, vector<10x32xbf16>, vector<10x32xf32> -> vector<10x32xf32>
    %337 = arith.addf %316, %336 : vector<10x32xf32>
    %c3_160 = arith.constant 3 : index
    %c0_161 = arith.constant 0 : index
    %c0_162 = arith.constant 0 : index
    %338 = vector.load %arg2[%c3_160, %c0_161, %c0_162] : memref<4x1x32xbf16, #tpu.memory_space<vmem>>, vector<1x1x32xbf16>
    %339 = vector.shape_cast %338 : vector<1x1x32xbf16> to vector<1x32xbf16>
    %340 = vector.broadcast %339 : vector<1x32xbf16> to vector<10x32xbf16>
    %341 = arith.mulf %271, %340 : vector<10x32xbf16>
    %cst_163 = arith.constant dense<0.000000e+00> : vector<10x10xf32>
    %342 = tpu.matmul %341, %272, %cst_163 {dimension_numbers = #tpu.dot_dimension_numbers<[1], [1], [0], [0], [0, 0, 1, 0], [], []>} : vector<10x32xbf16>, vector<10x32xbf16>, vector<10x10xf32> -> vector<10x10xf32>
    %343 = arith.addf %342, %1 : vector<10x10xf32>
    %cst_164 = arith.constant dense<0xFF800000> : vector<10xf32>
    %344 = vector.multi_reduction <maximumf>, %343, %cst_164 [1] : vector<10x10xf32> to vector<10xf32>
    %345 = vector.shape_cast %344 : vector<10xf32> to vector<10x1xf32>
    %346 = vector.broadcast %345 : vector<10x1xf32> to vector<10x10xf32>
    %347 = arith.subf %343, %346 : vector<10x10xf32>
    %348 = math.exp %347 : vector<10x10xf32>
    %cst_165 = arith.constant dense<0.000000e+00> : vector<10xf32>
    %349 = vector.multi_reduction <add>, %348, %cst_165 [1] : vector<10x10xf32> to vector<10xf32>
    %350 = vector.shape_cast %349 : vector<10xf32> to vector<10x1xf32>
    %351 = tpu.reciprocal %350 {approx = true} : vector<10x1xf32> -> vector<10x1xf32>
    %352 = vector.broadcast %351 : vector<10x1xf32> to vector<10x10xf32>
    %353 = arith.mulf %348, %352 : vector<10x10xf32>
    %354 = arith.truncf %353 : vector<10x10xf32> to vector<10x10xbf16>
    %355 = vector.broadcast %339 : vector<1x32xbf16> to vector<10x32xbf16>
    %356 = arith.mulf %273, %355 : vector<10x32xbf16>
    %cst_166 = arith.constant dense<0.000000e+00> : vector<10x32xf32>
    %357 = tpu.matmul %354, %356, %cst_166 {dimension_numbers = #tpu.dot_dimension_numbers<[1], [0], [0], [1], [0, 0, 1, 1], [], []>} : vector<10x10xbf16>, vector<10x32xbf16>, vector<10x32xf32> -> vector<10x32xf32>
    %358 = arith.addf %337, %357 : vector<10x32xf32>
    %359 = arith.truncf %358 : vector<10x32xf32> to vector<10x32xbf16>
    %c1_167 = arith.constant 1 : index
    %c0_168 = arith.constant 0 : index
    %c0_169 = arith.constant 0 : index
    %360 = vector.load %arg9[%c1_167, %c0_168, %c0_169] : memref<2x32x32xbf16, #tpu.memory_space<vmem>>, vector<1x32x32xbf16>
    %361 = vector.shape_cast %360 : vector<1x32x32xbf16> to vector<32x32xbf16>
    %cst_170 = arith.constant dense<0.000000e+00> : vector<10x32xf32>
    %362 = tpu.matmul %359, %361, %cst_170 {dimension_numbers = #tpu.dot_dimension_numbers<[1], [0], [0], [1], [0, 0, 1, 1], [], []>} : vector<10x32xbf16>, vector<32x32xbf16>, vector<10x32xf32> -> vector<10x32xf32>
    %c1_171 = arith.constant 1 : index
    %c0_172 = arith.constant 0 : index
    %c0_173 = arith.constant 0 : index
    %363 = vector.load %arg10[%c1_171, %c0_172, %c0_173] : memref<2x1x32xf32, #tpu.memory_space<vmem>>, vector<1x1x32xf32>
    %364 = vector.shape_cast %363 : vector<1x1x32xf32> to vector<1x32xf32>
    %365 = vector.broadcast %364 : vector<1x32xf32> to vector<10x32xf32>
    %366 = arith.addf %362, %365 : vector<10x32xf32>
    %367 = arith.addf %224, %366 : vector<10x32xf32>
    %c1_174 = arith.constant 1 : index
    %c0_175 = arith.constant 0 : index
    %c0_176 = arith.constant 0 : index
    %368 = vector.load %arg13[%c1_174, %c0_175, %c0_176] : memref<2x1x32xf32, #tpu.memory_space<vmem>>, vector<1x1x32xf32>
    %369 = vector.shape_cast %368 : vector<1x1x32xf32> to vector<1x32xf32>
    %c1_177 = arith.constant 1 : index
    %c0_178 = arith.constant 0 : index
    %c0_179 = arith.constant 0 : index
    %370 = vector.load %arg14[%c1_177, %c0_178, %c0_179] : memref<2x1x32xf32, #tpu.memory_space<vmem>>, vector<1x1x32xf32>
    %371 = vector.shape_cast %370 : vector<1x1x32xf32> to vector<1x32xf32>
    %cst_180 = arith.constant dense<0.000000e+00> : vector<10xf32>
    %372 = vector.multi_reduction <add>, %367, %cst_180 [1] : vector<10x32xf32> to vector<10xf32>
    %373 = vector.shape_cast %372 : vector<10xf32> to vector<10x1xf32>
    %cst_181 = arith.constant 3.200000e+01 : f32
    %374 = vector.broadcast %cst_181 : f32 to vector<10x1xf32>
    %375 = arith.divf %373, %374 : vector<10x1xf32>
    %376 = vector.broadcast %375 : vector<10x1xf32> to vector<10x32xf32>
    %377 = arith.subf %367, %376 : vector<10x32xf32>
    %378 = arith.mulf %377, %377 : vector<10x32xf32>
    %cst_182 = arith.constant dense<0.000000e+00> : vector<10xf32>
    %379 = vector.multi_reduction <add>, %378, %cst_182 [1] : vector<10x32xf32> to vector<10xf32>
    %380 = vector.shape_cast %379 : vector<10xf32> to vector<10x1xf32>
    %cst_183 = arith.constant 3.200000e+01 : f32
    %381 = vector.broadcast %cst_183 : f32 to vector<10x1xf32>
    %382 = arith.divf %380, %381 : vector<10x1xf32>
    %cst_184 = arith.constant 9.99999974E-6 : f32
    %383 = vector.broadcast %cst_184 : f32 to vector<10x1xf32>
    %384 = arith.addf %382, %383 : vector<10x1xf32>
    %385 = math.rsqrt %384 : vector<10x1xf32>
    %386 = vector.broadcast %385 : vector<10x1xf32> to vector<10x32xf32>
    %387 = arith.mulf %377, %386 : vector<10x32xf32>
    %388 = vector.broadcast %369 : vector<1x32xf32> to vector<10x32xf32>
    %389 = arith.mulf %387, %388 : vector<10x32xf32>
    %390 = vector.broadcast %371 : vector<1x32xf32> to vector<10x32xf32>
    %391 = arith.addf %389, %390 : vector<10x32xf32>
    %392 = arith.truncf %391 : vector<10x32xf32> to vector<10x32xbf16>
    %c1_185 = arith.constant 1 : index
    %c0_186 = arith.constant 0 : index
    %c0_187 = arith.constant 0 : index
    %393 = vector.load %arg15[%c1_185, %c0_186, %c0_187] : memref<2x32x128xbf16, #tpu.memory_space<vmem>>, vector<1x32x128xbf16>
    %394 = vector.shape_cast %393 : vector<1x32x128xbf16> to vector<32x128xbf16>
    %cst_188 = arith.constant dense<0.000000e+00> : vector<10x128xf32>
    %395 = tpu.matmul %392, %394, %cst_188 {dimension_numbers = #tpu.dot_dimension_numbers<[1], [0], [0], [1], [0, 0, 1, 1], [], []>} : vector<10x32xbf16>, vector<32x128xbf16>, vector<10x128xf32> -> vector<10x128xf32>
    %c1_189 = arith.constant 1 : index
    %c0_190 = arith.constant 0 : index
    %c0_191 = arith.constant 0 : index
    %396 = vector.load %arg16[%c1_189, %c0_190, %c0_191] : memref<2x1x128xf32, #tpu.memory_space<vmem>>, vector<1x1x128xf32>
    %397 = vector.shape_cast %396 : vector<1x1x128xf32> to vector<1x128xf32>
    %398 = vector.broadcast %397 : vector<1x128xf32> to vector<10x128xf32>
    %399 = arith.addf %395, %398 : vector<10x128xf32>
    %cst_192 = arith.constant 5.000000e-01 : f32
    %400 = vector.broadcast %cst_192 : f32 to vector<10x128xf32>
    %401 = arith.mulf %400, %399 : vector<10x128xf32>
    %cst_193 = arith.constant 0.707106769 : f32
    %402 = vector.broadcast %cst_193 : f32 to vector<10x128xf32>
    %403 = arith.mulf %399, %402 : vector<10x128xf32>
    %404 = math.absf %403 : vector<10x128xf32>
    %cst_194 = arith.constant 0.327591091 : f32
    %405 = vector.broadcast %cst_194 : f32 to vector<10x128xf32>
    %406 = arith.mulf %405, %404 : vector<10x128xf32>
    %cst_195 = arith.constant 1.000000e+00 : f32
    %407 = vector.broadcast %cst_195 : f32 to vector<10x128xf32>
    %408 = arith.addf %407, %406 : vector<10x128xf32>
    %409 = tpu.reciprocal %408 {approx = true} : vector<10x128xf32> -> vector<10x128xf32>
    %cst_196 = arith.constant 1.06140542 : f32
    %410 = vector.broadcast %cst_196 : f32 to vector<10x128xf32>
    %411 = arith.mulf %410, %409 : vector<10x128xf32>
    %cst_197 = arith.constant -1.45315206 : f32
    %412 = vector.broadcast %cst_197 : f32 to vector<10x128xf32>
    %413 = arith.addf %411, %412 : vector<10x128xf32>
    %414 = arith.mulf %413, %409 : vector<10x128xf32>
    %cst_198 = arith.constant 1.42141378 : f32
    %415 = vector.broadcast %cst_198 : f32 to vector<10x128xf32>
    %416 = arith.addf %414, %415 : vector<10x128xf32>
    %417 = arith.mulf %416, %409 : vector<10x128xf32>
    %cst_199 = arith.constant -0.284496725 : f32
    %418 = vector.broadcast %cst_199 : f32 to vector<10x128xf32>
    %419 = arith.addf %417, %418 : vector<10x128xf32>
    %420 = arith.mulf %419, %409 : vector<10x128xf32>
    %cst_200 = arith.constant 0.254829586 : f32
    %421 = vector.broadcast %cst_200 : f32 to vector<10x128xf32>
    %422 = arith.addf %420, %421 : vector<10x128xf32>
    %423 = arith.mulf %422, %409 : vector<10x128xf32>
    %cst_201 = arith.constant 0.000000e+00 : f32
    %424 = vector.broadcast %cst_201 : f32 to vector<10x128xf32>
    %425 = arith.subf %424, %404 : vector<10x128xf32>
    %426 = arith.mulf %425, %404 : vector<10x128xf32>
    %427 = math.exp %426 : vector<10x128xf32>
    %428 = arith.mulf %423, %427 : vector<10x128xf32>
    %cst_202 = arith.constant 1.000000e+00 : f32
    %429 = vector.broadcast %cst_202 : f32 to vector<10x128xf32>
    %430 = arith.subf %429, %428 : vector<10x128xf32>
    %cst_203 = arith.constant 0.000000e+00 : f32
    %431 = vector.broadcast %cst_203 : f32 to vector<10x128xf32>
    %432 = arith.cmpf olt, %403, %431 : vector<10x128xf32>
    %cst_204 = arith.constant 0.000000e+00 : f32
    %433 = vector.broadcast %cst_204 : f32 to vector<10x128xf32>
    %434 = arith.subf %433, %430 : vector<10x128xf32>
    %435 = arith.select %432, %434, %430 : vector<10x128xi1>, vector<10x128xf32>
    %cst_205 = arith.constant 1.000000e+00 : f32
    %436 = vector.broadcast %cst_205 : f32 to vector<10x128xf32>
    %437 = arith.addf %436, %435 : vector<10x128xf32>
    %438 = arith.mulf %401, %437 : vector<10x128xf32>
    %439 = arith.truncf %438 : vector<10x128xf32> to vector<10x128xbf16>
    %c1_206 = arith.constant 1 : index
    %c0_207 = arith.constant 0 : index
    %c0_208 = arith.constant 0 : index
    %440 = vector.load %arg17[%c1_206, %c0_207, %c0_208] : memref<2x128x32xbf16, #tpu.memory_space<vmem>>, vector<1x128x32xbf16>
    %441 = vector.shape_cast %440 : vector<1x128x32xbf16> to vector<128x32xbf16>
    %cst_209 = arith.constant dense<0.000000e+00> : vector<10x32xf32>
    %442 = tpu.matmul %439, %441, %cst_209 {dimension_numbers = #tpu.dot_dimension_numbers<[1], [0], [0], [1], [0, 0, 1, 1], [], []>} : vector<10x128xbf16>, vector<128x32xbf16>, vector<10x32xf32> -> vector<10x32xf32>
    %c1_210 = arith.constant 1 : index
    %c0_211 = arith.constant 0 : index
    %c0_212 = arith.constant 0 : index
    %443 = vector.load %arg18[%c1_210, %c0_211, %c0_212] : memref<2x1x32xf32, #tpu.memory_space<vmem>>, vector<1x1x32xf32>
    %444 = vector.shape_cast %443 : vector<1x1x32xf32> to vector<1x32xf32>
    %445 = vector.broadcast %444 : vector<1x32xf32> to vector<10x32xf32>
    %446 = arith.addf %442, %445 : vector<10x32xf32>
    %447 = arith.addf %367, %446 : vector<10x32xf32>
    %c0_213 = arith.constant 0 : index
    %c0_214 = arith.constant 0 : index
    %448 = vector.load %arg19[%c0_213, %c0_214] : memref<1x32xf32, #tpu.memory_space<vmem>>, vector<1x32xf32>
    %c0_215 = arith.constant 0 : index
    %c0_216 = arith.constant 0 : index
    %449 = vector.load %arg20[%c0_215, %c0_216] : memref<1x32xf32, #tpu.memory_space<vmem>>, vector<1x32xf32>
    %cst_217 = arith.constant dense<0.000000e+00> : vector<10xf32>
    %450 = vector.multi_reduction <add>, %447, %cst_217 [1] : vector<10x32xf32> to vector<10xf32>
    %451 = vector.shape_cast %450 : vector<10xf32> to vector<10x1xf32>
    %cst_218 = arith.constant 3.200000e+01 : f32
    %452 = vector.broadcast %cst_218 : f32 to vector<10x1xf32>
    %453 = arith.divf %451, %452 : vector<10x1xf32>
    %454 = vector.broadcast %453 : vector<10x1xf32> to vector<10x32xf32>
    %455 = arith.subf %447, %454 : vector<10x32xf32>
    %456 = arith.mulf %455, %455 : vector<10x32xf32>
    %cst_219 = arith.constant dense<0.000000e+00> : vector<10xf32>
    %457 = vector.multi_reduction <add>, %456, %cst_219 [1] : vector<10x32xf32> to vector<10xf32>
    %458 = vector.shape_cast %457 : vector<10xf32> to vector<10x1xf32>
    %cst_220 = arith.constant 3.200000e+01 : f32
    %459 = vector.broadcast %cst_220 : f32 to vector<10x1xf32>
    %460 = arith.divf %458, %459 : vector<10x1xf32>
    %cst_221 = arith.constant 9.99999974E-6 : f32
    %461 = vector.broadcast %cst_221 : f32 to vector<10x1xf32>
    %462 = arith.addf %460, %461 : vector<10x1xf32>
    %463 = math.rsqrt %462 : vector<10x1xf32>
    %464 = vector.broadcast %463 : vector<10x1xf32> to vector<10x32xf32>
    %465 = arith.mulf %455, %464 : vector<10x32xf32>
    %466 = vector.broadcast %448 : vector<1x32xf32> to vector<10x32xf32>
    %467 = arith.mulf %465, %466 : vector<10x32xf32>
    %468 = vector.broadcast %449 : vector<1x32xf32> to vector<10x32xf32>
    %469 = arith.addf %467, %468 : vector<10x32xf32>
    %470 = arith.truncf %469 : vector<10x32xf32> to vector<10x32xbf16>
    %c0_222 = arith.constant 0 : index
    %c0_223 = arith.constant 0 : index
    %471 = vector.load %arg21[%c0_222, %c0_223] : memref<32x16xbf16, #tpu.memory_space<vmem>>, vector<32x16xbf16>
    %cst_224 = arith.constant dense<0.000000e+00> : vector<10x16xf32>
    %472 = tpu.matmul %470, %471, %cst_224 {dimension_numbers = #tpu.dot_dimension_numbers<[1], [0], [0], [1], [0, 0, 1, 1], [], []>} : vector<10x32xbf16>, vector<32x16xbf16>, vector<10x16xf32> -> vector<10x16xf32>
    %c0_225 = arith.constant 0 : index
    %c0_226 = arith.constant 0 : index
    %473 = vector.load %arg22[%c0_225, %c0_226] : memref<1x16xf32, #tpu.memory_space<vmem>>, vector<1x16xf32>
    %474 = vector.broadcast %473 : vector<1x16xf32> to vector<10x16xf32>
    %475 = arith.addf %472, %474 : vector<10x16xf32>
    %cst_227 = arith.constant 0.000000e+00 : f32
    %476 = vector.broadcast %cst_227 : f32 to vector<10x16xf32>
    %477 = arith.maximumf %475, %476 : vector<10x16xf32>
    %478 = arith.truncf %477 : vector<10x16xf32> to vector<10x16xbf16>
    %c0_228 = arith.constant 0 : index
    %c0_229 = arith.constant 0 : index
    %479 = vector.load %arg23[%c0_228, %c0_229] : memref<16x32xbf16, #tpu.memory_space<vmem>>, vector<16x32xbf16>
    %cst_230 = arith.constant dense<0.000000e+00> : vector<10x32xf32>
    %480 = tpu.matmul %478, %479, %cst_230 {dimension_numbers = #tpu.dot_dimension_numbers<[1], [0], [0], [1], [0, 0, 1, 1], [], []>} : vector<10x16xbf16>, vector<16x32xbf16>, vector<10x32xf32> -> vector<10x32xf32>
    %c0_231 = arith.constant 0 : index
    %c0_232 = arith.constant 0 : index
    %481 = vector.load %arg24[%c0_231, %c0_232] : memref<1x32xf32, #tpu.memory_space<vmem>>, vector<1x32xf32>
    %482 = vector.broadcast %481 : vector<1x32xf32> to vector<10x32xf32>
    %483 = arith.addf %480, %482 : vector<10x32xf32>
    %484 = arith.truncf %483 : vector<10x32xf32> to vector<10x32xbf16>
    %c0_233 = arith.constant 0 : index
    %c0_234 = arith.constant 0 : index
    %485 = vector.load %arg25[%c0_233, %c0_234] : memref<32x32xbf16, #tpu.memory_space<vmem>>, vector<32x32xbf16>
    %cst_235 = arith.constant dense<0.000000e+00> : vector<10x32xf32>
    %486 = tpu.matmul %484, %485, %cst_235 {dimension_numbers = #tpu.dot_dimension_numbers<[1], [0], [0], [1], [0, 0, 1, 1], [], []>} : vector<10x32xbf16>, vector<32x32xbf16>, vector<10x32xf32> -> vector<10x32xf32>
    %c0_236 = arith.constant 0 : index
    %c0_237 = arith.constant 0 : index
    %487 = vector.load %arg26[%c0_236, %c0_237] : memref<1x32xf32, #tpu.memory_space<vmem>>, vector<1x32xf32>
    %488 = vector.broadcast %487 : vector<1x32xf32> to vector<10x32xf32>
    %489 = arith.addf %486, %488 : vector<10x32xf32>
    %c0_238 = arith.constant 0 : index
    %c0_239 = arith.constant 0 : index
    %490 = vector.load %arg27[%c0_238, %c0_239] : memref<10x32xf32, #tpu.memory_space<vmem>>, vector<10x32xf32>
    tpu.vector_store %arg27[%c0_238, %c0_239], %489 {strides = array<i32>} : memref<10x32xf32, #tpu.memory_space<vmem>>, vector<10x32xf32>,
    return
  }
}

module attributes {stable_mosaic.version = 11 : i64} {
  func.func @_decoder_kernel(%arg0: memref<34x32xf32, #tpu.memory_space<vmem>>, %arg1: memref<34x34xf32, #tpu.memory_space<vmem>>, %arg2: memref<4x1x32xbf16, #tpu.memory_space<vmem>>, %arg3: memref<2x32x32xbf16, #tpu.memory_space<vmem>>, %arg4: memref<2x32x32xbf16, #tpu.memory_space<vmem>>, %arg5: memref<2x32x32xbf16, #tpu.memory_space<vmem>>, %arg6: memref<2x1x32xf32, #tpu.memory_space<vmem>>, %arg7: memref<2x1x32xf32, #tpu.memory_space<vmem>>, %arg8: memref<2x1x32xf32, #tpu.memory_space<vmem>>, %arg9: memref<2x32x32xbf16, #tpu.memory_space<vmem>>, %arg10: memref<2x1x32xf32, #tpu.memory_space<vmem>>, %arg11: memref<2x1x32xf32, #tpu.memory_space<vmem>>, %arg12: memref<2x1x32xf32, #tpu.memory_space<vmem>>, %arg13: memref<2x1x32xf32, #tpu.memory_space<vmem>>, %arg14: memref<2x1x32xf32, #tpu.memory_space<vmem>>, %arg15: memref<2x32x128xbf16, #tpu.memory_space<vmem>>, %arg16: memref<2x1x128xf32, #tpu.memory_space<vmem>>, %arg17: memref<2x128x32xbf16, #tpu.memory_space<vmem>>, %arg18: memref<2x1x32xf32, #tpu.memory_space<vmem>>, %arg19: memref<1x32xf32, #tpu.memory_space<vmem>>, %arg20: memref<1x32xf32, #tpu.memory_space<vmem>>, %arg21: memref<32x64xbf16, #tpu.memory_space<vmem>>, %arg22: memref<1x64xf32, #tpu.memory_space<vmem>>, %arg23: memref<34x64xf32, #tpu.memory_space<vmem>>, %arg24: memref<34x1xf32, #tpu.memory_space<vmem>>, %arg25: memref<34x64xf32, #tpu.memory_space<vmem>>, %arg26: memref<1x1xf32, #tpu.memory_space<vmem>>) attributes {dimension_semantics = [], scalar_prefetch = 0 : i64, scratch_operands = 0 : i64, tpu.core_type = #tpu.core_type<tc>} {
    %c0 = arith.constant 0 : index
    %c0_0 = arith.constant 0 : index
    %0 = vector.load %arg0[%c0, %c0_0] : memref<34x32xf32, #tpu.memory_space<vmem>>, vector<34x32xf32>
    %c0_1 = arith.constant 0 : index
    %c0_2 = arith.constant 0 : index
    %1 = vector.load %arg1[%c0_1, %c0_2] : memref<34x34xf32, #tpu.memory_space<vmem>>, vector<34x34xf32>
    %c0_3 = arith.constant 0 : index
    %c0_4 = arith.constant 0 : index
    %c0_5 = arith.constant 0 : index
    %2 = vector.load %arg11[%c0_3, %c0_4, %c0_5] : memref<2x1x32xf32, #tpu.memory_space<vmem>>, vector<1x1x32xf32>
    %3 = vector.shape_cast %2 : vector<1x1x32xf32> to vector<1x32xf32>
    %c0_6 = arith.constant 0 : index
    %c0_7 = arith.constant 0 : index
    %c0_8 = arith.constant 0 : index
    %4 = vector.load %arg12[%c0_6, %c0_7, %c0_8] : memref<2x1x32xf32, #tpu.memory_space<vmem>>, vector<1x1x32xf32>
    %5 = vector.shape_cast %4 : vector<1x1x32xf32> to vector<1x32xf32>
    %cst = arith.constant dense<0.000000e+00> : vector<34xf32>
    %6 = vector.multi_reduction <add>, %0, %cst [1] : vector<34x32xf32> to vector<34xf32>
    %7 = vector.shape_cast %6 : vector<34xf32> to vector<34x1xf32>
    %cst_9 = arith.constant 3.200000e+01 : f32
    %8 = vector.broadcast %cst_9 : f32 to vector<34x1xf32>
    %9 = arith.divf %7, %8 : vector<34x1xf32>
    %10 = vector.broadcast %9 : vector<34x1xf32> to vector<34x32xf32>
    %11 = arith.subf %0, %10 : vector<34x32xf32>
    %12 = arith.mulf %11, %11 : vector<34x32xf32>
    %cst_10 = arith.constant dense<0.000000e+00> : vector<34xf32>
    %13 = vector.multi_reduction <add>, %12, %cst_10 [1] : vector<34x32xf32> to vector<34xf32>
    %14 = vector.shape_cast %13 : vector<34xf32> to vector<34x1xf32>
    %cst_11 = arith.constant 3.200000e+01 : f32
    %15 = vector.broadcast %cst_11 : f32 to vector<34x1xf32>
    %16 = arith.divf %14, %15 : vector<34x1xf32>
    %cst_12 = arith.constant 9.99999974E-6 : f32
    %17 = vector.broadcast %cst_12 : f32 to vector<34x1xf32>
    %18 = arith.addf %16, %17 : vector<34x1xf32>
    %19 = math.rsqrt %18 : vector<34x1xf32>
    %20 = vector.broadcast %19 : vector<34x1xf32> to vector<34x32xf32>
    %21 = arith.mulf %11, %20 : vector<34x32xf32>
    %22 = vector.broadcast %3 : vector<1x32xf32> to vector<34x32xf32>
    %23 = arith.mulf %21, %22 : vector<34x32xf32>
    %24 = vector.broadcast %5 : vector<1x32xf32> to vector<34x32xf32>
    %25 = arith.addf %23, %24 : vector<34x32xf32>
    %26 = arith.truncf %25 : vector<34x32xf32> to vector<34x32xbf16>
    %c0_13 = arith.constant 0 : index
    %c0_14 = arith.constant 0 : index
    %c0_15 = arith.constant 0 : index
    %27 = vector.load %arg3[%c0_13, %c0_14, %c0_15] : memref<2x32x32xbf16, #tpu.memory_space<vmem>>, vector<1x32x32xbf16>
    %28 = vector.shape_cast %27 : vector<1x32x32xbf16> to vector<32x32xbf16>
    %cst_16 = arith.constant dense<0.000000e+00> : vector<34x32xf32>
    %29 = tpu.matmul %26, %28, %cst_16 {dimension_numbers = #tpu.dot_dimension_numbers<[1], [0], [0], [1], [0, 0, 1, 1], [], []>} : vector<34x32xbf16>, vector<32x32xbf16>, vector<34x32xf32> -> vector<34x32xf32>
    %c0_17 = arith.constant 0 : index
    %c0_18 = arith.constant 0 : index
    %c0_19 = arith.constant 0 : index
    %30 = vector.load %arg6[%c0_17, %c0_18, %c0_19] : memref<2x1x32xf32, #tpu.memory_space<vmem>>, vector<1x1x32xf32>
    %31 = vector.shape_cast %30 : vector<1x1x32xf32> to vector<1x32xf32>
    %32 = vector.broadcast %31 : vector<1x32xf32> to vector<34x32xf32>
    %33 = arith.addf %29, %32 : vector<34x32xf32>
    %c0_20 = arith.constant 0 : index
    %c0_21 = arith.constant 0 : index
    %c0_22 = arith.constant 0 : index
    %34 = vector.load %arg4[%c0_20, %c0_21, %c0_22] : memref<2x32x32xbf16, #tpu.memory_space<vmem>>, vector<1x32x32xbf16>
    %35 = vector.shape_cast %34 : vector<1x32x32xbf16> to vector<32x32xbf16>
    %cst_23 = arith.constant dense<0.000000e+00> : vector<34x32xf32>
    %36 = tpu.matmul %26, %35, %cst_23 {dimension_numbers = #tpu.dot_dimension_numbers<[1], [0], [0], [1], [0, 0, 1, 1], [], []>} : vector<34x32xbf16>, vector<32x32xbf16>, vector<34x32xf32> -> vector<34x32xf32>
    %c0_24 = arith.constant 0 : index
    %c0_25 = arith.constant 0 : index
    %c0_26 = arith.constant 0 : index
    %37 = vector.load %arg7[%c0_24, %c0_25, %c0_26] : memref<2x1x32xf32, #tpu.memory_space<vmem>>, vector<1x1x32xf32>
    %38 = vector.shape_cast %37 : vector<1x1x32xf32> to vector<1x32xf32>
    %39 = vector.broadcast %38 : vector<1x32xf32> to vector<34x32xf32>
    %40 = arith.addf %36, %39 : vector<34x32xf32>
    %c0_27 = arith.constant 0 : index
    %c0_28 = arith.constant 0 : index
    %c0_29 = arith.constant 0 : index
    %41 = vector.load %arg5[%c0_27, %c0_28, %c0_29] : memref<2x32x32xbf16, #tpu.memory_space<vmem>>, vector<1x32x32xbf16>
    %42 = vector.shape_cast %41 : vector<1x32x32xbf16> to vector<32x32xbf16>
    %cst_30 = arith.constant dense<0.000000e+00> : vector<34x32xf32>
    %43 = tpu.matmul %26, %42, %cst_30 {dimension_numbers = #tpu.dot_dimension_numbers<[1], [0], [0], [1], [0, 0, 1, 1], [], []>} : vector<34x32xbf16>, vector<32x32xbf16>, vector<34x32xf32> -> vector<34x32xf32>
    %c0_31 = arith.constant 0 : index
    %c0_32 = arith.constant 0 : index
    %c0_33 = arith.constant 0 : index
    %44 = vector.load %arg8[%c0_31, %c0_32, %c0_33] : memref<2x1x32xf32, #tpu.memory_space<vmem>>, vector<1x1x32xf32>
    %45 = vector.shape_cast %44 : vector<1x1x32xf32> to vector<1x32xf32>
    %46 = vector.broadcast %45 : vector<1x32xf32> to vector<34x32xf32>
    %47 = arith.addf %43, %46 : vector<34x32xf32>
    %48 = arith.truncf %33 : vector<34x32xf32> to vector<34x32xbf16>
    %49 = arith.truncf %40 : vector<34x32xf32> to vector<34x32xbf16>
    %50 = arith.truncf %47 : vector<34x32xf32> to vector<34x32xbf16>
    %cst_34 = arith.constant 0.000000e+00 : f32
    %51 = vector.broadcast %cst_34 : f32 to vector<34x32xf32>
    %c0_35 = arith.constant 0 : index
    %c0_36 = arith.constant 0 : index
    %c0_37 = arith.constant 0 : index
    %52 = vector.load %arg2[%c0_35, %c0_36, %c0_37] : memref<4x1x32xbf16, #tpu.memory_space<vmem>>, vector<1x1x32xbf16>
    %53 = vector.shape_cast %52 : vector<1x1x32xbf16> to vector<1x32xbf16>
    %54 = vector.broadcast %53 : vector<1x32xbf16> to vector<34x32xbf16>
    %55 = arith.mulf %48, %54 : vector<34x32xbf16>
    %cst_38 = arith.constant dense<0.000000e+00> : vector<34x34xf32>
    %56 = tpu.matmul %55, %49, %cst_38 {dimension_numbers = #tpu.dot_dimension_numbers<[1], [1], [0], [0], [0, 0, 1, 0], [], []>} : vector<34x32xbf16>, vector<34x32xbf16>, vector<34x34xf32> -> vector<34x34xf32>
    %57 = arith.addf %56, %1 : vector<34x34xf32>
    %cst_39 = arith.constant dense<0xFF800000> : vector<34xf32>
    %58 = vector.multi_reduction <maximumf>, %57, %cst_39 [1] : vector<34x34xf32> to vector<34xf32>
    %59 = vector.shape_cast %58 : vector<34xf32> to vector<34x1xf32>
    %60 = vector.broadcast %59 : vector<34x1xf32> to vector<34x34xf32>
    %61 = arith.subf %57, %60 : vector<34x34xf32>
    %62 = math.exp %61 : vector<34x34xf32>
    %cst_40 = arith.constant dense<0.000000e+00> : vector<34xf32>
    %63 = vector.multi_reduction <add>, %62, %cst_40 [1] : vector<34x34xf32> to vector<34xf32>
    %64 = vector.shape_cast %63 : vector<34xf32> to vector<34x1xf32>
    %65 = tpu.reciprocal %64 {approx = true} : vector<34x1xf32> -> vector<34x1xf32>
    %66 = vector.broadcast %65 : vector<34x1xf32> to vector<34x34xf32>
    %67 = arith.mulf %62, %66 : vector<34x34xf32>
    %68 = arith.truncf %67 : vector<34x34xf32> to vector<34x34xbf16>
    %69 = vector.broadcast %53 : vector<1x32xbf16> to vector<34x32xbf16>
    %70 = arith.mulf %50, %69 : vector<34x32xbf16>
    %cst_41 = arith.constant dense<0.000000e+00> : vector<34x32xf32>
    %71 = tpu.matmul %68, %70, %cst_41 {dimension_numbers = #tpu.dot_dimension_numbers<[1], [0], [0], [1], [0, 0, 1, 1], [], []>} : vector<34x34xbf16>, vector<34x32xbf16>, vector<34x32xf32> -> vector<34x32xf32>
    %72 = arith.addf %51, %71 : vector<34x32xf32>
    %c1 = arith.constant 1 : index
    %c0_42 = arith.constant 0 : index
    %c0_43 = arith.constant 0 : index
    %73 = vector.load %arg2[%c1, %c0_42, %c0_43] : memref<4x1x32xbf16, #tpu.memory_space<vmem>>, vector<1x1x32xbf16>
    %74 = vector.shape_cast %73 : vector<1x1x32xbf16> to vector<1x32xbf16>
    %75 = vector.broadcast %74 : vector<1x32xbf16> to vector<34x32xbf16>
    %76 = arith.mulf %48, %75 : vector<34x32xbf16>
    %cst_44 = arith.constant dense<0.000000e+00> : vector<34x34xf32>
    %77 = tpu.matmul %76, %49, %cst_44 {dimension_numbers = #tpu.dot_dimension_numbers<[1], [1], [0], [0], [0, 0, 1, 0], [], []>} : vector<34x32xbf16>, vector<34x32xbf16>, vector<34x34xf32> -> vector<34x34xf32>
    %78 = arith.addf %77, %1 : vector<34x34xf32>
    %cst_45 = arith.constant dense<0xFF800000> : vector<34xf32>
    %79 = vector.multi_reduction <maximumf>, %78, %cst_45 [1] : vector<34x34xf32> to vector<34xf32>
    %80 = vector.shape_cast %79 : vector<34xf32> to vector<34x1xf32>
    %81 = vector.broadcast %80 : vector<34x1xf32> to vector<34x34xf32>
    %82 = arith.subf %78, %81 : vector<34x34xf32>
    %83 = math.exp %82 : vector<34x34xf32>
    %cst_46 = arith.constant dense<0.000000e+00> : vector<34xf32>
    %84 = vector.multi_reduction <add>, %83, %cst_46 [1] : vector<34x34xf32> to vector<34xf32>
    %85 = vector.shape_cast %84 : vector<34xf32> to vector<34x1xf32>
    %86 = tpu.reciprocal %85 {approx = true} : vector<34x1xf32> -> vector<34x1xf32>
    %87 = vector.broadcast %86 : vector<34x1xf32> to vector<34x34xf32>
    %88 = arith.mulf %83, %87 : vector<34x34xf32>
    %89 = arith.truncf %88 : vector<34x34xf32> to vector<34x34xbf16>
    %90 = vector.broadcast %74 : vector<1x32xbf16> to vector<34x32xbf16>
    %91 = arith.mulf %50, %90 : vector<34x32xbf16>
    %cst_47 = arith.constant dense<0.000000e+00> : vector<34x32xf32>
    %92 = tpu.matmul %89, %91, %cst_47 {dimension_numbers = #tpu.dot_dimension_numbers<[1], [0], [0], [1], [0, 0, 1, 1], [], []>} : vector<34x34xbf16>, vector<34x32xbf16>, vector<34x32xf32> -> vector<34x32xf32>
    %93 = arith.addf %72, %92 : vector<34x32xf32>
    %c2 = arith.constant 2 : index
    %c0_48 = arith.constant 0 : index
    %c0_49 = arith.constant 0 : index
    %94 = vector.load %arg2[%c2, %c0_48, %c0_49] : memref<4x1x32xbf16, #tpu.memory_space<vmem>>, vector<1x1x32xbf16>
    %95 = vector.shape_cast %94 : vector<1x1x32xbf16> to vector<1x32xbf16>
    %96 = vector.broadcast %95 : vector<1x32xbf16> to vector<34x32xbf16>
    %97 = arith.mulf %48, %96 : vector<34x32xbf16>
    %cst_50 = arith.constant dense<0.000000e+00> : vector<34x34xf32>
    %98 = tpu.matmul %97, %49, %cst_50 {dimension_numbers = #tpu.dot_dimension_numbers<[1], [1], [0], [0], [0, 0, 1, 0], [], []>} : vector<34x32xbf16>, vector<34x32xbf16>, vector<34x34xf32> -> vector<34x34xf32>
    %99 = arith.addf %98, %1 : vector<34x34xf32>
    %cst_51 = arith.constant dense<0xFF800000> : vector<34xf32>
    %100 = vector.multi_reduction <maximumf>, %99, %cst_51 [1] : vector<34x34xf32> to vector<34xf32>
    %101 = vector.shape_cast %100 : vector<34xf32> to vector<34x1xf32>
    %102 = vector.broadcast %101 : vector<34x1xf32> to vector<34x34xf32>
    %103 = arith.subf %99, %102 : vector<34x34xf32>
    %104 = math.exp %103 : vector<34x34xf32>
    %cst_52 = arith.constant dense<0.000000e+00> : vector<34xf32>
    %105 = vector.multi_reduction <add>, %104, %cst_52 [1] : vector<34x34xf32> to vector<34xf32>
    %106 = vector.shape_cast %105 : vector<34xf32> to vector<34x1xf32>
    %107 = tpu.reciprocal %106 {approx = true} : vector<34x1xf32> -> vector<34x1xf32>
    %108 = vector.broadcast %107 : vector<34x1xf32> to vector<34x34xf32>
    %109 = arith.mulf %104, %108 : vector<34x34xf32>
    %110 = arith.truncf %109 : vector<34x34xf32> to vector<34x34xbf16>
    %111 = vector.broadcast %95 : vector<1x32xbf16> to vector<34x32xbf16>
    %112 = arith.mulf %50, %111 : vector<34x32xbf16>
    %cst_53 = arith.constant dense<0.000000e+00> : vector<34x32xf32>
    %113 = tpu.matmul %110, %112, %cst_53 {dimension_numbers = #tpu.dot_dimension_numbers<[1], [0], [0], [1], [0, 0, 1, 1], [], []>} : vector<34x34xbf16>, vector<34x32xbf16>, vector<34x32xf32> -> vector<34x32xf32>
    %114 = arith.addf %93, %113 : vector<34x32xf32>
    %c3 = arith.constant 3 : index
    %c0_54 = arith.constant 0 : index
    %c0_55 = arith.constant 0 : index
    %115 = vector.load %arg2[%c3, %c0_54, %c0_55] : memref<4x1x32xbf16, #tpu.memory_space<vmem>>, vector<1x1x32xbf16>
    %116 = vector.shape_cast %115 : vector<1x1x32xbf16> to vector<1x32xbf16>
    %117 = vector.broadcast %116 : vector<1x32xbf16> to vector<34x32xbf16>
    %118 = arith.mulf %48, %117 : vector<34x32xbf16>
    %cst_56 = arith.constant dense<0.000000e+00> : vector<34x34xf32>
    %119 = tpu.matmul %118, %49, %cst_56 {dimension_numbers = #tpu.dot_dimension_numbers<[1], [1], [0], [0], [0, 0, 1, 0], [], []>} : vector<34x32xbf16>, vector<34x32xbf16>, vector<34x34xf32> -> vector<34x34xf32>
    %120 = arith.addf %119, %1 : vector<34x34xf32>
    %cst_57 = arith.constant dense<0xFF800000> : vector<34xf32>
    %121 = vector.multi_reduction <maximumf>, %120, %cst_57 [1] : vector<34x34xf32> to vector<34xf32>
    %122 = vector.shape_cast %121 : vector<34xf32> to vector<34x1xf32>
    %123 = vector.broadcast %122 : vector<34x1xf32> to vector<34x34xf32>
    %124 = arith.subf %120, %123 : vector<34x34xf32>
    %125 = math.exp %124 : vector<34x34xf32>
    %cst_58 = arith.constant dense<0.000000e+00> : vector<34xf32>
    %126 = vector.multi_reduction <add>, %125, %cst_58 [1] : vector<34x34xf32> to vector<34xf32>
    %127 = vector.shape_cast %126 : vector<34xf32> to vector<34x1xf32>
    %128 = tpu.reciprocal %127 {approx = true} : vector<34x1xf32> -> vector<34x1xf32>
    %129 = vector.broadcast %128 : vector<34x1xf32> to vector<34x34xf32>
    %130 = arith.mulf %125, %129 : vector<34x34xf32>
    %131 = arith.truncf %130 : vector<34x34xf32> to vector<34x34xbf16>
    %132 = vector.broadcast %116 : vector<1x32xbf16> to vector<34x32xbf16>
    %133 = arith.mulf %50, %132 : vector<34x32xbf16>
    %cst_59 = arith.constant dense<0.000000e+00> : vector<34x32xf32>
    %134 = tpu.matmul %131, %133, %cst_59 {dimension_numbers = #tpu.dot_dimension_numbers<[1], [0], [0], [1], [0, 0, 1, 1], [], []>} : vector<34x34xbf16>, vector<34x32xbf16>, vector<34x32xf32> -> vector<34x32xf32>
    %135 = arith.addf %114, %134 : vector<34x32xf32>
    %136 = arith.truncf %135 : vector<34x32xf32> to vector<34x32xbf16>
    %c0_60 = arith.constant 0 : index
    %c0_61 = arith.constant 0 : index
    %c0_62 = arith.constant 0 : index
    %137 = vector.load %arg9[%c0_60, %c0_61, %c0_62] : memref<2x32x32xbf16, #tpu.memory_space<vmem>>, vector<1x32x32xbf16>
    %138 = vector.shape_cast %137 : vector<1x32x32xbf16> to vector<32x32xbf16>
    %cst_63 = arith.constant dense<0.000000e+00> : vector<34x32xf32>
    %139 = tpu.matmul %136, %138, %cst_63 {dimension_numbers = #tpu.dot_dimension_numbers<[1], [0], [0], [1], [0, 0, 1, 1], [], []>} : vector<34x32xbf16>, vector<32x32xbf16>, vector<34x32xf32> -> vector<34x32xf32>
    %c0_64 = arith.constant 0 : index
    %c0_65 = arith.constant 0 : index
    %c0_66 = arith.constant 0 : index
    %140 = vector.load %arg10[%c0_64, %c0_65, %c0_66] : memref<2x1x32xf32, #tpu.memory_space<vmem>>, vector<1x1x32xf32>
    %141 = vector.shape_cast %140 : vector<1x1x32xf32> to vector<1x32xf32>
    %142 = vector.broadcast %141 : vector<1x32xf32> to vector<34x32xf32>
    %143 = arith.addf %139, %142 : vector<34x32xf32>
    %144 = arith.addf %0, %143 : vector<34x32xf32>
    %c0_67 = arith.constant 0 : index
    %c0_68 = arith.constant 0 : index
    %c0_69 = arith.constant 0 : index
    %145 = vector.load %arg13[%c0_67, %c0_68, %c0_69] : memref<2x1x32xf32, #tpu.memory_space<vmem>>, vector<1x1x32xf32>
    %146 = vector.shape_cast %145 : vector<1x1x32xf32> to vector<1x32xf32>
    %c0_70 = arith.constant 0 : index
    %c0_71 = arith.constant 0 : index
    %c0_72 = arith.constant 0 : index
    %147 = vector.load %arg14[%c0_70, %c0_71, %c0_72] : memref<2x1x32xf32, #tpu.memory_space<vmem>>, vector<1x1x32xf32>
    %148 = vector.shape_cast %147 : vector<1x1x32xf32> to vector<1x32xf32>
    %cst_73 = arith.constant dense<0.000000e+00> : vector<34xf32>
    %149 = vector.multi_reduction <add>, %144, %cst_73 [1] : vector<34x32xf32> to vector<34xf32>
    %150 = vector.shape_cast %149 : vector<34xf32> to vector<34x1xf32>
    %cst_74 = arith.constant 3.200000e+01 : f32
    %151 = vector.broadcast %cst_74 : f32 to vector<34x1xf32>
    %152 = arith.divf %150, %151 : vector<34x1xf32>
    %153 = vector.broadcast %152 : vector<34x1xf32> to vector<34x32xf32>
    %154 = arith.subf %144, %153 : vector<34x32xf32>
    %155 = arith.mulf %154, %154 : vector<34x32xf32>
    %cst_75 = arith.constant dense<0.000000e+00> : vector<34xf32>
    %156 = vector.multi_reduction <add>, %155, %cst_75 [1] : vector<34x32xf32> to vector<34xf32>
    %157 = vector.shape_cast %156 : vector<34xf32> to vector<34x1xf32>
    %cst_76 = arith.constant 3.200000e+01 : f32
    %158 = vector.broadcast %cst_76 : f32 to vector<34x1xf32>
    %159 = arith.divf %157, %158 : vector<34x1xf32>
    %cst_77 = arith.constant 9.99999974E-6 : f32
    %160 = vector.broadcast %cst_77 : f32 to vector<34x1xf32>
    %161 = arith.addf %159, %160 : vector<34x1xf32>
    %162 = math.rsqrt %161 : vector<34x1xf32>
    %163 = vector.broadcast %162 : vector<34x1xf32> to vector<34x32xf32>
    %164 = arith.mulf %154, %163 : vector<34x32xf32>
    %165 = vector.broadcast %146 : vector<1x32xf32> to vector<34x32xf32>
    %166 = arith.mulf %164, %165 : vector<34x32xf32>
    %167 = vector.broadcast %148 : vector<1x32xf32> to vector<34x32xf32>
    %168 = arith.addf %166, %167 : vector<34x32xf32>
    %169 = arith.truncf %168 : vector<34x32xf32> to vector<34x32xbf16>
    %c0_78 = arith.constant 0 : index
    %c0_79 = arith.constant 0 : index
    %c0_80 = arith.constant 0 : index
    %170 = vector.load %arg15[%c0_78, %c0_79, %c0_80] : memref<2x32x128xbf16, #tpu.memory_space<vmem>>, vector<1x32x128xbf16>
    %171 = vector.shape_cast %170 : vector<1x32x128xbf16> to vector<32x128xbf16>
    %cst_81 = arith.constant dense<0.000000e+00> : vector<34x128xf32>
    %172 = tpu.matmul %169, %171, %cst_81 {dimension_numbers = #tpu.dot_dimension_numbers<[1], [0], [0], [1], [0, 0, 1, 1], [], []>} : vector<34x32xbf16>, vector<32x128xbf16>, vector<34x128xf32> -> vector<34x128xf32>
    %c0_82 = arith.constant 0 : index
    %c0_83 = arith.constant 0 : index
    %c0_84 = arith.constant 0 : index
    %173 = vector.load %arg16[%c0_82, %c0_83, %c0_84] : memref<2x1x128xf32, #tpu.memory_space<vmem>>, vector<1x1x128xf32>
    %174 = vector.shape_cast %173 : vector<1x1x128xf32> to vector<1x128xf32>
    %175 = vector.broadcast %174 : vector<1x128xf32> to vector<34x128xf32>
    %176 = arith.addf %172, %175 : vector<34x128xf32>
    %cst_85 = arith.constant 5.000000e-01 : f32
    %177 = vector.broadcast %cst_85 : f32 to vector<34x128xf32>
    %178 = arith.mulf %177, %176 : vector<34x128xf32>
    %cst_86 = arith.constant 0.707106769 : f32
    %179 = vector.broadcast %cst_86 : f32 to vector<34x128xf32>
    %180 = arith.mulf %176, %179 : vector<34x128xf32>
    %181 = math.absf %180 : vector<34x128xf32>
    %cst_87 = arith.constant 0.327591091 : f32
    %182 = vector.broadcast %cst_87 : f32 to vector<34x128xf32>
    %183 = arith.mulf %182, %181 : vector<34x128xf32>
    %cst_88 = arith.constant 1.000000e+00 : f32
    %184 = vector.broadcast %cst_88 : f32 to vector<34x128xf32>
    %185 = arith.addf %184, %183 : vector<34x128xf32>
    %186 = tpu.reciprocal %185 {approx = true} : vector<34x128xf32> -> vector<34x128xf32>
    %cst_89 = arith.constant 1.06140542 : f32
    %187 = vector.broadcast %cst_89 : f32 to vector<34x128xf32>
    %188 = arith.mulf %187, %186 : vector<34x128xf32>
    %cst_90 = arith.constant -1.45315206 : f32
    %189 = vector.broadcast %cst_90 : f32 to vector<34x128xf32>
    %190 = arith.addf %188, %189 : vector<34x128xf32>
    %191 = arith.mulf %190, %186 : vector<34x128xf32>
    %cst_91 = arith.constant 1.42141378 : f32
    %192 = vector.broadcast %cst_91 : f32 to vector<34x128xf32>
    %193 = arith.addf %191, %192 : vector<34x128xf32>
    %194 = arith.mulf %193, %186 : vector<34x128xf32>
    %cst_92 = arith.constant -0.284496725 : f32
    %195 = vector.broadcast %cst_92 : f32 to vector<34x128xf32>
    %196 = arith.addf %194, %195 : vector<34x128xf32>
    %197 = arith.mulf %196, %186 : vector<34x128xf32>
    %cst_93 = arith.constant 0.254829586 : f32
    %198 = vector.broadcast %cst_93 : f32 to vector<34x128xf32>
    %199 = arith.addf %197, %198 : vector<34x128xf32>
    %200 = arith.mulf %199, %186 : vector<34x128xf32>
    %cst_94 = arith.constant 0.000000e+00 : f32
    %201 = vector.broadcast %cst_94 : f32 to vector<34x128xf32>
    %202 = arith.subf %201, %181 : vector<34x128xf32>
    %203 = arith.mulf %202, %181 : vector<34x128xf32>
    %204 = math.exp %203 : vector<34x128xf32>
    %205 = arith.mulf %200, %204 : vector<34x128xf32>
    %cst_95 = arith.constant 1.000000e+00 : f32
    %206 = vector.broadcast %cst_95 : f32 to vector<34x128xf32>
    %207 = arith.subf %206, %205 : vector<34x128xf32>
    %cst_96 = arith.constant 0.000000e+00 : f32
    %208 = vector.broadcast %cst_96 : f32 to vector<34x128xf32>
    %209 = arith.cmpf olt, %180, %208 : vector<34x128xf32>
    %cst_97 = arith.constant 0.000000e+00 : f32
    %210 = vector.broadcast %cst_97 : f32 to vector<34x128xf32>
    %211 = arith.subf %210, %207 : vector<34x128xf32>
    %212 = arith.select %209, %211, %207 : vector<34x128xi1>, vector<34x128xf32>
    %cst_98 = arith.constant 1.000000e+00 : f32
    %213 = vector.broadcast %cst_98 : f32 to vector<34x128xf32>
    %214 = arith.addf %213, %212 : vector<34x128xf32>
    %215 = arith.mulf %178, %214 : vector<34x128xf32>
    %216 = arith.truncf %215 : vector<34x128xf32> to vector<34x128xbf16>
    %c0_99 = arith.constant 0 : index
    %c0_100 = arith.constant 0 : index
    %c0_101 = arith.constant 0 : index
    %217 = vector.load %arg17[%c0_99, %c0_100, %c0_101] : memref<2x128x32xbf16, #tpu.memory_space<vmem>>, vector<1x128x32xbf16>
    %218 = vector.shape_cast %217 : vector<1x128x32xbf16> to vector<128x32xbf16>
    %cst_102 = arith.constant dense<0.000000e+00> : vector<34x32xf32>
    %219 = tpu.matmul %216, %218, %cst_102 {dimension_numbers = #tpu.dot_dimension_numbers<[1], [0], [0], [1], [0, 0, 1, 1], [], []>} : vector<34x128xbf16>, vector<128x32xbf16>, vector<34x32xf32> -> vector<34x32xf32>
    %c0_103 = arith.constant 0 : index
    %c0_104 = arith.constant 0 : index
    %c0_105 = arith.constant 0 : index
    %220 = vector.load %arg18[%c0_103, %c0_104, %c0_105] : memref<2x1x32xf32, #tpu.memory_space<vmem>>, vector<1x1x32xf32>
    %221 = vector.shape_cast %220 : vector<1x1x32xf32> to vector<1x32xf32>
    %222 = vector.broadcast %221 : vector<1x32xf32> to vector<34x32xf32>
    %223 = arith.addf %219, %222 : vector<34x32xf32>
    %224 = arith.addf %144, %223 : vector<34x32xf32>
    %c1_106 = arith.constant 1 : index
    %c0_107 = arith.constant 0 : index
    %c0_108 = arith.constant 0 : index
    %225 = vector.load %arg11[%c1_106, %c0_107, %c0_108] : memref<2x1x32xf32, #tpu.memory_space<vmem>>, vector<1x1x32xf32>
    %226 = vector.shape_cast %225 : vector<1x1x32xf32> to vector<1x32xf32>
    %c1_109 = arith.constant 1 : index
    %c0_110 = arith.constant 0 : index
    %c0_111 = arith.constant 0 : index
    %227 = vector.load %arg12[%c1_109, %c0_110, %c0_111] : memref<2x1x32xf32, #tpu.memory_space<vmem>>, vector<1x1x32xf32>
    %228 = vector.shape_cast %227 : vector<1x1x32xf32> to vector<1x32xf32>
    %cst_112 = arith.constant dense<0.000000e+00> : vector<34xf32>
    %229 = vector.multi_reduction <add>, %224, %cst_112 [1] : vector<34x32xf32> to vector<34xf32>
    %230 = vector.shape_cast %229 : vector<34xf32> to vector<34x1xf32>
    %cst_113 = arith.constant 3.200000e+01 : f32
    %231 = vector.broadcast %cst_113 : f32 to vector<34x1xf32>
    %232 = arith.divf %230, %231 : vector<34x1xf32>
    %233 = vector.broadcast %232 : vector<34x1xf32> to vector<34x32xf32>
    %234 = arith.subf %224, %233 : vector<34x32xf32>
    %235 = arith.mulf %234, %234 : vector<34x32xf32>
    %cst_114 = arith.constant dense<0.000000e+00> : vector<34xf32>
    %236 = vector.multi_reduction <add>, %235, %cst_114 [1] : vector<34x32xf32> to vector<34xf32>
    %237 = vector.shape_cast %236 : vector<34xf32> to vector<34x1xf32>
    %cst_115 = arith.constant 3.200000e+01 : f32
    %238 = vector.broadcast %cst_115 : f32 to vector<34x1xf32>
    %239 = arith.divf %237, %238 : vector<34x1xf32>
    %cst_116 = arith.constant 9.99999974E-6 : f32
    %240 = vector.broadcast %cst_116 : f32 to vector<34x1xf32>
    %241 = arith.addf %239, %240 : vector<34x1xf32>
    %242 = math.rsqrt %241 : vector<34x1xf32>
    %243 = vector.broadcast %242 : vector<34x1xf32> to vector<34x32xf32>
    %244 = arith.mulf %234, %243 : vector<34x32xf32>
    %245 = vector.broadcast %226 : vector<1x32xf32> to vector<34x32xf32>
    %246 = arith.mulf %244, %245 : vector<34x32xf32>
    %247 = vector.broadcast %228 : vector<1x32xf32> to vector<34x32xf32>
    %248 = arith.addf %246, %247 : vector<34x32xf32>
    %249 = arith.truncf %248 : vector<34x32xf32> to vector<34x32xbf16>
    %c1_117 = arith.constant 1 : index
    %c0_118 = arith.constant 0 : index
    %c0_119 = arith.constant 0 : index
    %250 = vector.load %arg3[%c1_117, %c0_118, %c0_119] : memref<2x32x32xbf16, #tpu.memory_space<vmem>>, vector<1x32x32xbf16>
    %251 = vector.shape_cast %250 : vector<1x32x32xbf16> to vector<32x32xbf16>
    %cst_120 = arith.constant dense<0.000000e+00> : vector<34x32xf32>
    %252 = tpu.matmul %249, %251, %cst_120 {dimension_numbers = #tpu.dot_dimension_numbers<[1], [0], [0], [1], [0, 0, 1, 1], [], []>} : vector<34x32xbf16>, vector<32x32xbf16>, vector<34x32xf32> -> vector<34x32xf32>
    %c1_121 = arith.constant 1 : index
    %c0_122 = arith.constant 0 : index
    %c0_123 = arith.constant 0 : index
    %253 = vector.load %arg6[%c1_121, %c0_122, %c0_123] : memref<2x1x32xf32, #tpu.memory_space<vmem>>, vector<1x1x32xf32>
    %254 = vector.shape_cast %253 : vector<1x1x32xf32> to vector<1x32xf32>
    %255 = vector.broadcast %254 : vector<1x32xf32> to vector<34x32xf32>
    %256 = arith.addf %252, %255 : vector<34x32xf32>
    %c1_124 = arith.constant 1 : index
    %c0_125 = arith.constant 0 : index
    %c0_126 = arith.constant 0 : index
    %257 = vector.load %arg4[%c1_124, %c0_125, %c0_126] : memref<2x32x32xbf16, #tpu.memory_space<vmem>>, vector<1x32x32xbf16>
    %258 = vector.shape_cast %257 : vector<1x32x32xbf16> to vector<32x32xbf16>
    %cst_127 = arith.constant dense<0.000000e+00> : vector<34x32xf32>
    %259 = tpu.matmul %249, %258, %cst_127 {dimension_numbers = #tpu.dot_dimension_numbers<[1], [0], [0], [1], [0, 0, 1, 1], [], []>} : vector<34x32xbf16>, vector<32x32xbf16>, vector<34x32xf32> -> vector<34x32xf32>
    %c1_128 = arith.constant 1 : index
    %c0_129 = arith.constant 0 : index
    %c0_130 = arith.constant 0 : index
    %260 = vector.load %arg7[%c1_128, %c0_129, %c0_130] : memref<2x1x32xf32, #tpu.memory_space<vmem>>, vector<1x1x32xf32>
    %261 = vector.shape_cast %260 : vector<1x1x32xf32> to vector<1x32xf32>
    %262 = vector.broadcast %261 : vector<1x32xf32> to vector<34x32xf32>
    %263 = arith.addf %259, %262 : vector<34x32xf32>
    %c1_131 = arith.constant 1 : index
    %c0_132 = arith.constant 0 : index
    %c0_133 = arith.constant 0 : index
    %264 = vector.load %arg5[%c1_131, %c0_132, %c0_133] : memref<2x32x32xbf16, #tpu.memory_space<vmem>>, vector<1x32x32xbf16>
    %265 = vector.shape_cast %264 : vector<1x32x32xbf16> to vector<32x32xbf16>
    %cst_134 = arith.constant dense<0.000000e+00> : vector<34x32xf32>
    %266 = tpu.matmul %249, %265, %cst_134 {dimension_numbers = #tpu.dot_dimension_numbers<[1], [0], [0], [1], [0, 0, 1, 1], [], []>} : vector<34x32xbf16>, vector<32x32xbf16>, vector<34x32xf32> -> vector<34x32xf32>
    %c1_135 = arith.constant 1 : index
    %c0_136 = arith.constant 0 : index
    %c0_137 = arith.constant 0 : index
    %267 = vector.load %arg8[%c1_135, %c0_136, %c0_137] : memref<2x1x32xf32, #tpu.memory_space<vmem>>, vector<1x1x32xf32>
    %268 = vector.shape_cast %267 : vector<1x1x32xf32> to vector<1x32xf32>
    %269 = vector.broadcast %268 : vector<1x32xf32> to vector<34x32xf32>
    %270 = arith.addf %266, %269 : vector<34x32xf32>
    %271 = arith.truncf %256 : vector<34x32xf32> to vector<34x32xbf16>
    %272 = arith.truncf %263 : vector<34x32xf32> to vector<34x32xbf16>
    %273 = arith.truncf %270 : vector<34x32xf32> to vector<34x32xbf16>
    %cst_138 = arith.constant 0.000000e+00 : f32
    %274 = vector.broadcast %cst_138 : f32 to vector<34x32xf32>
    %c0_139 = arith.constant 0 : index
    %c0_140 = arith.constant 0 : index
    %c0_141 = arith.constant 0 : index
    %275 = vector.load %arg2[%c0_139, %c0_140, %c0_141] : memref<4x1x32xbf16, #tpu.memory_space<vmem>>, vector<1x1x32xbf16>
    %276 = vector.shape_cast %275 : vector<1x1x32xbf16> to vector<1x32xbf16>
    %277 = vector.broadcast %276 : vector<1x32xbf16> to vector<34x32xbf16>
    %278 = arith.mulf %271, %277 : vector<34x32xbf16>
    %cst_142 = arith.constant dense<0.000000e+00> : vector<34x34xf32>
    %279 = tpu.matmul %278, %272, %cst_142 {dimension_numbers = #tpu.dot_dimension_numbers<[1], [1], [0], [0], [0, 0, 1, 0], [], []>} : vector<34x32xbf16>, vector<34x32xbf16>, vector<34x34xf32> -> vector<34x34xf32>
    %280 = arith.addf %279, %1 : vector<34x34xf32>
    %cst_143 = arith.constant dense<0xFF800000> : vector<34xf32>
    %281 = vector.multi_reduction <maximumf>, %280, %cst_143 [1] : vector<34x34xf32> to vector<34xf32>
    %282 = vector.shape_cast %281 : vector<34xf32> to vector<34x1xf32>
    %283 = vector.broadcast %282 : vector<34x1xf32> to vector<34x34xf32>
    %284 = arith.subf %280, %283 : vector<34x34xf32>
    %285 = math.exp %284 : vector<34x34xf32>
    %cst_144 = arith.constant dense<0.000000e+00> : vector<34xf32>
    %286 = vector.multi_reduction <add>, %285, %cst_144 [1] : vector<34x34xf32> to vector<34xf32>
    %287 = vector.shape_cast %286 : vector<34xf32> to vector<34x1xf32>
    %288 = tpu.reciprocal %287 {approx = true} : vector<34x1xf32> -> vector<34x1xf32>
    %289 = vector.broadcast %288 : vector<34x1xf32> to vector<34x34xf32>
    %290 = arith.mulf %285, %289 : vector<34x34xf32>
    %291 = arith.truncf %290 : vector<34x34xf32> to vector<34x34xbf16>
    %292 = vector.broadcast %276 : vector<1x32xbf16> to vector<34x32xbf16>
    %293 = arith.mulf %273, %292 : vector<34x32xbf16>
    %cst_145 = arith.constant dense<0.000000e+00> : vector<34x32xf32>
    %294 = tpu.matmul %291, %293, %cst_145 {dimension_numbers = #tpu.dot_dimension_numbers<[1], [0], [0], [1], [0, 0, 1, 1], [], []>} : vector<34x34xbf16>, vector<34x32xbf16>, vector<34x32xf32> -> vector<34x32xf32>
    %295 = arith.addf %274, %294 : vector<34x32xf32>
    %c1_146 = arith.constant 1 : index
    %c0_147 = arith.constant 0 : index
    %c0_148 = arith.constant 0 : index
    %296 = vector.load %arg2[%c1_146, %c0_147, %c0_148] : memref<4x1x32xbf16, #tpu.memory_space<vmem>>, vector<1x1x32xbf16>
    %297 = vector.shape_cast %296 : vector<1x1x32xbf16> to vector<1x32xbf16>
    %298 = vector.broadcast %297 : vector<1x32xbf16> to vector<34x32xbf16>
    %299 = arith.mulf %271, %298 : vector<34x32xbf16>
    %cst_149 = arith.constant dense<0.000000e+00> : vector<34x34xf32>
    %300 = tpu.matmul %299, %272, %cst_149 {dimension_numbers = #tpu.dot_dimension_numbers<[1], [1], [0], [0], [0, 0, 1, 0], [], []>} : vector<34x32xbf16>, vector<34x32xbf16>, vector<34x34xf32> -> vector<34x34xf32>
    %301 = arith.addf %300, %1 : vector<34x34xf32>
    %cst_150 = arith.constant dense<0xFF800000> : vector<34xf32>
    %302 = vector.multi_reduction <maximumf>, %301, %cst_150 [1] : vector<34x34xf32> to vector<34xf32>
    %303 = vector.shape_cast %302 : vector<34xf32> to vector<34x1xf32>
    %304 = vector.broadcast %303 : vector<34x1xf32> to vector<34x34xf32>
    %305 = arith.subf %301, %304 : vector<34x34xf32>
    %306 = math.exp %305 : vector<34x34xf32>
    %cst_151 = arith.constant dense<0.000000e+00> : vector<34xf32>
    %307 = vector.multi_reduction <add>, %306, %cst_151 [1] : vector<34x34xf32> to vector<34xf32>
    %308 = vector.shape_cast %307 : vector<34xf32> to vector<34x1xf32>
    %309 = tpu.reciprocal %308 {approx = true} : vector<34x1xf32> -> vector<34x1xf32>
    %310 = vector.broadcast %309 : vector<34x1xf32> to vector<34x34xf32>
    %311 = arith.mulf %306, %310 : vector<34x34xf32>
    %312 = arith.truncf %311 : vector<34x34xf32> to vector<34x34xbf16>
    %313 = vector.broadcast %297 : vector<1x32xbf16> to vector<34x32xbf16>
    %314 = arith.mulf %273, %313 : vector<34x32xbf16>
    %cst_152 = arith.constant dense<0.000000e+00> : vector<34x32xf32>
    %315 = tpu.matmul %312, %314, %cst_152 {dimension_numbers = #tpu.dot_dimension_numbers<[1], [0], [0], [1], [0, 0, 1, 1], [], []>} : vector<34x34xbf16>, vector<34x32xbf16>, vector<34x32xf32> -> vector<34x32xf32>
    %316 = arith.addf %295, %315 : vector<34x32xf32>
    %c2_153 = arith.constant 2 : index
    %c0_154 = arith.constant 0 : index
    %c0_155 = arith.constant 0 : index
    %317 = vector.load %arg2[%c2_153, %c0_154, %c0_155] : memref<4x1x32xbf16, #tpu.memory_space<vmem>>, vector<1x1x32xbf16>
    %318 = vector.shape_cast %317 : vector<1x1x32xbf16> to vector<1x32xbf16>
    %319 = vector.broadcast %318 : vector<1x32xbf16> to vector<34x32xbf16>
    %320 = arith.mulf %271, %319 : vector<34x32xbf16>
    %cst_156 = arith.constant dense<0.000000e+00> : vector<34x34xf32>
    %321 = tpu.matmul %320, %272, %cst_156 {dimension_numbers = #tpu.dot_dimension_numbers<[1], [1], [0], [0], [0, 0, 1, 0], [], []>} : vector<34x32xbf16>, vector<34x32xbf16>, vector<34x34xf32> -> vector<34x34xf32>
    %322 = arith.addf %321, %1 : vector<34x34xf32>
    %cst_157 = arith.constant dense<0xFF800000> : vector<34xf32>
    %323 = vector.multi_reduction <maximumf>, %322, %cst_157 [1] : vector<34x34xf32> to vector<34xf32>
    %324 = vector.shape_cast %323 : vector<34xf32> to vector<34x1xf32>
    %325 = vector.broadcast %324 : vector<34x1xf32> to vector<34x34xf32>
    %326 = arith.subf %322, %325 : vector<34x34xf32>
    %327 = math.exp %326 : vector<34x34xf32>
    %cst_158 = arith.constant dense<0.000000e+00> : vector<34xf32>
    %328 = vector.multi_reduction <add>, %327, %cst_158 [1] : vector<34x34xf32> to vector<34xf32>
    %329 = vector.shape_cast %328 : vector<34xf32> to vector<34x1xf32>
    %330 = tpu.reciprocal %329 {approx = true} : vector<34x1xf32> -> vector<34x1xf32>
    %331 = vector.broadcast %330 : vector<34x1xf32> to vector<34x34xf32>
    %332 = arith.mulf %327, %331 : vector<34x34xf32>
    %333 = arith.truncf %332 : vector<34x34xf32> to vector<34x34xbf16>
    %334 = vector.broadcast %318 : vector<1x32xbf16> to vector<34x32xbf16>
    %335 = arith.mulf %273, %334 : vector<34x32xbf16>
    %cst_159 = arith.constant dense<0.000000e+00> : vector<34x32xf32>
    %336 = tpu.matmul %333, %335, %cst_159 {dimension_numbers = #tpu.dot_dimension_numbers<[1], [0], [0], [1], [0, 0, 1, 1], [], []>} : vector<34x34xbf16>, vector<34x32xbf16>, vector<34x32xf32> -> vector<34x32xf32>
    %337 = arith.addf %316, %336 : vector<34x32xf32>
    %c3_160 = arith.constant 3 : index
    %c0_161 = arith.constant 0 : index
    %c0_162 = arith.constant 0 : index
    %338 = vector.load %arg2[%c3_160, %c0_161, %c0_162] : memref<4x1x32xbf16, #tpu.memory_space<vmem>>, vector<1x1x32xbf16>
    %339 = vector.shape_cast %338 : vector<1x1x32xbf16> to vector<1x32xbf16>
    %340 = vector.broadcast %339 : vector<1x32xbf16> to vector<34x32xbf16>
    %341 = arith.mulf %271, %340 : vector<34x32xbf16>
    %cst_163 = arith.constant dense<0.000000e+00> : vector<34x34xf32>
    %342 = tpu.matmul %341, %272, %cst_163 {dimension_numbers = #tpu.dot_dimension_numbers<[1], [1], [0], [0], [0, 0, 1, 0], [], []>} : vector<34x32xbf16>, vector<34x32xbf16>, vector<34x34xf32> -> vector<34x34xf32>
    %343 = arith.addf %342, %1 : vector<34x34xf32>
    %cst_164 = arith.constant dense<0xFF800000> : vector<34xf32>
    %344 = vector.multi_reduction <maximumf>, %343, %cst_164 [1] : vector<34x34xf32> to vector<34xf32>
    %345 = vector.shape_cast %344 : vector<34xf32> to vector<34x1xf32>
    %346 = vector.broadcast %345 : vector<34x1xf32> to vector<34x34xf32>
    %347 = arith.subf %343, %346 : vector<34x34xf32>
    %348 = math.exp %347 : vector<34x34xf32>
    %cst_165 = arith.constant dense<0.000000e+00> : vector<34xf32>
    %349 = vector.multi_reduction <add>, %348, %cst_165 [1] : vector<34x34xf32> to vector<34xf32>
    %350 = vector.shape_cast %349 : vector<34xf32> to vector<34x1xf32>
    %351 = tpu.reciprocal %350 {approx = true} : vector<34x1xf32> -> vector<34x1xf32>
    %352 = vector.broadcast %351 : vector<34x1xf32> to vector<34x34xf32>
    %353 = arith.mulf %348, %352 : vector<34x34xf32>
    %354 = arith.truncf %353 : vector<34x34xf32> to vector<34x34xbf16>
    %355 = vector.broadcast %339 : vector<1x32xbf16> to vector<34x32xbf16>
    %356 = arith.mulf %273, %355 : vector<34x32xbf16>
    %cst_166 = arith.constant dense<0.000000e+00> : vector<34x32xf32>
    %357 = tpu.matmul %354, %356, %cst_166 {dimension_numbers = #tpu.dot_dimension_numbers<[1], [0], [0], [1], [0, 0, 1, 1], [], []>} : vector<34x34xbf16>, vector<34x32xbf16>, vector<34x32xf32> -> vector<34x32xf32>
    %358 = arith.addf %337, %357 : vector<34x32xf32>
    %359 = arith.truncf %358 : vector<34x32xf32> to vector<34x32xbf16>
    %c1_167 = arith.constant 1 : index
    %c0_168 = arith.constant 0 : index
    %c0_169 = arith.constant 0 : index
    %360 = vector.load %arg9[%c1_167, %c0_168, %c0_169] : memref<2x32x32xbf16, #tpu.memory_space<vmem>>, vector<1x32x32xbf16>
    %361 = vector.shape_cast %360 : vector<1x32x32xbf16> to vector<32x32xbf16>
    %cst_170 = arith.constant dense<0.000000e+00> : vector<34x32xf32>
    %362 = tpu.matmul %359, %361, %cst_170 {dimension_numbers = #tpu.dot_dimension_numbers<[1], [0], [0], [1], [0, 0, 1, 1], [], []>} : vector<34x32xbf16>, vector<32x32xbf16>, vector<34x32xf32> -> vector<34x32xf32>
    %c1_171 = arith.constant 1 : index
    %c0_172 = arith.constant 0 : index
    %c0_173 = arith.constant 0 : index
    %363 = vector.load %arg10[%c1_171, %c0_172, %c0_173] : memref<2x1x32xf32, #tpu.memory_space<vmem>>, vector<1x1x32xf32>
    %364 = vector.shape_cast %363 : vector<1x1x32xf32> to vector<1x32xf32>
    %365 = vector.broadcast %364 : vector<1x32xf32> to vector<34x32xf32>
    %366 = arith.addf %362, %365 : vector<34x32xf32>
    %367 = arith.addf %224, %366 : vector<34x32xf32>
    %c1_174 = arith.constant 1 : index
    %c0_175 = arith.constant 0 : index
    %c0_176 = arith.constant 0 : index
    %368 = vector.load %arg13[%c1_174, %c0_175, %c0_176] : memref<2x1x32xf32, #tpu.memory_space<vmem>>, vector<1x1x32xf32>
    %369 = vector.shape_cast %368 : vector<1x1x32xf32> to vector<1x32xf32>
    %c1_177 = arith.constant 1 : index
    %c0_178 = arith.constant 0 : index
    %c0_179 = arith.constant 0 : index
    %370 = vector.load %arg14[%c1_177, %c0_178, %c0_179] : memref<2x1x32xf32, #tpu.memory_space<vmem>>, vector<1x1x32xf32>
    %371 = vector.shape_cast %370 : vector<1x1x32xf32> to vector<1x32xf32>
    %cst_180 = arith.constant dense<0.000000e+00> : vector<34xf32>
    %372 = vector.multi_reduction <add>, %367, %cst_180 [1] : vector<34x32xf32> to vector<34xf32>
    %373 = vector.shape_cast %372 : vector<34xf32> to vector<34x1xf32>
    %cst_181 = arith.constant 3.200000e+01 : f32
    %374 = vector.broadcast %cst_181 : f32 to vector<34x1xf32>
    %375 = arith.divf %373, %374 : vector<34x1xf32>
    %376 = vector.broadcast %375 : vector<34x1xf32> to vector<34x32xf32>
    %377 = arith.subf %367, %376 : vector<34x32xf32>
    %378 = arith.mulf %377, %377 : vector<34x32xf32>
    %cst_182 = arith.constant dense<0.000000e+00> : vector<34xf32>
    %379 = vector.multi_reduction <add>, %378, %cst_182 [1] : vector<34x32xf32> to vector<34xf32>
    %380 = vector.shape_cast %379 : vector<34xf32> to vector<34x1xf32>
    %cst_183 = arith.constant 3.200000e+01 : f32
    %381 = vector.broadcast %cst_183 : f32 to vector<34x1xf32>
    %382 = arith.divf %380, %381 : vector<34x1xf32>
    %cst_184 = arith.constant 9.99999974E-6 : f32
    %383 = vector.broadcast %cst_184 : f32 to vector<34x1xf32>
    %384 = arith.addf %382, %383 : vector<34x1xf32>
    %385 = math.rsqrt %384 : vector<34x1xf32>
    %386 = vector.broadcast %385 : vector<34x1xf32> to vector<34x32xf32>
    %387 = arith.mulf %377, %386 : vector<34x32xf32>
    %388 = vector.broadcast %369 : vector<1x32xf32> to vector<34x32xf32>
    %389 = arith.mulf %387, %388 : vector<34x32xf32>
    %390 = vector.broadcast %371 : vector<1x32xf32> to vector<34x32xf32>
    %391 = arith.addf %389, %390 : vector<34x32xf32>
    %392 = arith.truncf %391 : vector<34x32xf32> to vector<34x32xbf16>
    %c1_185 = arith.constant 1 : index
    %c0_186 = arith.constant 0 : index
    %c0_187 = arith.constant 0 : index
    %393 = vector.load %arg15[%c1_185, %c0_186, %c0_187] : memref<2x32x128xbf16, #tpu.memory_space<vmem>>, vector<1x32x128xbf16>
    %394 = vector.shape_cast %393 : vector<1x32x128xbf16> to vector<32x128xbf16>
    %cst_188 = arith.constant dense<0.000000e+00> : vector<34x128xf32>
    %395 = tpu.matmul %392, %394, %cst_188 {dimension_numbers = #tpu.dot_dimension_numbers<[1], [0], [0], [1], [0, 0, 1, 1], [], []>} : vector<34x32xbf16>, vector<32x128xbf16>, vector<34x128xf32> -> vector<34x128xf32>
    %c1_189 = arith.constant 1 : index
    %c0_190 = arith.constant 0 : index
    %c0_191 = arith.constant 0 : index
    %396 = vector.load %arg16[%c1_189, %c0_190, %c0_191] : memref<2x1x128xf32, #tpu.memory_space<vmem>>, vector<1x1x128xf32>
    %397 = vector.shape_cast %396 : vector<1x1x128xf32> to vector<1x128xf32>
    %398 = vector.broadcast %397 : vector<1x128xf32> to vector<34x128xf32>
    %399 = arith.addf %395, %398 : vector<34x128xf32>
    %cst_192 = arith.constant 5.000000e-01 : f32
    %400 = vector.broadcast %cst_192 : f32 to vector<34x128xf32>
    %401 = arith.mulf %400, %399 : vector<34x128xf32>
    %cst_193 = arith.constant 0.707106769 : f32
    %402 = vector.broadcast %cst_193 : f32 to vector<34x128xf32>
    %403 = arith.mulf %399, %402 : vector<34x128xf32>
    %404 = math.absf %403 : vector<34x128xf32>
    %cst_194 = arith.constant 0.327591091 : f32
    %405 = vector.broadcast %cst_194 : f32 to vector<34x128xf32>
    %406 = arith.mulf %405, %404 : vector<34x128xf32>
    %cst_195 = arith.constant 1.000000e+00 : f32
    %407 = vector.broadcast %cst_195 : f32 to vector<34x128xf32>
    %408 = arith.addf %407, %406 : vector<34x128xf32>
    %409 = tpu.reciprocal %408 {approx = true} : vector<34x128xf32> -> vector<34x128xf32>
    %cst_196 = arith.constant 1.06140542 : f32
    %410 = vector.broadcast %cst_196 : f32 to vector<34x128xf32>
    %411 = arith.mulf %410, %409 : vector<34x128xf32>
    %cst_197 = arith.constant -1.45315206 : f32
    %412 = vector.broadcast %cst_197 : f32 to vector<34x128xf32>
    %413 = arith.addf %411, %412 : vector<34x128xf32>
    %414 = arith.mulf %413, %409 : vector<34x128xf32>
    %cst_198 = arith.constant 1.42141378 : f32
    %415 = vector.broadcast %cst_198 : f32 to vector<34x128xf32>
    %416 = arith.addf %414, %415 : vector<34x128xf32>
    %417 = arith.mulf %416, %409 : vector<34x128xf32>
    %cst_199 = arith.constant -0.284496725 : f32
    %418 = vector.broadcast %cst_199 : f32 to vector<34x128xf32>
    %419 = arith.addf %417, %418 : vector<34x128xf32>
    %420 = arith.mulf %419, %409 : vector<34x128xf32>
    %cst_200 = arith.constant 0.254829586 : f32
    %421 = vector.broadcast %cst_200 : f32 to vector<34x128xf32>
    %422 = arith.addf %420, %421 : vector<34x128xf32>
    %423 = arith.mulf %422, %409 : vector<34x128xf32>
    %cst_201 = arith.constant 0.000000e+00 : f32
    %424 = vector.broadcast %cst_201 : f32 to vector<34x128xf32>
    %425 = arith.subf %424, %404 : vector<34x128xf32>
    %426 = arith.mulf %425, %404 : vector<34x128xf32>
    %427 = math.exp %426 : vector<34x128xf32>
    %428 = arith.mulf %423, %427 : vector<34x128xf32>
    %cst_202 = arith.constant 1.000000e+00 : f32
    %429 = vector.broadcast %cst_202 : f32 to vector<34x128xf32>
    %430 = arith.subf %429, %428 : vector<34x128xf32>
    %cst_203 = arith.constant 0.000000e+00 : f32
    %431 = vector.broadcast %cst_203 : f32 to vector<34x128xf32>
    %432 = arith.cmpf olt, %403, %431 : vector<34x128xf32>
    %cst_204 = arith.constant 0.000000e+00 : f32
    %433 = vector.broadcast %cst_204 : f32 to vector<34x128xf32>
    %434 = arith.subf %433, %430 : vector<34x128xf32>
    %435 = arith.select %432, %434, %430 : vector<34x128xi1>, vector<34x128xf32>
    %cst_205 = arith.constant 1.000000e+00 : f32
    %436 = vector.broadcast %cst_205 : f32 to vector<34x128xf32>
    %437 = arith.addf %436, %435 : vector<34x128xf32>
    %438 = arith.mulf %401, %437 : vector<34x128xf32>
    %439 = arith.truncf %438 : vector<34x128xf32> to vector<34x128xbf16>
    %c1_206 = arith.constant 1 : index
    %c0_207 = arith.constant 0 : index
    %c0_208 = arith.constant 0 : index
    %440 = vector.load %arg17[%c1_206, %c0_207, %c0_208] : memref<2x128x32xbf16, #tpu.memory_space<vmem>>, vector<1x128x32xbf16>
    %441 = vector.shape_cast %440 : vector<1x128x32xbf16> to vector<128x32xbf16>
    %cst_209 = arith.constant dense<0.000000e+00> : vector<34x32xf32>
    %442 = tpu.matmul %439, %441, %cst_209 {dimension_numbers = #tpu.dot_dimension_numbers<[1], [0], [0], [1], [0, 0, 1, 1], [], []>} : vector<34x128xbf16>, vector<128x32xbf16>, vector<34x32xf32> -> vector<34x32xf32>
    %c1_210 = arith.constant 1 : index
    %c0_211 = arith.constant 0 : index
    %c0_212 = arith.constant 0 : index
    %443 = vector.load %arg18[%c1_210, %c0_211, %c0_212] : memref<2x1x32xf32, #tpu.memory_space<vmem>>, vector<1x1x32xf32>
    %444 = vector.shape_cast %443 : vector<1x1x32xf32> to vector<1x32xf32>
    %445 = vector.broadcast %444 : vector<1x32xf32> to vector<34x32xf32>
    %446 = arith.addf %442, %445 : vector<34x32xf32>
    %447 = arith.addf %367, %446 : vector<34x32xf32>
    %c0_213 = arith.constant 0 : index
    %c0_214 = arith.constant 0 : index
    %448 = vector.load %arg19[%c0_213, %c0_214] : memref<1x32xf32, #tpu.memory_space<vmem>>, vector<1x32xf32>
    %c0_215 = arith.constant 0 : index
    %c0_216 = arith.constant 0 : index
    %449 = vector.load %arg20[%c0_215, %c0_216] : memref<1x32xf32, #tpu.memory_space<vmem>>, vector<1x32xf32>
    %cst_217 = arith.constant dense<0.000000e+00> : vector<34xf32>
    %450 = vector.multi_reduction <add>, %447, %cst_217 [1] : vector<34x32xf32> to vector<34xf32>
    %451 = vector.shape_cast %450 : vector<34xf32> to vector<34x1xf32>
    %cst_218 = arith.constant 3.200000e+01 : f32
    %452 = vector.broadcast %cst_218 : f32 to vector<34x1xf32>
    %453 = arith.divf %451, %452 : vector<34x1xf32>
    %454 = vector.broadcast %453 : vector<34x1xf32> to vector<34x32xf32>
    %455 = arith.subf %447, %454 : vector<34x32xf32>
    %456 = arith.mulf %455, %455 : vector<34x32xf32>
    %cst_219 = arith.constant dense<0.000000e+00> : vector<34xf32>
    %457 = vector.multi_reduction <add>, %456, %cst_219 [1] : vector<34x32xf32> to vector<34xf32>
    %458 = vector.shape_cast %457 : vector<34xf32> to vector<34x1xf32>
    %cst_220 = arith.constant 3.200000e+01 : f32
    %459 = vector.broadcast %cst_220 : f32 to vector<34x1xf32>
    %460 = arith.divf %458, %459 : vector<34x1xf32>
    %cst_221 = arith.constant 9.99999974E-6 : f32
    %461 = vector.broadcast %cst_221 : f32 to vector<34x1xf32>
    %462 = arith.addf %460, %461 : vector<34x1xf32>
    %463 = math.rsqrt %462 : vector<34x1xf32>
    %464 = vector.broadcast %463 : vector<34x1xf32> to vector<34x32xf32>
    %465 = arith.mulf %455, %464 : vector<34x32xf32>
    %466 = vector.broadcast %448 : vector<1x32xf32> to vector<34x32xf32>
    %467 = arith.mulf %465, %466 : vector<34x32xf32>
    %468 = vector.broadcast %449 : vector<1x32xf32> to vector<34x32xf32>
    %469 = arith.addf %467, %468 : vector<34x32xf32>
    %470 = arith.truncf %469 : vector<34x32xf32> to vector<34x32xbf16>
    %c0_222 = arith.constant 0 : index
    %c0_223 = arith.constant 0 : index
    %471 = vector.load %arg21[%c0_222, %c0_223] : memref<32x64xbf16, #tpu.memory_space<vmem>>, vector<32x64xbf16>
    %cst_224 = arith.constant dense<0.000000e+00> : vector<34x64xf32>
    %472 = tpu.matmul %470, %471, %cst_224 {dimension_numbers = #tpu.dot_dimension_numbers<[1], [0], [0], [1], [0, 0, 1, 1], [], []>} : vector<34x32xbf16>, vector<32x64xbf16>, vector<34x64xf32> -> vector<34x64xf32>
    %c0_225 = arith.constant 0 : index
    %c0_226 = arith.constant 0 : index
    %473 = vector.load %arg22[%c0_225, %c0_226] : memref<1x64xf32, #tpu.memory_space<vmem>>, vector<1x64xf32>
    %474 = vector.broadcast %473 : vector<1x64xf32> to vector<34x64xf32>
    %475 = arith.addf %472, %474 : vector<34x64xf32>
    %c0_227 = arith.constant 0 : index
    %c0_228 = arith.constant 0 : index
    %476 = vector.load %arg25[%c0_227, %c0_228] : memref<34x64xf32, #tpu.memory_space<vmem>>, vector<34x64xf32>
    tpu.vector_store %arg25[%c0_227, %c0_228], %475 {strides = array<i32>} : memref<34x64xf32, #tpu.memory_space<vmem>>, vector<34x64xf32>,
    %c0_229 = arith.constant 0 : index
    %c0_230 = arith.constant 0 : index
    %477 = vector.load %arg23[%c0_229, %c0_230] : memref<34x64xf32, #tpu.memory_space<vmem>>, vector<34x64xf32>
    %478 = arith.subf %475, %477 : vector<34x64xf32>
    %479 = arith.mulf %478, %478 : vector<34x64xf32>
    %cst_231 = arith.constant dense<0.000000e+00> : vector<34xf32>
    %480 = vector.multi_reduction <add>, %479, %cst_231 [1] : vector<34x64xf32> to vector<34xf32>
    %481 = vector.shape_cast %480 : vector<34xf32> to vector<34x1xf32>
    %c0_232 = arith.constant 0 : index
    %c0_233 = arith.constant 0 : index
    %482 = vector.load %arg24[%c0_232, %c0_233] : memref<34x1xf32, #tpu.memory_space<vmem>>, vector<34x1xf32>
    %483 = arith.mulf %481, %482 : vector<34x1xf32>
    %484 = vector.shape_cast %483 : vector<34x1xf32> to vector<1x34x1xf32>
    %cst_234 = arith.constant dense<0.000000e+00> : vector<1xf32>
    %485 = vector.multi_reduction <add>, %484, %cst_234 [1, 2] : vector<1x34x1xf32> to vector<1xf32>
    %486 = vector.shape_cast %485 : vector<1xf32> to vector<1x1x1xf32>
    %487 = vector.extract %486[0, 0, 0] : f32 from vector<1x1x1xf32>
    %488 = vector.broadcast %487 : f32 to vector<1x1xf32>
    %489 = vector.shape_cast %482 : vector<34x1xf32> to vector<1x34x1xf32>
    %cst_235 = arith.constant dense<0.000000e+00> : vector<1xf32>
    %490 = vector.multi_reduction <add>, %489, %cst_235 [1, 2] : vector<1x34x1xf32> to vector<1xf32>
    %491 = vector.shape_cast %490 : vector<1xf32> to vector<1x1x1xf32>
    %492 = vector.extract %491[0, 0, 0] : f32 from vector<1x1x1xf32>
    %493 = vector.broadcast %492 : f32 to vector<1x1xf32>
    %494 = arith.divf %488, %493 : vector<1x1xf32>
    %c0_236 = arith.constant 0 : index
    %c0_237 = arith.constant 0 : index
    %495 = vector.load %arg26[%c0_236, %c0_237] : memref<1x1xf32, #tpu.memory_space<vmem>>, vector<1x1xf32>
    tpu.vector_store %arg26[%c0_236, %c0_237], %494 {strides = array<i32>} : memref<1x1xf32, #tpu.memory_space<vmem>>, vector<1x1xf32>,
    return
  }
}

</mosaic_0001>

<bundles_post_ra>
// kernel: eq.33
= control target key start
LH: loop header
LB: loop body
LE: loop exit
PB: predicated region body
PF: predicated region fallthrough
CT: control target
= control target key end

     0   :  { %vm7_vm0 = vcmask 39936   ;;  %vm13_vm1 = vcmask 80936   ;;  %s39_s0 = inlined_call_operand.vmem [shape: s32[2,5], index: 0, kind: input, shape index: {}]   ;;  %s40_s1 = inlined_call_operand.vmem [shape: s32[10], index: 1, kind: output, shape index: {}]  }
   0x1   :  { %v4_v0 = vld [vmem:[%s39_s0] sm:$0x3]  ;;  %s22_s0 = smov 5  }
   0x2   :  { %5 = vst [vmem:[#allocation1] sm:$0x3] %v4_v0 }
   0x9   :  { %v10_v1 = vld [vmem:[#allocation1 + $0x1] sm:$0x1]   ;;  %v6_v2 = vld [vmem:[#allocation1] sm:$0x1]  }
   0xa   :  { %11 = vrot.lane.b32.xlu0 %v10_v1, %s22_s0  ;;  %8 = vst.msk [vmem:[#allocation0] sm:$0x1] %vm7_vm0, %v6_v2  }
  0x7c   :  { %v12_v3 = vpop.permute.xlu0 %11  }
  0x7d   :  { %14 = vst.msk [vmem:[#allocation0] sm:$0x1] %vm13_vm1, %v12_v3  }
  0x84   :  { %v18_v4 = vld [vmem:[#allocation0] sm:$0x1] }
  0x85   :  { %20 = vst [vmem:[%s40_s1] sm:$0x1] %v18_v4 }

// kernel: eq.47
= control target key start
LH: loop header
LB: loop body
LE: loop exit
PB: predicated region body
PF: predicated region fallthrough
CT: control target
= control target key end

     0   :  { %vm7_vm0 = vcmask 138240   ;;  %vm13_vm1 = vcmask 277640   ;;  %s39_s0 = inlined_call_operand.vmem [shape: s32[2,17], index: 0, kind: input, shape index: {}]   ;;  %s40_s1 = inlined_call_operand.vmem [shape: s32[34], index: 1, kind: output, shape index: {}]  }
   0x1   :  { %v4_v0 = vld [vmem:[%s39_s0] sm:$0x3]  ;;  %s22_s0 = smov 17  }
   0x2   :  { %5 = vst [vmem:[#allocation1] sm:$0x3] %v4_v0 }
   0x9   :  { %v10_v1 = vld [vmem:[#allocation1 + $0x1] sm:$0x1]   ;;  %v6_v2 = vld [vmem:[#allocation1] sm:$0x1]  }
   0xa   :  { %11 = vrot.lane.b32.xlu0 %v10_v1, %s22_s0  ;;  %8 = vst.msk [vmem:[#allocation0] sm:$0x1] %vm7_vm0, %v6_v2  }
  0x7c   :  { %v12_v3 = vpop.permute.xlu0 %11  }
  0x7d   :  { %14 = vst.msk [vmem:[#allocation0] sm:$0x1] %vm13_vm1, %v12_v3  }
  0x84   :  { %v18_v4 = vld [vmem:[#allocation0] sm:$0x1] }
  0x85   :  { %20 = vst [vmem:[%s40_s1] sm:$0x1] %v18_v4 }

// kernel: forward.2
= control target key start
LH: loop header
LB: loop body
LE: loop exit
PB: predicated region body
PF: predicated region fallthrough
CT: control target
= control target key end

     0   :  { %vm93_vm0 = vcmask 261120   ;;  %vm97_vm1 = vcmask 254976   ;;  %v3162_v15 = vmov 0.0   ;;  %vm3163_vm2 = vmmov 0   ;;  %s3843_s0 = inlined_call_operand.vmem [shape: f32[10,32], index: 0, kind: input, shape index: {}]   ;;  %s3844_s3 = inlined_call_operand.vmem [shape: bf16[2,32,32], index: 3, kind: input, shape index: {}]   ;;  %s3845_s4 = inlined_call_operand.vmem [shape: bf16[2,32,32], index: 4, kind: input, shape index: {}]   ;;  %s3846_s5 = inlined_call_operand.vmem [shape: bf16[2,32,32], index: 5, kind: input, shape index: {}]   ;;  %s3847_s11 = inlined_call_operand.vmem [shape: f32[2,1,32], index: 11, kind: input, shape index: {}]   ;;  %s3848_s12 = inlined_call_operand.vmem [shape: f32[2,1,32], index: 12, kind: input, shape index: {}]   ;;  %s3849_s6 = inlined_call_operand.vmem [shape: f32[2,1,32], index: 6, kind: input, shape index: {}]   ;;  %s3850_s7 = inlined_call_operand.vmem [shape: f32[2,1,32], index: 7, kind: input, shape index: {}]   ;;  %s3851_s2 = inlined_call_operand.vmem [shape: bf16[4,1,32], index: 2, kind: input, shape index: {}]   ;;  %s3852_s8 = inlined_call_operand.vmem [shape: f32[2,1,32], index: 8, kind: input, shape index: {}]   ;;  %s3853_s1 = inlined_call_operand.vmem [shape: f32[10,10], index: 1, kind: input, shape index: {}]   ;;  %s3854_s9 = inlined_call_operand.vmem [shape: bf16[2,32,32], index: 9, kind: input, shape index: {}]   ;;  %s3855_s10 = inlined_call_operand.vmem [shape: f32[2,1,32], index: 10, kind: input, shape index: {}]   ;;  %s3856_s15 = inlined_call_operand.vmem [shape: bf16[2,32,128], index: 15, kind: input, shape index: {}]   ;;  %s3857_s13 = inlined_call_operand.vmem [shape: f32[2,1,32], index: 13, kind: input, shape index: {}]   ;;  %s3858_s14 = inlined_call_operand.vmem [shape: f32[2,1,32], index: 14, kind: input, shape index: {}]   ;;  %s3859_s17 = inlined_call_operand.vmem [shape: bf16[2,128,32], index: 17, kind: input, shape index: {}]   ;;  %s3860_s16 = inlined_call_operand.vmem [shape: f32[2,1,128], index: 16, kind: input, shape index: {}]   ;;  %s3861_s18 = inlined_call_operand.vmem [shape: f32[2,1,32], index: 18, kind: input, shape index: {}]   ;;  %s3862_s21 = inlined_call_operand.vmem [shape: bf16[32,16], index: 21, kind: input, shape index: {}]   ;;  %s3863_s19 = inlined_call_operand.vmem [shape: f32[1,32], index: 19, kind: input, shape index: {}]   ;;  %s3864_s20 = inlined_call_operand.vmem [shape: f32[1,32], index: 20, kind: input, shape index: {}]   ;;  %s3865_s23 = inlined_call_operand.vmem [shape: bf16[16,32], index: 23, kind: input, shape index: {}]   ;;  %s3866_s22 = inlined_call_operand.vmem [shape: f32[1,16], index: 22, kind: input, shape index: {}]   ;;  %s3867_s25 = inlined_call_operand.vmem [shape: bf16[32,32], index: 25, kind: input, shape index: {}]   ;;  %s3868_s24 = inlined_call_operand.vmem [shape: f32[1,32], index: 24, kind: input, shape index: {}]   ;;  %s3869_s26 = inlined_call_operand.vmem [shape: f32[1,32], index: 26, kind: input, shape index: {}]   ;;  %s3870_s27 = inlined_call_operand.vmem [shape: f32[10,32], index: 27, kind: output, shape index: {}]  }
   0x1   :  { %3884 = sst [smem:[#allocation2_spill]] %s3843_s0  ;;  %2755 = vmatprep.subr.bf16.mxu0 %v3162_v15  ;;  %2763 = vmatprep.subr.bf16.mxu1 %v3162_v15  ;;  %v341_v38 = vlaneseq  ;;  %vm500_vm3 = vcmask 1044480   ;;  %vm393_vm4 = vcmask 80896   ;;  %vm397_vm5 = vcmask 74752  }
   0x2   :  { %3885 = sst [smem:[#allocation3_spill]] %s3844_s3  ;;  %2759 = vmatprep.mubr.msk.bf16.mxu0 %vm3163_vm2, %v3162_v15  ;;  %2767 = vmatprep.mubr.msk.bf16.mxu1 %vm3163_vm2, %v3162_v15  ;;  %vm2404_vm10 = vcmask 130048  }
   0x3   :  { %3886 = sst [smem:[#allocation4_spill]] %s3845_s4  ;;  %s3899_s0 = sld [smem:[#allocation3_spill]]  ;;  %v342_v46 = vshrl.u32 %v341_v38, 7 }
   0x4   :  { %3887 = sst [smem:[#allocation5_spill]] %s3846_s5  ;;  %s3900_s3 = sld [smem:[#allocation4_spill]] }
   0x5   :  { %3888 = sst [smem:[#allocation6_spill]] %s3847_s11  ;;  %s3898_s11 = sld [smem:[#allocation2_spill]]  ;;  %v343_v59 = vsub.s32 0, %v342_v46 }
   0x6   :  { %3889 = sst [smem:[#allocation7_spill]] %s3848_s12  ;;  %s3903_s29 = sld [smem:[#allocation5_spill]] }
   0x7   :  { %3890 = sst [smem:[#allocation8_spill]] %s3849_s6  ;;  %s3902_s12 = sld [smem:[#allocation7_spill]] }
   0x8   :  { %3891 = sst [smem:[#allocation9_spill]] %s3850_s7 }
   0x9   :  { %3892 = sst [smem:[#allocation10_spill]] %s3851_s2  ;;  %v3019_v14 = vld [vmem:[%s3899_s0] sm:$0xff]   ;;  %v3021_v17 = vld [vmem:[%s3899_s0 + $0x8] sm:$0xff]   ;;  %s3904_s2 = sld [smem:[#allocation8_spill]] }
   0xa   :  { %3893 = sst [smem:[#allocation11_spill]] %s3852_s8  ;;  %v3020_v16 = vld [vmem:[%s3900_s3] sm:$0xff]   ;;  %2756 = vmatpush3.bf16.msra.mxu0 %v3019_v14  ;;  %v3022_v18 = vld [vmem:[%s3900_s3 + $0x8] sm:$0xff]   ;;  %s3905_s8 = sld [smem:[#allocation9_spill]] }
   0xb   :  { %3894 = sst [smem:[#allocation12_spill]] %s3853_s1  ;;  %v3307_v0 = vld [vmem:[%s3898_s11] sm:$0xff]  ;;  %v3312_v1 = vld [vmem:[%s3898_s11 + $0x8] sm:$0x3]  ;;  %2764 = vmatpush3.bf16.msra.mxu1 %v3020_v16  ;;  %2757 = vmatprep.subr.bf16.mxu0 %v3162_v15  ;;  %s3901_s11 = sld [smem:[#allocation6_spill]] }
   0xc   :  { %3895 = sst [smem:[#allocation13_spill]] %s3854_s9  ;;  %v94_v2 = vsel %vm93_vm0, %v3307_v0, 0.0  ;;  %v98_v3 = vsel %vm97_vm1, %v3312_v1, 0.0  ;;  %2765 = vmatprep.subr.bf16.mxu1 %v3162_v15  ;;  %v3023_v35 = vld [vmem:[%s3903_s29] sm:$0xff]   ;;  %v3024_v37 = vld [vmem:[%s3903_s29 + $0x8] sm:$0xff]   ;;  %s3906_s6 = sld [smem:[#allocation10_spill]] }
   0xd   :  { %3896 = sst [smem:[#allocation14_spill]] %s3869_s26  ;;  %95 = vadd.xlane.f32.xlu0 %v94_v2  ;;  %v2524_v31 = vld [vmem:[%s3902_s12] ss:$0 sm:$0xff]  ;;  %s3907_s30 = sld [smem:[#allocation11_spill]] }
   0xe   :  { %3897 = sst [smem:[#allocation15_spill]] %s3870_s27  ;;  %2758 = vmatpush3.bf16.msra.mxu0 %v3021_v17  ;;  %s3908_s7 = sld [smem:[#allocation12_spill]] }
   0xf   :  { %2766 = vmatpush3.bf16.msra.mxu1 %v3022_v18  ;;  %2771 = vmatprep.subr.bf16.mxu0 %v3162_v15  ;;  %v2525_v39 = vld [vmem:[%s3904_s2] ss:$0 sm:$0xff]  ;;  %s3910_s4 = sld [smem:[#allocation14_spill]]  ;;  %s3911_s5 = sld [smem:[#allocation15_spill]] }
  0x10   :  { %2779 = vmatprep.subr.bf16.mxu1 %v3162_v15  ;;  %v2529_v41 = vld [vmem:[%s3905_s8] ss:$0 sm:$0xff] }
  0x11   :  { %99 = vadd.xlane.f32.xlu0 %v98_v3  ;;  %v2523_v27 = vld [vmem:[%s3901_s11] ss:$0 sm:$0xff] }
  0x12   :  { %v337_v51 = vld [vmem:[%s3906_s6] sm:$0x1]  ;;  %v2538_v52 = vld [vmem:[%s3906_s6 + $0x1] sm:$0x1]  ;;  %v2545_v18 = vld [vmem:[%s3906_s6 + $0x3] sm:$0x1] }
  0x13   :  { %v339_v58 = vpack.i.b16 %v337_v51, %v337_v51  ;;  %v422_v60 = vpack.i.b16 %v2538_v52, %v2538_v52  ;;  %v2533_v61 = vld [vmem:[%s3907_s30] ss:$0 sm:$0xff] }
  0x15   :  { %v3383_v3 = vrot.slane %v339_v58, %v343_v59 }
  0x9a   :  { %v96_v4 = vpop.xlane.xlu0 %95 }
  0x9b   :  { %v102_v5 = vmul.f32 0.03125, %v96_v4  ;;  %v3385_v4 = vrot.slane %v422_v60, %v343_v59 }
  0x9d   :  { %v104_v6 = vsub.f32 %v3307_v0, %v102_v5 }
  0x9e   :  { %v100_v7 = vpop.xlane.xlu0 %99 }
  0x9f   :  { %v103_v8 = vmul.f32 0.03125, %v100_v7  ;;  %v106_v9 = vmul.f32 %v104_v6, %v104_v6 }
  0xa1   :  { %v105_v10 = vsub.f32 %v3312_v1, %v103_v8  ;;  %v108_v11 = vsel %vm93_vm0, %v106_v9, 0.0 }
  0xa2   :  { %109 = vadd.xlane.f32.xlu1 %v108_v11 }
  0xa3   :  { %v107_v12 = vmul.f32 %v105_v10, %v105_v10 }
  0xa5   :  { %v111_v13 = vsel %vm97_vm1, %v107_v12, 0.0 }
  0xa6   :  { %112 = vadd.xlane.f32.xlu1 %v111_v13 }
 0x12f   :  { %v110_v19 = vpop.xlane.xlu1 %109 }
 0x130   :  { %v114_v20 = vmul.f32 0.03125, %v110_v19 }
 0x132   :  { %v116_v21 = vadd.f32 1e-05, %v114_v20  ;;  %v722_v20 = vpack.i.b16 %v2545_v18, %v2545_v18 }
 0x133   :  { %v113_v22 = vpop.xlane.xlu1 %112 }
 0x134   :  { %3060 = vrsqrt.f32 %v116_v21  ;;  %v115_v23 = vmul.f32 0.03125, %v113_v22  ;;  %v3416_v21 = vrot.slane %v722_v20, %v343_v59 }
 0x136   :  { %v117_v24 = vadd.f32 1e-05, %v115_v23  ;;  %v3426_v23 = vld [vmem:[%s3908_s7] sm:$0xff] }
 0x138   :  { %3062 = vrsqrt.f32 %v117_v24 }
 0x13e   :  { %v3061_v25 = vpop.eup %3060 }
 0x13f   :  { %v120_v26 = vmul.f32 %v3061_v25, %v104_v6  ;;  %v2542_v6 = vld [vmem:[%s3906_s6 + $0x2] sm:$0x1]  ;;  %s3909_s6 = sld [smem:[#allocation13_spill]] }
 0x140   :  { %v595_v13 = vpack.i.b16 %v2542_v6, %v2542_v6 }
 0x141   :  { %v128_v30 = vmul.f32 %v2523_v27, %v120_v26  ;;  %v3431_v26 = vld [vmem:[%s3908_s7 + $0x8] sm:$0x3] }
 0x142   :  { %v3063_v28 = vpop.eup %3062  ;;  %v3403_v17 = vrot.slane %v595_v13, %v343_v59 }
 0x143   :  { %v121_v29 = vmul.f32 %v3063_v28, %v105_v10  ;;  %v136_v33 = vadd.f32 %v2524_v31, %v128_v30 }
 0x145   :  { %v129_v32 = vmul.f32 %v2523_v27, %v121_v29 }
 0x147   :  { %v137_v34 = vadd.f32 %v2524_v31, %v129_v32 }
 0x149   :  { %v138_v36 = vpack.c.bf16 %v137_v34, %v136_v33 }
 0x14b   :  { %2760 = vmatmul.mubr.msk.bf16.vlgmr.msra.gmra.mrb[0].mxu0 %vm93_vm0, %v138_v36  ;;  %2768 = vmatmul.mubr.msk.bf16.vlgmr.msra.gmra.mrb[0].mxu1 %vm93_vm0, %v138_v36 }
 0x14c   :  { %2772 = vmatpush3.bf16.msra.mxu0 %v3023_v35  ;;  %2775 = vmatprep.mubr.msk.bf16.mxu0 %vm3163_vm2, %v3162_v15 }
 0x14d   :  { %2773 = vmatprep.subr.bf16.mxu0 %v3162_v15  ;;  %2781 = vmatprep.mubr.msk.bf16.mxu1 %vm3163_vm2, %v3162_v15 }
 0x150   :  { %2774 = vmatpush3.bf16.msra.mxu0 %v3024_v37 }
 0x151   :  { %2785 = vmatprep.subr.bf16.mxu0 %v3162_v15 }
 0x153   :  { %2776 = vmatmul.mubr.msk.bf16.vlgmr.msra.gmra.mrb[4].mxu0 %vm93_vm0, %v138_v36 }
 0x154   :  { %2787 = vmatprep.mubr.msk.bf16.mxu0 %vm3163_vm2, %v3162_v15 }
 0x21e   :  { %v199_v40 = vpop.f32.mrb[0].mxu0  ;;  %v263_v42 = vpop.f32.mrb[0].mxu1 }
 0x21f   :  { %v2761_v43 = vpop.f32.mrb[1].mxu0  ;;  %v2769_v44 = vpop.f32.mrb[1].mxu1  ;;  %v200_v48 = vadd.f32 %v2525_v39, %v199_v40  ;;  %v264_v49 = vadd.f32 %v2529_v41, %v263_v42 }
 0x220   :  { %v202_v45 = vpop.f32.mrb[2].mxu0  ;;  %v266_v47 = vpop.f32.mrb[2].mxu1 }
 0x221   :  { %v203_v50 = vadd.f32 %v2525_v39, %v202_v45  ;;  %v267_v53 = vadd.f32 %v2529_v41, %v266_v47  ;;  %v2762_v54 = vpop.f32.mrb[3].mxu0  ;;  %v2770_v55 = vpop.f32.mrb[3].mxu1 }
 0x223   :  { %v334_v56 = vpack.c.bf16 %v203_v50, %v200_v48  ;;  %v335_v57 = vpack.c.bf16 %v267_v53, %v264_v49 }
 0x225   :  { %v350_v63 = vsel %vm93_vm0, %v335_v57, 0  ;;  %v345_v11 = vmul.bf16 %v3383_v3, %v334_v56  ;;  %v428_v12 = vmul.bf16 %v3385_v4, %v334_v56  ;;  %v601_v19 = vmul.bf16 %v3403_v17, %v334_v56 }
 0x226   :  { %v327_v62 = vpop.f32.mrb[4].mxu0  ;;  %2780 = vmatpush3.bf16.xpose.msra.mxu1 %v350_v63  ;;  %2786 = vmatpush3.bf16.xpose.msra.mxu0 %v350_v63  ;;  %v728_v22 = vmul.bf16 %v3416_v21, %v334_v56 }
 0x227   :  { %v2777_v2 = vpop.f32.mrb[5].mxu0  ;;  %2803 = vmatprep.subr.bf16.mxu0 %v3162_v15  ;;  %2791 = vmatprep.subr.bf16.mxu1 %v3162_v15  ;;  %v328_v7 = vadd.f32 %v2533_v61, %v327_v62 }
 0x228   :  { %v330_v5 = vpop.f32.mrb[6].mxu0 }
 0x229   :  { %v331_v8 = vadd.f32 %v2533_v61, %v330_v5  ;;  %v2778_v9 = vpop.f32.mrb[7].mxu0 }
 0x22b   :  { %v3392_v10 = vpack.c.bf16 %v331_v8, %v328_v7 }
 0x22d   :  { %v496_v14 = vmul.bf16 %v3385_v4, %v3392_v10  ;;  %2782 = vmatmul.mubr.msk.bf16.vlgmr.msra.gmra.mrb[4].mxu1 %vm93_vm0, %v345_v11  ;;  %2788 = vmatmul.mubr.msk.bf16.vlgmr.msra.gmra.mrb[8].mxu0 %vm93_vm0, %v428_v12 }
 0x22e   :  { %2804 = vmatpush3.bf16.xpose.msra.mxu0 %v350_v63  ;;  %2805 = vmatprep.mubr.msk.bf16.mxu0 %vm3163_vm2, %v3162_v15 }
 0x22f   :  { %v502_v16 = vsel %vm500_vm3, %v496_v14, 0  ;;  %2815 = vmatprep.subr.bf16.mxu0 %v3162_v15  ;;  %2793 = vmatprep.mubr.msk.bf16.mxu1 %vm3163_vm2, %v3162_v15 }
 0x230   :  { %2792 = vmatpush3.bf16.msra.mxu1 %v502_v16 }
 0x231   :  { %2797 = vmatprep.subr.bf16.mxu1 %v3162_v15 }
 0x235   :  { %2806 = vmatmul.mubr.msk.bf16.vlgmr.msra.gmra.mrb[12].mxu0 %vm93_vm0, %v601_v19 }
 0x236   :  { %2816 = vmatpush3.bf16.xpose.msra.mxu0 %v350_v63  ;;  %2817 = vmatprep.mubr.msk.bf16.mxu0 %vm3163_vm2, %v3162_v15 }
 0x237   :  { %2827 = vmatprep.subr.bf16.mxu0 %v3162_v15 }
 0x23d   :  { %2818 = vmatmul.mubr.msk.bf16.vlgmr.msra.gmra.mrb[16].mxu0 %vm93_vm0, %v728_v22 }
 0x23e   :  { %2831 = vmatprep.mubr.msk.bf16.mxu0 %vm3163_vm2, %v3162_v15 }
 0x300   :  { %v386_v24 = vpop.f32.mrb[4].mxu1  ;;  %v466_v25 = vpop.f32.mrb[8].mxu0 }
 0x301   :  { %v467_v27 = vadd.f32 %v466_v25, %v3426_v23  ;;  %v2783_v28 = vpop.f32.mrb[5].mxu1  ;;  %v2789_v29 = vpop.f32.mrb[9].mxu0  ;;  %v387_v32 = vadd.f32 %v386_v24, %v3426_v23 }
 0x302   :  { %v389_v30 = vpop.f32.mrb[6].mxu1  ;;  %v469_v31 = vpop.f32.mrb[10].mxu0 }
 0x303   :  { %v470_v33 = vadd.f32 %v469_v31, %v3431_v26  ;;  %v2784_v34 = vpop.f32.mrb[7].mxu1  ;;  %v2790_v35 = vpop.f32.mrb[11].mxu0  ;;  %v473_v36 = vsel %vm393_vm4, %v467_v27, -inf  ;;  %v390_v37 = vadd.f32 %v389_v30, %v3431_v26  ;;  %v394_v39 = vsel %vm393_vm4, %v387_v32, -inf }
 0x304   :  { %474 = vmax.xlane.f32.xlu0 %v473_v36 }
 0x305   :  { %v476_v38 = vsel %vm397_vm5, %v470_v33, -inf  ;;  %v398_v43 = vsel %vm397_vm5, %v390_v37, -inf }
 0x306   :  { %477 = vmax.xlane.f32.xlu1 %v476_v38 }
 0x308   :  { %395 = vmax.xlane.f32.xlu0 %v394_v39  ;;  %v639_v40 = vpop.f32.mrb[12].mxu0 }
 0x309   :  { %v640_v41 = vadd.f32 %v639_v40, %v3426_v23  ;;  %v2807_v42 = vpop.f32.mrb[13].mxu0 }
 0x30a   :  { %399 = vmax.xlane.f32.xlu1 %v398_v43  ;;  %v642_v44 = vpop.f32.mrb[14].mxu0  ;;  %v3025_v43 = vld [vmem:[%s3909_s6] sm:$0xff]  }
 0x30b   :  { %v643_v45 = vadd.f32 %v642_v44, %v3431_v26  ;;  %v2808_v46 = vpop.f32.mrb[15].mxu0  ;;  %v646_v47 = vsel %vm393_vm4, %v640_v41, -inf  ;;  %2828 = vmatpush3.bf16.msra.mxu0 %v3025_v43 }
 0x30c   :  { %647 = vmax.xlane.f32.xlu0 %v646_v47  ;;  %2829 = vmatprep.subr.bf16.mxu0 %v3162_v15 }
 0x30d   :  { %v649_v48 = vsel %vm397_vm5, %v643_v45, -inf }
 0x30e   :  { %650 = vmax.xlane.f32.xlu1 %v649_v48 }
 0x310   :  { %v766_v49 = vpop.f32.mrb[16].mxu0 }
 0x311   :  { %v767_v50 = vadd.f32 %v766_v49, %v3426_v23  ;;  %v2819_v51 = vpop.f32.mrb[17].mxu0 }
 0x312   :  { %v769_v52 = vpop.f32.mrb[18].mxu0 }
 0x313   :  { %v770_v53 = vadd.f32 %v769_v52, %v3431_v26  ;;  %v2820_v54 = vpop.f32.mrb[19].mxu0  ;;  %v773_v55 = vsel %vm393_vm4, %v767_v50, -inf  ;;  %v418_v52 = vmul.bf16 %v3383_v3, %v3392_v10 }
 0x314   :  { %774 = vmax.xlane.f32.xlu0 %v773_v55 }
 0x315   :  { %v776_v56 = vsel %vm397_vm5, %v770_v53, -inf  ;;  %v549_v54 = vsel %vm500_vm3, %v418_v52, 0 }
 0x316   :  { %777 = vmax.xlane.f32.xlu1 %v776_v56 }
 0x391   :  { %v475_v57 = vpop.xlane.xlu0 %474 }
 0x392   :  { %v479_v58 = vsub.f32 %v467_v27, %v475_v57 }
 0x393   :  { %v478_v59 = vpop.xlane.xlu1 %477 }
 0x394   :  { %v481_v60 = vmul.f32 1.442695, %v479_v58  ;;  %v480_v61 = vsub.f32 %v470_v33, %v478_v59 }
 0x395   :  { %v396_v62 = vpop.xlane.xlu0 %395 }
 0x396   :  { %3064 = vpow2.f32 %v481_v60  ;;  %v483_v63 = vmul.f32 1.442695, %v480_v61  ;;  %v401_v2 = vsub.f32 %v387_v32, %v396_v62  ;;  %v669_v61 = vmul.bf16 %v3403_v17, %v3392_v10 }
 0x397   :  { %v400_v5 = vpop.xlane.xlu1 %399 }
 0x398   :  { %3066 = vpow2.f32 %v483_v63  ;;  %v403_v6 = vmul.f32 1.442695, %v401_v2  ;;  %v402_v7 = vsub.f32 %v390_v37, %v400_v5  ;;  %v674_v63 = vsel %vm500_vm3, %v669_v61, 0 }
 0x399   :  { %v648_v8 = vpop.xlane.xlu0 %647 }
 0x39a   :  { %3068 = vpow2.f32 %v403_v6  ;;  %v405_v9 = vmul.f32 1.442695, %v402_v7  ;;  %v652_v11 = vsub.f32 %v640_v41, %v648_v8 }
 0x39b   :  { %v651_v12 = vpop.xlane.xlu1 %650 }
 0x39c   :  { %3070 = vpow2.f32 %v405_v9  ;;  %v654_v13 = vmul.f32 1.442695, %v652_v11  ;;  %v653_v14 = vsub.f32 %v643_v45, %v651_v12  ;;  %v796_v11 = vmul.bf16 %v3416_v21, %v3392_v10  ;;  %v3026_v10 = vld [vmem:[%s3909_s6 + $0x8] sm:$0xff]  }
 0x39d   :  { %2830 = vmatpush3.bf16.msra.mxu0 %v3026_v10 }
 0x39e   :  { %3072 = vpow2.f32 %v654_v13  ;;  %v656_v16 = vmul.f32 1.442695, %v653_v14  ;;  %v801_v13 = vsel %vm500_vm3, %v796_v11, 0  ;;  %2835 = vmatprep.subr.bf16.mxu0 %v3162_v15  ;;  %v3032_v11 = vld [vmem:[%s3859_s17 + $0x18] sm:$0xff]  }
 0x3a0   :  { %v3065_v18 = vpop.eup %3064  ;;  %3074 = vpow2.f32 %v656_v16 }
 0x3a1   :  { %v775_v19 = vpop.xlane.xlu0 %774  ;;  %v485_v20 = vsel %vm393_vm4, %v3065_v18, 0.0 }
 0x3a2   :  { %v3067_v22 = vpop.eup %3066  ;;  %v779_v24 = vsub.f32 %v767_v50, %v775_v19  ;;  %486 = vadd.xlane.f32.xlu0 %v485_v20 }
 0x3a3   :  { %v778_v25 = vpop.xlane.xlu1 %777  ;;  %v488_v27 = vsel %vm397_vm5, %v3067_v22, 0.0 }
 0x3a4   :  { %v3069_v28 = vpop.eup %3068  ;;  %v781_v29 = vmul.f32 1.442695, %v779_v24  ;;  %v780_v30 = vsub.f32 %v770_v53, %v778_v25  ;;  %489 = vadd.xlane.f32.xlu1 %v488_v27 }
 0x3a5   :  { %v407_v31 = vsel %vm393_vm4, %v3069_v28, 0.0 }
 0x3a6   :  { %v3071_v32 = vpop.eup %3070  ;;  %3076 = vpow2.f32 %v781_v29  ;;  %v783_v33 = vmul.f32 1.442695, %v780_v30  ;;  %408 = vadd.xlane.f32.xlu0 %v407_v31  ;;  %v2548_v29 = vld [vmem:[%s3855_s10] ss:$0 sm:$0xff] }
 0x3a7   :  { %v410_v34 = vsel %vm397_vm5, %v3071_v32, 0.0 }
 0x3a8   :  { %v3073_v35 = vpop.eup %3072  ;;  %3078 = vpow2.f32 %v783_v33  ;;  %411 = vadd.xlane.f32.xlu1 %v410_v34 }
 0x3a9   :  { %v658_v36 = vsel %vm393_vm4, %v3073_v35, 0.0 }
 0x3aa   :  { %v3075_v37 = vpop.eup %3074  ;;  %659 = vadd.xlane.f32.xlu0 %v658_v36 }
 0x3ab   :  { %v661_v38 = vsel %vm397_vm5, %v3075_v37, 0.0 }
 0x3ac   :  { %662 = vadd.xlane.f32.xlu1 %v661_v38 }
 0x3b0   :  { %v3077_v39 = vpop.eup %3076 }
 0x3b1   :  { %v785_v40 = vsel %vm393_vm4, %v3077_v39, 0.0 }
 0x3b2   :  { %v3079_v41 = vpop.eup %3078  ;;  %786 = vadd.xlane.f32.xlu0 %v785_v40 }
 0x3b3   :  { %v788_v42 = vsel %vm397_vm5, %v3079_v41, 0.0 }
 0x3b4   :  { %789 = vadd.xlane.f32.xlu1 %v788_v42 }
 0x42f   :  { %v487_v44 = vpop.xlane.xlu0 %486 }
 0x430   :  { %3080 = vrcp.f32 %v487_v44 }
 0x431   :  { %v490_v45 = vpop.xlane.xlu1 %489 }
 0x432   :  { %3082 = vrcp.f32 %v490_v45 }
 0x433   :  { %v409_v47 = vpop.xlane.xlu0 %408 }
 0x435   :  { %v412_v46 = vpop.xlane.xlu1 %411 }
 0x436   :  { %3084 = vrcp.f32 %v412_v46 }
 0x437   :  { %3086 = vrcp.f32 %v409_v47  ;;  %v660_v57 = vpop.xlane.xlu0 %659 }
 0x439   :  { %v663_v55 = vpop.xlane.xlu1 %662 }
 0x43a   :  { %v3081_v48 = vpop.eup %3080  ;;  %3088 = vrcp.f32 %v663_v55 }
 0x43b   :  { %v493_v50 = vmul.f32 %v3081_v48, %v3065_v18  ;;  %3090 = vrcp.f32 %v660_v57  ;;  %v3027_v48 = vld [vmem:[%s3856_s15] sm:$0xff]  }
 0x43c   :  { %v3083_v49 = vpop.eup %3082  ;;  %v2552_v57 = vld [vmem:[%s3857_s13] ss:$0 sm:$0xff] }
 0x43d   :  { %v494_v51 = vmul.f32 %v3083_v49, %v3067_v22  ;;  %v3028_v49 = vld [vmem:[%s3856_s15 + $0x8] sm:$0xff]  }
 0x43f   :  { %v495_v53 = vpack.c.bf16 %v494_v51, %v493_v50  ;;  %v787_v6 = vpop.xlane.xlu0 %786 }
 0x440   :  { %v3085_v56 = vpop.eup %3084 }
 0x441   :  { %2794 = vmatmul.mubr.msk.bf16.vlgmr.msra.gmra.mrb[8].mxu1 %vm393_vm4, %v495_v53  ;;  %v3087_v58 = vpop.eup %3086  ;;  %v416_v59 = vmul.f32 %v3085_v56, %v3071_v32  ;;  %v790_v2 = vpop.xlane.xlu1 %789 }
 0x442   :  { %2798 = vmatpush3.bf16.msra.mxu1 %v549_v54  ;;  %2799 = vmatprep.mubr.msk.bf16.mxu1 %vm3163_vm2, %v3162_v15  ;;  %v415_v60 = vmul.f32 %v3087_v58, %v3069_v28  ;;  %3092 = vrcp.f32 %v790_v2 }
 0x443   :  { %2809 = vmatprep.subr.bf16.mxu1 %v3162_v15  ;;  %3094 = vrcp.f32 %v787_v6 }
 0x444   :  { %v417_v62 = vpack.c.bf16 %v416_v59, %v415_v60  ;;  %v3089_v5 = vpop.eup %3088 }
 0x445   :  { %v3091_v7 = vpop.eup %3090  ;;  %v667_v8 = vmul.f32 %v3089_v5, %v3075_v37 }
 0x446   :  { %v666_v9 = vmul.f32 %v3091_v7, %v3073_v35  ;;  %v3029_v7 = vld [vmem:[%s3859_s17] sm:$0xff]  }
 0x448   :  { %v668_v12 = vpack.c.bf16 %v667_v8, %v666_v9  ;;  %v3030_v8 = vld [vmem:[%s3859_s17 + $0x8] sm:$0xff]   ;;  %v3031_v9 = vld [vmem:[%s3859_s17 + $0x10] sm:$0xff]  }
 0x44c   :  { %v3093_v14 = vpop.eup %3092 }
 0x44d   :  { %2800 = vmatmul.mubr.msk.bf16.vlgmr.msra.gmra.mrb[8].mxu1 %vm393_vm4, %v417_v62  ;;  %v3095_v16 = vpop.eup %3094  ;;  %v794_v18 = vmul.f32 %v3093_v14, %v3079_v41  ;;  %v2553_v62 = vld [vmem:[%s3858_s14] ss:$0 sm:$0xff]  ;;  %v3035_v14 = vld [vmem:[%s3859_s17 + $0x30] sm:$0xff]  }
 0x44e   :  { %2810 = vmatpush3.bf16.msra.mxu1 %v674_v63  ;;  %2811 = vmatprep.mubr.msk.bf16.mxu1 %vm3163_vm2, %v3162_v15  ;;  %v793_v19 = vmul.f32 %v3095_v16, %v3077_v39  ;;  %v3036_v16 = vld [vmem:[%s3859_s17 + $0x38] sm:$0xff]  }
 0x44f   :  { %2821 = vmatprep.subr.bf16.mxu1 %v3162_v15 }
 0x450   :  { %v795_v20 = vpack.c.bf16 %v794_v18, %v793_v19  ;;  %v2554_v18 = vld [vmem:[%s3860_s16] ss:$0 sm:$0xff] }
 0x459   :  { %2812 = vmatmul.mubr.msk.bf16.vlgmr.msra.gmra.mrb[8].mxu1 %vm393_vm4, %v668_v12  ;;  %v3033_v12 = vld [vmem:[%s3859_s17 + $0x20] sm:$0xff]  }
 0x45a   :  { %2822 = vmatpush3.bf16.msra.mxu1 %v801_v13  ;;  %2823 = vmatprep.mubr.msk.bf16.mxu1 %vm3163_vm2, %v3162_v15  ;;  %v3034_v13 = vld [vmem:[%s3859_s17 + $0x28] sm:$0xff]  }
 0x45b   :  { %2843 = vmatprep.subr.bf16.mxu1 %v3162_v15 }
 0x465   :  { %2824 = vmatmul.mubr.msk.bf16.vlgmr.msra.gmra.mrb[8].mxu1 %vm393_vm4, %v795_v20 }
 0x466   :  { %2859 = vmatprep.mubr.msk.bf16.mxu1 %vm3163_vm2, %v3162_v15  ;;  %2844 = vmatpush3.bf16.msra.mxu1 %v3029_v7 }
 0x467   :  { %2845 = vmatprep.subr.bf16.mxu1 %v3162_v15 }
 0x46a   :  { %2846 = vmatpush3.bf16.msra.mxu1 %v3030_v8 }
 0x46b   :  { %2847 = vmatprep.subr.bf16.mxu1 %v3162_v15 }
 0x46e   :  { %2848 = vmatpush3.bf16.msra.mxu1 %v3031_v9 }
 0x46f   :  { %2849 = vmatprep.subr.bf16.mxu1 %v3162_v15 }
 0x472   :  { %2850 = vmatpush3.bf16.msra.mxu1 %v3032_v11 }
 0x473   :  { %2851 = vmatprep.subr.bf16.mxu1 %v3162_v15 }
 0x476   :  { %2852 = vmatpush3.bf16.msra.mxu1 %v3033_v12 }
 0x477   :  { %2853 = vmatprep.subr.bf16.mxu1 %v3162_v15 }
 0x47a   :  { %2854 = vmatpush3.bf16.msra.mxu1 %v3034_v13 }
 0x47b   :  { %2855 = vmatprep.subr.bf16.mxu1 %v3162_v15 }
 0x47e   :  { %2856 = vmatpush3.bf16.msra.mxu1 %v3035_v14 }
 0x47f   :  { %2857 = vmatprep.subr.bf16.mxu1 %v3162_v15 }
 0x482   :  { %2858 = vmatpush3.bf16.msra.mxu1 %v3036_v16 }
 0x483   :  { %2893 = vmatprep.subr.bf16.mxu1 %v3162_v15 }
 0x538   :  { %v837_v22 = vpop.f32.mrb[8].mxu1 }
 0x539   :  { %v2825_v24 = vpop.f32.mrb[9].mxu1 }
 0x53a   :  { %v840_v25 = vpop.f32.mrb[10].mxu1 }
 0x53b   :  { %v846_v27 = vpack.c.bf16 %v840_v25, %v837_v22  ;;  %v2826_v28 = vpop.f32.mrb[11].mxu1 }
 0x53d   :  { %2832 = vmatmul.mubr.msk.bf16.vlgmr.msra.gmra.mrb[20].mxu0 %vm93_vm0, %v846_v27 }
 0x53e   :  { %2839 = vmatprep.mubr.msk.bf16.mxu0 %vm3163_vm2, %v3162_v15  ;;  %2836 = vmatpush3.bf16.msra.mxu0 %v3027_v48 }
 0x53f   :  { %2837 = vmatprep.subr.bf16.mxu0 %v3162_v15 }
 0x542   :  { %2838 = vmatpush3.bf16.msra.mxu0 %v3028_v49 }
 0x543   :  { %2863 = vmatprep.subr.bf16.mxu0 %v3162_v15 }
 0x610   :  { %v907_v30 = vpop.f32.mrb[20].mxu0 }
 0x611   :  { %v908_v31 = vadd.f32 %v2548_v29, %v907_v30  ;;  %v2833_v32 = vpop.f32.mrb[21].mxu0 }
 0x612   :  { %v910_v33 = vpop.f32.mrb[22].mxu0 }
 0x613   :  { %v3496_v34 = vadd.f32 %v908_v31, %v3307_v0  ;;  %v911_v35 = vadd.f32 %v2548_v29, %v910_v33  ;;  %v2834_v36 = vpop.f32.mrb[23].mxu0 }
 0x615   :  { %v3499_v37 = vadd.f32 %v911_v35, %v3312_v1  ;;  %v918_v38 = vsel %vm93_vm0, %v3496_v34, 0.0 }
 0x616   :  { %919 = vadd.xlane.f32.xlu0 %v918_v38 }
 0x617   :  { %v921_v39 = vsel %vm97_vm1, %v3499_v37, 0.0 }
 0x618   :  { %922 = vadd.xlane.f32.xlu1 %v921_v39 }
 0x6a3   :  { %v920_v40 = vpop.xlane.xlu0 %919 }
 0x6a4   :  { %v924_v41 = vmul.f32 0.03125, %v920_v40 }
 0x6a5   :  { %v923_v42 = vpop.xlane.xlu1 %922 }
 0x6a6   :  { %v926_v43 = vsub.f32 %v3496_v34, %v924_v41  ;;  %v925_v0 = vmul.f32 0.03125, %v923_v42 }
 0x6a8   :  { %v927_v44 = vsub.f32 %v3499_v37, %v925_v0  ;;  %v928_v45 = vmul.f32 %v926_v43, %v926_v43 }
 0x6aa   :  { %v930_v1 = vsel %vm93_vm0, %v928_v45, 0.0  ;;  %v929_v46 = vmul.f32 %v927_v44, %v927_v44 }
 0x6ab   :  { %931 = vadd.xlane.f32.xlu0 %v930_v1 }
 0x6ac   :  { %v933_v47 = vsel %vm97_vm1, %v929_v46, 0.0 }
 0x6ad   :  { %934 = vadd.xlane.f32.xlu1 %v933_v47 }
 0x738   :  { %v932_v50 = vpop.xlane.xlu0 %931 }
 0x739   :  { %v936_v51 = vmul.f32 0.03125, %v932_v50 }
 0x73a   :  { %v935_v52 = vpop.xlane.xlu1 %934 }
 0x73b   :  { %v938_v53 = vadd.f32 1e-05, %v936_v51  ;;  %v937_v54 = vmul.f32 0.03125, %v935_v52 }
 0x73d   :  { %3096 = vrsqrt.f32 %v938_v53  ;;  %v939_v55 = vadd.f32 1e-05, %v937_v54 }
 0x73f   :  { %3098 = vrsqrt.f32 %v939_v55 }
 0x747   :  { %v3097_v56 = vpop.eup %3096 }
 0x748   :  { %v942_v58 = vmul.f32 %v3097_v56, %v926_v43 }
 0x749   :  { %v3099_v59 = vpop.eup %3098 }
 0x74a   :  { %v950_v60 = vmul.f32 %v2552_v57, %v942_v58  ;;  %v943_v61 = vmul.f32 %v3099_v59, %v927_v44 }
 0x74c   :  { %v951_v63 = vmul.f32 %v2552_v57, %v943_v61  ;;  %v958_v2 = vadd.f32 %v2553_v62, %v950_v60 }
 0x74e   :  { %v959_v5 = vadd.f32 %v2553_v62, %v951_v63 }
 0x750   :  { %v960_v6 = vpack.c.bf16 %v959_v5, %v958_v2 }
 0x752   :  { %2840 = vmatmul.mubr.msk.bf16.vlgmr.msra.gmra.mrb[24].mxu0 %vm93_vm0, %v960_v6 }
 0x753   :  { %2867 = vmatprep.mubr.msk.bf16.mxu0 %vm3163_vm2, %v3162_v15 }
 0x825   :  { %v1021_v19 = vpop.f32.mrb[24].mxu0 }
 0x826   :  { %v1022_v20 = vadd.f32 %v2554_v18, %v1021_v19  ;;  %v2841_v10 = vpop.f32.mrb[25].mxu0 }
 0x827   :  { %v1024_v22 = vpop.f32.mrb[26].mxu0 }
 0x828   :  { %v1030_v24 = vmul.f32 0.70710677, %v1022_v20  ;;  %v1025_v25 = vadd.f32 %v2554_v18, %v1024_v22  ;;  %v2842_v27 = vpop.f32.mrb[27].mxu0  ;;  %v1028_v13 = vmul.f32 0.5, %v1022_v20  ;;  %v2558_v22 = vld [vmem:[%s3861_s18] ss:$0 sm:$0xff] }
 0x82a   :  { %v1032_v28 = vand.u32 2147483647, %v1030_v24  ;;  %v1031_v29 = vmul.f32 0.70710677, %v1025_v25  ;;  %vm1070_vm6 = vcmp.lt.f32.partialorder %v1030_v24, 0.0  ;;  %v1029_v14 = vmul.f32 0.5, %v1025_v25 }
 0x82c   :  { %v1034_v30 = vmul.f32 0.3275911, %v1032_v28  ;;  %v1033_v31 = vand.u32 2147483647, %v1031_v29  ;;  %v1058_v36 = vsub.f32 0.0, %v1032_v28  ;;  %vm1071_vm7 = vcmp.lt.f32.partialorder %v1031_v29, 0.0 }
 0x82e   :  { %v1036_v32 = vadd.f32 1.0, %v1034_v30  ;;  %v1035_v33 = vmul.f32 0.3275911, %v1033_v31  ;;  %v1059_v38 = vsub.f32 0.0, %v1033_v31  ;;  %v1060_v40 = vmul.f32 %v1058_v36, %v1032_v28 }
 0x830   :  { %3100 = vrcp.f32 %v1036_v32  ;;  %v1037_v35 = vadd.f32 1.0, %v1035_v33  ;;  %v1061_v0 = vmul.f32 %v1059_v38, %v1033_v31  ;;  %v1062_v44 = vmul.f32 1.442695, %v1060_v40 }
 0x832   :  { %3102 = vrcp.f32 %v1037_v35  ;;  %v1064_v48 = vmul.f32 1.442695, %v1061_v0  ;;  %v3037_v0 = vld [vmem:[%s3899_s0 + $0x10] sm:$0xff]  }
 0x833   :  { %3104 = vpow2.f32 %v1062_v44  ;;  %2864 = vmatpush3.bf16.msra.mxu0 %v3037_v0  ;;  %v3038_v44 = vld [vmem:[%s3899_s0 + $0x18] sm:$0xff]  }
 0x834   :  { %3106 = vpow2.f32 %v1064_v48  ;;  %2865 = vmatprep.subr.bf16.mxu0 %v3162_v15 }
 0x837   :  { %2866 = vmatpush3.bf16.msra.mxu0 %v3038_v44 }
 0x838   :  { %2871 = vmatprep.subr.bf16.mxu0 %v3162_v15 }
 0x83a   :  { %v3101_v39 = vpop.eup %3100 }
 0x83b   :  { %v1040_v41 = vmul.f32 1.0614054, %v3101_v39 }
 0x83c   :  { %v3103_v42 = vpop.eup %3102 }
 0x83d   :  { %v1042_v43 = vadd.f32 -1.4531521, %v1040_v41  ;;  %v1041_v45 = vmul.f32 1.0614054, %v3103_v42  ;;  %v3105_v59 = vpop.eup %3104 }
 0x83e   :  { %v3107_v63 = vpop.eup %3106 }
 0x83f   :  { %v1044_v1 = vmul.f32 %v3101_v39, %v1042_v43  ;;  %v1043_v46 = vadd.f32 -1.4531521, %v1041_v45 }
 0x841   :  { %v1046_v47 = vadd.f32 1.4214138, %v1044_v1  ;;  %v1045_v49 = vmul.f32 %v3103_v42, %v1043_v46 }
 0x843   :  { %v1048_v50 = vmul.f32 %v3101_v39, %v1046_v47  ;;  %v1047_v51 = vadd.f32 1.4214138, %v1045_v49 }
 0x845   :  { %v1050_v52 = vadd.f32 -0.28449672, %v1048_v50  ;;  %v1049_v53 = vmul.f32 %v3103_v42, %v1047_v51  ;;  %v2569_v51 = vld [vmem:[%s3901_s11 + $0x1] ss:$0 sm:$0xff] }
 0x847   :  { %v1052_v54 = vmul.f32 %v3101_v39, %v1050_v52  ;;  %v1051_v55 = vadd.f32 -0.28449672, %v1049_v53 }
 0x849   :  { %v1054_v56 = vadd.f32 0.2548296, %v1052_v54  ;;  %v1053_v57 = vmul.f32 %v3103_v42, %v1051_v55  ;;  %v2570_v54 = vld [vmem:[%s3902_s12 + $0x1] ss:$0 sm:$0xff] }
 0x84b   :  { %v1056_v58 = vmul.f32 %v3101_v39, %v1054_v56  ;;  %v1055_v60 = vadd.f32 0.2548296, %v1053_v57 }
 0x84d   :  { %v1066_v61 = vmul.f32 %v3105_v59, %v1056_v58  ;;  %v1057_v62 = vmul.f32 %v3103_v42, %v1055_v60  ;;  %v3039_v60 = vld [vmem:[%s3900_s3 + $0x10] sm:$0xff]  }
 0x84f   :  { %v1068_v2 = vsub.f32 1.0, %v1066_v61  ;;  %v1067_v5 = vmul.f32 %v3107_v63, %v1057_v62  ;;  %v3040_v62 = vld [vmem:[%s3900_s3 + $0x18] sm:$0xff]   ;;  %v3041_v63 = vld [vmem:[%s3903_s29 + $0x10] sm:$0xff]  }
 0x851   :  { %v1072_v6 = vsub.f32 0.0, %v1068_v2  ;;  %v1069_v7 = vsub.f32 1.0, %v1067_v5  ;;  %v2576_v5 = vld [vmem:[%s3904_s2 + $0x1] ss:$0 sm:$0xff] }
 0x853   :  { %v1074_v8 = vsel %vm1070_vm6, %v1072_v6, %v1068_v2  ;;  %v1073_v9 = vsub.f32 0.0, %v1069_v7  ;;  %v3042_v2 = vld [vmem:[%s3903_s29 + $0x18] sm:$0xff]  }
 0x854   :  { %v1076_v11 = vadd.f32 1.0, %v1074_v8 }
 0x855   :  { %v1075_v12 = vsel %vm1071_vm7, %v1073_v9, %v1069_v7 }
 0x856   :  { %v1077_v16 = vadd.f32 1.0, %v1075_v12  ;;  %v1078_v18 = vmul.f32 %v1076_v11, %v1028_v13 }
 0x858   :  { %v1079_v19 = vmul.f32 %v1077_v16, %v1029_v14  ;;  %v2585_v14 = vld [vmem:[%s3905_s8 + $0x1] ss:$0 sm:$0xff] }
 0x85a   :  { %v1080_v10 = vpack.c.bf16 %v1079_v19, %v1078_v18 }
 0x85c   :  { %2860 = vmatmul.mubr.bf16.vlgmr.msra.gmra.mrb[12].mxu1 %v1080_v10 }
 0x85d   :  { %2895 = vmatprep.mubr.msk.bf16.mxu1 %vm3163_vm2, %v3162_v15 }
 0x92f   :  { %v1186_v24 = vpop.f32.mrb[12].mxu1 }
 0x930   :  { %v1187_v27 = vadd.f32 %v2558_v22, %v1186_v24  ;;  %v2861_v28 = vpop.f32.mrb[13].mxu1 }
 0x931   :  { %v1189_v30 = vpop.f32.mrb[14].mxu1 }
 0x932   :  { %v3567_v29 = vadd.f32 %v1187_v27, %v3496_v34  ;;  %v1190_v20 = vadd.f32 %v2558_v22, %v1189_v30  ;;  %v2862_v25 = vpop.f32.mrb[15].mxu1  ;;  %v2594_v30 = vld [vmem:[%s3907_s30 + $0x1] ss:$0 sm:$0xff] }
 0x934   :  { %v3570_v31 = vadd.f32 %v1190_v20, %v3499_v37  ;;  %v1199_v32 = vsel %vm93_vm0, %v3567_v29, 0.0 }
 0x935   :  { %1200 = vadd.xlane.f32.xlu0 %v1199_v32 }
 0x936   :  { %v1202_v33 = vsel %vm97_vm1, %v3570_v31, 0.0 }
 0x937   :  { %1203 = vadd.xlane.f32.xlu1 %v1202_v33 }
 0x9c2   :  { %v1201_v35 = vpop.xlane.xlu0 %1200 }
 0x9c3   :  { %v1205_v36 = vmul.f32 0.03125, %v1201_v35 }
 0x9c4   :  { %v1204_v38 = vpop.xlane.xlu1 %1203 }
 0x9c5   :  { %v1207_v39 = vsub.f32 %v3567_v29, %v1205_v36  ;;  %v1206_v34 = vmul.f32 0.03125, %v1204_v38 }
 0x9c7   :  { %v1208_v40 = vsub.f32 %v3570_v31, %v1206_v34  ;;  %v1209_v41 = vmul.f32 %v1207_v39, %v1207_v39 }
 0x9c9   :  { %v1211_v37 = vsel %vm93_vm0, %v1209_v41, 0.0  ;;  %v1210_v42 = vmul.f32 %v1208_v40, %v1208_v40 }
 0x9ca   :  { %1212 = vadd.xlane.f32.xlu0 %v1211_v37 }
 0x9cb   :  { %v1214_v43 = vsel %vm97_vm1, %v1210_v42, 0.0 }
 0x9cc   :  { %1215 = vadd.xlane.f32.xlu1 %v1214_v43 }
 0xa57   :  { %v1213_v45 = vpop.xlane.xlu0 %1212 }
 0xa58   :  { %v1217_v1 = vmul.f32 0.03125, %v1213_v45 }
 0xa59   :  { %v1216_v46 = vpop.xlane.xlu1 %1215 }
 0xa5a   :  { %v1219_v47 = vadd.f32 1e-05, %v1217_v1  ;;  %v1218_v48 = vmul.f32 0.03125, %v1216_v46 }
 0xa5c   :  { %3108 = vrsqrt.f32 %v1219_v47  ;;  %v1220_v49 = vadd.f32 1e-05, %v1218_v48 }
 0xa5e   :  { %3110 = vrsqrt.f32 %v1220_v49 }
 0xa66   :  { %v3109_v50 = vpop.eup %3108 }
 0xa67   :  { %v1223_v52 = vmul.f32 %v3109_v50, %v1207_v39 }
 0xa68   :  { %v3111_v53 = vpop.eup %3110 }
 0xa69   :  { %v1231_v55 = vmul.f32 %v2569_v51, %v1223_v52  ;;  %v1224_v56 = vmul.f32 %v3111_v53, %v1208_v40 }
 0xa6b   :  { %v1232_v57 = vmul.f32 %v2569_v51, %v1224_v56  ;;  %v1239_v58 = vadd.f32 %v2570_v54, %v1231_v55 }
 0xa6d   :  { %v1240_v59 = vadd.f32 %v2570_v54, %v1232_v57 }
 0xa6f   :  { %v1241_v61 = vpack.c.bf16 %v1240_v59, %v1239_v58 }
 0xa71   :  { %2868 = vmatmul.mubr.msk.bf16.vlgmr.msra.gmra.mrb[28].mxu0 %vm93_vm0, %v1241_v61 }
 0xa72   :  { %2872 = vmatpush3.bf16.msra.mxu0 %v3039_v60  ;;  %2875 = vmatprep.mubr.msk.bf16.mxu0 %vm3163_vm2, %v3162_v15 }
 0xa73   :  { %2873 = vmatprep.subr.bf16.mxu0 %v3162_v15 }
 0xa76   :  { %2874 = vmatpush3.bf16.msra.mxu0 %v3040_v62 }
 0xa77   :  { %2879 = vmatprep.subr.bf16.mxu0 %v3162_v15 }
 0xa79   :  { %2876 = vmatmul.mubr.msk.bf16.vlgmr.msra.gmra.mrb[32].mxu0 %vm93_vm0, %v1241_v61 }
 0xa7a   :  { %2880 = vmatpush3.bf16.msra.mxu0 %v3041_v63  ;;  %2883 = vmatprep.mubr.msk.bf16.mxu0 %vm3163_vm2, %v3162_v15 }
 0xa7b   :  { %2881 = vmatprep.subr.bf16.mxu0 %v3162_v15 }
 0xa7e   :  { %2882 = vmatpush3.bf16.msra.mxu0 %v3042_v2 }
 0xa7f   :  { %2887 = vmatprep.subr.bf16.mxu0 %v3162_v15 }
 0xa81   :  { %2884 = vmatmul.mubr.msk.bf16.vlgmr.msra.gmra.mrb[36].mxu0 %vm93_vm0, %v1241_v61 }
 0xa82   :  { %2889 = vmatprep.mubr.msk.bf16.mxu0 %vm3163_vm2, %v3162_v15 }
 0xb44   :  { %v1304_v6 = vpop.f32.mrb[28].mxu0 }
 0xb45   :  { %v2869_v7 = vpop.f32.mrb[29].mxu0  ;;  %v1305_v9 = vadd.f32 %v2576_v5, %v1304_v6 }
 0xb46   :  { %v1307_v8 = vpop.f32.mrb[30].mxu0 }
 0xb47   :  { %v1308_v11 = vadd.f32 %v2576_v5, %v1307_v8  ;;  %v2870_v12 = vpop.f32.mrb[31].mxu0  ;;  %v3160_v5 = vld [vmem:[%s3908_s7] sm:$0xff]  ;;  %v3161_v8 = vld [vmem:[%s3908_s7 + $0x8] sm:$0x3] }
 0xb49   :  { %v1443_v13 = vpack.c.bf16 %v1308_v11, %v1305_v9 }
 0xb4b   :  { %v1446_v38 = vmul.bf16 %v1443_v13, %v3383_v3  ;;  %v1518_v39 = vmul.bf16 %v1443_v13, %v3385_v4  ;;  %v1681_v37 = vmul.bf16 %v1443_v13, %v3403_v17 }
 0xb4c   :  { %v1370_v16 = vpop.f32.mrb[32].mxu0 }
 0xb4d   :  { %v2877_v18 = vpop.f32.mrb[33].mxu0  ;;  %v1371_v10 = vadd.f32 %v2585_v14, %v1370_v16 }
 0xb4e   :  { %v1373_v19 = vpop.f32.mrb[34].mxu0 }
 0xb4f   :  { %v1374_v22 = vadd.f32 %v2585_v14, %v1373_v19  ;;  %v2878_v24 = vpop.f32.mrb[35].mxu0 }
 0xb51   :  { %v1444_v27 = vpack.c.bf16 %v1374_v22, %v1371_v10 }
 0xb53   :  { %v1451_v28 = vsel %vm93_vm0, %v1444_v27, 0 }
 0xb54   :  { %v1436_v20 = vpop.f32.mrb[36].mxu0  ;;  %2888 = vmatpush3.bf16.xpose.msra.mxu0 %v1451_v28  ;;  %2894 = vmatpush3.bf16.xpose.msra.mxu1 %v1451_v28 }
 0xb55   :  { %v2885_v25 = vpop.f32.mrb[37].mxu0  ;;  %2911 = vmatprep.subr.bf16.mxu1 %v3162_v15  ;;  %2899 = vmatprep.subr.bf16.mxu0 %v3162_v15  ;;  %v1437_v33 = vadd.f32 %v2594_v30, %v1436_v20 }
 0xb56   :  { %v1439_v32 = vpop.f32.mrb[38].mxu0 }
 0xb57   :  { %v1440_v35 = vadd.f32 %v2594_v30, %v1439_v32  ;;  %v2886_v36 = vpop.f32.mrb[39].mxu0 }
 0xb59   :  { %v3633_v34 = vpack.c.bf16 %v1440_v35, %v1437_v33 }
 0xb5b   :  { %2890 = vmatmul.mubr.msk.bf16.vlgmr.msra.gmra.mrb[40].mxu0 %vm93_vm0, %v1446_v38  ;;  %2896 = vmatmul.mubr.msk.bf16.vlgmr.msra.gmra.mrb[16].mxu1 %vm93_vm0, %v1518_v39  ;;  %v1586_v40 = vmul.bf16 %v3633_v34, %v3385_v4  ;;  %v1799_v4 = vmul.bf16 %v1443_v13, %v3416_v21 }
 0xb5c   :  { %2912 = vmatpush3.bf16.xpose.msra.mxu1 %v1451_v28  ;;  %2913 = vmatprep.mubr.msk.bf16.mxu1 %vm3163_vm2, %v3162_v15 }
 0xb5d   :  { %v1591_v41 = vsel %vm500_vm3, %v1586_v40, 0  ;;  %2923 = vmatprep.subr.bf16.mxu1 %v3162_v15  ;;  %2901 = vmatprep.mubr.msk.bf16.mxu0 %vm3163_vm2, %v3162_v15 }
 0xb5e   :  { %2900 = vmatpush3.bf16.msra.mxu0 %v1591_v41 }
 0xb5f   :  { %2905 = vmatprep.subr.bf16.mxu0 %v3162_v15 }
 0xb63   :  { %2914 = vmatmul.mubr.msk.bf16.vlgmr.msra.gmra.mrb[20].mxu1 %vm93_vm0, %v1681_v37 }
 0xb64   :  { %2924 = vmatpush3.bf16.xpose.msra.mxu1 %v1451_v28  ;;  %2925 = vmatprep.mubr.msk.bf16.mxu1 %vm3163_vm2, %v3162_v15 }
 0xb65   :  { %2935 = vmatprep.subr.bf16.mxu1 %v3162_v15 }
 0xb6b   :  { %2926 = vmatmul.mubr.msk.bf16.vlgmr.msra.gmra.mrb[24].mxu1 %vm93_vm0, %v1799_v4 }
 0xb6c   :  { %2939 = vmatprep.mubr.msk.bf16.mxu1 %vm3163_vm2, %v3162_v15 }
 0xc2e   :  { %v1487_v42 = vpop.f32.mrb[40].mxu0  ;;  %v1556_v43 = vpop.f32.mrb[16].mxu1 }
 0xc2f   :  { %v1557_v0 = vadd.f32 %v1556_v43, %v3426_v23  ;;  %v2891_v44 = vpop.f32.mrb[41].mxu0  ;;  %v2897_v45 = vpop.f32.mrb[17].mxu1  ;;  %v1488_v47 = vadd.f32 %v1487_v42, %v3426_v23 }
 0xc30   :  { %v1490_v1 = vpop.f32.mrb[42].mxu0  ;;  %v1559_v46 = vpop.f32.mrb[18].mxu1 }
 0xc31   :  { %v1560_v48 = vadd.f32 %v1559_v46, %v3431_v26  ;;  %v2892_v49 = vpop.f32.mrb[43].mxu0  ;;  %v2898_v50 = vpop.f32.mrb[19].mxu1  ;;  %v1563_v51 = vsel %vm393_vm4, %v1557_v0, -inf  ;;  %v1491_v52 = vadd.f32 %v1490_v1, %v3431_v26  ;;  %v1494_v54 = vsel %vm393_vm4, %v1488_v47, -inf }
 0xc32   :  { %1564 = vmax.xlane.f32.xlu0 %v1563_v51 }
 0xc33   :  { %v1566_v53 = vsel %vm397_vm5, %v1560_v48, -inf  ;;  %v1497_v58 = vsel %vm397_vm5, %v1491_v52, -inf }
 0xc34   :  { %1567 = vmax.xlane.f32.xlu1 %v1566_v53 }
 0xc36   :  { %v1719_v55 = vpop.f32.mrb[20].mxu1  ;;  %1495 = vmax.xlane.f32.xlu0 %v1494_v54 }
 0xc37   :  { %v1720_v56 = vadd.f32 %v1719_v55, %v3426_v23  ;;  %v2915_v57 = vpop.f32.mrb[21].mxu1 }
 0xc38   :  { %v1722_v59 = vpop.f32.mrb[22].mxu1  ;;  %1498 = vmax.xlane.f32.xlu1 %v1497_v58  ;;  %v3043_v57 = vld [vmem:[%s3909_s6 + $0x10] sm:$0xff]  }
 0xc39   :  { %v1723_v60 = vadd.f32 %v1722_v59, %v3431_v26  ;;  %v2916_v61 = vpop.f32.mrb[23].mxu1  ;;  %v1726_v62 = vsel %vm393_vm4, %v1720_v56, -inf  ;;  %2936 = vmatpush3.bf16.msra.mxu1 %v3043_v57  ;;  %v3046_v57 = vld [vmem:[%s3856_s15 + $0x18] sm:$0xff]  }
 0xc3a   :  { %1727 = vmax.xlane.f32.xlu0 %v1726_v62  ;;  %2937 = vmatprep.subr.bf16.mxu1 %v3162_v15 }
 0xc3b   :  { %v1729_v63 = vsel %vm397_vm5, %v1723_v60, -inf }
 0xc3c   :  { %1730 = vmax.xlane.f32.xlu1 %v1729_v63 }
 0xc3e   :  { %v1837_v2 = vpop.f32.mrb[24].mxu1 }
 0xc3f   :  { %v1838_v23 = vadd.f32 %v3160_v5, %v1837_v2  ;;  %v2927_v6 = vpop.f32.mrb[25].mxu1 }
 0xc40   :  { %v1840_v7 = vpop.f32.mrb[26].mxu1 }
 0xc41   :  { %v1841_v26 = vadd.f32 %v3161_v8, %v1840_v7  ;;  %v2928_v9 = vpop.f32.mrb[27].mxu1  ;;  %v1844_v11 = vsel %vm393_vm4, %v1838_v23, -inf }
 0xc42   :  { %1845 = vmax.xlane.f32.xlu0 %v1844_v11 }
 0xc43   :  { %v1847_v12 = vsel %vm397_vm5, %v1841_v26, -inf }
 0xc44   :  { %1848 = vmax.xlane.f32.xlu1 %v1847_v12 }
 0xcbf   :  { %v1565_v13 = vpop.xlane.xlu0 %1564 }
 0xcc0   :  { %v1569_v14 = vsub.f32 %v1557_v0, %v1565_v13 }
 0xcc1   :  { %v1568_v16 = vpop.xlane.xlu1 %1567 }
 0xcc2   :  { %v1571_v18 = vmul.f32 1.442695, %v1569_v14  ;;  %v1570_v19 = vsub.f32 %v1560_v48, %v1568_v16 }
 0xcc3   :  { %v1496_v10 = vpop.xlane.xlu0 %1495 }
 0xcc4   :  { %3112 = vpow2.f32 %v1571_v18  ;;  %v1573_v22 = vmul.f32 1.442695, %v1570_v19  ;;  %v1500_v24 = vsub.f32 %v1488_v47, %v1496_v10 }
 0xcc5   :  { %v1499_v27 = vpop.xlane.xlu1 %1498 }
 0xcc6   :  { %3114 = vpow2.f32 %v1573_v22  ;;  %v1502_v28 = vmul.f32 1.442695, %v1500_v24  ;;  %v1501_v30 = vsub.f32 %v1491_v52, %v1499_v27 }
 0xcc7   :  { %v1728_v20 = vpop.xlane.xlu0 %1727 }
 0xcc8   :  { %3116 = vpow2.f32 %v1502_v28  ;;  %v1504_v25 = vmul.f32 1.442695, %v1501_v30  ;;  %v1732_v32 = vsub.f32 %v1720_v56, %v1728_v20 }
 0xcc9   :  { %v1731_v33 = vpop.xlane.xlu1 %1730 }
 0xcca   :  { %3118 = vpow2.f32 %v1504_v25  ;;  %v1734_v35 = vmul.f32 1.442695, %v1732_v32  ;;  %v1733_v36 = vsub.f32 %v1723_v60, %v1731_v33 }
 0xccc   :  { %3120 = vpow2.f32 %v1734_v35  ;;  %v1736_v38 = vmul.f32 1.442695, %v1733_v36 }
 0xcce   :  { %v3113_v39 = vpop.eup %3112  ;;  %3122 = vpow2.f32 %v1736_v38 }
 0xccf   :  { %v1846_v40 = vpop.xlane.xlu0 %1845  ;;  %v1575_v41 = vsel %vm393_vm4, %v3113_v39, 0.0 }
 0xcd0   :  { %v3115_v37 = vpop.eup %3114  ;;  %v1850_v4 = vsub.f32 %v1838_v23, %v1846_v40  ;;  %1576 = vadd.xlane.f32.xlu0 %v1575_v41  ;;  %v1517_v23 = vmul.bf16 %v3633_v34, %v3383_v3  ;;  %v1749_v3 = vmul.bf16 %v3633_v34, %v3403_v17  ;;  %v1867_v17 = vmul.bf16 %v3633_v34, %v3416_v21  ;;  %v3044_v21 = vld [vmem:[%s3909_s6 + $0x18] sm:$0xff]   ;;  %v2611_v41 = vld [vmem:[%s3855_s10 + $0x1] ss:$0 sm:$0xff] }
 0xcd1   :  { %v1849_v42 = vpop.xlane.xlu1 %1848  ;;  %v1578_v43 = vsel %vm397_vm5, %v3115_v37, 0.0  ;;  %2938 = vmatpush3.bf16.msra.mxu1 %v3044_v21 }
 0xcd2   :  { %v3117_v0 = vpop.eup %3116  ;;  %v1852_v44 = vmul.f32 1.442695, %v1850_v4  ;;  %v1851_v45 = vsub.f32 %v1841_v26, %v1849_v42  ;;  %1579 = vadd.xlane.f32.xlu1 %v1578_v43  ;;  %v1638_v7 = vsel %vm500_vm3, %v1517_v23, 0  ;;  %v1754_v16 = vsel %vm500_vm3, %v1749_v3, 0  ;;  %2943 = vmatprep.subr.bf16.mxu1 %v3162_v15  ;;  %v3047_v3 = vld [vmem:[%s3859_s17 + $0x40] sm:$0xff]  }
 0xcd3   :  { %v1506_v1 = vsel %vm393_vm4, %v3117_v0, 0.0  ;;  %v1872_v30 = vsel %vm500_vm3, %v1867_v17, 0 }
 0xcd4   :  { %v3119_v46 = vpop.eup %3118  ;;  %3124 = vpow2.f32 %v1852_v44  ;;  %v1854_v47 = vmul.f32 1.442695, %v1851_v45  ;;  %1507 = vadd.xlane.f32.xlu0 %v1506_v1 }
 0xcd5   :  { %v1509_v48 = vsel %vm397_vm5, %v3119_v46, 0.0 }
 0xcd6   :  { %v3121_v49 = vpop.eup %3120  ;;  %3126 = vpow2.f32 %v1854_v47  ;;  %1510 = vadd.xlane.f32.xlu1 %v1509_v48 }
 0xcd7   :  { %v1738_v50 = vsel %vm393_vm4, %v3121_v49, 0.0 }
 0xcd8   :  { %v3123_v51 = vpop.eup %3122  ;;  %1739 = vadd.xlane.f32.xlu0 %v1738_v50 }
 0xcd9   :  { %v1741_v52 = vsel %vm397_vm5, %v3123_v51, 0.0 }
 0xcda   :  { %1742 = vadd.xlane.f32.xlu1 %v1741_v52 }
 0xcde   :  { %v3125_v53 = vpop.eup %3124 }
 0xcdf   :  { %v1856_v54 = vsel %vm393_vm4, %v3125_v53, 0.0 }
 0xce0   :  { %v3127_v55 = vpop.eup %3126  ;;  %1857 = vadd.xlane.f32.xlu0 %v1856_v54 }
 0xce1   :  { %v1859_v56 = vsel %vm397_vm5, %v3127_v55, 0.0 }
 0xce2   :  { %1860 = vadd.xlane.f32.xlu1 %v1859_v56  ;;  %v3045_v56 = vld [vmem:[%s3856_s15 + $0x10] sm:$0xff]  }
 0xd5d   :  { %v1577_v58 = vpop.xlane.xlu0 %1576 }
 0xd5e   :  { %3128 = vrcp.f32 %v1577_v58 }
 0xd5f   :  { %v1580_v59 = vpop.xlane.xlu1 %1579 }
 0xd60   :  { %3130 = vrcp.f32 %v1580_v59 }
 0xd61   :  { %v1508_v61 = vpop.xlane.xlu0 %1507 }
 0xd63   :  { %v1511_v60 = vpop.xlane.xlu1 %1510 }
 0xd64   :  { %3132 = vrcp.f32 %v1511_v60 }
 0xd65   :  { %3134 = vrcp.f32 %v1508_v61  ;;  %v1740_v9 = vpop.xlane.xlu0 %1739 }
 0xd67   :  { %v1743_v8 = vpop.xlane.xlu1 %1742 }
 0xd68   :  { %v3129_v62 = vpop.eup %3128  ;;  %3136 = vrcp.f32 %v1743_v8 }
 0xd69   :  { %v1583_v2 = vmul.f32 %v3129_v62, %v3113_v39  ;;  %3138 = vrcp.f32 %v1740_v9 }
 0xd6a   :  { %v3131_v63 = vpop.eup %3130 }
 0xd6b   :  { %v1584_v5 = vmul.f32 %v3131_v63, %v3115_v37 }
 0xd6d   :  { %v1585_v6 = vpack.c.bf16 %v1584_v5, %v1583_v2  ;;  %v1858_v10 = vpop.xlane.xlu0 %1857  ;;  %v2617_v5 = vld [vmem:[%s3857_s13 + $0x1] ss:$0 sm:$0xff] }
 0xd6e   :  { %v3133_v26 = vpop.eup %3132 }
 0xd6f   :  { %2902 = vmatmul.mubr.msk.bf16.vlgmr.msra.gmra.mrb[44].mxu0 %vm393_vm4, %v1585_v6  ;;  %v3135_v11 = vpop.eup %3134  ;;  %v1515_v12 = vmul.f32 %v3133_v26, %v3119_v46  ;;  %v1861_v18 = vpop.xlane.xlu1 %1860  ;;  %v2618_v26 = vld [vmem:[%s3858_s14 + $0x1] ss:$0 sm:$0xff] }
 0xd70   :  { %2906 = vmatpush3.bf16.msra.mxu0 %v1638_v7  ;;  %2907 = vmatprep.mubr.msk.bf16.mxu0 %vm3163_vm2, %v3162_v15  ;;  %v1514_v13 = vmul.f32 %v3135_v11, %v3117_v0  ;;  %3140 = vrcp.f32 %v1861_v18  ;;  %v3050_v18 = vld [vmem:[%s3859_s17 + $0x58] sm:$0xff]  }
 0xd71   :  { %2917 = vmatprep.subr.bf16.mxu0 %v3162_v15  ;;  %3142 = vrcp.f32 %v1858_v10  ;;  %v3052_v10 = vld [vmem:[%s3859_s17 + $0x68] sm:$0xff]  }
 0xd72   :  { %v1516_v14 = vpack.c.bf16 %v1515_v12, %v1514_v13  ;;  %v3137_v19 = vpop.eup %3136 }
 0xd73   :  { %v3139_v22 = vpop.eup %3138  ;;  %v1747_v24 = vmul.f32 %v3137_v19, %v3123_v51  ;;  %v3051_v19 = vld [vmem:[%s3859_s17 + $0x60] sm:$0xff]  }
 0xd74   :  { %v1746_v27 = vmul.f32 %v3139_v22, %v3121_v49  ;;  %v3053_v22 = vld [vmem:[%s3859_s17 + $0x70] sm:$0xff]  }
 0xd76   :  { %v1748_v28 = vpack.c.bf16 %v1747_v24, %v1746_v27  ;;  %v3054_v24 = vld [vmem:[%s3859_s17 + $0x78] sm:$0xff]   ;;  %v2624_v27 = vld [vmem:[%s3860_s16 + $0x1] ss:$0 sm:$0xff] }
 0xd7a   :  { %v3141_v20 = vpop.eup %3140 }
 0xd7b   :  { %2908 = vmatmul.mubr.msk.bf16.vlgmr.msra.gmra.mrb[44].mxu0 %vm393_vm4, %v1516_v14  ;;  %v3143_v25 = vpop.eup %3142  ;;  %v1865_v32 = vmul.f32 %v3141_v20, %v3127_v55  ;;  %v3048_v14 = vld [vmem:[%s3859_s17 + $0x48] sm:$0xff]  }
 0xd7c   :  { %2918 = vmatpush3.bf16.msra.mxu0 %v1754_v16  ;;  %2919 = vmatprep.mubr.msk.bf16.mxu0 %vm3163_vm2, %v3162_v15  ;;  %v1864_v33 = vmul.f32 %v3143_v25, %v3125_v53  ;;  %v3049_v16 = vld [vmem:[%s3859_s17 + $0x50] sm:$0xff]  }
 0xd7d   :  { %2929 = vmatprep.subr.bf16.mxu0 %v3162_v15 }
 0xd7e   :  { %v1866_v35 = vpack.c.bf16 %v1865_v32, %v1864_v33 }
 0xd87   :  { %2920 = vmatmul.mubr.msk.bf16.vlgmr.msra.gmra.mrb[44].mxu0 %vm393_vm4, %v1748_v28 }
 0xd88   :  { %2930 = vmatpush3.bf16.msra.mxu0 %v1872_v30  ;;  %2931 = vmatprep.mubr.msk.bf16.mxu0 %vm3163_vm2, %v3162_v15 }
 0xd89   :  { %2951 = vmatprep.subr.bf16.mxu0 %v3162_v15 }
 0xd93   :  { %2932 = vmatmul.mubr.msk.bf16.vlgmr.msra.gmra.mrb[44].mxu0 %vm393_vm4, %v1866_v35 }
 0xd94   :  { %2967 = vmatprep.mubr.msk.bf16.mxu0 %vm3163_vm2, %v3162_v15  ;;  %2952 = vmatpush3.bf16.msra.mxu0 %v3047_v3 }
 0xd95   :  { %2953 = vmatprep.subr.bf16.mxu0 %v3162_v15 }
 0xd98   :  { %2954 = vmatpush3.bf16.msra.mxu0 %v3048_v14 }
 0xd99   :  { %2955 = vmatprep.subr.bf16.mxu0 %v3162_v15 }
 0xd9c   :  { %2956 = vmatpush3.bf16.msra.mxu0 %v3049_v16 }
 0xd9d   :  { %2957 = vmatprep.subr.bf16.mxu0 %v3162_v15 }
 0xda0   :  { %2958 = vmatpush3.bf16.msra.mxu0 %v3050_v18 }
 0xda1   :  { %2959 = vmatprep.subr.bf16.mxu0 %v3162_v15 }
 0xda4   :  { %2960 = vmatpush3.bf16.msra.mxu0 %v3051_v19 }
 0xda5   :  { %2961 = vmatprep.subr.bf16.mxu0 %v3162_v15 }
 0xda8   :  { %2962 = vmatpush3.bf16.msra.mxu0 %v3052_v10  ;;  %v2645_v10 = vld [vmem:[%s3861_s18 + $0x1] ss:$0 sm:$0xff] }
 0xda9   :  { %2963 = vmatprep.subr.bf16.mxu0 %v3162_v15 }
 0xdac   :  { %2964 = vmatpush3.bf16.msra.mxu0 %v3053_v22 }
 0xdad   :  { %2965 = vmatprep.subr.bf16.mxu0 %v3162_v15 }
 0xdb0   :  { %2966 = vmatpush3.bf16.msra.mxu0 %v3054_v24 }
 0xe66   :  { %v1908_v34 = vpop.f32.mrb[44].mxu0 }
 0xe67   :  { %v2933_v36 = vpop.f32.mrb[45].mxu0 }
 0xe68   :  { %v1911_v38 = vpop.f32.mrb[46].mxu0 }
 0xe69   :  { %v1917_v39 = vpack.c.bf16 %v1911_v38, %v1908_v34  ;;  %v2934_v40 = vpop.f32.mrb[47].mxu0 }
 0xe6b   :  { %2940 = vmatmul.mubr.msk.bf16.vlgmr.msra.gmra.mrb[28].mxu1 %vm93_vm0, %v1917_v39 }
 0xe6c   :  { %2947 = vmatprep.mubr.msk.bf16.mxu1 %vm3163_vm2, %v3162_v15  ;;  %2944 = vmatpush3.bf16.msra.mxu1 %v3045_v56 }
 0xe6d   :  { %2945 = vmatprep.subr.bf16.mxu1 %v3162_v15 }
 0xe70   :  { %2946 = vmatpush3.bf16.msra.mxu1 %v3046_v57 }
 0xe71   :  { %2971 = vmatprep.subr.bf16.mxu1 %v3162_v15 }
 0xf3e   :  { %v1980_v37 = vpop.f32.mrb[28].mxu1 }
 0xf3f   :  { %v1981_v4 = vadd.f32 %v2611_v41, %v1980_v37  ;;  %v2941_v42 = vpop.f32.mrb[29].mxu1 }
 0xf40   :  { %v1983_v43 = vpop.f32.mrb[30].mxu1 }
 0xf41   :  { %v3722_v0 = vadd.f32 %v1981_v4, %v3567_v29  ;;  %v1984_v44 = vadd.f32 %v2611_v41, %v1983_v43  ;;  %v2942_v45 = vpop.f32.mrb[31].mxu1 }
 0xf43   :  { %v3725_v1 = vadd.f32 %v1984_v44, %v3570_v31  ;;  %v1993_v46 = vsel %vm93_vm0, %v3722_v0, 0.0 }
 0xf44   :  { %1994 = vadd.xlane.f32.xlu0 %v1993_v46 }
 0xf45   :  { %v1996_v47 = vsel %vm97_vm1, %v3725_v1, 0.0 }
 0xf46   :  { %1997 = vadd.xlane.f32.xlu1 %v1996_v47 }
 0xfd1   :  { %v1995_v48 = vpop.xlane.xlu0 %1994 }
 0xfd2   :  { %v1999_v49 = vmul.f32 0.03125, %v1995_v48 }
 0xfd3   :  { %v1998_v50 = vpop.xlane.xlu1 %1997 }
 0xfd4   :  { %v2001_v51 = vsub.f32 %v3722_v0, %v1999_v49  ;;  %v2000_v29 = vmul.f32 0.03125, %v1998_v50 }
 0xfd6   :  { %v2002_v52 = vsub.f32 %v3725_v1, %v2000_v29  ;;  %v2003_v53 = vmul.f32 %v2001_v51, %v2001_v51 }
 0xfd8   :  { %v2005_v31 = vsel %vm93_vm0, %v2003_v53, 0.0  ;;  %v2004_v54 = vmul.f32 %v2002_v52, %v2002_v52 }
 0xfd9   :  { %2006 = vadd.xlane.f32.xlu0 %v2005_v31 }
 0xfda   :  { %v2008_v55 = vsel %vm97_vm1, %v2004_v54, 0.0 }
 0xfdb   :  { %2009 = vadd.xlane.f32.xlu1 %v2008_v55 }
0x1066   :  { %v2007_v58 = vpop.xlane.xlu0 %2006 }
0x1067   :  { %v2011_v59 = vmul.f32 0.03125, %v2007_v58 }
0x1068   :  { %v2010_v60 = vpop.xlane.xlu1 %2009 }
0x1069   :  { %v2013_v61 = vadd.f32 1e-05, %v2011_v59  ;;  %v2012_v62 = vmul.f32 0.03125, %v2010_v60 }
0x106b   :  { %3144 = vrsqrt.f32 %v2013_v61  ;;  %v2014_v63 = vadd.f32 1e-05, %v2012_v62 }
0x106d   :  { %3146 = vrsqrt.f32 %v2014_v63 }
0x1075   :  { %v3145_v2 = vpop.eup %3144 }
0x1076   :  { %v2017_v23 = vmul.f32 %v3145_v2, %v2001_v51 }
0x1077   :  { %v3147_v6 = vpop.eup %3146 }
0x1078   :  { %v2025_v7 = vmul.f32 %v2617_v5, %v2017_v23  ;;  %v2018_v8 = vmul.f32 %v3147_v6, %v2002_v52 }
0x107a   :  { %v2026_v9 = vmul.f32 %v2617_v5, %v2018_v8  ;;  %v2033_v11 = vadd.f32 %v2618_v26, %v2025_v7 }
0x107c   :  { %v2034_v12 = vadd.f32 %v2618_v26, %v2026_v9 }
0x107e   :  { %v2035_v13 = vpack.c.bf16 %v2034_v12, %v2033_v11 }
0x1080   :  { %2948 = vmatmul.mubr.msk.bf16.vlgmr.msra.gmra.mrb[32].mxu1 %vm93_vm0, %v2035_v13 }
0x1081   :  { %2975 = vmatprep.mubr.msk.bf16.mxu1 %vm3163_vm2, %v3162_v15 }
0x1153   :  { %v2098_v17 = vpop.f32.mrb[32].mxu1 }
0x1154   :  { %v2099_v28 = vadd.f32 %v2624_v27, %v2098_v17  ;;  %v2949_v30 = vpop.f32.mrb[33].mxu1 }
0x1155   :  { %v2101_v20 = vpop.f32.mrb[34].mxu1 }
0x1156   :  { %v2107_v25 = vmul.f32 0.70710677, %v2099_v28  ;;  %v2102_v32 = vadd.f32 %v2624_v27, %v2101_v20  ;;  %v2950_v33 = vpop.f32.mrb[35].mxu1  ;;  %v2105_v13 = vmul.f32 0.5, %v2099_v28 }
0x1158   :  { %v2109_v35 = vand.u32 2147483647, %v2107_v25  ;;  %v2108_v21 = vmul.f32 0.70710677, %v2102_v32  ;;  %vm2147_vm8 = vcmp.lt.f32.partialorder %v2107_v25, 0.0  ;;  %v2106_v3 = vmul.f32 0.5, %v2102_v32 }
0x115a   :  { %v2111_v34 = vmul.f32 0.3275911, %v2109_v35  ;;  %v2110_v36 = vand.u32 2147483647, %v2108_v21  ;;  %v2135_v41 = vsub.f32 0.0, %v2109_v35  ;;  %vm2148_vm9 = vcmp.lt.f32.partialorder %v2108_v21, 0.0 }
0x115c   :  { %v2113_v38 = vadd.f32 1.0, %v2111_v34  ;;  %v2112_v39 = vmul.f32 0.3275911, %v2110_v36  ;;  %v2136_v37 = vsub.f32 0.0, %v2110_v36  ;;  %v2137_v42 = vmul.f32 %v2135_v41, %v2109_v35 }
0x115e   :  { %3148 = vrcp.f32 %v2113_v38  ;;  %v2114_v40 = vadd.f32 1.0, %v2112_v39  ;;  %v2138_v46 = vmul.f32 %v2136_v37, %v2110_v36  ;;  %v2139_v47 = vmul.f32 1.442695, %v2137_v42 }
0x1160   :  { %3150 = vrcp.f32 %v2114_v40  ;;  %v2141_v29 = vmul.f32 1.442695, %v2138_v46 }
0x1161   :  { %3152 = vpow2.f32 %v2139_v47 }
0x1162   :  { %3154 = vpow2.f32 %v2141_v29 }
0x1168   :  { %v3149_v4 = vpop.eup %3148 }
0x1169   :  { %v2117_v43 = vmul.f32 1.0614054, %v3149_v4 }
0x116a   :  { %v3151_v44 = vpop.eup %3150 }
0x116b   :  { %v2119_v45 = vadd.f32 -1.4531521, %v2117_v43  ;;  %v2118_v48 = vmul.f32 1.0614054, %v3151_v44  ;;  %v3153_v61 = vpop.eup %3152 }
0x116c   :  { %v3155_v5 = vpop.eup %3154 }
0x116d   :  { %v2121_v49 = vmul.f32 %v3149_v4, %v2119_v45  ;;  %v2120_v50 = vadd.f32 -1.4531521, %v2118_v48 }
0x116f   :  { %v2123_v51 = vadd.f32 1.4214138, %v2121_v49  ;;  %v2122_v52 = vmul.f32 %v3151_v44, %v2120_v50  ;;  %v2654_v49 = vld [vmem:[%s3863_s19] ss:$0 sm:$0xff] }
0x1171   :  { %v2125_v53 = vmul.f32 %v3149_v4, %v2123_v51  ;;  %v2124_v31 = vadd.f32 1.4214138, %v2122_v52 }
0x1173   :  { %v2127_v54 = vadd.f32 -0.28449672, %v2125_v53  ;;  %v2126_v55 = vmul.f32 %v3151_v44, %v2124_v31  ;;  %v2655_v53 = vld [vmem:[%s3864_s20] ss:$0 sm:$0xff] }
0x1175   :  { %v2129_v56 = vmul.f32 %v3149_v4, %v2127_v54  ;;  %v2128_v57 = vadd.f32 -0.28449672, %v2126_v55 }
0x1177   :  { %v2131_v58 = vadd.f32 0.2548296, %v2129_v56  ;;  %v2130_v59 = vmul.f32 %v3151_v44, %v2128_v57  ;;  %v3057_v57 = vld [vmem:[%s3865_s23] sm:$0xff]  }
0x1179   :  { %v2133_v60 = vmul.f32 %v3149_v4, %v2131_v58  ;;  %v2132_v62 = vadd.f32 0.2548296, %v2130_v59  ;;  %v3056_v4 = vld [vmem:[%s3862_s21 + $0x8] sm:$0xff]   ;;  %v2656_v58 = vld [vmem:[%s3866_s22] ss:$0 sm:$0xff] }
0x117b   :  { %v2143_v63 = vmul.f32 %v3153_v61, %v2133_v60  ;;  %v2134_v2 = vmul.f32 %v3151_v44, %v2132_v62 }
0x117d   :  { %v2145_v23 = vsub.f32 1.0, %v2143_v63  ;;  %v2144_v6 = vmul.f32 %v3155_v5, %v2134_v2 }
0x117f   :  { %v2149_v7 = vsub.f32 0.0, %v2145_v23  ;;  %v2146_v8 = vsub.f32 1.0, %v2144_v6 }
0x1181   :  { %v2151_v26 = vsel %vm2147_vm8, %v2149_v7, %v2145_v23  ;;  %v2150_v9 = vsub.f32 0.0, %v2146_v8  ;;  %v3058_v7 = vld [vmem:[%s3867_s25] sm:$0xff]  }
0x1182   :  { %v2153_v11 = vadd.f32 1.0, %v2151_v26  ;;  %v2660_v26 = vld [vmem:[%s3868_s24] ss:$0 sm:$0xff] }
0x1183   :  { %v2152_v12 = vsel %vm2148_vm9, %v2150_v9, %v2146_v8  ;;  %v3059_v8 = vld [vmem:[%s3867_s25 + $0x8] sm:$0xff]  }
0x1184   :  { %v2154_v14 = vadd.f32 1.0, %v2152_v12  ;;  %v2155_v16 = vmul.f32 %v2153_v11, %v2105_v13 }
0x1186   :  { %v2156_v18 = vmul.f32 %v2154_v14, %v2106_v3 }
0x1188   :  { %v2157_v19 = vpack.c.bf16 %v2156_v18, %v2155_v16 }
0x118a   :  { %2968 = vmatmul.mubr.bf16.vlgmr.msra.gmra.mrb[48].mxu0 %v2157_v19 }
0x125d   :  { %v2265_v22 = vpop.f32.mrb[48].mxu0 }
0x125e   :  { %v2266_v24 = vadd.f32 %v2645_v10, %v2265_v22  ;;  %v2969_v27 = vpop.f32.mrb[49].mxu0 }
0x125f   :  { %v2268_v17 = vpop.f32.mrb[50].mxu0 }
0x1260   :  { %v2269_v30 = vadd.f32 %v2645_v10, %v2268_v17  ;;  %v2970_v20 = vpop.f32.mrb[51].mxu0  ;;  %v2272_v25 = vadd.f32 %v2266_v24, %v3722_v0 }
0x1262   :  { %v2276_v28 = vsel %vm93_vm0, %v2272_v25, 0.0  ;;  %v2273_v32 = vadd.f32 %v2269_v30, %v3725_v1  ;;  %v3055_v1 = vld [vmem:[%s3862_s21] sm:$0xff]  }
0x1263   :  { %2277 = vadd.xlane.f32.xlu0 %v2276_v28  ;;  %2972 = vmatpush3.bf16.msra.mxu1 %v3055_v1 }
0x1264   :  { %v2279_v33 = vsel %vm97_vm1, %v2273_v32, 0.0  ;;  %2973 = vmatprep.subr.bf16.mxu1 %v3162_v15 }
0x1265   :  { %2280 = vadd.xlane.f32.xlu1 %v2279_v33 }
0x1267   :  { %2974 = vmatpush3.bf16.msra.mxu1 %v3056_v4 }
0x1268   :  { %2979 = vmatprep.subr.bf16.mxu1 %v3162_v15 }
0x12f0   :  { %v2278_v35 = vpop.xlane.xlu0 %2277 }
0x12f1   :  { %v2282_v21 = vmul.f32 0.03125, %v2278_v35 }
0x12f2   :  { %v2281_v34 = vpop.xlane.xlu1 %2280 }
0x12f3   :  { %v2284_v36 = vsub.f32 %v2272_v25, %v2282_v21  ;;  %v2283_v38 = vmul.f32 0.03125, %v2281_v34 }
0x12f5   :  { %v2285_v39 = vsub.f32 %v2273_v32, %v2283_v38  ;;  %v2286_v40 = vmul.f32 %v2284_v36, %v2284_v36 }
0x12f7   :  { %v2288_v41 = vsel %vm93_vm0, %v2286_v40, 0.0  ;;  %v2287_v37 = vmul.f32 %v2285_v39, %v2285_v39 }
0x12f8   :  { %2289 = vadd.xlane.f32.xlu0 %v2288_v41 }
0x12f9   :  { %v2291_v0 = vsel %vm97_vm1, %v2287_v37, 0.0 }
0x12fa   :  { %2292 = vadd.xlane.f32.xlu1 %v2291_v0 }
0x1385   :  { %v2290_v42 = vpop.xlane.xlu0 %2289 }
0x1386   :  { %v2294_v43 = vmul.f32 0.03125, %v2290_v42 }
0x1387   :  { %v2293_v44 = vpop.xlane.xlu1 %2292 }
0x1388   :  { %v2296_v45 = vadd.f32 1e-05, %v2294_v43  ;;  %v2295_v46 = vmul.f32 0.03125, %v2293_v44 }
0x138a   :  { %3156 = vrsqrt.f32 %v2296_v45  ;;  %v2297_v47 = vadd.f32 1e-05, %v2295_v46 }
0x138c   :  { %3158 = vrsqrt.f32 %v2297_v47 }
0x1394   :  { %v3157_v48 = vpop.eup %3156 }
0x1395   :  { %v2300_v50 = vmul.f32 %v3157_v48, %v2284_v36 }
0x1396   :  { %v3159_v51 = vpop.eup %3158 }
0x1397   :  { %v2308_v29 = vmul.f32 %v2654_v49, %v2300_v50  ;;  %v2301_v52 = vmul.f32 %v3159_v51, %v2285_v39 }
0x1399   :  { %v2309_v31 = vmul.f32 %v2654_v49, %v2301_v52  ;;  %v2316_v54 = vadd.f32 %v2655_v53, %v2308_v29 }
0x139b   :  { %v2317_v55 = vadd.f32 %v2655_v53, %v2309_v31 }
0x139d   :  { %v2318_v56 = vpack.c.bf16 %v2317_v55, %v2316_v54 }
0x139f   :  { %2976 = vmatmul.mubr.msk.bf16.vlgmr.msra.gmra.mrb[36].mxu1 %vm93_vm0, %v2318_v56 }
0x13a0   :  { %2981 = vmatprep.mubr.msk.bf16.mxu1 %vm3163_vm2, %v3162_v15  ;;  %2980 = vmatpush3.bf16.msra.mxu1 %v3057_v57 }
0x13a1   :  { %2985 = vmatprep.subr.bf16.mxu1 %v3162_v15 }
0x1472   :  { %v2379_v59 = vpop.f32.mrb[36].mxu1 }
0x1473   :  { %v2380_v60 = vadd.f32 %v2656_v58, %v2379_v59  ;;  %v2977_v61 = vpop.f32.mrb[37].mxu1 }
0x1474   :  { %v2382_v62 = vpop.f32.mrb[38].mxu1 }
0x1475   :  { %v2383_v63 = vadd.f32 %v2656_v58, %v2382_v62  ;;  %v2978_v2 = vpop.f32.mrb[39].mxu1  ;;  %v2386_v5 = vmax.f32 %v2380_v60, 0.0 }
0x1477   :  { %v2387_v23 = vmax.f32 %v2383_v63, 0.0 }
0x1479   :  { %v2388_v6 = vpack.c.bf16 %v2387_v23, %v2386_v5 }
0x147b   :  { %2982 = vmatmul.mubr.msk.bf16.vlgmr.msra.gmra.mrb[40].mxu1 %vm2404_vm10, %v2388_v6 }
0x147c   :  { %2989 = vmatprep.mubr.msk.bf16.mxu1 %vm3163_vm2, %v3162_v15  ;;  %2986 = vmatpush3.bf16.msra.mxu1 %v3058_v7 }
0x147d   :  { %2987 = vmatprep.subr.bf16.mxu1 %v3162_v15  ;;  %v2663_v15 = vld [vmem:[%s3910_s4] ss:$0 sm:$0xff] }
0x1480   :  { %2988 = vmatpush3.bf16.msra.mxu1 %v3059_v8 }
0x154e   :  { %v2442_v9 = vpop.f32.mrb[40].mxu1 }
0x154f   :  { %v2983_v11 = vpop.f32.mrb[41].mxu1  ;;  %v2443_v13 = vadd.f32 %v2660_v26, %v2442_v9 }
0x1550   :  { %v2445_v12 = vpop.f32.mrb[42].mxu1 }
0x1551   :  { %v2446_v3 = vadd.f32 %v2660_v26, %v2445_v12  ;;  %v2984_v14 = vpop.f32.mrb[43].mxu1 }
0x1553   :  { %v2449_v16 = vpack.c.bf16 %v2446_v3, %v2443_v13 }
0x1555   :  { %2990 = vmatmul.mubr.msk.bf16.vlgmr.msra.gmra.mrb[44].mxu1 %vm93_vm0, %v2449_v16 }
0x1628   :  { %v2510_v18 = vpop.f32.mrb[44].mxu1 }
0x1629   :  { %v2511_v19 = vadd.f32 %v2663_v15, %v2510_v18  ;;  %v2991_v10 = vpop.f32.mrb[45].mxu1 }
0x162a   :  { %v2513_v22 = vpop.f32.mrb[46].mxu1 }
0x162b   :  { %2517 = vst.msk [vmem:[%s3911_s5] sm:$0xff] %vm93_vm0, %v2511_v19  ;;  %v2514_v24 = vadd.f32 %v2663_v15, %v2513_v22  ;;  %v2992_v27 = vpop.f32.mrb[47].mxu1 }
0x162d   :  { %2518 = vst.msk [vmem:[%s3911_s5 + $0x8] sm:$0x3] %vm97_vm1, %v2514_v24 }

// kernel: forward.3
= control target key start
LH: loop header
LB: loop body
LE: loop exit
PB: predicated region body
PF: predicated region fallthrough
CT: control target
= control target key end

     0   :  { %s6797_s0 = inlined_call_operand.vmem [shape: f32[34,32], index: 0, kind: input, shape index: {}]   ;;  %s6798_s1 = inlined_call_operand.vmem [shape: f32[34,34], index: 1, kind: input, shape index: {}]   ;;  %s6799_s2 = inlined_call_operand.vmem [shape: bf16[4,1,32], index: 2, kind: input, shape index: {}]   ;;  %s6800_s3 = inlined_call_operand.vmem [shape: bf16[2,32,32], index: 3, kind: input, shape index: {}]   ;;  %s6801_s4 = inlined_call_operand.vmem [shape: bf16[2,32,32], index: 4, kind: input, shape index: {}]   ;;  %s6802_s5 = inlined_call_operand.vmem [shape: bf16[2,32,32], index: 5, kind: input, shape index: {}]   ;;  %s6803_s6 = inlined_call_operand.vmem [shape: f32[2,1,32], index: 6, kind: input, shape index: {}]   ;;  %s6804_s7 = inlined_call_operand.vmem [shape: f32[2,1,32], index: 7, kind: input, shape index: {}]   ;;  %s6805_s8 = inlined_call_operand.vmem [shape: f32[2,1,32], index: 8, kind: input, shape index: {}]   ;;  %s6806_s9 = inlined_call_operand.vmem [shape: bf16[2,32,32], index: 9, kind: input, shape index: {}]   ;;  %s6807_s10 = inlined_call_operand.vmem [shape: f32[2,1,32], index: 10, kind: input, shape index: {}]   ;;  %s6808_s11 = inlined_call_operand.vmem [shape: f32[2,1,32], index: 11, kind: input, shape index: {}]   ;;  %s6809_s12 = inlined_call_operand.vmem [shape: f32[2,1,32], index: 12, kind: input, shape index: {}]   ;;  %s6810_s13 = inlined_call_operand.vmem [shape: f32[2,1,32], index: 13, kind: input, shape index: {}]   ;;  %s6811_s14 = inlined_call_operand.vmem [shape: f32[2,1,32], index: 14, kind: input, shape index: {}]   ;;  %s6812_s15 = inlined_call_operand.vmem [shape: bf16[2,32,128], index: 15, kind: input, shape index: {}]   ;;  %s6813_s16 = inlined_call_operand.vmem [shape: f32[2,1,128], index: 16, kind: input, shape index: {}]   ;;  %s6814_s17 = inlined_call_operand.vmem [shape: bf16[2,128,32], index: 17, kind: input, shape index: {}]   ;;  %s6815_s18 = inlined_call_operand.vmem [shape: f32[2,1,32], index: 18, kind: input, shape index: {}]   ;;  %s6816_s19 = inlined_call_operand.vmem [shape: f32[1,32], index: 19, kind: input, shape index: {}]   ;;  %s6817_s20 = inlined_call_operand.vmem [shape: f32[1,32], index: 20, kind: input, shape index: {}]   ;;  %s6818_s21 = inlined_call_operand.vmem [shape: bf16[32,64], index: 21, kind: input, shape index: {}]   ;;  %s6819_s22 = inlined_call_operand.vmem [shape: f32[1,64], index: 22, kind: input, shape index: {}]   ;;  %s6820_s23 = inlined_call_operand.vmem [shape: f32[34,64], index: 23, kind: input, shape index: {}]   ;;  %s6821_s24 = inlined_call_operand.vmem [shape: f32[34,1], index: 24, kind: input, shape index: {}]   ;;  %s6822_s25 = inlined_call_operand.vmem [shape: f32[34,64], index: 25, kind: output, shape index: {0}]   ;;  %s6823_s26 = inlined_call_operand.hbm [shape: f32[1,1], index: 26, kind: output, shape index: {1}]  }
   0x1   :  { %6837 = sst [smem:[#allocation5_spill]] %s6797_s0 }
   0x2   :  { %6838 = sst [smem:[#allocation6_spill]] %s6798_s1 }
   0x3   :  { %6839 = sst [smem:[#allocation7_spill]] %s6799_s2 }
   0x4   :  { %6840 = sst [smem:[#allocation8_spill]] %s6800_s3 }
   0x5   :  { %6841 = sst [smem:[#allocation9_spill]] %s6801_s4 }
   0x6   :  { %6842 = sst [smem:[#allocation10_spill]] %s6802_s5 }
   0x7   :  { %6843 = sst [smem:[#allocation11_spill]] %s6803_s6 }
   0x8   :  { %6844 = sst [smem:[#allocation12_spill]] %s6804_s7 }
   0x9   :  { %6845 = sst [smem:[#allocation13_spill]] %s6805_s8 }
   0xa   :  { %6846 = sst [smem:[#allocation14_spill]] %s6806_s9 }
   0xb   :  { %6847 = sst [smem:[#allocation15_spill]] %s6807_s10 }
   0xc   :  { %6848 = sst [smem:[#allocation16_spill]] %s6821_s24 }
   0xd   :  { %6849 = sst [smem:[#allocation17_spill]] %s6823_s26 }
   0xe   :  { %s6850_s7 = sld [smem:[#allocation5_spill]]  ;;  %vm96_vm0 = vcmask 261120   ;;  %vm109_vm1 = vcmask 254976  }
  0x14   :  { %v84_v0 = vld [vmem:[%s6850_s7] sm:$0xff]  ;;  %v86_v1 = vld [vmem:[%s6850_s7 + $0x10] sm:$0xff]  ;;  %v85_v2 = vld [vmem:[%s6850_s7 + $0x8] sm:$0xff] }
  0x15   :  { %v97_v3 = vsel %vm96_vm0, %v84_v0, 0.0  ;;  %v103_v4 = vsel %vm96_vm0, %v86_v1, 0.0  ;;  %v100_v5 = vsel %vm96_vm0, %v85_v2, 0.0  ;;  %v87_v6 = vld [vmem:[%s6850_s7 + $0x18] sm:$0xff]  ;;  %v88_v7 = vld [vmem:[%s6850_s7 + $0x20] sm:$0x3] }
  0x16   :  { %98 = vadd.xlane.f32.xlu0 %v97_v3  ;;  %104 = vadd.xlane.f32.xlu1 %v103_v4  ;;  %v106_v8 = vsel %vm96_vm0, %v87_v6, 0.0  ;;  %v110_v9 = vsel %vm109_vm1, %v88_v7, 0.0 }
  0x1a   :  { %101 = vadd.xlane.f32.xlu0 %v100_v5  ;;  %107 = vadd.xlane.f32.xlu1 %v106_v8 }
  0x1e   :  { %111 = vadd.xlane.f32.xlu0 %v110_v9 }
  0x1f   :  { %32 = vsyncpa [#allocation3], 0  ;;  %s6851_s6 = sld [smem:[#allocation8_spill]]  ;;  %s6852_s3 = sld [smem:[#allocation9_spill]]  ;;  %v5117_v37 = vmov 0.0   ;;  %vm5118_vm2 = vmmov 0  }
  0x20   :  { %4194 = vmatprep.subr.bf16.mxu0 %v5117_v37  ;;  %4210 = vmatprep.subr.bf16.mxu1 %v5117_v37  ;;  %v3830_v57 = vld [vmem:[%s6808_s11] ss:$0 sm:$0xff]  ;;  %s6853_s1 = sld [smem:[#allocation10_spill]]  ;;  %s6854_s29 = sld [smem:[#allocation11_spill]]  ;;  %vm739_vm3 = vcmask 1040384   ;;  %vm529_vm4 = vcmask 277504  }
  0x21   :  { %4198 = vmatprep.mubr.msk.bf16.mxu0 %vm5118_vm2, %v5117_v37  ;;  %4214 = vmatprep.mubr.msk.bf16.mxu1 %vm5118_vm2, %v5117_v37  ;;  %v3831_v62 = vld [vmem:[%s6809_s12] ss:$0 sm:$0xff]  ;;  %s6855_s30 = sld [smem:[#allocation12_spill]]  ;;  %s6856_s10 = sld [smem:[#allocation7_spill]]  ;;  %vm542_vm5 = vcmask 271360  }
  0x22   :  { %s6857_s0 = sld [smem:[#allocation13_spill]]  ;;  %s6858_s8 = sld [smem:[#allocation6_spill]] }
  0x23   :  { %s6859_s5 = sld [smem:[#allocation14_spill]]  ;;  %s6860_s9 = sld [smem:[#allocation15_spill]] }
  0x24   :  { %s5119_s28 = smov [#allocation2]  }
  0x25   :  { %v4793_v35 = vld [vmem:[%s6851_s6] sm:$0xff]   ;;  %v4795_v38 = vld [vmem:[%s6851_s6 + $0x8] sm:$0xff]   ;;  %s3820_s4 = sshll.u32 %s5119_s28, 4  ;;  %s3821_s4 = int_to_ptr.vmem [resolvable:$true] %s3820_s4 }
  0x26   :  { %v4794_v36 = vld [vmem:[%s6852_s3] sm:$0xff]   ;;  %4195 = vmatpush3.bf16.msra.mxu0 %v4793_v35  ;;  %v4796_v39 = vld [vmem:[%s6852_s3 + $0x8] sm:$0xff]   ;;  %p5098_p1 = scmp.lt.s32.totalorder %s3821_s4, %s3821_s4 }
  0x27   :  { %4211 = vmatpush3.bf16.msra.mxu1 %v4794_v36  ;;  %4196 = vmatprep.subr.bf16.mxu0 %v5117_v37 }
  0x28   :  { %4212 = vmatprep.subr.bf16.mxu1 %v5117_v37 }
  0x2a   :  { %4197 = vmatpush3.bf16.msra.mxu0 %v4795_v38 }
  0x2b   :  { %4213 = vmatpush3.bf16.msra.mxu1 %v4796_v39  ;;  %4226 = vmatprep.subr.bf16.mxu0 %v5117_v37 }
  0x2c   :  { %4242 = vmatprep.subr.bf16.mxu1 %v5117_v37 }
  0xa3   :  { %v99_v10 = vpop.xlane.xlu0 %98  ;;  %v105_v11 = vpop.xlane.xlu1 %104 }
  0xa4   :  { %v114_v12 = vmul.f32 0.03125, %v99_v10  ;;  %v116_v13 = vmul.f32 0.03125, %v105_v11 }
  0xa6   :  { %v5275_v14 = vsub.f32 %v84_v0, %v114_v12  ;;  %v5277_v15 = vsub.f32 %v86_v1, %v116_v13  ;;  %v4798_v12 = vld [vmem:[%s6853_s1 + $0x8] sm:$0xff]  }
  0xa7   :  { %v102_v16 = vpop.xlane.xlu0 %101  ;;  %v108_v17 = vpop.xlane.xlu1 %107 }
  0xa8   :  { %v115_v18 = vmul.f32 0.03125, %v102_v16  ;;  %v117_v19 = vmul.f32 0.03125, %v108_v17  ;;  %v124_v20 = vmul.f32 %v5275_v14, %v5275_v14  ;;  %v126_v21 = vmul.f32 %v5277_v15, %v5277_v15 }
  0xaa   :  { %v120_v22 = vsub.f32 %v85_v2, %v115_v18  ;;  %v5283_v23 = vsub.f32 %v87_v6, %v117_v19  ;;  %v129_v24 = vsel %vm96_vm0, %v124_v20, 0.0  ;;  %v135_v27 = vsel %vm96_vm0, %v126_v21, 0.0  ;;  %v5366_v18 = vld [vmem:[%s6854_s29] ss:$0 sm:$0xff] }
  0xab   :  { %130 = vadd.xlane.f32.xlu1 %v129_v24  ;;  %v112_v25 = vpop.xlane.xlu0 %111  ;;  %v3838_v20 = vld [vmem:[%s6855_s30] ss:$0 sm:$0xff] }
  0xac   :  { %v118_v26 = vmul.f32 0.03125, %v112_v25  ;;  %v125_v28 = vmul.f32 %v120_v22, %v120_v22  ;;  %v127_v29 = vmul.f32 %v5283_v23, %v5283_v23 }
  0xae   :  { %v5289_v30 = vsub.f32 %v88_v7, %v118_v26  ;;  %v132_v31 = vsel %vm96_vm0, %v125_v28, 0.0  ;;  %v138_v32 = vsel %vm96_vm0, %v127_v29, 0.0  ;;  %v4797_v7 = vld [vmem:[%s6853_s1] sm:$0xff]  }
  0xaf   :  { %136 = vadd.xlane.f32.xlu1 %v135_v27  ;;  %133 = vadd.xlane.f32.xlu0 %v132_v31 }
  0xb0   :  { %v128_v33 = vmul.f32 %v5289_v30, %v5289_v30 }
  0xb2   :  { %v141_v34 = vsel %vm109_vm1, %v128_v33, 0.0 }
  0xb3   :  { %139 = vadd.xlane.f32.xlu0 %v138_v32  ;;  %142 = vadd.xlane.f32.xlu1 %v141_v34 }
 0x138   :  { %v131_v40 = vpop.xlane.xlu1 %130 }
 0x139   :  { %v144_v41 = vmul.f32 0.03125, %v131_v40 }
 0x13b   :  { %v149_v42 = vadd.f32 1e-05, %v144_v41 }
 0x13c   :  { %v137_v43 = vpop.xlane.xlu1 %136  ;;  %v134_v44 = vpop.xlane.xlu0 %133 }
 0x13d   :  { %4831 = vrsqrt.f32 %v149_v42  ;;  %v146_v45 = vmul.f32 0.03125, %v137_v43  ;;  %v145_v46 = vmul.f32 0.03125, %v134_v44 }
 0x13f   :  { %v150_v47 = vadd.f32 1e-05, %v145_v46  ;;  %v151_v48 = vadd.f32 1e-05, %v146_v45 }
 0x140   :  { %v143_v49 = vpop.xlane.xlu1 %142  ;;  %v140_v50 = vpop.xlane.xlu0 %139 }
 0x141   :  { %v147_v51 = vmul.f32 0.03125, %v140_v50  ;;  %4833 = vrsqrt.f32 %v150_v47  ;;  %v148_v52 = vmul.f32 0.03125, %v143_v49  ;;  %v448_v50 = vlaneseq }
 0x142   :  { %4835 = vrsqrt.f32 %v151_v48 }
 0x143   :  { %v152_v53 = vadd.f32 1e-05, %v147_v51  ;;  %v153_v54 = vadd.f32 1e-05, %v148_v52 }
 0x145   :  { %4837 = vrsqrt.f32 %v152_v53 }
 0x146   :  { %4839 = vrsqrt.f32 %v153_v54 }
 0x147   :  { %v4832_v55 = vpop.eup %4831 }
 0x148   :  { %v159_v56 = vmul.f32 %v4832_v55, %v5275_v14 }
 0x14a   :  { %v170_v60 = vmul.f32 %v3830_v57, %v159_v56 }
 0x14b   :  { %v4834_v58 = vpop.eup %4833 }
 0x14c   :  { %v160_v59 = vmul.f32 %v4834_v58, %v120_v22  ;;  %v4836_v61 = vpop.eup %4835  ;;  %v181_v1 = vadd.f32 %v3831_v62, %v170_v60  ;;  %v444_v60 = vld [vmem:[%s6856_s10] sm:$0x1] }
 0x14d   :  { %v161_v3 = vmul.f32 %v4836_v61, %v5277_v15  ;;  %v3853_v61 = vld [vmem:[%s6856_s10 + $0x1] sm:$0x1] }
 0x14e   :  { %v171_v63 = vmul.f32 %v3830_v57, %v160_v59 }
 0x14f   :  { %v4838_v0 = vpop.eup %4837  ;;  %v172_v9 = vmul.f32 %v3830_v57, %v161_v3  ;;  %v595_v3 = vpack.i.b16 %v3853_v61, %v3853_v61 }
 0x150   :  { %v182_v2 = vadd.f32 %v3831_v62, %v171_v63  ;;  %v162_v4 = vmul.f32 %v4838_v0, %v5283_v23  ;;  %v4840_v8 = vpop.eup %4839 }
 0x151   :  { %v163_v11 = vmul.f32 %v4840_v8, %v5289_v30  ;;  %v183_v13 = vadd.f32 %v3831_v62, %v172_v9 }
 0x152   :  { %v186_v5 = vpack.c.bf16 %v182_v2, %v181_v1  ;;  %v173_v6 = vmul.f32 %v3830_v57, %v162_v4  ;;  %v446_v1 = vpack.i.b16 %v444_v60, %v444_v60 }
 0x153   :  { %v174_v15 = vmul.f32 %v3830_v57, %v163_v11  ;;  %v449_v57 = vshrl.u32 %v448_v50, 7 }
 0x154   :  { %4199 = vmatmul.mubr.msk.bf16.vlgmr.msra.gmra.mrb[0].mxu0 %vm96_vm0, %v186_v5  ;;  %4215 = vmatmul.mubr.msk.bf16.vlgmr.msra.gmra.mrb[0].mxu1 %vm96_vm0, %v186_v5  ;;  %v184_v10 = vadd.f32 %v3831_v62, %v173_v6 }
 0x155   :  { %4202 = vmatprep.mubr.msk.bf16.mxu0 %vm5118_vm2, %v5117_v37  ;;  %4218 = vmatprep.mubr.msk.bf16.mxu1 %vm5118_vm2, %v5117_v37  ;;  %v185_v16 = vadd.f32 %v3831_v62, %v174_v15  ;;  %v5399_v2 = vsub.s32 0, %v449_v57 }
 0x156   :  { %4227 = vmatpush3.bf16.msra.mxu0 %v4797_v7  ;;  %v187_v14 = vpack.c.bf16 %v184_v10, %v183_v13 }
 0x157   :  { %4228 = vmatprep.subr.bf16.mxu0 %v5117_v37  ;;  %v188_v17 = vpack.c.bf16 %v185_v16, %v185_v16  ;;  %v5410_v8 = vrot.slane %v446_v1, %v5399_v2  ;;  %v5413_v9 = vrot.slane %v595_v3, %v5399_v2  ;;  %v5537_v3 = vld [vmem:[%s6858_s8 + $0x10] sm:$0xff] }
 0x15a   :  { %4229 = vmatpush3.bf16.msra.mxu0 %v4798_v12 }
 0x15b   :  { %4260 = vmatprep.subr.bf16.mxu0 %v5117_v37 }
 0x15c   :  { %4203 = vmatmul.mubr.msk.bf16.gmra.mrb[4].mxu0 %vm96_vm0, %v187_v14  ;;  %4219 = vmatmul.mubr.msk.bf16.gmra.mrb[4].mxu1 %vm96_vm0, %v187_v14 }
 0x15d   :  { %4206 = vmatprep.mubr.msk.bf16.mxu0 %vm5118_vm2, %v5117_v37  ;;  %4222 = vmatprep.mubr.msk.bf16.mxu1 %vm5118_vm2, %v5117_v37 }
 0x164   :  { %4207 = vmatmul.mubr.msk.bf16.gmra.mrb[8].mxu0 %vm96_vm0, %v188_v17  ;;  %4223 = vmatmul.mubr.msk.bf16.gmra.mrb[8].mxu1 %vm96_vm0, %v188_v17 }
 0x165   :  { %4230 = vmatprep.mubr.msk.bf16.mxu0 %vm5118_vm2, %v5117_v37  ;;  %4248 = vmatprep.mubr.msk.bf16.mxu1 %vm5118_vm2, %v5117_v37 }
 0x16c   :  { %4231 = vmatmul.mubr.msk.bf16.vlgmr.msra.gmra.mrb[12].mxu0 %vm96_vm0, %v186_v5  ;;  %v3844_v5 = vld [vmem:[%s6857_s0] ss:$0 sm:$0xff] }
 0x16d   :  { %4234 = vmatprep.mubr.msk.bf16.mxu0 %vm5118_vm2, %v5117_v37 }
 0x174   :  { %4235 = vmatmul.mubr.msk.bf16.gmra.mrb[16].mxu0 %vm96_vm0, %v187_v14 }
 0x175   :  { %4238 = vmatprep.mubr.msk.bf16.mxu0 %vm5118_vm2, %v5117_v37 }
 0x17c   :  { %4239 = vmatmul.mubr.msk.bf16.gmra.mrb[20].mxu0 %vm96_vm0, %v188_v17 }
 0x17d   :  { %4266 = vmatprep.mubr.msk.bf16.mxu0 %vm5118_vm2, %v5117_v37 }
 0x227   :  { %v255_v19 = vpop.f32.mrb[0].mxu0  ;;  %v334_v21 = vpop.f32.mrb[0].mxu1 }
 0x228   :  { %v4200_v22 = vpop.f32.mrb[1].mxu0  ;;  %v4216_v23 = vpop.f32.mrb[1].mxu1  ;;  %v256_v26 = vadd.f32 %v5366_v18, %v255_v19  ;;  %v335_v27 = vadd.f32 %v3838_v20, %v334_v21 }
 0x229   :  { %v258_v24 = vpop.f32.mrb[2].mxu0  ;;  %v337_v25 = vpop.f32.mrb[2].mxu1 }
 0x22a   :  { %v259_v28 = vadd.f32 %v5366_v18, %v258_v24  ;;  %v338_v29 = vadd.f32 %v3838_v20, %v337_v25  ;;  %v4201_v30 = vpop.f32.mrb[3].mxu0  ;;  %v4217_v31 = vpop.f32.mrb[3].mxu1 }
 0x22c   :  { %v5373_v32 = vpack.c.bf16 %v259_v28, %v256_v26  ;;  %v438_v33 = vpack.c.bf16 %v338_v29, %v335_v27 }
 0x22e   :  { %v5376_v36 = vsel %vm96_vm0, %v438_v33, 0  ;;  %v452_v15 = vmul.bf16 %v5410_v8, %v5373_v32  ;;  %v601_v16 = vmul.bf16 %v5413_v9, %v5373_v32 }
 0x22f   :  { %v263_v34 = vpop.f32.mrb[4].mxu0  ;;  %v342_v35 = vpop.f32.mrb[4].mxu1  ;;  %4243 = vmatpush3.bf16.xpose.msra.mxu1 %v5376_v36  ;;  %4261 = vmatpush3.bf16.xpose.msra.mxu0 %v5376_v36 }
 0x230   :  { %v4204_v38 = vpop.f32.mrb[5].mxu0  ;;  %v4220_v39 = vpop.f32.mrb[5].mxu1  ;;  %4244 = vmatprep.subr.bf16.mxu1 %v5117_v37  ;;  %4262 = vmatprep.subr.bf16.mxu0 %v5117_v37  ;;  %v264_v42 = vadd.f32 %v5366_v18, %v263_v34  ;;  %v343_v43 = vadd.f32 %v3838_v20, %v342_v35  ;;  %v3863_v35 = vld [vmem:[%s6856_s10 + $0x2] sm:$0x1] }
 0x231   :  { %v266_v40 = vpop.f32.mrb[6].mxu0  ;;  %v345_v41 = vpop.f32.mrb[6].mxu1 }
 0x232   :  { %v267_v44 = vadd.f32 %v5366_v18, %v266_v40  ;;  %v346_v45 = vadd.f32 %v3838_v20, %v345_v41  ;;  %v4205_v46 = vpop.f32.mrb[7].mxu0  ;;  %v4221_v47 = vpop.f32.mrb[7].mxu1  ;;  %v870_v41 = vpack.i.b16 %v3863_v35, %v3863_v35 }
 0x234   :  { %v5384_v48 = vpack.c.bf16 %v267_v44, %v264_v42  ;;  %v439_v49 = vpack.c.bf16 %v346_v45, %v343_v43  ;;  %v5466_v45 = vrot.slane %v870_v41, %v5399_v2 }
 0x236   :  { %v5387_v51 = vsel %vm96_vm0, %v439_v49, 0  ;;  %v453_v27 = vmul.bf16 %v5410_v8, %v5384_v48  ;;  %v602_v28 = vmul.bf16 %v5413_v9, %v5384_v48  ;;  %v876_v46 = vmul.bf16 %v5466_v45, %v5373_v32 }
 0x237   :  { %v271_v52 = vpop.f32.mrb[8].mxu0  ;;  %v350_v53 = vpop.f32.mrb[8].mxu1  ;;  %4245 = vmatpush3.bf16.xpose.msra.mxu1 %v5387_v51  ;;  %4263 = vmatpush3.bf16.xpose.msra.mxu0 %v5387_v51  ;;  %v877_v47 = vmul.bf16 %v5466_v45, %v5384_v48 }
 0x238   :  { %v351_v54 = vadd.f32 %v3838_v20, %v350_v53  ;;  %v4208_v55 = vpop.f32.mrb[9].mxu0  ;;  %v4224_v56 = vpop.f32.mrb[9].mxu1  ;;  %4246 = vmatprep.subr.bf16.mxu1 %v5117_v37  ;;  %4264 = vmatprep.subr.bf16.mxu0 %v5117_v37  ;;  %v272_v26 = vadd.f32 %v5366_v18, %v271_v52 }
 0x239   :  { %v274_v58 = vpop.f32.mrb[10].mxu0  ;;  %v353_v59 = vpop.f32.mrb[10].mxu1 }
 0x23a   :  { %v4209_v62 = vpop.f32.mrb[11].mxu0  ;;  %v4225_v63 = vpop.f32.mrb[11].mxu1  ;;  %v440_v0 = vpack.c.bf16 %v351_v54, %v351_v54  ;;  %v437_v18 = vpack.c.bf16 %v272_v26, %v272_v26 }
 0x23c   :  { %v5402_v4 = vsel %vm96_vm0, %v440_v0, 0  ;;  %v454_v42 = vmul.bf16 %v5410_v8, %v437_v18  ;;  %v603_v43 = vmul.bf16 %v5413_v9, %v437_v18  ;;  %v878_v50 = vmul.bf16 %v5466_v45, %v437_v18 }
 0x23f   :  { %v413_v6 = vpop.f32.mrb[12].mxu0  ;;  %4247 = vmatpush3.bf16.xpose.msra.mxu1 %v5402_v4  ;;  %4265 = vmatpush3.bf16.xpose.msra.mxu0 %v5402_v4 }
 0x240   :  { %v4232_v7 = vpop.f32.mrb[13].mxu0  ;;  %4314 = vmatprep.subr.bf16.mxu0 %v5117_v37  ;;  %4278 = vmatprep.subr.bf16.mxu1 %v5117_v37  ;;  %v414_v11 = vadd.f32 %v3844_v5, %v413_v6  ;;  %v5542_v6 = vld [vmem:[%s6858_s8 + $0x18] sm:$0xff] }
 0x241   :  { %v416_v10 = vpop.f32.mrb[14].mxu0 }
 0x242   :  { %v417_v12 = vadd.f32 %v3844_v5, %v416_v10  ;;  %v4233_v13 = vpop.f32.mrb[15].mxu0 }
 0x244   :  { %v5417_v14 = vpack.c.bf16 %v417_v12, %v414_v11 }
 0x246   :  { %v727_v17 = vmul.bf16 %v5413_v9, %v5417_v14  ;;  %4249 = vmatmul.mubr.msk.bf16.vlgmr.msra.gmra.mrb[12].mxu1 %vm96_vm0, %v452_v15  ;;  %4267 = vmatmul.mubr.msk.bf16.vlgmr.msra.gmra.mrb[24].mxu0 %vm96_vm0, %v601_v16 }
 0x247   :  { %v421_v19 = vpop.f32.mrb[16].mxu0  ;;  %4315 = vmatpush3.bf16.xpose.msra.mxu0 %v5376_v36  ;;  %4252 = vmatprep.mubr.msk.bf16.mxu1 %vm5118_vm2, %v5117_v37 }
 0x248   :  { %v4236_v20 = vpop.f32.mrb[17].mxu0  ;;  %4279 = vmatpush3.bf16.msra.mxu1 %v727_v17  ;;  %4270 = vmatprep.mubr.msk.bf16.mxu0 %vm5118_vm2, %v5117_v37  ;;  %v422_v22 = vadd.f32 %v3844_v5, %v421_v19 }
 0x249   :  { %v424_v21 = vpop.f32.mrb[18].mxu0  ;;  %4316 = vmatprep.subr.bf16.mxu0 %v5117_v37  ;;  %4280 = vmatprep.subr.bf16.mxu1 %v5117_v37 }
 0x24a   :  { %v425_v23 = vadd.f32 %v3844_v5, %v424_v21  ;;  %v4237_v24 = vpop.f32.mrb[19].mxu0 }
 0x24c   :  { %v5434_v25 = vpack.c.bf16 %v425_v23, %v422_v22  ;;  %v5560_v22 = vld [vmem:[%s6858_s8 + $0x20] sm:$0x3] }
 0x24e   :  { %v728_v29 = vmul.bf16 %v5413_v9, %v5434_v25  ;;  %4253 = vmatmul.mubr.msk.bf16.gmra.mrb[16].mxu1 %vm96_vm0, %v453_v27  ;;  %4271 = vmatmul.mubr.msk.bf16.gmra.mrb[28].mxu0 %vm96_vm0, %v602_v28 }
 0x24f   :  { %v429_v30 = vpop.f32.mrb[20].mxu0  ;;  %4317 = vmatpush3.bf16.xpose.msra.mxu0 %v5387_v51  ;;  %4256 = vmatprep.mubr.msk.bf16.mxu1 %vm5118_vm2, %v5117_v37 }
 0x250   :  { %v430_v31 = vadd.f32 %v3844_v5, %v429_v30  ;;  %v4240_v33 = vpop.f32.mrb[21].mxu0  ;;  %4281 = vmatpush3.bf16.msra.mxu1 %v728_v29  ;;  %4274 = vmatprep.mubr.msk.bf16.mxu0 %vm5118_vm2, %v5117_v37 }
 0x251   :  { %v432_v34 = vpop.f32.mrb[22].mxu0  ;;  %4282 = vmatprep.subr.bf16.mxu1 %v5117_v37  ;;  %4318 = vmatprep.subr.bf16.mxu0 %v5117_v37 }
 0x252   :  { %v5453_v38 = vpack.c.bf16 %v430_v31, %v430_v31  ;;  %v4241_v39 = vpop.f32.mrb[23].mxu0 }
 0x254   :  { %v729_v40 = vmul.bf16 %v5413_v9, %v5453_v38 }
 0x256   :  { %v741_v44 = vsel %vm739_vm3, %v729_v40, 0  ;;  %4257 = vmatmul.mubr.msk.bf16.gmra.mrb[20].mxu1 %vm96_vm0, %v454_v42  ;;  %4275 = vmatmul.mubr.msk.bf16.gmra.mrb[32].mxu0 %vm96_vm0, %v603_v43 }
 0x257   :  { %4283 = vmatpush3.bf16.msra.mxu1 %v741_v44  ;;  %4319 = vmatpush3.bf16.xpose.msra.mxu0 %v5402_v4 }
 0x258   :  { %4320 = vmatprep.mubr.msk.bf16.mxu0 %vm5118_vm2, %v5117_v37  ;;  %4350 = vmatprep.subr.bf16.mxu0 %v5117_v37 }
 0x259   :  { %4284 = vmatprep.mubr.msk.bf16.mxu1 %vm5118_vm2, %v5117_v37  ;;  %4296 = vmatprep.subr.bf16.mxu1 %v5117_v37 }
 0x25e   :  { %4321 = vmatmul.mubr.msk.bf16.vlgmr.msra.gmra.mrb[36].mxu0 %vm96_vm0, %v876_v46 }
 0x25f   :  { %4351 = vmatpush3.bf16.xpose.msra.mxu0 %v5376_v36  ;;  %4324 = vmatprep.mubr.msk.bf16.mxu0 %vm5118_vm2, %v5117_v37  ;;  %v3870_v36 = vld [vmem:[%s6856_s10 + $0x3] sm:$0x1] }
 0x260   :  { %4352 = vmatprep.subr.bf16.mxu0 %v5117_v37  ;;  %v1081_v49 = vpack.i.b16 %v3870_v36, %v3870_v36 }
 0x266   :  { %4325 = vmatmul.mubr.msk.bf16.gmra.mrb[40].mxu0 %vm96_vm0, %v877_v47 }
 0x267   :  { %4353 = vmatpush3.bf16.xpose.msra.mxu0 %v5387_v51  ;;  %4328 = vmatprep.mubr.msk.bf16.mxu0 %vm5118_vm2, %v5117_v37  ;;  %v5497_v51 = vrot.slane %v1081_v49, %v5399_v2 }
 0x268   :  { %4354 = vmatprep.subr.bf16.mxu0 %v5117_v37 }
 0x269   :  { %v1087_v52 = vmul.bf16 %v5497_v51, %v5373_v32  ;;  %v1088_v53 = vmul.bf16 %v5497_v51, %v5384_v48  ;;  %v1089_v54 = vmul.bf16 %v5497_v51, %v437_v18  ;;  %v5517_v32 = vld [vmem:[%s6858_s8] sm:$0xff]  ;;  %v5522_v48 = vld [vmem:[%s6858_s8 + $0x8] sm:$0xff] }
 0x26e   :  { %4329 = vmatmul.mubr.msk.bf16.gmra.mrb[44].mxu0 %vm96_vm0, %v878_v50 }
 0x26f   :  { %4355 = vmatpush3.bf16.xpose.msra.mxu0 %v5402_v4  ;;  %4356 = vmatprep.mubr.msk.bf16.mxu0 %vm5118_vm2, %v5117_v37 }
 0x270   :  { %4386 = vmatprep.subr.bf16.mxu0 %v5117_v37 }
 0x276   :  { %4357 = vmatmul.mubr.msk.bf16.vlgmr.msra.gmra.mrb[48].mxu0 %vm96_vm0, %v1087_v52 }
 0x277   :  { %4360 = vmatprep.mubr.msk.bf16.mxu0 %vm5118_vm2, %v5117_v37 }
 0x27e   :  { %4361 = vmatmul.mubr.msk.bf16.gmra.mrb[52].mxu0 %vm96_vm0, %v1088_v53 }
 0x27f   :  { %4364 = vmatprep.mubr.msk.bf16.mxu0 %vm5118_vm2, %v5117_v37 }
 0x286   :  { %4365 = vmatmul.mubr.msk.bf16.gmra.mrb[56].mxu0 %vm96_vm0, %v1089_v54 }
 0x287   :  { %4390 = vmatprep.mubr.msk.bf16.mxu0 %vm5118_vm2, %v5117_v37 }
 0x319   :  { %v507_v55 = vpop.f32.mrb[12].mxu1  ;;  %v647_v56 = vpop.f32.mrb[24].mxu0 }
 0x31a   :  { %v5525_v57 = vadd.f32 %v647_v56, %v5517_v32  ;;  %v4250_v58 = vpop.f32.mrb[13].mxu1  ;;  %v4268_v59 = vpop.f32.mrb[25].mxu0  ;;  %v5553_v20 = vadd.f32 %v507_v55, %v5517_v32 }
 0x31b   :  { %v510_v60 = vpop.f32.mrb[14].mxu1  ;;  %v650_v61 = vpop.f32.mrb[26].mxu0 }
 0x31c   :  { %v5528_v62 = vadd.f32 %v650_v61, %v5522_v48  ;;  %v4251_v63 = vpop.f32.mrb[15].mxu1  ;;  %v4269_v0 = vpop.f32.mrb[27].mxu0  ;;  %v669_v1 = vsel %vm529_vm4, %v5525_v57, -inf  ;;  %v530_v30 = vsel %vm529_vm4, %v5553_v20, -inf  ;;  %v5571_v18 = vadd.f32 %v510_v60, %v5522_v48 }
 0x31d   :  { %670 = vmax.xlane.f32.xlu0 %v669_v1 }
 0x31e   :  { %v672_v2 = vsel %vm529_vm4, %v5528_v62, -inf  ;;  %v533_v43 = vsel %vm529_vm4, %v5571_v18, -inf }
 0x31f   :  { %673 = vmax.xlane.f32.xlu1 %v672_v2 }
 0x321   :  { %v515_v4 = vpop.f32.mrb[16].mxu1  ;;  %v655_v5 = vpop.f32.mrb[28].mxu0 }
 0x322   :  { %v5545_v7 = vadd.f32 %v655_v5, %v5537_v3  ;;  %v4254_v10 = vpop.f32.mrb[17].mxu1  ;;  %v4272_v11 = vpop.f32.mrb[29].mxu0  ;;  %v5563_v26 = vadd.f32 %v515_v4, %v5537_v3 }
 0x323   :  { %v518_v12 = vpop.f32.mrb[18].mxu1  ;;  %v658_v13 = vpop.f32.mrb[30].mxu0 }
 0x324   :  { %v5548_v15 = vadd.f32 %v658_v13, %v5542_v6  ;;  %v4255_v16 = vpop.f32.mrb[19].mxu1  ;;  %v4273_v17 = vpop.f32.mrb[31].mxu0  ;;  %v675_v19 = vsel %vm529_vm4, %v5545_v7, -inf  ;;  %v536_v41 = vsel %vm529_vm4, %v5563_v26, -inf  ;;  %v5581_v42 = vadd.f32 %v518_v12, %v5542_v6 }
 0x325   :  { %676 = vmax.xlane.f32.xlu0 %v675_v19 }
 0x326   :  { %v678_v21 = vsel %vm529_vm4, %v5548_v15, -inf  ;;  %v539_v53 = vsel %vm529_vm4, %v5581_v42, -inf }
 0x327   :  { %679 = vmax.xlane.f32.xlu1 %v678_v21 }
 0x329   :  { %v523_v23 = vpop.f32.mrb[20].mxu1  ;;  %v663_v24 = vpop.f32.mrb[32].mxu0 }
 0x32a   :  { %v5566_v27 = vadd.f32 %v663_v24, %v5560_v22  ;;  %v4258_v28 = vpop.f32.mrb[21].mxu1  ;;  %v4276_v29 = vpop.f32.mrb[33].mxu0  ;;  %v5576_v40 = vadd.f32 %v523_v23, %v5560_v22 }
 0x32b   :  { %v526_v31 = vpop.f32.mrb[22].mxu1  ;;  %531 = vmax.xlane.f32.xlu1 %v530_v30  ;;  %v666_v33 = vpop.f32.mrb[34].mxu0 }
 0x32c   :  { %v4259_v34 = vpop.f32.mrb[23].mxu1  ;;  %v4277_v35 = vpop.f32.mrb[35].mxu0  ;;  %v681_v39 = vsel %vm542_vm5, %v5566_v27, -inf  ;;  %v543_v47 = vsel %vm542_vm5, %v5576_v40, -inf }
 0x32d   :  { %682 = vmax.xlane.f32.xlu0 %v681_v39 }
 0x32f   :  { %537 = vmax.xlane.f32.xlu1 %v536_v41 }
 0x331   :  { %534 = vmax.xlane.f32.xlu0 %v533_v43  ;;  %v922_v44 = vpop.f32.mrb[36].mxu0 }
 0x332   :  { %v4322_v46 = vpop.f32.mrb[37].mxu0  ;;  %v5588_v49 = vadd.f32 %v922_v44, %v5517_v32 }
 0x333   :  { %544 = vmax.xlane.f32.xlu1 %v543_v47  ;;  %v925_v36 = vpop.f32.mrb[38].mxu0 }
 0x334   :  { %v5591_v50 = vadd.f32 %v925_v36, %v5522_v48  ;;  %v4323_v52 = vpop.f32.mrb[39].mxu0  ;;  %v944_v55 = vsel %vm529_vm4, %v5588_v49, -inf }
 0x335   :  { %540 = vmax.xlane.f32.xlu0 %v539_v53 }
 0x336   :  { %v947_v54 = vsel %vm529_vm4, %v5591_v50, -inf }
 0x337   :  { %948 = vmax.xlane.f32.xlu1 %v947_v54 }
 0x339   :  { %945 = vmax.xlane.f32.xlu0 %v944_v55  ;;  %v930_v56 = vpop.f32.mrb[40].mxu0 }
 0x33a   :  { %v5600_v58 = vadd.f32 %v930_v56, %v5537_v3  ;;  %v4326_v59 = vpop.f32.mrb[41].mxu0 }
 0x33b   :  { %v933_v60 = vpop.f32.mrb[42].mxu0 }
 0x33c   :  { %v5603_v61 = vadd.f32 %v933_v60, %v5542_v6  ;;  %v4327_v63 = vpop.f32.mrb[43].mxu0  ;;  %v950_v0 = vsel %vm529_vm4, %v5600_v58, -inf }
 0x33d   :  { %951 = vmax.xlane.f32.xlu0 %v950_v0 }
 0x33e   :  { %v953_v1 = vsel %vm529_vm4, %v5603_v61, -inf }
 0x33f   :  { %954 = vmax.xlane.f32.xlu1 %v953_v1 }
 0x341   :  { %v938_v2 = vpop.f32.mrb[44].mxu0 }
 0x342   :  { %v5610_v4 = vadd.f32 %v938_v2, %v5560_v22  ;;  %v4330_v5 = vpop.f32.mrb[45].mxu0 }
 0x343   :  { %v941_v10 = vpop.f32.mrb[46].mxu0 }
 0x344   :  { %v4331_v11 = vpop.f32.mrb[47].mxu0  ;;  %v956_v12 = vsel %vm542_vm5, %v5610_v4, -inf }
 0x345   :  { %957 = vmax.xlane.f32.xlu0 %v956_v12 }
 0x349   :  { %v1133_v13 = vpop.f32.mrb[48].mxu0 }
 0x34a   :  { %v5615_v16 = vadd.f32 %v1133_v13, %v5517_v32  ;;  %v4358_v17 = vpop.f32.mrb[49].mxu0 }
 0x34b   :  { %v1136_v19 = vpop.f32.mrb[50].mxu0 }
 0x34c   :  { %v5618_v21 = vadd.f32 %v1136_v19, %v5522_v48  ;;  %v4359_v23 = vpop.f32.mrb[51].mxu0  ;;  %v1155_v24 = vsel %vm529_vm4, %v5615_v16, -inf }
 0x34d   :  { %1156 = vmax.xlane.f32.xlu1 %v1155_v24 }
 0x34e   :  { %v1158_v28 = vsel %vm529_vm4, %v5618_v21, -inf }
 0x34f   :  { %1159 = vmax.xlane.f32.xlu0 %v1158_v28 }
 0x351   :  { %v1141_v29 = vpop.f32.mrb[52].mxu0 }
 0x352   :  { %v5625_v30 = vadd.f32 %v1141_v29, %v5537_v3  ;;  %v4362_v32 = vpop.f32.mrb[53].mxu0 }
 0x353   :  { %v1144_v31 = vpop.f32.mrb[54].mxu0 }
 0x354   :  { %v5628_v33 = vadd.f32 %v1144_v31, %v5542_v6  ;;  %v4363_v48 = vpop.f32.mrb[55].mxu0  ;;  %v1161_v34 = vsel %vm529_vm4, %v5625_v30, -inf }
 0x355   :  { %1162 = vmax.xlane.f32.xlu1 %v1161_v34 }
 0x356   :  { %v1164_v35 = vsel %vm529_vm4, %v5628_v33, -inf }
 0x357   :  { %1165 = vmax.xlane.f32.xlu0 %v1164_v35 }
 0x359   :  { %v1149_v39 = vpop.f32.mrb[56].mxu0 }
 0x35a   :  { %v4366_v41 = vpop.f32.mrb[57].mxu0  ;;  %v5654_v28 = vadd.f32 %v1149_v39, %v5560_v22 }
 0x35b   :  { %v1152_v43 = vpop.f32.mrb[58].mxu0 }
 0x35c   :  { %v4367_v44 = vpop.f32.mrb[59].mxu0  ;;  %v1167_v39 = vsel %vm542_vm5, %v5654_v28, -inf }
 0x3aa   :  { %v671_v3 = vpop.xlane.xlu0 %670 }
 0x3ab   :  { %v684_v46 = vsub.f32 %v5525_v57, %v671_v3 }
 0x3ac   :  { %v674_v47 = vpop.xlane.xlu1 %673 }
 0x3ad   :  { %v689_v36 = vmul.f32 1.442695, %v684_v46  ;;  %v685_v6 = vsub.f32 %v5528_v62, %v674_v47 }
 0x3af   :  { %4841 = vpow2.f32 %v689_v36  ;;  %v691_v52 = vmul.f32 1.442695, %v685_v6 }
 0x3b1   :  { %4843 = vpow2.f32 %v691_v52 }
 0x3b2   :  { %v677_v53 = vpop.xlane.xlu0 %676 }
 0x3b3   :  { %v686_v54 = vsub.f32 %v5545_v7, %v677_v53 }
 0x3b4   :  { %v680_v55 = vpop.xlane.xlu1 %679 }
 0x3b5   :  { %v693_v56 = vmul.f32 1.442695, %v686_v54  ;;  %v687_v59 = vsub.f32 %v5548_v15, %v680_v55 }
 0x3b7   :  { %4845 = vpow2.f32 %v693_v56  ;;  %v695_v60 = vmul.f32 1.442695, %v687_v59 }
 0x3b8   :  { %v532_v63 = vpop.xlane.xlu1 %531 }
 0x3b9   :  { %v5638_v0 = vpop.eup %4841  ;;  %4847 = vpow2.f32 %v695_v60  ;;  %v546_v57 = vsub.f32 %v5553_v20, %v532_v63 }
 0x3ba   :  { %v683_v1 = vpop.xlane.xlu0 %682  ;;  %v699_v62 = vsel %vm529_vm4, %v5638_v0, 0.0 }
 0x3bb   :  { %v5643_v2 = vpop.eup %4843  ;;  %v551_v5 = vmul.f32 1.442695, %v546_v57  ;;  %v688_v7 = vsub.f32 %v5566_v27, %v683_v1  ;;  %700 = vadd.xlane.f32.xlu1 %v699_v62 }
 0x3bc   :  { %v538_v10 = vpop.xlane.xlu1 %537  ;;  %v702_v15 = vsel %vm529_vm4, %v5643_v2, 0.0 }
 0x3bd   :  { %4849 = vpow2.f32 %v551_v5  ;;  %v697_v11 = vmul.f32 1.442695, %v688_v7  ;;  %v548_v12 = vsub.f32 %v5563_v26, %v538_v10  ;;  %703 = vadd.xlane.f32.xlu0 %v702_v15 }
 0x3be   :  { %v535_v20 = vpop.xlane.xlu0 %534 }
 0x3bf   :  { %4851 = vpow2.f32 %v697_v11  ;;  %v555_v13 = vmul.f32 1.442695, %v548_v12  ;;  %v547_v17 = vsub.f32 %v5571_v18, %v535_v20 }
 0x3c0   :  { %v545_v19 = vpop.xlane.xlu1 %544 }
 0x3c1   :  { %v5650_v23 = vpop.eup %4845  ;;  %4853 = vpow2.f32 %v555_v13  ;;  %v553_v27 = vmul.f32 1.442695, %v547_v17  ;;  %v550_v24 = vsub.f32 %v5576_v40, %v545_v19 }
 0x3c2   :  { %v541_v29 = vpop.xlane.xlu0 %540  ;;  %v705_v26 = vsel %vm529_vm4, %v5650_v23, 0.0 }
 0x3c3   :  { %v5658_v32 = vpop.eup %4847  ;;  %4855 = vpow2.f32 %v553_v27  ;;  %v559_v31 = vmul.f32 1.442695, %v550_v24  ;;  %v549_v18 = vsub.f32 %v5581_v42, %v541_v29  ;;  %706 = vadd.xlane.f32.xlu1 %v705_v26 }
 0x3c4   :  { %v949_v48 = vpop.xlane.xlu1 %948  ;;  %v708_v34 = vsel %vm529_vm4, %v5658_v32, 0.0 }
 0x3c5   :  { %4857 = vpow2.f32 %v559_v31  ;;  %v557_v40 = vmul.f32 1.442695, %v549_v18  ;;  %v960_v22 = vsub.f32 %v5591_v50, %v949_v48  ;;  %709 = vadd.xlane.f32.xlu0 %v708_v34 }
 0x3c6   :  { %v946_v35 = vpop.xlane.xlu0 %945 }
 0x3c7   :  { %v5666_v41 = vpop.eup %4849  ;;  %4859 = vpow2.f32 %v557_v40  ;;  %v966_v43 = vmul.f32 1.442695, %v960_v22  ;;  %v959_v42 = vsub.f32 %v5588_v49, %v946_v35  ;;  %1168 = vmax.xlane.f32.xlu1 %v1167_v39 }
 0x3c8   :  { %v561_v47 = vsel %vm529_vm4, %v5666_v41, 0.0 }
 0x3c9   :  { %v5669_v44 = vpop.eup %4851  ;;  %4861 = vpow2.f32 %v966_v43  ;;  %v964_v3 = vmul.f32 1.442695, %v959_v42 }
 0x3ca   :  { %v952_v46 = vpop.xlane.xlu0 %951  ;;  %v711_v50 = vsel %vm542_vm5, %v5669_v44, 0.0 }
 0x3cb   :  { %v5675_v36 = vpop.eup %4853  ;;  %4863 = vpow2.f32 %v964_v3  ;;  %v961_v6 = vsub.f32 %v5600_v58, %v952_v46  ;;  %712 = vadd.xlane.f32.xlu0 %v711_v50  ;;  %562 = vadd.xlane.f32.xlu1 %v561_v47 }
 0x3cc   :  { %v955_v49 = vpop.xlane.xlu1 %954  ;;  %v567_v56 = vsel %vm529_vm4, %v5675_v36, 0.0 }
 0x3cd   :  { %v5678_v52 = vpop.eup %4855  ;;  %v968_v53 = vmul.f32 1.442695, %v961_v6  ;;  %v962_v54 = vsub.f32 %v5603_v61, %v955_v49 }
 0x3ce   :  { %v564_v55 = vsel %vm529_vm4, %v5678_v52, 0.0 }
 0x3cf   :  { %v5685_v59 = vpop.eup %4857  ;;  %4865 = vpow2.f32 %v968_v53  ;;  %v970_v60 = vmul.f32 1.442695, %v962_v54  ;;  %565 = vadd.xlane.f32.xlu0 %v564_v55  ;;  %568 = vadd.xlane.f32.xlu1 %v567_v56 }
 0x3d0   :  { %v573_v61 = vsel %vm542_vm5, %v5685_v59, 0.0 }
 0x3d1   :  { %v5687_v58 = vpop.eup %4859  ;;  %4867 = vpow2.f32 %v970_v60 }
 0x3d2   :  { %v958_v63 = vpop.xlane.xlu0 %957  ;;  %v570_v57 = vsel %vm529_vm4, %v5687_v58, 0.0 }
 0x3d3   :  { %v5693_v1 = vpop.eup %4861  ;;  %v963_v62 = vsub.f32 %v5610_v4, %v958_v63  ;;  %571 = vadd.xlane.f32.xlu0 %v570_v57  ;;  %574 = vadd.xlane.f32.xlu1 %v573_v61 }
 0x3d4   :  { %v977_v15 = vsel %vm529_vm4, %v5693_v1, 0.0 }
 0x3d5   :  { %v5696_v5 = vpop.eup %4863  ;;  %v972_v7 = vmul.f32 1.442695, %v963_v62  ;;  %v589_v62 = vmul.bf16 %v5410_v8, %v5417_v14 }
 0x3d6   :  { %v974_v10 = vsel %vm529_vm4, %v5696_v5, 0.0 }
 0x3d7   :  { %4869 = vpow2.f32 %v972_v7  ;;  %975 = vadd.xlane.f32.xlu0 %v974_v10  ;;  %978 = vadd.xlane.f32.xlu1 %v977_v15 }
 0x3d9   :  { %v5702_v11 = vpop.eup %4865 }
 0x3da   :  { %v1157_v12 = vpop.xlane.xlu1 %1156  ;;  %v980_v4 = vsel %vm529_vm4, %v5702_v11, 0.0 }
 0x3db   :  { %v5706_v20 = vpop.eup %4867  ;;  %v1170_v13 = vsub.f32 %v5615_v16, %v1157_v12  ;;  %981 = vadd.xlane.f32.xlu0 %v980_v4  ;;  %v591_v4 = vmul.bf16 %v5410_v8, %v5453_v38 }
 0x3dc   :  { %v1160_v17 = vpop.xlane.xlu0 %1159  ;;  %v983_v19 = vsel %vm529_vm4, %v5706_v20, 0.0 }
 0x3dd   :  { %v1175_v27 = vmul.f32 1.442695, %v1170_v13  ;;  %v1171_v24 = vsub.f32 %v5618_v21, %v1160_v17  ;;  %984 = vadd.xlane.f32.xlu1 %v983_v19  ;;  %v809_v17 = vsel %vm739_vm3, %v591_v4, 0 }
 0x3df   :  { %4871 = vpow2.f32 %v1175_v27  ;;  %v1177_v29 = vmul.f32 1.442695, %v1171_v24 }
 0x3e1   :  { %v5712_v26 = vpop.eup %4869  ;;  %4873 = vpow2.f32 %v1177_v29 }
 0x3e2   :  { %v1163_v31 = vpop.xlane.xlu1 %1162  ;;  %v986_v18 = vsel %vm542_vm5, %v5712_v26, 0.0 }
 0x3e3   :  { %v1172_v16 = vsub.f32 %v5625_v30, %v1163_v31  ;;  %987 = vadd.xlane.f32.xlu0 %v986_v18 }
 0x3e4   :  { %v1166_v48 = vpop.xlane.xlu0 %1165 }
 0x3e5   :  { %v1179_v34 = vmul.f32 1.442695, %v1172_v16  ;;  %v1173_v40 = vsub.f32 %v5628_v33, %v1166_v48 }
 0x3e7   :  { %4875 = vpow2.f32 %v1179_v34  ;;  %v1181_v22 = vmul.f32 1.442695, %v1173_v40 }
 0x3e9   :  { %v5718_v21 = vpop.eup %4871  ;;  %4877 = vpow2.f32 %v1181_v22 }
 0x3ea   :  { %v1185_v35 = vsel %vm529_vm4, %v5718_v21, 0.0 }
 0x3eb   :  { %v5722_v39 = vpop.eup %4873  ;;  %1186 = vadd.xlane.f32.xlu1 %v1185_v35 }
 0x3ec   :  { %v1188_v43 = vsel %vm529_vm4, %v5722_v39, 0.0 }
 0x3ed   :  { %1189 = vadd.xlane.f32.xlu0 %v1188_v43 }
 0x3f1   :  { %v5726_v30 = vpop.eup %4875 }
 0x3f2   :  { %v1191_v33 = vsel %vm529_vm4, %v5726_v30, 0.0 }
 0x3f3   :  { %v5730_v42 = vpop.eup %4877  ;;  %1192 = vadd.xlane.f32.xlu1 %v1191_v33 }
 0x3f4   :  { %v1194_v3 = vsel %vm529_vm4, %v5730_v42, 0.0 }
 0x3f5   :  { %1195 = vadd.xlane.f32.xlu0 %v1194_v3 }
 0x448   :  { %v701_v46 = vpop.xlane.xlu1 %700 }
 0x449   :  { %4879 = vrcp.f32 %v701_v46 }
 0x44a   :  { %v704_v50 = vpop.xlane.xlu0 %703 }
 0x44b   :  { %4881 = vrcp.f32 %v704_v50  ;;  %v1004_v50 = vmul.bf16 %v5466_v45, %v5453_v38 }
 0x450   :  { %v707_v47 = vpop.xlane.xlu1 %706 }
 0x451   :  { %4883 = vrcp.f32 %v707_v47 }
 0x452   :  { %v710_v6 = vpop.xlane.xlu0 %709 }
 0x453   :  { %v4880_v49 = vpop.eup %4879  ;;  %4885 = vrcp.f32 %v710_v6 }
 0x454   :  { %v1169_v53 = vpop.xlane.xlu1 %1168  ;;  %v719_v56 = vmul.f32 %v4880_v49, %v5638_v0  ;;  %v1015_v49 = vsel %vm739_vm3, %v1004_v50, 0 }
 0x455   :  { %v4882_v54 = vpop.eup %4881  ;;  %v1174_v55 = vsub.f32 %v5654_v28, %v1169_v53 }
 0x456   :  { %v720_v60 = vmul.f32 %v4882_v54, %v5643_v2  ;;  %v590_v2 = vmul.bf16 %v5410_v8, %v5434_v25 }
 0x457   :  { %v1183_v63 = vmul.f32 1.442695, %v1174_v55 }
 0x458   :  { %v724_v57 = vpack.c.bf16 %v720_v60, %v719_v56  ;;  %v713_v61 = vpop.xlane.xlu0 %712  ;;  %v563_v10 = vpop.xlane.xlu1 %562  ;;  %v4799_v60 = vld [vmem:[%s6859_s5] sm:$0xff]  }
 0x459   :  { %4887 = vpow2.f32 %v1183_v63  ;;  %4387 = vmatpush3.bf16.msra.mxu0 %v4799_v60 }
 0x45a   :  { %4889 = vrcp.f32 %v713_v61  ;;  %4285 = vmatmul.mubr.msk.bf16.vlgmr.msra.gmra.mrb[24].mxu1 %vm529_vm4, %v724_v57  ;;  %4388 = vmatprep.subr.bf16.mxu0 %v5117_v37 }
 0x45b   :  { %v4884_v7 = vpop.eup %4883  ;;  %4297 = vmatpush3.bf16.msra.mxu1 %v589_v62  ;;  %4288 = vmatprep.mubr.msk.bf16.mxu1 %vm5118_vm2, %v5117_v37 }
 0x45c   :  { %v566_v28 = vpop.xlane.xlu0 %565  ;;  %4298 = vmatprep.subr.bf16.mxu1 %v5117_v37  ;;  %v721_v15 = vmul.f32 %v4884_v7, %v5650_v23  ;;  %v569_v29 = vpop.xlane.xlu1 %568  ;;  %v1213_v7 = vmul.bf16 %v5497_v51, %v5417_v14 }
 0x45d   :  { %v4886_v0 = vpop.eup %4885  ;;  %4891 = vrcp.f32 %v566_v28 }
 0x45e   :  { %v722_v12 = vmul.f32 %v4886_v0, %v5658_v32  ;;  %4893 = vrcp.f32 %v563_v10  ;;  %v1214_v0 = vmul.bf16 %v5497_v51, %v5434_v25 }
 0x45f   :  { %4299 = vmatpush3.bf16.msra.mxu1 %v590_v2 }
 0x460   :  { %4300 = vmatprep.subr.bf16.mxu1 %v5117_v37  ;;  %v725_v13 = vpack.c.bf16 %v722_v12, %v721_v15  ;;  %v572_v32 = vpop.xlane.xlu0 %571  ;;  %v575_v34 = vpop.xlane.xlu1 %574 }
 0x461   :  { %4895 = vrcp.f32 %v572_v32 }
 0x462   :  { %4289 = vmatmul.mubr.msk.bf16.gmra.mrb[28].mxu1 %vm529_vm4, %v725_v13  ;;  %4897 = vrcp.f32 %v569_v29 }
 0x463   :  { %v5752_v19 = vpop.eup %4887  ;;  %4301 = vmatpush3.bf16.msra.mxu1 %v809_v17  ;;  %4292 = vmatprep.mubr.msk.bf16.mxu1 %vm5118_vm2, %v5117_v37  ;;  %4899 = vrcp.f32 %v575_v34 }
 0x464   :  { %v4890_v23 = vpop.eup %4889  ;;  %v1197_v27 = vsel %vm542_vm5, %v5752_v19, 0.0  ;;  %4332 = vmatprep.subr.bf16.mxu1 %v5117_v37  ;;  %v976_v33 = vpop.xlane.xlu0 %975 }
 0x465   :  { %1198 = vadd.xlane.f32.xlu1 %v1197_v27  ;;  %v723_v24 = vmul.f32 %v4890_v23, %v5669_v44  ;;  %v1002_v44 = vmul.bf16 %v5466_v45, %v5417_v14  ;;  %v979_v3 = vpop.xlane.xlu1 %978  ;;  %4901 = vrcp.f32 %v976_v33  ;;  %v1215_v14 = vmul.bf16 %v5497_v51, %v5453_v38 }
 0x466   :  { %4903 = vrcp.f32 %v979_v3 }
 0x467   :  { %v726_v31 = vpack.c.bf16 %v723_v24, %v723_v24  ;;  %v4892_v18 = vpop.eup %4891 }
 0x468   :  { %v4894_v16 = vpop.eup %4893  ;;  %v582_v48 = vmul.f32 %v4892_v18, %v5678_v52  ;;  %v982_v53 = vpop.xlane.xlu0 %981 }
 0x469   :  { %v581_v40 = vmul.f32 %v4894_v16, %v5666_v41  ;;  %v1003_v41 = vmul.bf16 %v5466_v45, %v5434_v25 }
 0x46a   :  { %4293 = vmatmul.mubr.msk.bf16.gmra.mrb[32].mxu1 %vm529_vm4, %v726_v31 }
 0x46b   :  { %4302 = vmatprep.mubr.msk.bf16.mxu1 %vm5118_vm2, %v5117_v37  ;;  %v586_v22 = vpack.c.bf16 %v582_v48, %v581_v40  ;;  %v4896_v35 = vpop.eup %4895 }
 0x46c   :  { %v4898_v43 = vpop.eup %4897  ;;  %v584_v52 = vmul.f32 %v4896_v35, %v5687_v58  ;;  %v985_v58 = vpop.xlane.xlu1 %984 }
 0x46d   :  { %v583_v46 = vmul.f32 %v4898_v43, %v5675_v36  ;;  %v4900_v6 = vpop.eup %4899  ;;  %4905 = vrcp.f32 %v985_v58 }
 0x46e   :  { %v585_v36 = vmul.f32 %v4900_v6, %v5685_v59  ;;  %4907 = vrcp.f32 %v982_v53  ;;  %v3877_v6 = vld [vmem:[%s6860_s9] ss:$0 sm:$0xff] }
 0x46f   :  { %v587_v47 = vpack.c.bf16 %v584_v52, %v583_v46  ;;  %v4902_v54 = vpop.eup %4901 }
 0x470   :  { %v588_v55 = vpack.c.bf16 %v585_v36, %v585_v36  ;;  %v4904_v56 = vpop.eup %4903  ;;  %v994_v63 = vmul.f32 %v4902_v54, %v5696_v5  ;;  %v988_v57 = vpop.xlane.xlu0 %987  ;;  %v5083_v54 = vld [vmem:[%s6850_s7] sm:$0xff] }
 0x471   :  { %v995_v59 = vmul.f32 %v4904_v56, %v5693_v1  ;;  %4909 = vrcp.f32 %v988_v57 }
 0x472   :  { %4303 = vmatmul.mubr.msk.bf16.vlgmr.msra.gmra.mrb[24].mxu1 %vm529_vm4, %v586_v22 }
 0x473   :  { %4333 = vmatpush3.bf16.msra.mxu1 %v1002_v44  ;;  %4306 = vmatprep.mubr.msk.bf16.mxu1 %vm5118_vm2, %v5117_v37  ;;  %v999_v61 = vpack.c.bf16 %v995_v59, %v994_v63  ;;  %v5084_v63 = vld [vmem:[%s6850_s7 + $0x8] sm:$0xff] }
 0x474   :  { %4334 = vmatprep.subr.bf16.mxu1 %v5117_v37 }
 0x477   :  { %4335 = vmatpush3.bf16.msra.mxu1 %v1003_v41  ;;  %v4906_v62 = vpop.eup %4905 }
 0x478   :  { %4336 = vmatprep.subr.bf16.mxu1 %v5117_v37  ;;  %v4908_v28 = vpop.eup %4907  ;;  %v997_v1 = vmul.f32 %v4906_v62, %v5706_v20  ;;  %v1187_v2 = vpop.xlane.xlu1 %1186  ;;  %v1226_v20 = vsel %vm739_vm3, %v1215_v14, 0  ;;  %v5086_v14 = vld [vmem:[%s6850_s7 + $0x18] sm:$0xff] }
 0x479   :  { %v996_v10 = vmul.f32 %v4908_v28, %v5702_v11 }
 0x47a   :  { %4307 = vmatmul.mubr.msk.bf16.gmra.mrb[28].mxu1 %vm529_vm4, %v587_v47  ;;  %v1190_v5 = vpop.xlane.xlu0 %1189 }
 0x47b   :  { %4337 = vmatpush3.bf16.msra.mxu1 %v1015_v49  ;;  %4310 = vmatprep.mubr.msk.bf16.mxu1 %vm5118_vm2, %v5117_v37  ;;  %4911 = vrcp.f32 %v1190_v5  ;;  %v1000_v15 = vpack.c.bf16 %v997_v1, %v996_v10  ;;  %v4910_v12 = vpop.eup %4909  ;;  %v5085_v1 = vld [vmem:[%s6850_s7 + $0x10] sm:$0xff] }
 0x47c   :  { %4368 = vmatprep.subr.bf16.mxu1 %v5117_v37  ;;  %4913 = vrcp.f32 %v1187_v2  ;;  %v998_v11 = vmul.f32 %v4910_v12, %v5712_v26 }
 0x47e   :  { %v1001_v4 = vpack.c.bf16 %v998_v11, %v998_v11 }
 0x480   :  { %v1193_v38 = vpop.xlane.xlu1 %1192 }
 0x482   :  { %4311 = vmatmul.mubr.msk.bf16.gmra.mrb[32].mxu1 %vm529_vm4, %v588_v55  ;;  %v1196_v25 = vpop.xlane.xlu0 %1195 }
 0x483   :  { %4338 = vmatprep.mubr.msk.bf16.mxu1 %vm5118_vm2, %v5117_v37  ;;  %4915 = vrcp.f32 %v1196_v25 }
 0x484   :  { %4917 = vrcp.f32 %v1193_v38 }
 0x485   :  { %v4912_v13 = vpop.eup %4911 }
 0x486   :  { %v4914_v17 = vpop.eup %4913  ;;  %v1206_v23 = vmul.f32 %v4912_v13, %v5722_v39  ;;  %v5087_v13 = vld [vmem:[%s6850_s7 + $0x20] sm:$0x3] }
 0x487   :  { %v1205_v32 = vmul.f32 %v4914_v17, %v5718_v21  ;;  %v4800_v21 = vld [vmem:[%s6859_s5 + $0x8] sm:$0xff]  }
 0x488   :  { %4389 = vmatpush3.bf16.msra.mxu0 %v4800_v21 }
 0x489   :  { %v1210_v27 = vpack.c.bf16 %v1206_v23, %v1205_v32  ;;  %4402 = vmatprep.subr.bf16.mxu0 %v5117_v37 }
 0x48a   :  { %4339 = vmatmul.mubr.msk.bf16.vlgmr.msra.gmra.mrb[24].mxu1 %vm529_vm4, %v999_v61 }
 0x48b   :  { %4369 = vmatpush3.bf16.msra.mxu1 %v1213_v7  ;;  %4342 = vmatprep.mubr.msk.bf16.mxu1 %vm5118_vm2, %v5117_v37 }
 0x48c   :  { %4370 = vmatprep.subr.bf16.mxu1 %v5117_v37 }
 0x48d   :  { %v4916_v24 = vpop.eup %4915 }
 0x48e   :  { %v4918_v26 = vpop.eup %4917  ;;  %v1208_v29 = vmul.f32 %v4916_v24, %v5730_v42 }
 0x48f   :  { %4371 = vmatpush3.bf16.msra.mxu1 %v1214_v0  ;;  %v1207_v31 = vmul.f32 %v4918_v26, %v5726_v30 }
 0x490   :  { %4372 = vmatprep.subr.bf16.mxu1 %v5117_v37 }
 0x491   :  { %v1211_v18 = vpack.c.bf16 %v1208_v29, %v1207_v31 }
 0x492   :  { %4343 = vmatmul.mubr.msk.bf16.gmra.mrb[28].mxu1 %vm529_vm4, %v1000_v15 }
 0x493   :  { %4373 = vmatpush3.bf16.msra.mxu1 %v1226_v20  ;;  %4346 = vmatprep.mubr.msk.bf16.mxu1 %vm5118_vm2, %v5117_v37 }
 0x494   :  { %4418 = vmatprep.subr.bf16.mxu1 %v5117_v37 }
 0x49a   :  { %4347 = vmatmul.mubr.msk.bf16.gmra.mrb[32].mxu1 %vm529_vm4, %v1001_v4 }
 0x49b   :  { %4374 = vmatprep.mubr.msk.bf16.mxu1 %vm5118_vm2, %v5117_v37 }
 0x4a2   :  { %4375 = vmatmul.mubr.msk.bf16.vlgmr.msra.gmra.mrb[24].mxu1 %vm529_vm4, %v1210_v27 }
 0x4a3   :  { %4378 = vmatprep.mubr.msk.bf16.mxu1 %vm5118_vm2, %v5117_v37 }
 0x4aa   :  { %4379 = vmatmul.mubr.msk.bf16.gmra.mrb[28].mxu1 %vm529_vm4, %v1211_v18 }
 0x4ab   :  { %4382 = vmatprep.mubr.msk.bf16.mxu1 %vm5118_vm2, %v5117_v37 }
 0x4f2   :  { %v1199_v39 = vpop.xlane.xlu1 %1198 }
 0x4f3   :  { %4919 = vrcp.f32 %v1199_v39 }
 0x4fd   :  { %v4920_v16 = vpop.eup %4919 }
 0x4fe   :  { %v1209_v42 = vmul.f32 %v4920_v16, %v5752_v19 }
 0x500   :  { %v1212_v48 = vpack.c.bf16 %v1209_v42, %v1209_v42 }
 0x502   :  { %4383 = vmatmul.mubr.msk.bf16.gmra.mrb[32].mxu1 %vm529_vm4, %v1212_v48 }
 0x503   :  { %4434 = vmatprep.mubr.msk.bf16.mxu1 %vm5118_vm2, %v5117_v37 }
 0x575   :  { %v1262_v30 = vpop.f32.mrb[24].mxu1 }
 0x576   :  { %v4376_v34 = vpop.f32.mrb[25].mxu1 }
 0x577   :  { %v1265_v40 = vpop.f32.mrb[26].mxu1 }
 0x578   :  { %v1289_v22 = vpack.c.bf16 %v1265_v40, %v1262_v30  ;;  %v4377_v35 = vpop.f32.mrb[27].mxu1 }
 0x57a   :  { %4391 = vmatmul.mubr.msk.bf16.vlgmr.msra.gmra.mrb[60].mxu0 %vm96_vm0, %v1289_v22 }
 0x57b   :  { %4394 = vmatprep.mubr.msk.bf16.mxu0 %vm5118_vm2, %v5117_v37 }
 0x57d   :  { %v1270_v44 = vpop.f32.mrb[28].mxu1 }
 0x57e   :  { %v4380_v43 = vpop.f32.mrb[29].mxu1 }
 0x57f   :  { %v1273_v33 = vpop.f32.mrb[30].mxu1 }
 0x580   :  { %v1290_v19 = vpack.c.bf16 %v1273_v33, %v1270_v44  ;;  %v4381_v3 = vpop.f32.mrb[31].mxu1 }
 0x581   :  { %v4801_v3 = vld [vmem:[%s6812_s15] sm:$0xff]  }
 0x582   :  { %4395 = vmatmul.mubr.msk.bf16.gmra.mrb[64].mxu0 %vm96_vm0, %v1290_v19 }
 0x583   :  { %4398 = vmatprep.mubr.msk.bf16.mxu0 %vm5118_vm2, %v5117_v37  ;;  %4403 = vmatpush3.bf16.msra.mxu0 %v4801_v3  ;;  %v4810_v3 = vld [vmem:[%s6814_s17 + $0x38] sm:$0xff]  }
 0x584   :  { %4404 = vmatprep.subr.bf16.mxu0 %v5117_v37 }
 0x5d5   :  { %v1278_v52 = vpop.f32.mrb[32].mxu1 }
 0x5d6   :  { %v1291_v41 = vpack.c.bf16 %v1278_v52, %v1278_v52  ;;  %v4384_v46 = vpop.f32.mrb[33].mxu1  ;;  %v4802_v52 = vld [vmem:[%s6812_s15 + $0x8] sm:$0xff]  }
 0x5d7   :  { %v1281_v50 = vpop.f32.mrb[34].mxu1  ;;  %4405 = vmatpush3.bf16.msra.mxu0 %v4802_v52  ;;  %v5948_v52 = vld [vmem:[%s6813_s16] ss:$0 sm:$0xff] }
 0x5d8   :  { %v4385_v47 = vpop.f32.mrb[35].mxu1  ;;  %4399 = vmatmul.mubr.msk.bf16.gmra.mrb[68].mxu0 %vm96_vm0, %v1291_v41  ;;  %4446 = vmatprep.subr.bf16.mxu0 %v5117_v37 }
 0x5d9   :  { %4406 = vmatprep.mubr.msk.bf16.mxu0 %vm5118_vm2, %v5117_v37 }
 0x64d   :  { %v1358_v49 = vpop.f32.mrb[60].mxu0 }
 0x64e   :  { %v1359_v58 = vadd.f32 %v3877_v6, %v1358_v49  ;;  %v4392_v36 = vpop.f32.mrb[61].mxu0 }
 0x64f   :  { %v1361_v53 = vpop.f32.mrb[62].mxu0 }
 0x650   :  { %v5848_v55 = vadd.f32 %v5083_v54, %v1359_v58  ;;  %v1362_v56 = vadd.f32 %v3877_v6, %v1361_v53  ;;  %v4393_v60 = vpop.f32.mrb[63].mxu0 }
 0x652   :  { %v5853_v59 = vadd.f32 %v5084_v63, %v1362_v56  ;;  %v1387_v57 = vsel %vm96_vm0, %v5848_v55, 0.0 }
 0x653   :  { %1388 = vadd.xlane.f32.xlu0 %v1387_v57 }
 0x654   :  { %v1390_v61 = vsel %vm96_vm0, %v5853_v59, 0.0 }
 0x655   :  { %1391 = vadd.xlane.f32.xlu1 %v1390_v61  ;;  %v1366_v62 = vpop.f32.mrb[64].mxu0 }
 0x656   :  { %v1367_v7 = vadd.f32 %v3877_v6, %v1366_v62  ;;  %v4396_v28 = vpop.f32.mrb[65].mxu0 }
 0x657   :  { %v1369_v5 = vpop.f32.mrb[66].mxu0 }
 0x658   :  { %v5862_v0 = vadd.f32 %v5085_v1, %v1367_v7  ;;  %v1370_v2 = vadd.f32 %v3877_v6, %v1369_v5  ;;  %v4397_v10 = vpop.f32.mrb[67].mxu0  ;;  %v3883_v5 = vld [vmem:[%s6810_s13] ss:$0 sm:$0xff] }
 0x65a   :  { %v5867_v15 = vadd.f32 %v5086_v14, %v1370_v2  ;;  %v1393_v12 = vsel %vm96_vm0, %v5862_v0, 0.0 }
 0x65b   :  { %1394 = vadd.xlane.f32.xlu0 %v1393_v12  ;;  %v3884_v12 = vld [vmem:[%s6811_s14] ss:$0 sm:$0xff] }
 0x65c   :  { %v1396_v20 = vsel %vm96_vm0, %v5867_v15, 0.0 }
 0x65d   :  { %1397 = vadd.xlane.f32.xlu1 %v1396_v20 }
 0x6ab   :  { %v1374_v25 = vpop.f32.mrb[68].mxu0 }
 0x6ac   :  { %v1375_v11 = vadd.f32 %v3877_v6, %v1374_v25  ;;  %v4400_v38 = vpop.f32.mrb[69].mxu0 }
 0x6ad   :  { %v1377_v4 = vpop.f32.mrb[70].mxu0 }
 0x6ae   :  { %v5876_v17 = vadd.f32 %v5087_v13, %v1375_v11  ;;  %v4401_v23 = vpop.f32.mrb[71].mxu0 }
 0x6b0   :  { %v1399_v32 = vsel %vm109_vm1, %v5876_v17, 0.0 }
 0x6b1   :  { %1400 = vadd.xlane.f32.xlu0 %v1399_v32 }
 0x6e0   :  { %v1389_v27 = vpop.xlane.xlu0 %1388 }
 0x6e1   :  { %v1402_v24 = vmul.f32 0.03125, %v1389_v27 }
 0x6e2   :  { %v1392_v26 = vpop.xlane.xlu1 %1391 }
 0x6e3   :  { %v1407_v29 = vsub.f32 %v5848_v55, %v1402_v24  ;;  %v1403_v31 = vmul.f32 0.03125, %v1392_v26 }
 0x6e5   :  { %v1408_v18 = vsub.f32 %v5853_v59, %v1403_v31  ;;  %v1412_v39 = vmul.f32 %v1407_v29, %v1407_v29 }
 0x6e7   :  { %v1417_v21 = vsel %vm96_vm0, %v1412_v39, 0.0  ;;  %v1413_v16 = vmul.f32 %v1408_v18, %v1408_v18 }
 0x6e8   :  { %v1395_v42 = vpop.xlane.xlu0 %1394  ;;  %1418 = vadd.xlane.f32.xlu1 %v1417_v21 }
 0x6e9   :  { %v1404_v48 = vmul.f32 0.03125, %v1395_v42  ;;  %v1420_v30 = vsel %vm96_vm0, %v1413_v16, 0.0 }
 0x6ea   :  { %v1398_v34 = vpop.xlane.xlu1 %1397  ;;  %1421 = vadd.xlane.f32.xlu0 %v1420_v30 }
 0x6eb   :  { %v1409_v40 = vsub.f32 %v5862_v0, %v1404_v48  ;;  %v1405_v22 = vmul.f32 0.03125, %v1398_v34 }
 0x6ed   :  { %v1410_v35 = vsub.f32 %v5867_v15, %v1405_v22  ;;  %v1414_v44 = vmul.f32 %v1409_v40, %v1409_v40  ;;  %v4804_v22 = vld [vmem:[%s6814_s17 + $0x8] sm:$0xff]  }
 0x6ef   :  { %v1423_v43 = vsel %vm96_vm0, %v1414_v44, 0.0  ;;  %v1415_v33 = vmul.f32 %v1410_v35, %v1410_v35  ;;  %v4806_v44 = vld [vmem:[%s6814_s17 + $0x18] sm:$0xff]  }
 0x6f0   :  { %1424 = vadd.xlane.f32.xlu1 %v1423_v43  ;;  %v4807_v43 = vld [vmem:[%s6814_s17 + $0x20] sm:$0xff]  }
 0x6f1   :  { %v1426_v19 = vsel %vm96_vm0, %v1415_v33, 0.0  ;;  %v4808_v33 = vld [vmem:[%s6814_s17 + $0x28] sm:$0xff]  }
 0x6f2   :  { %1427 = vadd.xlane.f32.xlu0 %v1426_v19  ;;  %v4809_v19 = vld [vmem:[%s6814_s17 + $0x30] sm:$0xff]  }
 0x73e   :  { %v1401_v41 = vpop.xlane.xlu0 %1400 }
 0x73f   :  { %v1406_v46 = vmul.f32 0.03125, %v1401_v41 }
 0x741   :  { %v1411_v50 = vsub.f32 %v5876_v17, %v1406_v46 }
 0x743   :  { %v1416_v47 = vmul.f32 %v1411_v50, %v1411_v50 }
 0x745   :  { %v1429_v6 = vsel %vm109_vm1, %v1416_v47, 0.0 }
 0x746   :  { %1430 = vadd.xlane.f32.xlu1 %v1429_v6 }
 0x775   :  { %v1419_v49 = vpop.xlane.xlu1 %1418 }
 0x776   :  { %v1432_v58 = vmul.f32 0.03125, %v1419_v49 }
 0x777   :  { %v1422_v36 = vpop.xlane.xlu0 %1421 }
 0x778   :  { %v1437_v53 = vadd.f32 1e-05, %v1432_v58  ;;  %v1433_v54 = vmul.f32 0.03125, %v1422_v36 }
 0x77a   :  { %4921 = vrsqrt.f32 %v1437_v53  ;;  %v1438_v56 = vadd.f32 1e-05, %v1433_v54 }
 0x77c   :  { %4923 = vrsqrt.f32 %v1438_v56 }
 0x77d   :  { %v1425_v60 = vpop.xlane.xlu1 %1424 }
 0x77e   :  { %v1434_v63 = vmul.f32 0.03125, %v1425_v60 }
 0x77f   :  { %v1428_v57 = vpop.xlane.xlu0 %1427 }
 0x780   :  { %v1439_v61 = vadd.f32 1e-05, %v1434_v63  ;;  %v1435_v62 = vmul.f32 0.03125, %v1428_v57 }
 0x782   :  { %4925 = vrsqrt.f32 %v1439_v61  ;;  %v1440_v7 = vadd.f32 1e-05, %v1435_v62 }
 0x784   :  { %v4922_v28 = vpop.eup %4921  ;;  %4927 = vrsqrt.f32 %v1440_v7 }
 0x785   :  { %v1447_v1 = vmul.f32 %v4922_v28, %v1407_v29 }
 0x786   :  { %v4924_v2 = vpop.eup %4923 }
 0x787   :  { %v1458_v10 = vmul.f32 %v3883_v5, %v1447_v1  ;;  %v1448_v14 = vmul.f32 %v4924_v2, %v1408_v18 }
 0x789   :  { %v1459_v20 = vmul.f32 %v3883_v5, %v1448_v14  ;;  %v1469_v25 = vadd.f32 %v3884_v12, %v1458_v10 }
 0x78b   :  { %v1470_v11 = vadd.f32 %v3884_v12, %v1459_v20 }
 0x78c   :  { %v4926_v38 = vpop.eup %4925 }
 0x78d   :  { %v1449_v4 = vmul.f32 %v4926_v38, %v1409_v40  ;;  %v1474_v13 = vpack.c.bf16 %v1470_v11, %v1469_v25  ;;  %v4803_v40 = vld [vmem:[%s6814_s17] sm:$0xff]  }
 0x78e   :  { %v4928_v23 = vpop.eup %4927  ;;  %4419 = vmatpush3.bf16.msra.mxu1 %v4803_v40 }
 0x78f   :  { %v1450_v32 = vmul.f32 %v4928_v23, %v1410_v35  ;;  %4407 = vmatmul.mubr.msk.bf16.vlgmr.msra.gmra.mrb[72].mxu0 %vm96_vm0, %v1474_v13  ;;  %v1460_v27 = vmul.f32 %v3883_v5, %v1449_v4  ;;  %4420 = vmatprep.subr.bf16.mxu1 %v5117_v37  ;;  %v4805_v35 = vld [vmem:[%s6814_s17 + $0x10] sm:$0xff]  }
 0x790   :  { %4410 = vmatprep.mubr.msk.bf16.mxu0 %vm5118_vm2, %v5117_v37 }
 0x791   :  { %v1461_v24 = vmul.f32 %v3883_v5, %v1450_v32  ;;  %v1471_v26 = vadd.f32 %v3884_v12, %v1460_v27 }
 0x792   :  { %4421 = vmatpush3.bf16.msra.mxu1 %v4804_v22 }
 0x793   :  { %v1472_v29 = vadd.f32 %v3884_v12, %v1461_v24  ;;  %4422 = vmatprep.subr.bf16.mxu1 %v5117_v37 }
 0x795   :  { %v1475_v31 = vpack.c.bf16 %v1472_v29, %v1471_v26 }
 0x796   :  { %4423 = vmatpush3.bf16.msra.mxu1 %v4805_v35 }
 0x797   :  { %4411 = vmatmul.mubr.msk.bf16.gmra.mrb[76].mxu0 %vm96_vm0, %v1475_v31  ;;  %4424 = vmatprep.subr.bf16.mxu1 %v5117_v37 }
 0x798   :  { %4414 = vmatprep.mubr.msk.bf16.mxu0 %vm5118_vm2, %v5117_v37 }
 0x79a   :  { %4425 = vmatpush3.bf16.msra.mxu1 %v4806_v44 }
 0x79b   :  { %4426 = vmatprep.subr.bf16.mxu1 %v5117_v37 }
 0x79e   :  { %4427 = vmatpush3.bf16.msra.mxu1 %v4807_v43 }
 0x79f   :  { %4428 = vmatprep.subr.bf16.mxu1 %v5117_v37 }
 0x7a2   :  { %4429 = vmatpush3.bf16.msra.mxu1 %v4808_v33 }
 0x7a3   :  { %4430 = vmatprep.subr.bf16.mxu1 %v5117_v37 }
 0x7a6   :  { %4431 = vmatpush3.bf16.msra.mxu1 %v4809_v19 }
 0x7a7   :  { %4432 = vmatprep.subr.bf16.mxu1 %v5117_v37 }
 0x7aa   :  { %4433 = vmatpush3.bf16.msra.mxu1 %v4810_v3 }
 0x7ab   :  { %4462 = vmatprep.subr.bf16.mxu1 %v5117_v37 }
 0x7d3   :  { %v1431_v18 = vpop.xlane.xlu1 %1430 }
 0x7d4   :  { %v1436_v39 = vmul.f32 0.03125, %v1431_v18 }
 0x7d6   :  { %v1441_v21 = vadd.f32 1e-05, %v1436_v39 }
 0x7d8   :  { %4929 = vrsqrt.f32 %v1441_v21 }
 0x7e2   :  { %v4930_v16 = vpop.eup %4929 }
 0x7e3   :  { %v1451_v42 = vmul.f32 %v4930_v16, %v1411_v50 }
 0x7e5   :  { %v1462_v48 = vmul.f32 %v3883_v5, %v1451_v42 }
 0x7e7   :  { %v1473_v30 = vadd.f32 %v3884_v12, %v1462_v48 }
 0x7e9   :  { %v1476_v34 = vpack.c.bf16 %v1473_v30, %v1473_v30 }
 0x7eb   :  { %4415 = vmatmul.mubr.msk.bf16.gmra.mrb[80].mxu0 %vm96_vm0, %v1476_v34 }
 0x7ec   :  { %4450 = vmatprep.mubr.msk.bf16.mxu0 %vm5118_vm2, %v5117_v37 }
 0x862   :  { %v1543_v41 = vpop.f32.mrb[72].mxu0 }
 0x863   :  { %v5951_v46 = vadd.f32 %v5948_v52, %v1543_v41  ;;  %v4408_v50 = vpop.f32.mrb[73].mxu0 }
 0x864   :  { %v1546_v47 = vpop.f32.mrb[74].mxu0 }
 0x865   :  { %v5954_v6 = vmul.f32 0.70710677, %v5951_v46  ;;  %v5957_v49 = vadd.f32 %v5948_v52, %v1546_v47  ;;  %v4409_v58 = vpop.f32.mrb[75].mxu0 }
 0x867   :  { %v1575_v36 = vand.u32 2147483647, %v5954_v6  ;;  %v5961_v53 = vmul.f32 0.70710677, %v5957_v49  ;;  %vm1670_vm6 = vcmp.lt.f32.partialorder %v5954_v6, 0.0 }
 0x869   :  { %v1580_v54 = vmul.f32 0.3275911, %v1575_v36  ;;  %v1576_v56 = vand.u32 2147483647, %v5961_v53  ;;  %v1640_v20 = vsub.f32 0.0, %v1575_v36  ;;  %vm1671_vm7 = vcmp.lt.f32.partialorder %v5961_v53, 0.0 }
 0x86a   :  { %v1551_v60 = vpop.f32.mrb[76].mxu0 }
 0x86b   :  { %v1585_v63 = vadd.f32 1.0, %v1580_v54  ;;  %v1581_v57 = vmul.f32 0.3275911, %v1576_v56  ;;  %v4412_v61 = vpop.f32.mrb[77].mxu0  ;;  %v5965_v62 = vadd.f32 %v5948_v52, %v1551_v60  ;;  %v1641_v4 = vsub.f32 0.0, %v1576_v56 }
 0x86c   :  { %v1554_v7 = vpop.f32.mrb[78].mxu0  ;;  %v1645_v23 = vmul.f32 %v1640_v20, %v1575_v36 }
 0x86d   :  { %4931 = vrcp.f32 %v1585_v63  ;;  %v1586_v28 = vadd.f32 1.0, %v1581_v57  ;;  %v4413_v5 = vpop.f32.mrb[79].mxu0  ;;  %v5968_v1 = vmul.f32 0.70710677, %v5965_v62  ;;  %v5971_v2 = vadd.f32 %v5948_v52, %v1554_v7 }
 0x86e   :  { %v1646_v29 = vmul.f32 %v1641_v4, %v1576_v56  ;;  %v1650_v31 = vmul.f32 1.442695, %v1645_v23 }
 0x86f   :  { %4933 = vrcp.f32 %v1586_v28  ;;  %v1577_v10 = vand.u32 2147483647, %v5968_v1  ;;  %v5975_v14 = vmul.f32 0.70710677, %v5971_v2  ;;  %vm1672_vm8 = vcmp.lt.f32.partialorder %v5968_v1, 0.0 }
 0x870   :  { %v1652_v48 = vmul.f32 1.442695, %v1646_v29 }
 0x871   :  { %v1582_v12 = vmul.f32 0.3275911, %v1577_v10  ;;  %v1578_v25 = vand.u32 2147483647, %v5975_v14  ;;  %v1642_v21 = vsub.f32 0.0, %v1577_v10  ;;  %vm1673_vm9 = vcmp.lt.f32.partialorder %v5975_v14, 0.0 }
 0x873   :  { %v1587_v11 = vadd.f32 1.0, %v1582_v12  ;;  %v1583_v38 = vmul.f32 0.3275911, %v1578_v25  ;;  %v1643_v34 = vsub.f32 0.0, %v1578_v25  ;;  %v1647_v35 = vmul.f32 %v1642_v21, %v1577_v10 }
 0x875   :  { %4935 = vrcp.f32 %v1587_v11  ;;  %v1588_v32 = vadd.f32 1.0, %v1583_v38  ;;  %v1648_v50 = vmul.f32 %v1643_v34, %v1578_v25  ;;  %v1654_v58 = vmul.f32 1.442695, %v1647_v35 }
 0x877   :  { %v4932_v13 = vpop.eup %4931  ;;  %4937 = vrcp.f32 %v1588_v32  ;;  %v1656_v7 = vmul.f32 1.442695, %v1648_v50 }
 0x878   :  { %v1595_v27 = vmul.f32 1.0614054, %v4932_v13  ;;  %4939 = vpow2.f32 %v1650_v31 }
 0x879   :  { %v4934_v24 = vpop.eup %4933  ;;  %4941 = vpow2.f32 %v1652_v48 }
 0x87a   :  { %v1600_v26 = vadd.f32 -1.4531521, %v1595_v27  ;;  %v1596_v18 = vmul.f32 1.0614054, %v4934_v24  ;;  %4943 = vpow2.f32 %v1654_v58 }
 0x87b   :  { %4945 = vpow2.f32 %v1656_v7 }
 0x87c   :  { %v1605_v39 = vmul.f32 %v4932_v13, %v1600_v26  ;;  %v1601_v16 = vadd.f32 -1.4531521, %v1596_v18 }
 0x87e   :  { %v1610_v42 = vadd.f32 1.4214138, %v1605_v39  ;;  %v1606_v30 = vmul.f32 %v4934_v24, %v1601_v16 }
 0x87f   :  { %v4936_v40 = vpop.eup %4935 }
 0x880   :  { %v1615_v22 = vmul.f32 %v4932_v13, %v1610_v42  ;;  %v1611_v44 = vadd.f32 1.4214138, %v1606_v30  ;;  %v1597_v43 = vmul.f32 1.0614054, %v4936_v40 }
 0x881   :  { %v4938_v19 = vpop.eup %4937 }
 0x882   :  { %v1620_v33 = vadd.f32 -0.28449672, %v1615_v22  ;;  %v1616_v3 = vmul.f32 %v4934_v24, %v1611_v44  ;;  %v1602_v41 = vadd.f32 -1.4531521, %v1597_v43  ;;  %v1598_v36 = vmul.f32 1.0614054, %v4938_v19  ;;  %v4940_v10 = vpop.eup %4939 }
 0x883   :  { %v4942_v23 = vpop.eup %4941  ;;  %v1565_v44 = vmul.f32 0.5, %v5951_v46  ;;  %v1566_v43 = vmul.f32 0.5, %v5957_v49  ;;  %v1567_v49 = vmul.f32 0.5, %v5965_v62 }
 0x884   :  { %v1625_v47 = vmul.f32 %v4932_v13, %v1620_v33  ;;  %v1621_v54 = vadd.f32 -0.28449672, %v1616_v3  ;;  %v1607_v56 = vmul.f32 %v4936_v40, %v1602_v41  ;;  %v1603_v63 = vadd.f32 -1.4531521, %v1598_v36  ;;  %v4944_v30 = vpop.eup %4943 }
 0x885   :  { %v4946_v6 = vpop.eup %4945 }
 0x886   :  { %v1630_v60 = vadd.f32 0.2548296, %v1625_v47  ;;  %v1626_v57 = vmul.f32 %v4934_v24, %v1621_v54  ;;  %v1612_v61 = vadd.f32 1.4214138, %v1607_v56  ;;  %v1608_v5 = vmul.f32 %v4938_v19, %v1603_v63 }
 0x888   :  { %v1635_v28 = vmul.f32 %v4932_v13, %v1630_v60  ;;  %v1631_v12 = vadd.f32 0.2548296, %v1626_v57  ;;  %v1617_v20 = vmul.f32 %v4936_v40, %v1612_v61  ;;  %v1613_v38 = vadd.f32 1.4214138, %v1608_v5 }
 0x88a   :  { %v1660_v11 = vmul.f32 %v4940_v10, %v1635_v28  ;;  %v1636_v4 = vmul.f32 %v4934_v24, %v1631_v12  ;;  %v1622_v25 = vadd.f32 -0.28449672, %v1617_v20  ;;  %v1618_v27 = vmul.f32 %v4938_v19, %v1613_v38 }
 0x88c   :  { %v1665_v32 = vsub.f32 1.0, %v1660_v11  ;;  %v1661_v26 = vmul.f32 %v4942_v23, %v1636_v4  ;;  %v1627_v29 = vmul.f32 %v4936_v40, %v1622_v25  ;;  %v1623_v18 = vadd.f32 -0.28449672, %v1618_v27 }
 0x88e   :  { %v1675_v31 = vsub.f32 0.0, %v1665_v32  ;;  %v1666_v13 = vsub.f32 1.0, %v1661_v26  ;;  %v1632_v39 = vadd.f32 0.2548296, %v1627_v29  ;;  %v1628_v16 = vmul.f32 %v4938_v19, %v1623_v18 }
 0x890   :  { %v1680_v21 = vsel %vm1670_vm6, %v1675_v31, %v1665_v32  ;;  %v1676_v42 = vsub.f32 0.0, %v1666_v13  ;;  %v1637_v48 = vmul.f32 %v4936_v40, %v1632_v39  ;;  %v1633_v24 = vadd.f32 0.2548296, %v1628_v16 }
 0x891   :  { %v1685_v34 = vadd.f32 1.0, %v1680_v21 }
 0x892   :  { %v1681_v22 = vsel %vm1671_vm7, %v1676_v42, %v1666_v13  ;;  %v1662_v35 = vmul.f32 %v4944_v30, %v1637_v48  ;;  %v1638_v3 = vmul.f32 %v4938_v19, %v1633_v24  ;;  %v1568_v19 = vmul.f32 0.5, %v5971_v2 }
 0x893   :  { %v1686_v33 = vadd.f32 1.0, %v1681_v22  ;;  %v1690_v50 = vmul.f32 %v1685_v34, %v1565_v44 }
 0x894   :  { %v1667_v41 = vsub.f32 1.0, %v1662_v35  ;;  %v1663_v58 = vmul.f32 %v4946_v6, %v1638_v3  ;;  %v3891_v35 = vld [vmem:[%s6815_s18] ss:$0 sm:$0xff] }
 0x895   :  { %v1691_v47 = vmul.f32 %v1686_v33, %v1566_v43 }
 0x896   :  { %v1677_v36 = vsub.f32 0.0, %v1667_v41  ;;  %v1668_v54 = vsub.f32 1.0, %v1663_v58 }
 0x897   :  { %v1695_v40 = vpack.c.bf16 %v1691_v47, %v1690_v50 }
 0x898   :  { %v1682_v53 = vsel %vm1672_vm8, %v1677_v36, %v1667_v41  ;;  %v1678_v56 = vsub.f32 0.0, %v1668_v54 }
 0x899   :  { %4435 = vmatmul.mubr.bf16.vlgmr.msra.gmra.mrb[36].mxu1 %v1695_v40  ;;  %v1687_v60 = vadd.f32 1.0, %v1682_v53 }
 0x89a   :  { %4438 = vmatprep.mubr.msk.bf16.mxu1 %vm5118_vm2, %v5117_v37  ;;  %v1683_v46 = vsel %vm1673_vm9, %v1678_v56, %v1668_v54 }
 0x89b   :  { %v1688_v63 = vadd.f32 1.0, %v1683_v46  ;;  %v1692_v57 = vmul.f32 %v1687_v60, %v1567_v49 }
 0x89d   :  { %v1693_v61 = vmul.f32 %v1688_v63, %v1568_v19 }
 0x89f   :  { %v1696_v7 = vpack.c.bf16 %v1693_v61, %v1692_v57 }
 0x8a1   :  { %4439 = vmatmul.mubr.bf16.gmra.mrb[40].mxu1 %v1696_v7 }
 0x8a2   :  { %4442 = vmatprep.mubr.msk.bf16.mxu1 %vm5118_vm2, %v5117_v37 }
 0x8be   :  { %v1559_v1 = vpop.f32.mrb[80].mxu0 }
 0x8bf   :  { %v1560_v28 = vadd.f32 %v5948_v52, %v1559_v1  ;;  %v4416_v14 = vpop.f32.mrb[81].mxu0 }
 0x8c0   :  { %v1562_v5 = vpop.f32.mrb[82].mxu0 }
 0x8c1   :  { %v1574_v10 = vmul.f32 0.70710677, %v1560_v28  ;;  %v4417_v12 = vpop.f32.mrb[83].mxu0  ;;  %v1569_v30 = vmul.f32 0.5, %v1560_v28 }
 0x8c3   :  { %v1579_v20 = vand.u32 2147483647, %v1574_v10  ;;  %vm1674_vm10 = vcmp.lt.f32.partialorder %v1574_v10, 0.0 }
 0x8c5   :  { %v1584_v11 = vmul.f32 0.3275911, %v1579_v20  ;;  %v1644_v2 = vsub.f32 0.0, %v1579_v20 }
 0x8c7   :  { %v1589_v62 = vadd.f32 1.0, %v1584_v11  ;;  %v1649_v4 = vmul.f32 %v1644_v2, %v1579_v20 }
 0x8c9   :  { %4947 = vrcp.f32 %v1589_v62  ;;  %v1658_v32 = vmul.f32 1.442695, %v1649_v4 }
 0x8cb   :  { %4949 = vpow2.f32 %v1658_v32 }
 0x8d3   :  { %v4948_v38 = vpop.eup %4947 }
 0x8d4   :  { %v1599_v25 = vmul.f32 1.0614054, %v4948_v38 }
 0x8d5   :  { %v4950_v39 = vpop.eup %4949 }
 0x8d6   :  { %v1604_v23 = vadd.f32 -1.4531521, %v1599_v25 }
 0x8d8   :  { %v1609_v27 = vmul.f32 %v4948_v38, %v1604_v23 }
 0x8da   :  { %v1614_v26 = vadd.f32 1.4214138, %v1609_v27 }
 0x8dc   :  { %v1619_v29 = vmul.f32 %v4948_v38, %v1614_v26 }
 0x8de   :  { %v1624_v31 = vadd.f32 -0.28449672, %v1619_v29 }
 0x8e0   :  { %v1629_v52 = vmul.f32 %v4948_v38, %v1624_v31 }
 0x8e2   :  { %v1634_v18 = vadd.f32 0.2548296, %v1629_v52 }
 0x8e4   :  { %v1639_v13 = vmul.f32 %v4948_v38, %v1634_v18  ;;  %v4811_v18 = vld [vmem:[%s6851_s6 + $0x10] sm:$0xff]  }
 0x8e5   :  { %4447 = vmatpush3.bf16.msra.mxu0 %v4811_v18 }
 0x8e6   :  { %v1664_v21 = vmul.f32 %v4950_v39, %v1639_v13  ;;  %v4812_v13 = vld [vmem:[%s6852_s3 + $0x10] sm:$0xff]   ;;  %4448 = vmatprep.subr.bf16.mxu0 %v5117_v37  ;;  %v4813_v39 = vld [vmem:[%s6851_s6 + $0x18] sm:$0xff]  }
 0x8e7   :  { %4463 = vmatpush3.bf16.msra.mxu1 %v4812_v13 }
 0x8e8   :  { %v1669_v16 = vsub.f32 1.0, %v1664_v21  ;;  %4464 = vmatprep.subr.bf16.mxu1 %v5117_v37  ;;  %v4814_v21 = vld [vmem:[%s6852_s3 + $0x18] sm:$0xff]  }
 0x8e9   :  { %4449 = vmatpush3.bf16.msra.mxu0 %v4813_v39 }
 0x8ea   :  { %v1679_v42 = vsub.f32 0.0, %v1669_v16  ;;  %4478 = vmatprep.subr.bf16.mxu0 %v5117_v37 }
 0x8eb   :  { %4465 = vmatpush3.bf16.msra.mxu1 %v4814_v21 }
 0x8ec   :  { %v1684_v48 = vsel %vm1674_vm10, %v1679_v42, %v1669_v16  ;;  %4494 = vmatprep.subr.bf16.mxu1 %v5117_v37 }
 0x8ed   :  { %v1689_v34 = vadd.f32 1.0, %v1684_v48 }
 0x8ef   :  { %v1694_v24 = vmul.f32 %v1689_v34, %v1569_v30 }
 0x8f1   :  { %v1697_v22 = vpack.c.bf16 %v1694_v24, %v1694_v24 }
 0x8f3   :  { %4443 = vmatmul.mubr.bf16.gmra.mrb[44].mxu1 %v1697_v22 }
 0x8f4   :  { %4466 = vmatprep.mubr.msk.bf16.mxu1 %vm5118_vm2, %v5117_v37 }
 0x96c   :  { %v1803_v44 = vpop.f32.mrb[36].mxu1 }
 0x96d   :  { %v1804_v43 = vadd.f32 %v3891_v35, %v1803_v44  ;;  %v4436_v33 = vpop.f32.mrb[37].mxu1 }
 0x96e   :  { %v1806_v3 = vpop.f32.mrb[38].mxu1 }
 0x96f   :  { %v5997_v6 = vadd.f32 %v1804_v43, %v5848_v55  ;;  %v1807_v41 = vadd.f32 %v3891_v35, %v1806_v3  ;;  %v4437_v50 = vpop.f32.mrb[39].mxu1 }
 0x971   :  { %v6000_v47 = vadd.f32 %v1807_v41, %v5853_v59  ;;  %v1834_v58 = vsel %vm96_vm0, %v5997_v6, 0.0 }
 0x972   :  { %1835 = vadd.xlane.f32.xlu0 %v1834_v58 }
 0x973   :  { %v1837_v36 = vsel %vm96_vm0, %v6000_v47, 0.0 }
 0x974   :  { %1838 = vadd.xlane.f32.xlu1 %v1837_v36  ;;  %v1811_v40 = vpop.f32.mrb[40].mxu1 }
 0x975   :  { %v1812_v54 = vadd.f32 %v3891_v35, %v1811_v40  ;;  %v4440_v53 = vpop.f32.mrb[41].mxu1 }
 0x976   :  { %v1814_v56 = vpop.f32.mrb[42].mxu1  ;;  %v3902_v53 = vld [vmem:[%s6808_s11 + $0x1] ss:$0 sm:$0xff]  ;;  %s5093_s11 = scalar_lea.vmem %s3821_s4, 16 }
 0x977   :  { %v6007_v55 = vadd.f32 %v1812_v54, %v5862_v0  ;;  %v1815_v60 = vadd.f32 %v3891_v35, %v1814_v56  ;;  %v4441_v46 = vpop.f32.mrb[43].mxu1  ;;  %p5094_p0 = scmp.ne.s32.totalorder %s3821_s4, %s5093_s11 }
 0x979   :  { %v6010_v59 = vadd.f32 %v1815_v60, %v5867_v15  ;;  %v1840_v49 = vsel %vm96_vm0, %v6007_v55, 0.0 }
 0x97a   :  { %1841 = vadd.xlane.f32.xlu0 %v1840_v49 }
 0x97b   :  { %v1843_v19 = vsel %vm96_vm0, %v6010_v59, 0.0 }
 0x97c   :  { %1844 = vadd.xlane.f32.xlu1 %v1843_v19  ;;  %v3903_v19 = vld [vmem:[%s6809_s12 + $0x1] ss:$0 sm:$0xff]  ;;  %s5097_s12 = scalar_lea.vmem %s3821_s4, 32 }
 0x97d   :  { %p5099_p2 = scmp.lt.s32.totalorder %s5097_s12, %s5093_s11 }
 0x97f   :  { %p5100_p3 = por %p5099_p2, %p5098_p1 }
 0x981   :  { %p5101_p4 = pnand %p5100_p3, %p5094_p0 }
 0x9c6   :  { %v1819_v63 = vpop.f32.mrb[44].mxu1 }
 0x9c7   :  { %v1820_v57 = vadd.f32 %v3891_v35, %v1819_v63  ;;  %v4444_v61 = vpop.f32.mrb[45].mxu1 }
 0x9c8   :  { %v1822_v7 = vpop.f32.mrb[46].mxu1 }
 0x9c9   :  { %v6017_v0 = vadd.f32 %v1820_v57, %v5876_v17  ;;  %v4445_v1 = vpop.f32.mrb[47].mxu1 }
 0x9cb   :  { %v1846_v15 = vsel %vm109_vm1, %v6017_v0, 0.0 }
 0x9cc   :  { %1847 = vadd.xlane.f32.xlu0 %v1846_v15  ;;  %v4815_v15 = vld [vmem:[%s6853_s1 + $0x10] sm:$0xff]  }
 0x9ff   :  { %v1836_v28 = vpop.xlane.xlu0 %1835 }
 0xa00   :  { %v1849_v14 = vmul.f32 0.03125, %v1836_v28 }
 0xa01   :  { %v1839_v5 = vpop.xlane.xlu1 %1838 }
 0xa02   :  { %v1854_v10 = vsub.f32 %v5997_v6, %v1849_v14  ;;  %v1850_v12 = vmul.f32 0.03125, %v1839_v5 }
 0xa04   :  { %v1855_v20 = vsub.f32 %v6000_v47, %v1850_v12  ;;  %v1859_v11 = vmul.f32 %v1854_v10, %v1854_v10  ;;  %v4816_v12 = vld [vmem:[%s6853_s1 + $0x18] sm:$0xff]  }
 0xa06   :  { %v1864_v62 = vsel %vm96_vm0, %v1859_v11, 0.0  ;;  %v1860_v2 = vmul.f32 %v1855_v20, %v1855_v20 }
 0xa07   :  { %1865 = vadd.xlane.f32.xlu1 %v1864_v62  ;;  %v1842_v17 = vpop.xlane.xlu0 %1841 }
 0xa08   :  { %v1867_v38 = vsel %vm96_vm0, %v1860_v2, 0.0  ;;  %v1851_v4 = vmul.f32 0.03125, %v1842_v17 }
 0xa09   :  { %1868 = vadd.xlane.f32.xlu0 %v1867_v38  ;;  %v1845_v25 = vpop.xlane.xlu1 %1844 }
 0xa0a   :  { %v1856_v23 = vsub.f32 %v6007_v55, %v1851_v4  ;;  %v1852_v32 = vmul.f32 0.03125, %v1845_v25 }
 0xa0c   :  { %v1857_v27 = vsub.f32 %v6010_v59, %v1852_v32  ;;  %v1861_v26 = vmul.f32 %v1856_v23, %v1856_v23 }
 0xa0e   :  { %v1870_v29 = vsel %vm96_vm0, %v1861_v26, 0.0  ;;  %v1862_v31 = vmul.f32 %v1857_v27, %v1857_v27 }
 0xa0f   :  { %1871 = vadd.xlane.f32.xlu1 %v1870_v29  ;;  %v6091_v29 = vld [vmem:[%s6854_s29 + $0x1] ss:$0 sm:$0xff] }
 0xa10   :  { %v1873_v52 = vsel %vm96_vm0, %v1862_v31, 0.0 }
 0xa11   :  { %1874 = vadd.xlane.f32.xlu0 %v1873_v52  ;;  %v3920_v52 = vld [vmem:[%s6855_s30 + $0x1] ss:$0 sm:$0xff] }
 0xa59   :  { %v1848_v16 = vpop.xlane.xlu0 %1847 }
 0xa5a   :  { %v1853_v42 = vmul.f32 0.03125, %v1848_v16 }
 0xa5c   :  { %v1858_v48 = vsub.f32 %v6017_v0, %v1853_v42 }
 0xa5e   :  { %v1863_v30 = vmul.f32 %v1858_v48, %v1858_v48 }
 0xa60   :  { %v1876_v34 = vsel %vm109_vm1, %v1863_v30, 0.0 }
 0xa61   :  { %1877 = vadd.xlane.f32.xlu1 %v1876_v34 }
 0xa94   :  { %v1866_v24 = vpop.xlane.xlu1 %1865 }
 0xa95   :  { %v1879_v22 = vmul.f32 0.03125, %v1866_v24 }
 0xa96   :  { %v1869_v35 = vpop.xlane.xlu0 %1868 }
 0xa97   :  { %v1884_v44 = vadd.f32 1e-05, %v1879_v22  ;;  %v1880_v43 = vmul.f32 0.03125, %v1869_v35 }
 0xa99   :  { %4951 = vrsqrt.f32 %v1884_v44  ;;  %v1885_v33 = vadd.f32 1e-05, %v1880_v43 }
 0xa9b   :  { %4953 = vrsqrt.f32 %v1885_v33 }
 0xa9c   :  { %v1872_v3 = vpop.xlane.xlu1 %1871 }
 0xa9d   :  { %v1881_v41 = vmul.f32 0.03125, %v1872_v3 }
 0xa9e   :  { %v1875_v50 = vpop.xlane.xlu0 %1874 }
 0xa9f   :  { %v1886_v58 = vadd.f32 1e-05, %v1881_v41  ;;  %v1882_v36 = vmul.f32 0.03125, %v1875_v50 }
 0xaa1   :  { %4955 = vrsqrt.f32 %v1886_v58  ;;  %v1887_v40 = vadd.f32 1e-05, %v1882_v36 }
 0xaa3   :  { %v4952_v54 = vpop.eup %4951  ;;  %4957 = vrsqrt.f32 %v1887_v40 }
 0xaa4   :  { %v1894_v56 = vmul.f32 %v4952_v54, %v1854_v10 }
 0xaa5   :  { %v4954_v60 = vpop.eup %4953 }
 0xaa6   :  { %v1905_v46 = vmul.f32 %v3902_v53, %v1894_v56  ;;  %v1895_v49 = vmul.f32 %v4954_v60, %v1855_v20 }
 0xaa8   :  { %v1906_v63 = vmul.f32 %v3902_v53, %v1895_v49  ;;  %v1916_v57 = vadd.f32 %v3903_v19, %v1905_v46 }
 0xaaa   :  { %v1917_v61 = vadd.f32 %v3903_v19, %v1906_v63 }
 0xaab   :  { %v4956_v7 = vpop.eup %4955 }
 0xaac   :  { %v1921_v1 = vpack.c.bf16 %v1917_v61, %v1916_v57  ;;  %v1896_v28 = vmul.f32 %v4956_v7, %v1856_v23 }
 0xaad   :  { %v4958_v14 = vpop.eup %4957 }
 0xaae   :  { %4451 = vmatmul.mubr.msk.bf16.vlgmr.msra.gmra.mrb[84].mxu0 %vm96_vm0, %v1921_v1  ;;  %4467 = vmatmul.mubr.msk.bf16.vlgmr.msra.gmra.mrb[48].mxu1 %vm96_vm0, %v1921_v1  ;;  %v1897_v5 = vmul.f32 %v4958_v14, %v1857_v27  ;;  %v1907_v10 = vmul.f32 %v3902_v53, %v1896_v28 }
 0xaaf   :  { %4454 = vmatprep.mubr.msk.bf16.mxu0 %vm5118_vm2, %v5117_v37  ;;  %4470 = vmatprep.mubr.msk.bf16.mxu1 %vm5118_vm2, %v5117_v37 }
 0xab0   :  { %4479 = vmatpush3.bf16.msra.mxu0 %v4815_v15  ;;  %v1908_v20 = vmul.f32 %v3902_v53, %v1897_v5  ;;  %v1918_v11 = vadd.f32 %v3903_v19, %v1907_v10 }
 0xab1   :  { %4480 = vmatprep.subr.bf16.mxu0 %v5117_v37 }
 0xab2   :  { %v1919_v62 = vadd.f32 %v3903_v19, %v1908_v20 }
 0xab4   :  { %4481 = vmatpush3.bf16.msra.mxu0 %v4816_v12  ;;  %v1922_v2 = vpack.c.bf16 %v1919_v62, %v1918_v11  ;;  %v3931_v11 = vld [vmem:[%s6857_s0 + $0x1] ss:$0 sm:$0xff] }
 0xab5   :  { %4512 = vmatprep.subr.bf16.mxu0 %v5117_v37 }
 0xab6   :  { %4455 = vmatmul.mubr.msk.bf16.gmra.mrb[88].mxu0 %vm96_vm0, %v1922_v2  ;;  %4471 = vmatmul.mubr.msk.bf16.gmra.mrb[52].mxu1 %vm96_vm0, %v1922_v2 }
 0xab7   :  { %4458 = vmatprep.mubr.msk.bf16.mxu0 %vm5118_vm2, %v5117_v37  ;;  %4474 = vmatprep.mubr.msk.bf16.mxu1 %vm5118_vm2, %v5117_v37 }
 0xaee   :  { %v1878_v17 = vpop.xlane.xlu1 %1877 }
 0xaef   :  { %v1883_v38 = vmul.f32 0.03125, %v1878_v17 }
 0xaf1   :  { %v1888_v4 = vadd.f32 1e-05, %v1883_v38 }
 0xaf3   :  { %4959 = vrsqrt.f32 %v1888_v4 }
 0xafd   :  { %v4960_v25 = vpop.eup %4959 }
 0xafe   :  { %v1898_v23 = vmul.f32 %v4960_v25, %v1858_v48 }
 0xb00   :  { %v1909_v32 = vmul.f32 %v3902_v53, %v1898_v23 }
 0xb02   :  { %v1920_v27 = vadd.f32 %v3903_v19, %v1909_v32 }
 0xb04   :  { %v1923_v26 = vpack.c.bf16 %v1920_v27, %v1920_v27 }
 0xb06   :  { %4459 = vmatmul.mubr.msk.bf16.gmra.mrb[92].mxu0 %vm96_vm0, %v1923_v26  ;;  %4475 = vmatmul.mubr.msk.bf16.gmra.mrb[56].mxu1 %vm96_vm0, %v1923_v26 }
 0xb07   :  { %4482 = vmatprep.mubr.msk.bf16.mxu0 %vm5118_vm2, %v5117_v37  ;;  %4500 = vmatprep.mubr.msk.bf16.mxu1 %vm5118_vm2, %v5117_v37 }
 0xb0e   :  { %4483 = vmatmul.mubr.msk.bf16.vlgmr.msra.gmra.mrb[96].mxu0 %vm96_vm0, %v1921_v1 }
 0xb0f   :  { %4486 = vmatprep.mubr.msk.bf16.mxu0 %vm5118_vm2, %v5117_v37 }
 0xb16   :  { %4487 = vmatmul.mubr.msk.bf16.gmra.mrb[100].mxu0 %vm96_vm0, %v1922_v2 }
 0xb17   :  { %4490 = vmatprep.mubr.msk.bf16.mxu0 %vm5118_vm2, %v5117_v37 }
 0xb1e   :  { %4491 = vmatmul.mubr.msk.bf16.gmra.mrb[104].mxu0 %vm96_vm0, %v1923_v26 }
 0xb1f   :  { %4518 = vmatprep.mubr.msk.bf16.mxu0 %vm5118_vm2, %v5117_v37 }
 0xb81   :  { %v1992_v31 = vpop.f32.mrb[84].mxu0  ;;  %v2073_v18 = vpop.f32.mrb[48].mxu1 }
 0xb82   :  { %v4452_v13 = vpop.f32.mrb[85].mxu0  ;;  %v4468_v39 = vpop.f32.mrb[49].mxu1  ;;  %v1993_v42 = vadd.f32 %v6091_v29, %v1992_v31  ;;  %v2074_v48 = vadd.f32 %v3920_v52, %v2073_v18 }
 0xb83   :  { %v1995_v21 = vpop.f32.mrb[86].mxu0  ;;  %v2076_v16 = vpop.f32.mrb[50].mxu1 }
 0xb84   :  { %v1996_v30 = vadd.f32 %v6091_v29, %v1995_v21  ;;  %v2077_v34 = vadd.f32 %v3920_v52, %v2076_v16  ;;  %v4453_v24 = vpop.f32.mrb[87].mxu0  ;;  %v4469_v22 = vpop.f32.mrb[51].mxu1 }
 0xb86   :  { %v6098_v35 = vpack.c.bf16 %v1996_v30, %v1993_v42  ;;  %v2179_v44 = vpack.c.bf16 %v2077_v34, %v2074_v48 }
 0xb88   :  { %v6101_v43 = vsel %vm96_vm0, %v2179_v44, 0  ;;  %v2185_v38 = vmul.bf16 %v6098_v35, %v5410_v8  ;;  %v2323_v4 = vmul.bf16 %v6098_v35, %v5413_v9 }
 0xb89   :  { %v2000_v33 = vpop.f32.mrb[88].mxu0  ;;  %v2081_v3 = vpop.f32.mrb[52].mxu1  ;;  %4495 = vmatpush3.bf16.xpose.msra.mxu1 %v6101_v43  ;;  %4513 = vmatpush3.bf16.xpose.msra.mxu0 %v6101_v43 }
 0xb8a   :  { %v4456_v41 = vpop.f32.mrb[89].mxu0  ;;  %v4472_v50 = vpop.f32.mrb[53].mxu1  ;;  %4496 = vmatprep.subr.bf16.mxu1 %v5117_v37  ;;  %4514 = vmatprep.subr.bf16.mxu0 %v5117_v37  ;;  %v2001_v40 = vadd.f32 %v6091_v29, %v2000_v33  ;;  %v2082_v54 = vadd.f32 %v3920_v52, %v2081_v3 }
 0xb8b   :  { %v2003_v58 = vpop.f32.mrb[90].mxu0  ;;  %v2084_v36 = vpop.f32.mrb[54].mxu1 }
 0xb8c   :  { %v2004_v53 = vadd.f32 %v6091_v29, %v2003_v58  ;;  %v2085_v56 = vadd.f32 %v3920_v52, %v2084_v36  ;;  %v4457_v60 = vpop.f32.mrb[91].mxu0  ;;  %v4473_v46 = vpop.f32.mrb[55].mxu1 }
 0xb8e   :  { %v6109_v49 = vpack.c.bf16 %v2004_v53, %v2001_v40  ;;  %v2180_v19 = vpack.c.bf16 %v2085_v56, %v2082_v54  ;;  %v2588_v54 = vmul.bf16 %v6098_v35, %v5466_v45 }
 0xb90   :  { %v6112_v63 = vsel %vm96_vm0, %v2180_v19, 0  ;;  %v2186_v13 = vmul.bf16 %v6109_v49, %v5410_v8  ;;  %v2324_v48 = vmul.bf16 %v6109_v49, %v5413_v9  ;;  %v2791_v56 = vmul.bf16 %v6109_v49, %v5497_v51  ;;  %v6216_v19 = vld [vmem:[%s6858_s8] sm:$0xff] }
 0xb91   :  { %4497 = vmatpush3.bf16.xpose.msra.mxu1 %v6112_v63  ;;  %4515 = vmatpush3.bf16.xpose.msra.mxu0 %v6112_v63 }
 0xb92   :  { %4498 = vmatprep.subr.bf16.mxu1 %v5117_v37  ;;  %4516 = vmatprep.subr.bf16.mxu0 %v5117_v37 }
 0xbd9   :  { %v2008_v57 = vpop.f32.mrb[92].mxu0  ;;  %v2089_v61 = vpop.f32.mrb[56].mxu1 }
 0xbda   :  { %v2090_v7 = vadd.f32 %v3920_v52, %v2089_v61  ;;  %v4460_v1 = vpop.f32.mrb[93].mxu0  ;;  %v4476_v15 = vpop.f32.mrb[57].mxu1  ;;  %v2009_v39 = vadd.f32 %v6091_v29, %v2008_v57 }
 0xbdb   :  { %v2011_v28 = vpop.f32.mrb[94].mxu0  ;;  %v2092_v14 = vpop.f32.mrb[58].mxu1  ;;  %v6224_v1 = vld [vmem:[%s6858_s8 + $0x8] sm:$0xff] }
 0xbdc   :  { %v2181_v5 = vpack.c.bf16 %v2090_v7, %v2090_v7  ;;  %v4461_v10 = vpop.f32.mrb[95].mxu0  ;;  %v4477_v12 = vpop.f32.mrb[59].mxu1  ;;  %v2178_v34 = vpack.c.bf16 %v2009_v39, %v2009_v39 }
 0xbde   :  { %v6119_v20 = vsel %vm96_vm0, %v2181_v5, 0  ;;  %v2187_v50 = vmul.bf16 %v2178_v34, %v5410_v8  ;;  %v2325_v58 = vmul.bf16 %v2178_v34, %v5413_v9  ;;  %v2590_v53 = vmul.bf16 %v2178_v34, %v5466_v45 }
 0xbdf   :  { %4499 = vmatpush3.bf16.xpose.msra.mxu1 %v6119_v20  ;;  %4517 = vmatpush3.bf16.xpose.msra.mxu0 %v6119_v20  ;;  %v2792_v60 = vmul.bf16 %v2178_v34, %v5497_v51 }
 0xbe0   :  { %4566 = vmatprep.subr.bf16.mxu0 %v5117_v37  ;;  %4530 = vmatprep.subr.bf16.mxu1 %v5117_v37 }
 0xbe1   :  { %v2154_v62 = vpop.f32.mrb[96].mxu0 }
 0xbe2   :  { %v4484_v2 = vpop.f32.mrb[97].mxu0  ;;  %v2155_v25 = vadd.f32 %v3931_v11, %v2154_v62 }
 0xbe3   :  { %v2157_v17 = vpop.f32.mrb[98].mxu0 }
 0xbe4   :  { %v2158_v23 = vadd.f32 %v3931_v11, %v2157_v17  ;;  %v4485_v32 = vpop.f32.mrb[99].mxu0 }
 0xbe6   :  { %v6132_v27 = vpack.c.bf16 %v2158_v23, %v2155_v25  ;;  %4501 = vmatmul.mubr.msk.bf16.vlgmr.msra.gmra.mrb[60].mxu1 %vm96_vm0, %v2185_v38  ;;  %4519 = vmatmul.mubr.msk.bf16.vlgmr.msra.gmra.mrb[108].mxu0 %vm96_vm0, %v2323_v4  ;;  %v6244_v25 = vld [vmem:[%s6858_s8 + $0x18] sm:$0xff] }
 0xbe7   :  { %4567 = vmatpush3.bf16.xpose.msra.mxu0 %v6101_v43  ;;  %4504 = vmatprep.mubr.msk.bf16.mxu1 %vm5118_vm2, %v5117_v37 }
 0xbe8   :  { %v2449_v26 = vmul.bf16 %v6132_v27, %v5413_v9  ;;  %4522 = vmatprep.mubr.msk.bf16.mxu0 %vm5118_vm2, %v5117_v37  ;;  %4568 = vmatprep.subr.bf16.mxu0 %v5117_v37 }
 0xbe9   :  { %v2162_v31 = vpop.f32.mrb[100].mxu0 }
 0xbea   :  { %v4488_v52 = vpop.f32.mrb[101].mxu0  ;;  %4531 = vmatpush3.bf16.msra.mxu1 %v2449_v26  ;;  %v2163_v21 = vadd.f32 %v3931_v11, %v2162_v31 }
 0xbeb   :  { %v2165_v18 = vpop.f32.mrb[102].mxu0  ;;  %4532 = vmatprep.subr.bf16.mxu1 %v5117_v37 }
 0xbec   :  { %v2166_v16 = vadd.f32 %v3931_v11, %v2165_v18  ;;  %v4489_v42 = vpop.f32.mrb[103].mxu0 }
 0xbee   :  { %v6150_v30 = vpack.c.bf16 %v2166_v16, %v2163_v21  ;;  %4505 = vmatmul.mubr.msk.bf16.gmra.mrb[64].mxu1 %vm96_vm0, %v2186_v13  ;;  %4523 = vmatmul.mubr.msk.bf16.gmra.mrb[112].mxu0 %vm96_vm0, %v2324_v48  ;;  %v6262_v16 = vld [vmem:[%s6858_s8 + $0x20] sm:$0x3] }
 0xbef   :  { %4569 = vmatpush3.bf16.xpose.msra.mxu0 %v6112_v63  ;;  %4508 = vmatprep.mubr.msk.bf16.mxu1 %vm5118_vm2, %v5117_v37 }
 0xbf0   :  { %v2450_v29 = vmul.bf16 %v6150_v30, %v5413_v9  ;;  %4526 = vmatprep.mubr.msk.bf16.mxu0 %vm5118_vm2, %v5117_v37  ;;  %4570 = vmatprep.subr.bf16.mxu0 %v5117_v37 }
 0xbf1   :  { %v2170_v24 = vpop.f32.mrb[104].mxu0 }
 0xbf2   :  { %v2171_v22 = vadd.f32 %v3931_v11, %v2170_v24  ;;  %v4492_v44 = vpop.f32.mrb[105].mxu0  ;;  %4533 = vmatpush3.bf16.msra.mxu1 %v2450_v29  ;;  %v6236_v11 = vld [vmem:[%s6858_s8 + $0x10] sm:$0xff] }
 0xbf3   :  { %v2173_v33 = vpop.f32.mrb[106].mxu0  ;;  %4534 = vmatprep.subr.bf16.mxu1 %v5117_v37 }
 0xbf4   :  { %v6163_v3 = vpack.c.bf16 %v2171_v22, %v2171_v22  ;;  %v4493_v41 = vpop.f32.mrb[107].mxu0 }
 0xbf6   :  { %4509 = vmatmul.mubr.msk.bf16.gmra.mrb[68].mxu1 %vm96_vm0, %v2187_v50  ;;  %4527 = vmatmul.mubr.msk.bf16.gmra.mrb[116].mxu0 %vm96_vm0, %v2325_v58  ;;  %v2451_v36 = vmul.bf16 %v6163_v3, %v5413_v9  ;;  %v2589_v9 = vmul.bf16 %v6109_v49, %v5466_v45 }
 0xbf7   :  { %4571 = vmatpush3.bf16.xpose.msra.mxu0 %v6119_v20  ;;  %4572 = vmatprep.mubr.msk.bf16.mxu0 %vm5118_vm2, %v5117_v37 }
 0xbf8   :  { %v2462_v40 = vsel %vm739_vm3, %v2451_v36, 0  ;;  %4602 = vmatprep.subr.bf16.mxu0 %v5117_v37  ;;  %4536 = vmatprep.mubr.msk.bf16.mxu1 %vm5118_vm2, %v5117_v37 }
 0xbf9   :  { %4535 = vmatpush3.bf16.msra.mxu1 %v2462_v40 }
 0xbfa   :  { %4548 = vmatprep.subr.bf16.mxu1 %v5117_v37 }
 0xbfe   :  { %4573 = vmatmul.mubr.msk.bf16.vlgmr.msra.gmra.mrb[120].mxu0 %vm96_vm0, %v2588_v54 }
 0xbff   :  { %4603 = vmatpush3.bf16.xpose.msra.mxu0 %v6101_v43  ;;  %4576 = vmatprep.mubr.msk.bf16.mxu0 %vm5118_vm2, %v5117_v37  ;;  %v2790_v43 = vmul.bf16 %v6098_v35, %v5497_v51 }
 0xc00   :  { %4604 = vmatprep.subr.bf16.mxu0 %v5117_v37 }
 0xc06   :  { %4577 = vmatmul.mubr.msk.bf16.gmra.mrb[124].mxu0 %vm96_vm0, %v2589_v9 }
 0xc07   :  { %4605 = vmatpush3.bf16.xpose.msra.mxu0 %v6112_v63  ;;  %4580 = vmatprep.mubr.msk.bf16.mxu0 %vm5118_vm2, %v5117_v37 }
 0xc08   :  { %4606 = vmatprep.subr.bf16.mxu0 %v5117_v37 }
 0xc0e   :  { %4581 = vmatmul.mubr.msk.bf16.gmra.mrb[128].mxu0 %vm96_vm0, %v2590_v53 }
 0xc0f   :  { %4607 = vmatpush3.bf16.xpose.msra.mxu0 %v6119_v20  ;;  %4608 = vmatprep.mubr.msk.bf16.mxu0 %vm5118_vm2, %v5117_v37 }
 0xc10   :  { %4638 = vmatprep.subr.bf16.mxu0 %v5117_v37 }
 0xc16   :  { %4609 = vmatmul.mubr.msk.bf16.vlgmr.msra.gmra.mrb[132].mxu0 %vm96_vm0, %v2790_v43 }
 0xc17   :  { %4612 = vmatprep.mubr.msk.bf16.mxu0 %vm5118_vm2, %v5117_v37 }
 0xc1e   :  { %4613 = vmatmul.mubr.msk.bf16.gmra.mrb[136].mxu0 %vm96_vm0, %v2791_v56 }
 0xc1f   :  { %4616 = vmatprep.mubr.msk.bf16.mxu0 %vm5118_vm2, %v5117_v37 }
 0xc26   :  { %4617 = vmatmul.mubr.msk.bf16.gmra.mrb[140].mxu0 %vm96_vm0, %v2792_v60 }
 0xc27   :  { %4642 = vmatprep.mubr.msk.bf16.mxu0 %vm5118_vm2, %v5117_v37 }
 0xcb9   :  { %v2240_v35 = vpop.f32.mrb[60].mxu1  ;;  %v2369_v46 = vpop.f32.mrb[108].mxu0 }
 0xcba   :  { %v6219_v49 = vadd.f32 %v6216_v19, %v2369_v46  ;;  %v4502_v63 = vpop.f32.mrb[61].mxu1  ;;  %v4520_v57 = vpop.f32.mrb[109].mxu0  ;;  %v6252_v52 = vadd.f32 %v6216_v19, %v2240_v35 }
 0xcbb   :  { %v2243_v61 = vpop.f32.mrb[62].mxu1  ;;  %v2372_v7 = vpop.f32.mrb[110].mxu0 }
 0xcbc   :  { %v6227_v15 = vadd.f32 %v6224_v1, %v2372_v7  ;;  %v4503_v28 = vpop.f32.mrb[63].mxu1  ;;  %v4521_v14 = vpop.f32.mrb[111].mxu0  ;;  %v2391_v5 = vsel %vm529_vm4, %v6219_v49, -inf  ;;  %v2262_v29 = vsel %vm529_vm4, %v6252_v52, -inf  ;;  %v6270_v44 = vadd.f32 %v6224_v1, %v2243_v61 }
 0xcbd   :  { %2392 = vmax.xlane.f32.xlu0 %v2391_v5 }
 0xcbe   :  { %v2394_v10 = vsel %vm529_vm4, %v6227_v15, -inf  ;;  %v2265_v54 = vsel %vm529_vm4, %v6270_v44, -inf }
 0xcbf   :  { %2395 = vmax.xlane.f32.xlu1 %v2394_v10 }
 0xcc1   :  { %v2248_v12 = vpop.f32.mrb[64].mxu1  ;;  %v2377_v20 = vpop.f32.mrb[112].mxu0 }
 0xcc2   :  { %v6239_v62 = vadd.f32 %v6236_v11, %v2377_v20  ;;  %v4506_v2 = vpop.f32.mrb[65].mxu1  ;;  %v4524_v17 = vpop.f32.mrb[113].mxu0  ;;  %v6257_v21 = vadd.f32 %v6236_v11, %v2248_v12 }
 0xcc3   :  { %v2251_v38 = vpop.f32.mrb[66].mxu1  ;;  %v2380_v4 = vpop.f32.mrb[114].mxu0 }
 0xcc4   :  { %v6247_v23 = vadd.f32 %v6244_v25, %v2380_v4  ;;  %v4507_v32 = vpop.f32.mrb[67].mxu1  ;;  %v4525_v26 = vpop.f32.mrb[115].mxu0  ;;  %v2397_v31 = vsel %vm529_vm4, %v6239_v62, -inf  ;;  %v2268_v36 = vsel %vm529_vm4, %v6257_v21, -inf  ;;  %v6280_v40 = vadd.f32 %v6244_v25, %v2251_v38 }
 0xcc5   :  { %2398 = vmax.xlane.f32.xlu0 %v2397_v31 }
 0xcc6   :  { %v2400_v18 = vsel %vm529_vm4, %v6247_v23, -inf  ;;  %v2271_v63 = vsel %vm529_vm4, %v6280_v40, -inf }
 0xcc7   :  { %2401 = vmax.xlane.f32.xlu1 %v2400_v18 }
 0xcc9   :  { %v2256_v13 = vpop.f32.mrb[68].mxu1  ;;  %v2385_v39 = vpop.f32.mrb[116].mxu0 }
 0xcca   :  { %v6265_v42 = vadd.f32 %v6262_v16, %v2385_v39  ;;  %v4510_v48 = vpop.f32.mrb[69].mxu1  ;;  %v4528_v34 = vpop.f32.mrb[117].mxu0  ;;  %v6275_v58 = vadd.f32 %v6262_v16, %v2256_v13 }
 0xccb   :  { %v2259_v24 = vpop.f32.mrb[70].mxu1  ;;  %2263 = vmax.xlane.f32.xlu1 %v2262_v29  ;;  %v2388_v22 = vpop.f32.mrb[118].mxu0 }
 0xccc   :  { %v4511_v33 = vpop.f32.mrb[71].mxu1  ;;  %v4529_v41 = vpop.f32.mrb[119].mxu0  ;;  %v2403_v50 = vsel %vm542_vm5, %v6265_v42, -inf  ;;  %v2274_v43 = vsel %vm542_vm5, %v6275_v58, -inf }
 0xccd   :  { %2404 = vmax.xlane.f32.xlu0 %v2403_v50 }
 0xccf   :  { %2269 = vmax.xlane.f32.xlu1 %v2268_v36 }
 0xcd1   :  { %2266 = vmax.xlane.f32.xlu0 %v2265_v54  ;;  %v2634_v9 = vpop.f32.mrb[120].mxu0 }
 0xcd2   :  { %v4574_v53 = vpop.f32.mrb[121].mxu0  ;;  %v6287_v60 = vadd.f32 %v6216_v19, %v2634_v9 }
 0xcd3   :  { %2275 = vmax.xlane.f32.xlu1 %v2274_v43  ;;  %v2637_v56 = vpop.f32.mrb[122].mxu0 }
 0xcd4   :  { %v6290_v35 = vadd.f32 %v6224_v1, %v2637_v56  ;;  %v4575_v46 = vpop.f32.mrb[123].mxu0  ;;  %v2656_v61 = vsel %vm529_vm4, %v6287_v60, -inf }
 0xcd5   :  { %2272 = vmax.xlane.f32.xlu0 %v2271_v63 }
 0xcd6   :  { %v2659_v57 = vsel %vm529_vm4, %v6290_v35, -inf }
 0xcd7   :  { %2660 = vmax.xlane.f32.xlu1 %v2659_v57 }
 0xcd9   :  { %2657 = vmax.xlane.f32.xlu0 %v2656_v61  ;;  %v2642_v7 = vpop.f32.mrb[124].mxu0 }
 0xcda   :  { %v6299_v28 = vadd.f32 %v6236_v11, %v2642_v7  ;;  %v4578_v14 = vpop.f32.mrb[125].mxu0 }
 0xcdb   :  { %v2645_v5 = vpop.f32.mrb[126].mxu0 }
 0xcdc   :  { %v6302_v10 = vadd.f32 %v6244_v25, %v2645_v5  ;;  %v4579_v12 = vpop.f32.mrb[127].mxu0  ;;  %v2662_v20 = vsel %vm529_vm4, %v6299_v28, -inf }
 0xcdd   :  { %2663 = vmax.xlane.f32.xlu0 %v2662_v20 }
 0xcde   :  { %v2665_v2 = vsel %vm529_vm4, %v6302_v10, -inf }
 0xcdf   :  { %2666 = vmax.xlane.f32.xlu1 %v2665_v2 }
 0xce1   :  { %v2650_v17 = vpop.f32.mrb[128].mxu0 }
 0xce2   :  { %v6309_v38 = vadd.f32 %v6262_v16, %v2650_v17  ;;  %v4582_v4 = vpop.f32.mrb[129].mxu0 }
 0xce3   :  { %v2653_v32 = vpop.f32.mrb[130].mxu0 }
 0xce4   :  { %v4583_v26 = vpop.f32.mrb[131].mxu0  ;;  %v2668_v31 = vsel %vm542_vm5, %v6309_v38, -inf }
 0xce5   :  { %2669 = vmax.xlane.f32.xlu0 %v2668_v31 }
 0xce9   :  { %v2836_v18 = vpop.f32.mrb[132].mxu0 }
 0xcea   :  { %v6314_v13 = vadd.f32 %v6216_v19, %v2836_v18  ;;  %v4610_v39 = vpop.f32.mrb[133].mxu0 }
 0xceb   :  { %v2839_v48 = vpop.f32.mrb[134].mxu0 }
 0xcec   :  { %v6317_v34 = vadd.f32 %v6224_v1, %v2839_v48  ;;  %v4611_v29 = vpop.f32.mrb[135].mxu0  ;;  %v2858_v24 = vsel %vm529_vm4, %v6314_v13, -inf }
 0xced   :  { %2859 = vmax.xlane.f32.xlu1 %v2858_v24 }
 0xcee   :  { %v2861_v22 = vsel %vm529_vm4, %v6317_v34, -inf }
 0xcef   :  { %2862 = vmax.xlane.f32.xlu0 %v2861_v22 }
 0xcf1   :  { %v2844_v33 = vpop.f32.mrb[136].mxu0 }
 0xcf2   :  { %v6324_v41 = vadd.f32 %v6236_v11, %v2844_v33  ;;  %v4614_v19 = vpop.f32.mrb[137].mxu0 }
 0xcf3   :  { %v2847_v50 = vpop.f32.mrb[138].mxu0 }
 0xcf4   :  { %v6327_v36 = vadd.f32 %v6244_v25, %v2847_v50  ;;  %v4615_v1 = vpop.f32.mrb[139].mxu0  ;;  %v2864_v54 = vsel %vm529_vm4, %v6324_v41, -inf }
 0xcf5   :  { %2865 = vmax.xlane.f32.xlu1 %v2864_v54 }
 0xcf6   :  { %v2867_v9 = vsel %vm529_vm4, %v6327_v36, -inf }
 0xcf7   :  { %2868 = vmax.xlane.f32.xlu0 %v2867_v9 }
 0xcf9   :  { %v2852_v53 = vpop.f32.mrb[140].mxu0 }
 0xcfa   :  { %v4618_v43 = vpop.f32.mrb[141].mxu0  ;;  %v6353_v1 = vadd.f32 %v6262_v16, %v2852_v53 }
 0xcfb   :  { %v2855_v56 = vpop.f32.mrb[142].mxu0 }
 0xcfc   :  { %v4619_v46 = vpop.f32.mrb[143].mxu0 }
 0xd4a   :  { %v2393_v11 = vpop.xlane.xlu0 %2392 }
 0xd4b   :  { %v2406_v63 = vsub.f32 %v6219_v49, %v2393_v11  ;;  %v2870_v11 = vsel %vm542_vm5, %v6353_v1, -inf }
 0xd4c   :  { %v2396_v57 = vpop.xlane.xlu1 %2395 }
 0xd4d   :  { %v2411_v61 = vmul.f32 1.442695, %v2406_v63  ;;  %v2407_v25 = vsub.f32 %v6227_v15, %v2396_v57 }
 0xd4f   :  { %4961 = vpow2.f32 %v2411_v61  ;;  %v2413_v7 = vmul.f32 1.442695, %v2407_v25 }
 0xd51   :  { %4963 = vpow2.f32 %v2413_v7 }
 0xd52   :  { %v2399_v14 = vpop.xlane.xlu0 %2398 }
 0xd53   :  { %v2408_v5 = vsub.f32 %v6239_v62, %v2399_v14 }
 0xd54   :  { %v2402_v12 = vpop.xlane.xlu1 %2401 }
 0xd55   :  { %v2415_v20 = vmul.f32 1.442695, %v2408_v5  ;;  %v2409_v2 = vsub.f32 %v6247_v23, %v2402_v12 }
 0xd57   :  { %4965 = vpow2.f32 %v2415_v20  ;;  %v2417_v17 = vmul.f32 1.442695, %v2409_v2 }
 0xd58   :  { %v2264_v4 = vpop.xlane.xlu1 %2263 }
 0xd59   :  { %v6337_v32 = vpop.eup %4961  ;;  %4967 = vpow2.f32 %v2417_v17  ;;  %v2277_v49 = vsub.f32 %v6252_v52, %v2264_v4 }
 0xd5a   :  { %v2405_v26 = vpop.xlane.xlu0 %2404  ;;  %v2421_v15 = vsel %vm529_vm4, %v6337_v32, 0.0 }
 0xd5b   :  { %v6342_v31 = vpop.eup %4963  ;;  %v2282_v18 = vmul.f32 1.442695, %v2277_v49  ;;  %v2410_v62 = vsub.f32 %v6265_v42, %v2405_v26  ;;  %2422 = vadd.xlane.f32.xlu1 %v2421_v15 }
 0xd5c   :  { %v2270_v39 = vpop.xlane.xlu1 %2269  ;;  %v2424_v23 = vsel %vm529_vm4, %v6342_v31, 0.0 }
 0xd5d   :  { %4969 = vpow2.f32 %v2282_v18  ;;  %v2419_v48 = vmul.f32 1.442695, %v2410_v62  ;;  %v2279_v29 = vsub.f32 %v6257_v21, %v2270_v39  ;;  %2425 = vadd.xlane.f32.xlu0 %v2424_v23 }
 0xd5e   :  { %v2267_v52 = vpop.xlane.xlu0 %2266 }
 0xd5f   :  { %4971 = vpow2.f32 %v2419_v48  ;;  %v2286_v24 = vmul.f32 1.442695, %v2279_v29  ;;  %v2278_v22 = vsub.f32 %v6270_v44, %v2267_v52 }
 0xd60   :  { %v2276_v33 = vpop.xlane.xlu1 %2275 }
 0xd61   :  { %v6349_v19 = vpop.eup %4965  ;;  %4973 = vpow2.f32 %v2286_v24  ;;  %v2284_v42 = vmul.f32 1.442695, %v2278_v22  ;;  %v2281_v50 = vsub.f32 %v6275_v58, %v2276_v33 }
 0xd62   :  { %v2273_v54 = vpop.xlane.xlu0 %2272  ;;  %v2427_v21 = vsel %vm529_vm4, %v6349_v19, 0.0 }
 0xd63   :  { %v6357_v9 = vpop.eup %4967  ;;  %4975 = vpow2.f32 %v2284_v42  ;;  %v2290_v43 = vmul.f32 1.442695, %v2281_v50  ;;  %v2280_v44 = vsub.f32 %v6280_v40, %v2273_v54  ;;  %2428 = vadd.xlane.f32.xlu1 %v2427_v21 }
 0xd64   :  { %v2661_v56 = vpop.xlane.xlu1 %2660  ;;  %v2430_v46 = vsel %vm529_vm4, %v6357_v9, 0.0 }
 0xd65   :  { %4977 = vpow2.f32 %v2290_v43  ;;  %v2288_v58 = vmul.f32 1.442695, %v2280_v44  ;;  %v2672_v16 = vsub.f32 %v6290_v35, %v2661_v56  ;;  %2431 = vadd.xlane.f32.xlu0 %v2430_v46 }
 0xd66   :  { %v2658_v53 = vpop.xlane.xlu0 %2657 }
 0xd67   :  { %v6365_v63 = vpop.eup %4969  ;;  %4979 = vpow2.f32 %v2288_v58  ;;  %v2678_v57 = vmul.f32 1.442695, %v2672_v16  ;;  %v2671_v40 = vsub.f32 %v6287_v60, %v2658_v53  ;;  %2871 = vmax.xlane.f32.xlu1 %v2870_v11 }
 0xd68   :  { %v2292_v14 = vsel %vm529_vm4, %v6365_v63, 0.0 }
 0xd69   :  { %v6368_v61 = vpop.eup %4971  ;;  %4981 = vpow2.f32 %v2678_v57  ;;  %v2676_v25 = vmul.f32 1.442695, %v2671_v40 }
 0xd6a   :  { %v2664_v7 = vpop.xlane.xlu0 %2663  ;;  %v2433_v35 = vsel %vm542_vm5, %v6368_v61, 0.0 }
 0xd6b   :  { %v6374_v5 = vpop.eup %4973  ;;  %4983 = vpow2.f32 %v2676_v25  ;;  %v2673_v12 = vsub.f32 %v6299_v28, %v2664_v7  ;;  %2434 = vadd.xlane.f32.xlu0 %v2433_v35  ;;  %2293 = vadd.xlane.f32.xlu1 %v2292_v14 }
 0xd6c   :  { %v2667_v60 = vpop.xlane.xlu1 %2666  ;;  %v2298_v49 = vsel %vm529_vm4, %v6374_v5, 0.0 }
 0xd6d   :  { %v6377_v20 = vpop.eup %4975  ;;  %v2680_v2 = vmul.f32 1.442695, %v2673_v12  ;;  %v2674_v17 = vsub.f32 %v6302_v10, %v2667_v60 }
 0xd6e   :  { %v2295_v4 = vsel %vm529_vm4, %v6377_v20, 0.0 }
 0xd6f   :  { %v6384_v26 = vpop.eup %4977  ;;  %4985 = vpow2.f32 %v2680_v2  ;;  %v2682_v15 = vmul.f32 1.442695, %v2674_v17  ;;  %2296 = vadd.xlane.f32.xlu0 %v2295_v4  ;;  %2299 = vadd.xlane.f32.xlu1 %v2298_v49 }
 0xd70   :  { %v2304_v10 = vsel %vm542_vm5, %v6384_v26, 0.0 }
 0xd71   :  { %v6386_v28 = vpop.eup %4979  ;;  %4987 = vpow2.f32 %v2682_v15 }
 0xd72   :  { %v2670_v18 = vpop.xlane.xlu0 %2669  ;;  %v2301_v62 = vsel %vm529_vm4, %v6386_v28, 0.0 }
 0xd73   :  { %v6392_v39 = vpop.eup %4981  ;;  %v2675_v23 = vsub.f32 %v6309_v38, %v2670_v18  ;;  %2302 = vadd.xlane.f32.xlu0 %v2301_v62  ;;  %2305 = vadd.xlane.f32.xlu1 %v2304_v10 }
 0xd74   :  { %v2689_v24 = vsel %vm529_vm4, %v6392_v39, 0.0 }
 0xd75   :  { %v6395_v48 = vpop.eup %4983  ;;  %v2684_v29 = vmul.f32 1.442695, %v2675_v23 }
 0xd76   :  { %v2686_v52 = vsel %vm529_vm4, %v6395_v48, 0.0 }
 0xd77   :  { %4989 = vpow2.f32 %v2684_v29  ;;  %2687 = vadd.xlane.f32.xlu0 %v2686_v52  ;;  %2690 = vadd.xlane.f32.xlu1 %v2689_v24 }
 0xd79   :  { %v6401_v22 = vpop.eup %4985 }
 0xd7a   :  { %v2860_v33 = vpop.xlane.xlu1 %2859  ;;  %v2692_v38 = vsel %vm529_vm4, %v6401_v22, 0.0 }
 0xd7b   :  { %v6405_v42 = vpop.eup %4987  ;;  %v2873_v50 = vsub.f32 %v6314_v13, %v2860_v33  ;;  %2693 = vadd.xlane.f32.xlu0 %v2692_v38  ;;  %v2320_v33 = vmul.bf16 %v6132_v27, %v5410_v8 }
 0xd7c   :  { %v2863_v54 = vpop.xlane.xlu0 %2862  ;;  %v2695_v21 = vsel %vm529_vm4, %v6405_v42, 0.0 }
 0xd7d   :  { %v2878_v43 = vmul.f32 1.442695, %v2873_v50  ;;  %v2874_v44 = vsub.f32 %v6317_v34, %v2863_v54  ;;  %2696 = vadd.xlane.f32.xlu1 %v2695_v21 }
 0xd7f   :  { %4991 = vpow2.f32 %v2878_v43  ;;  %v2880_v56 = vmul.f32 1.442695, %v2874_v44  ;;  %v2322_v43 = vmul.bf16 %v6163_v3, %v5410_v8 }
 0xd81   :  { %v6411_v46 = vpop.eup %4989  ;;  %4993 = vpow2.f32 %v2880_v56  ;;  %v2530_v56 = vsel %vm739_vm3, %v2322_v43, 0 }
 0xd82   :  { %v2866_v58 = vpop.xlane.xlu1 %2865  ;;  %v2698_v16 = vsel %vm542_vm5, %v6411_v46, 0.0 }
 0xd83   :  { %v2875_v13 = vsub.f32 %v6324_v41, %v2866_v58  ;;  %2699 = vadd.xlane.f32.xlu0 %v2698_v16 }
 0xd84   :  { %v2869_v53 = vpop.xlane.xlu0 %2868 }
 0xd85   :  { %v2882_v11 = vmul.f32 1.442695, %v2875_v13  ;;  %v2876_v57 = vsub.f32 %v6327_v36, %v2869_v53 }
 0xd87   :  { %4995 = vpow2.f32 %v2882_v11  ;;  %v2884_v40 = vmul.f32 1.442695, %v2876_v57 }
 0xd89   :  { %v6417_v34 = vpop.eup %4991  ;;  %4997 = vpow2.f32 %v2884_v40 }
 0xd8a   :  { %v2888_v25 = vsel %vm529_vm4, %v6417_v34, 0.0 }
 0xd8b   :  { %v6421_v7 = vpop.eup %4993  ;;  %2889 = vadd.xlane.f32.xlu1 %v2888_v25 }
 0xd8c   :  { %v2891_v35 = vsel %vm529_vm4, %v6421_v7, 0.0 }
 0xd8d   :  { %2892 = vadd.xlane.f32.xlu0 %v2891_v35 }
 0xd91   :  { %v6425_v41 = vpop.eup %4995 }
 0xd92   :  { %v2894_v36 = vsel %vm529_vm4, %v6425_v41, 0.0 }
 0xd93   :  { %v6429_v14 = vpop.eup %4997  ;;  %2895 = vadd.xlane.f32.xlu1 %v2894_v36 }
 0xd94   :  { %v2897_v12 = vsel %vm529_vm4, %v6429_v14, 0.0 }
 0xd95   :  { %2898 = vadd.xlane.f32.xlu0 %v2897_v12 }
 0xde8   :  { %v2423_v60 = vpop.xlane.xlu1 %2422 }
 0xde9   :  { %4999 = vrcp.f32 %v2423_v60 }
 0xdea   :  { %v2426_v2 = vpop.xlane.xlu0 %2425 }
 0xdeb   :  { %5001 = vrcp.f32 %v2426_v2 }
 0xdf0   :  { %v2429_v17 = vpop.xlane.xlu1 %2428 }
 0xdf1   :  { %5003 = vrcp.f32 %v2429_v17 }
 0xdf2   :  { %v2432_v4 = vpop.xlane.xlu0 %2431 }
 0xdf3   :  { %v5000_v49 = vpop.eup %4999  ;;  %5005 = vrcp.f32 %v2432_v4 }
 0xdf4   :  { %v2872_v15 = vpop.xlane.xlu1 %2871  ;;  %v2441_v10 = vmul.f32 %v5000_v49, %v6337_v32  ;;  %v2716_v49 = vmul.bf16 %v6163_v3, %v5466_v45 }
 0xdf5   :  { %v5002_v18 = vpop.eup %5001  ;;  %v2877_v62 = vsub.f32 %v6353_v1, %v2872_v15 }
 0xdf6   :  { %v2442_v23 = vmul.f32 %v5002_v18, %v6342_v31  ;;  %v2321_v31 = vmul.bf16 %v6150_v30, %v5410_v8 }
 0xdf7   :  { %v2886_v29 = vmul.f32 1.442695, %v2877_v62  ;;  %v2727_v62 = vsel %vm739_vm3, %v2716_v49, 0 }
 0xdf8   :  { %v2446_v52 = vpack.c.bf16 %v2442_v23, %v2441_v10  ;;  %v2435_v24 = vpop.xlane.xlu0 %2434  ;;  %v2294_v50 = vpop.xlane.xlu1 %2293 }
 0xdf9   :  { %5007 = vpow2.f32 %v2886_v29 }
 0xdfa   :  { %5009 = vrcp.f32 %v2435_v24  ;;  %4537 = vmatmul.mubr.msk.bf16.vlgmr.msra.gmra.mrb[72].mxu1 %vm529_vm4, %v2446_v52  ;;  %v4817_v52 = vld [vmem:[%s6859_s5 + $0x10] sm:$0xff]  }
 0xdfb   :  { %v5004_v38 = vpop.eup %5003  ;;  %4549 = vmatpush3.bf16.msra.mxu1 %v2320_v33  ;;  %4540 = vmatprep.mubr.msk.bf16.mxu1 %vm5118_vm2, %v5117_v37 }
 0xdfc   :  { %v2297_v1 = vpop.xlane.xlu0 %2296  ;;  %4550 = vmatprep.subr.bf16.mxu1 %v5117_v37  ;;  %v2443_v54 = vmul.f32 %v5004_v38, %v6349_v19  ;;  %v2300_v13 = vpop.xlane.xlu1 %2299  ;;  %4639 = vmatpush3.bf16.msra.mxu0 %v4817_v52 }
 0xdfd   :  { %v5006_v32 = vpop.eup %5005  ;;  %5011 = vrcp.f32 %v2297_v1  ;;  %4640 = vmatprep.subr.bf16.mxu0 %v5117_v37 }
 0xdfe   :  { %v2444_v21 = vmul.f32 %v5006_v32, %v6357_v9  ;;  %5013 = vrcp.f32 %v2294_v50  ;;  %v2916_v32 = vmul.bf16 %v6132_v27, %v5497_v51  ;;  %v2917_v50 = vmul.bf16 %v6150_v30, %v5497_v51 }
 0xdff   :  { %4551 = vmatpush3.bf16.msra.mxu1 %v2321_v31 }
 0xe00   :  { %4552 = vmatprep.subr.bf16.mxu1 %v5117_v37  ;;  %v2447_v44 = vpack.c.bf16 %v2444_v21, %v2443_v54  ;;  %v2303_v9 = vpop.xlane.xlu0 %2302  ;;  %v2306_v25 = vpop.xlane.xlu1 %2305 }
 0xe01   :  { %5015 = vrcp.f32 %v2303_v9 }
 0xe02   :  { %4541 = vmatmul.mubr.msk.bf16.gmra.mrb[76].mxu1 %vm529_vm4, %v2447_v44  ;;  %5017 = vrcp.f32 %v2300_v13 }
 0xe03   :  { %v6451_v58 = vpop.eup %5007  ;;  %4553 = vmatpush3.bf16.msra.mxu1 %v2530_v56  ;;  %4544 = vmatprep.mubr.msk.bf16.mxu1 %vm5118_vm2, %v5117_v37  ;;  %5019 = vrcp.f32 %v2306_v25 }
 0xe04   :  { %v5010_v19 = vpop.eup %5009  ;;  %v2900_v8 = vsel %vm542_vm5, %v6451_v58, 0.0  ;;  %4584 = vmatprep.subr.bf16.mxu1 %v5117_v37  ;;  %v2688_v2 = vpop.xlane.xlu0 %2687 }
 0xe05   :  { %2901 = vadd.xlane.f32.xlu1 %v2900_v8  ;;  %v2445_v16 = vmul.f32 %v5010_v19, %v6368_v61  ;;  %v2714_v61 = vmul.bf16 %v6132_v27, %v5466_v45  ;;  %v2691_v17 = vpop.xlane.xlu1 %2690  ;;  %5021 = vrcp.f32 %v2688_v2  ;;  %v2918_v27 = vmul.bf16 %v6163_v3, %v5497_v51 }
 0xe06   :  { %5023 = vrcp.f32 %v2691_v17 }
 0xe07   :  { %v2448_v53 = vpack.c.bf16 %v2445_v16, %v2445_v16  ;;  %v5012_v11 = vpop.eup %5011 }
 0xe08   :  { %v5014_v57 = vpop.eup %5013  ;;  %v2313_v40 = vmul.f32 %v5012_v11, %v6377_v20 }
 0xe09   :  { %v2312_v35 = vmul.f32 %v5014_v57, %v6365_v63  ;;  %v2715_v63 = vmul.bf16 %v6150_v30, %v5466_v45  ;;  %v2694_v45 = vpop.xlane.xlu0 %2693 }
 0xe0a   :  { %4545 = vmatmul.mubr.msk.bf16.gmra.mrb[80].mxu1 %vm529_vm4, %v2448_v53 }
 0xe0b   :  { %4554 = vmatprep.mubr.msk.bf16.mxu1 %vm5118_vm2, %v5117_v37  ;;  %v2317_v36 = vpack.c.bf16 %v2313_v40, %v2312_v35  ;;  %v5016_v12 = vpop.eup %5015 }
 0xe0c   :  { %v5018_v60 = vpop.eup %5017  ;;  %v2315_v20 = vmul.f32 %v5016_v12, %v6386_v28  ;;  %v2697_v28 = vpop.xlane.xlu1 %2696 }
 0xe0d   :  { %v2314_v4 = vmul.f32 %v5018_v60, %v6374_v5  ;;  %v5020_v18 = vpop.eup %5019  ;;  %5025 = vrcp.f32 %v2697_v28 }
 0xe0e   :  { %v2316_v5 = vmul.f32 %v5020_v18, %v6384_v26  ;;  %5027 = vrcp.f32 %v2694_v45 }
 0xe0f   :  { %v2318_v15 = vpack.c.bf16 %v2315_v20, %v2314_v4  ;;  %v5022_v10 = vpop.eup %5021 }
 0xe10   :  { %v2319_v23 = vpack.c.bf16 %v2316_v5, %v2316_v5  ;;  %v5024_v29 = vpop.eup %5023  ;;  %v2706_v24 = vmul.f32 %v5022_v10, %v6395_v48  ;;  %v2700_v33 = vpop.xlane.xlu0 %2699 }
 0xe11   :  { %v2707_v26 = vmul.f32 %v5024_v29, %v6392_v39  ;;  %5029 = vrcp.f32 %v2700_v33 }
 0xe12   :  { %4555 = vmatmul.mubr.msk.bf16.vlgmr.msra.gmra.mrb[72].mxu1 %vm529_vm4, %v2317_v36 }
 0xe13   :  { %4585 = vmatpush3.bf16.msra.mxu1 %v2714_v61  ;;  %4558 = vmatprep.mubr.msk.bf16.mxu1 %vm5118_vm2, %v5117_v37  ;;  %v2711_v38 = vpack.c.bf16 %v2707_v26, %v2706_v24 }
 0xe14   :  { %4586 = vmatprep.subr.bf16.mxu1 %v5117_v37 }
 0xe17   :  { %4587 = vmatpush3.bf16.msra.mxu1 %v2715_v63  ;;  %v5026_v1 = vpop.eup %5025 }
 0xe18   :  { %4588 = vmatprep.subr.bf16.mxu1 %v5117_v37  ;;  %v5028_v31 = vpop.eup %5027  ;;  %v2709_v39 = vmul.f32 %v5026_v1, %v6405_v42  ;;  %v2890_v54 = vpop.xlane.xlu1 %2889  ;;  %v2929_v42 = vsel %vm739_vm3, %v2918_v27, 0  ;;  %vm3776_vm3 = vcmask 1024  }
 0xe19   :  { %v2708_v21 = vmul.f32 %v5028_v31, %v6401_v22 }
 0xe1a   :  { %4559 = vmatmul.mubr.msk.bf16.gmra.mrb[76].mxu1 %vm529_vm4, %v2318_v15  ;;  %v2893_v48 = vpop.xlane.xlu0 %2892 }
 0xe1b   :  { %4589 = vmatpush3.bf16.msra.mxu1 %v2727_v62  ;;  %4562 = vmatprep.mubr.msk.bf16.mxu1 %vm5118_vm2, %v5117_v37  ;;  %5031 = vrcp.f32 %v2893_v48  ;;  %v2712_v43 = vpack.c.bf16 %v2709_v39, %v2708_v21  ;;  %v5030_v44 = vpop.eup %5029  ;;  %v3966_v62 = vld [vmem:[%s6860_s9 + $0x1] ss:$0 sm:$0xff] }
 0xe1c   :  { %4620 = vmatprep.subr.bf16.mxu1 %v5117_v37  ;;  %5033 = vrcp.f32 %v2890_v54  ;;  %v2710_v22 = vmul.f32 %v5030_v44, %v6411_v46 }
 0xe1e   :  { %v2713_v3 = vpack.c.bf16 %v2710_v22, %v2710_v22 }
 0xe20   :  { %v2896_v51 = vpop.xlane.xlu1 %2895 }
 0xe22   :  { %4563 = vmatmul.mubr.msk.bf16.gmra.mrb[80].mxu1 %vm529_vm4, %v2319_v23  ;;  %v2899_v30 = vpop.xlane.xlu0 %2898 }
 0xe23   :  { %4590 = vmatprep.mubr.msk.bf16.mxu1 %vm5118_vm2, %v5117_v37  ;;  %5035 = vrcp.f32 %v2899_v30 }
 0xe24   :  { %5037 = vrcp.f32 %v2896_v51 }
 0xe25   :  { %v5032_v56 = vpop.eup %5031 }
 0xe26   :  { %v5034_v19 = vpop.eup %5033  ;;  %v2909_v9 = vmul.f32 %v5032_v56, %v6421_v7 }
 0xe27   :  { %v2908_v8 = vmul.f32 %v5034_v19, %v6417_v34  ;;  %v4818_v34 = vld [vmem:[%s6859_s5 + $0x18] sm:$0xff]  }
 0xe28   :  { %4641 = vmatpush3.bf16.msra.mxu0 %v4818_v34 }
 0xe29   :  { %v2913_v16 = vpack.c.bf16 %v2909_v9, %v2908_v8  ;;  %4654 = vmatprep.subr.bf16.mxu0 %v5117_v37 }
 0xe2a   :  { %4591 = vmatmul.mubr.msk.bf16.vlgmr.msra.gmra.mrb[72].mxu1 %vm529_vm4, %v2711_v38 }
 0xe2b   :  { %4621 = vmatpush3.bf16.msra.mxu1 %v2916_v32  ;;  %4594 = vmatprep.mubr.msk.bf16.mxu1 %vm5118_vm2, %v5117_v37 }
 0xe2c   :  { %4622 = vmatprep.subr.bf16.mxu1 %v5117_v37 }
 0xe2d   :  { %v5036_v13 = vpop.eup %5035 }
 0xe2e   :  { %v5038_v46 = vpop.eup %5037  ;;  %v2911_v53 = vmul.f32 %v5036_v13, %v6429_v14 }
 0xe2f   :  { %4623 = vmatpush3.bf16.msra.mxu1 %v2917_v50  ;;  %v2910_v11 = vmul.f32 %v5038_v46, %v6425_v41 }
 0xe30   :  { %4624 = vmatprep.subr.bf16.mxu1 %v5117_v37 }
 0xe31   :  { %v2914_v57 = vpack.c.bf16 %v2911_v53, %v2910_v11 }
 0xe32   :  { %4595 = vmatmul.mubr.msk.bf16.gmra.mrb[76].mxu1 %vm529_vm4, %v2712_v43 }
 0xe33   :  { %4625 = vmatpush3.bf16.msra.mxu1 %v2929_v42  ;;  %4598 = vmatprep.mubr.msk.bf16.mxu1 %vm5118_vm2, %v5117_v37 }
 0xe34   :  { %4670 = vmatprep.subr.bf16.mxu1 %v5117_v37 }
 0xe3a   :  { %4599 = vmatmul.mubr.msk.bf16.gmra.mrb[80].mxu1 %vm529_vm4, %v2713_v3 }
 0xe3b   :  { %4626 = vmatprep.mubr.msk.bf16.mxu1 %vm5118_vm2, %v5117_v37 }
 0xe42   :  { %4627 = vmatmul.mubr.msk.bf16.vlgmr.msra.gmra.mrb[72].mxu1 %vm529_vm4, %v2913_v16 }
 0xe43   :  { %4630 = vmatprep.mubr.msk.bf16.mxu1 %vm5118_vm2, %v5117_v37 }
 0xe4a   :  { %4631 = vmatmul.mubr.msk.bf16.gmra.mrb[76].mxu1 %vm529_vm4, %v2914_v57 }
 0xe4b   :  { %4634 = vmatprep.mubr.msk.bf16.mxu1 %vm5118_vm2, %v5117_v37 }
 0xe92   :  { %v2902_v7 = vpop.xlane.xlu1 %2901 }
 0xe93   :  { %5039 = vrcp.f32 %v2902_v7 }
 0xe9d   :  { %v5040_v40 = vpop.eup %5039 }
 0xe9e   :  { %v2912_v14 = vmul.f32 %v5040_v40, %v6451_v58 }
 0xea0   :  { %v2915_v25 = vpack.c.bf16 %v2912_v14, %v2912_v14 }
 0xea2   :  { %4635 = vmatmul.mubr.msk.bf16.gmra.mrb[80].mxu1 %vm529_vm4, %v2915_v25  ;;  %vm3810_vm4 = vcmask 0  }
 0xea3   :  { %4686 = vmatprep.mubr.msk.bf16.mxu1 %vm5118_vm2, %v5117_v37 }
 0xf15   :  { %v2965_v41 = vpop.f32.mrb[72].mxu1 }
 0xf16   :  { %v4628_v35 = vpop.f32.mrb[73].mxu1 }
 0xf17   :  { %v2968_v36 = vpop.f32.mrb[74].mxu1  ;;  %v4820_v35 = vld [vmem:[%s6812_s15 + $0x18] sm:$0xff]  }
 0xf18   :  { %v2992_v12 = vpack.c.bf16 %v2968_v36, %v2965_v41  ;;  %v4629_v61 = vpop.f32.mrb[75].mxu1  ;;  %v4819_v41 = vld [vmem:[%s6812_s15 + $0x10] sm:$0xff]  }
 0xf1a   :  { %4643 = vmatmul.mubr.msk.bf16.vlgmr.msra.gmra.mrb[144].mxu0 %vm96_vm0, %v2992_v12 }
 0xf1b   :  { %4646 = vmatprep.mubr.msk.bf16.mxu0 %vm5118_vm2, %v5117_v37  ;;  %4655 = vmatpush3.bf16.msra.mxu0 %v4819_v41 }
 0xf1c   :  { %4656 = vmatprep.subr.bf16.mxu0 %v5117_v37 }
 0xf1d   :  { %v2973_v60 = vpop.f32.mrb[76].mxu1 }
 0xf1e   :  { %v4632_v2 = vpop.f32.mrb[77].mxu1 }
 0xf1f   :  { %v2976_v17 = vpop.f32.mrb[78].mxu1  ;;  %4657 = vmatpush3.bf16.msra.mxu0 %v4820_v35 }
 0xf20   :  { %v2993_v58 = vpack.c.bf16 %v2976_v17, %v2973_v60  ;;  %v4633_v20 = vpop.f32.mrb[79].mxu1  ;;  %4698 = vmatprep.subr.bf16.mxu0 %v5117_v37 }
 0xf22   :  { %4647 = vmatmul.mubr.msk.bf16.gmra.mrb[148].mxu0 %vm96_vm0, %v2993_v58 }
 0xf23   :  { %4650 = vmatprep.mubr.msk.bf16.mxu0 %vm5118_vm2, %v5117_v37 }
 0xf75   :  { %v2981_v63 = vpop.f32.mrb[80].mxu1 }
 0xf76   :  { %v2994_v4 = vpack.c.bf16 %v2981_v63, %v2981_v63  ;;  %v4636_v49 = vpop.f32.mrb[81].mxu1 }
 0xf77   :  { %v2984_v15 = vpop.f32.mrb[82].mxu1 }
 0xf78   :  { %v4637_v18 = vpop.f32.mrb[83].mxu1  ;;  %4651 = vmatmul.mubr.msk.bf16.gmra.mrb[152].mxu0 %vm96_vm0, %v2994_v4 }
 0xf79   :  { %4658 = vmatprep.mubr.msk.bf16.mxu0 %vm5118_vm2, %v5117_v37 }
 0xfed   :  { %v3063_v28 = vpop.f32.mrb[144].mxu0 }
 0xfee   :  { %v3064_v5 = vadd.f32 %v3966_v62, %v3063_v28  ;;  %v4644_v45 = vpop.f32.mrb[145].mxu0 }
 0xfef   :  { %v3066_v10 = vpop.f32.mrb[146].mxu0 }
 0xff0   :  { %v6545_v23 = vadd.f32 %v3064_v5, %v5997_v6  ;;  %v3067_v29 = vadd.f32 %v3966_v62, %v3066_v10  ;;  %v4645_v52 = vpop.f32.mrb[147].mxu0 }
 0xff2   :  { %v6548_v24 = vadd.f32 %v3067_v29, %v6000_v47  ;;  %v3094_v26 = vsel %vm96_vm0, %v6545_v23, 0.0  ;;  %v3974_v29 = vld [vmem:[%s6810_s13 + $0x1] ss:$0 sm:$0xff] }
 0xff3   :  { %3095 = vadd.xlane.f32.xlu0 %v3094_v26 }
 0xff4   :  { %v3097_v33 = vsel %vm96_vm0, %v6548_v24, 0.0 }
 0xff5   :  { %3098 = vadd.xlane.f32.xlu1 %v3097_v33  ;;  %v3071_v38 = vpop.f32.mrb[148].mxu0 }
 0xff6   :  { %v3072_v1 = vadd.f32 %v3966_v62, %v3071_v38  ;;  %v4648_v32 = vpop.f32.mrb[149].mxu0 }
 0xff7   :  { %v3074_v31 = vpop.f32.mrb[150].mxu0 }
 0xff8   :  { %v6555_v6 = vadd.f32 %v3072_v1, %v6007_v55  ;;  %v3075_v48 = vadd.f32 %v3966_v62, %v3074_v31  ;;  %v4649_v39 = vpop.f32.mrb[151].mxu0  ;;  %v3975_v1 = vld [vmem:[%s6811_s14 + $0x1] ss:$0 sm:$0xff] }
 0xffa   :  { %v6558_v47 = vadd.f32 %v3075_v48, %v6010_v59  ;;  %v3100_v50 = vsel %vm96_vm0, %v6555_v6, 0.0 }
 0xffb   :  { %3101 = vadd.xlane.f32.xlu0 %v3100_v50 }
 0xffc   :  { %v3103_v54 = vsel %vm96_vm0, %v6558_v47, 0.0 }
 0xffd   :  { %3104 = vadd.xlane.f32.xlu1 %v3103_v54 }
0x104b   :  { %v3079_v21 = vpop.f32.mrb[152].mxu0 }
0x104c   :  { %v3080_v27 = vadd.f32 %v3966_v62, %v3079_v21  ;;  %v4652_v43 = vpop.f32.mrb[153].mxu0 }
0x104d   :  { %v3082_v44 = vpop.f32.mrb[154].mxu0 }
0x104e   :  { %v6565_v55 = vadd.f32 %v3080_v27, %v6017_v0  ;;  %v4653_v42 = vpop.f32.mrb[155].mxu0 }
0x1050   :  { %v3106_v59 = vsel %vm109_vm1, %v6565_v55, 0.0 }
0x1051   :  { %3107 = vadd.xlane.f32.xlu0 %v3106_v59 }
0x1080   :  { %v3096_v30 = vpop.xlane.xlu0 %3095 }
0x1081   :  { %v3109_v22 = vmul.f32 0.03125, %v3096_v30 }
0x1082   :  { %v3099_v51 = vpop.xlane.xlu1 %3098 }
0x1083   :  { %v3114_v3 = vsub.f32 %v6545_v23, %v3109_v22  ;;  %v3110_v56 = vmul.f32 0.03125, %v3099_v51 }
0x1085   :  { %v3115_v19 = vsub.f32 %v6548_v24, %v3110_v56  ;;  %v3119_v9 = vmul.f32 %v3114_v3, %v3114_v3 }
0x1087   :  { %v3124_v8 = vsel %vm96_vm0, %v3119_v9, 0.0  ;;  %v3120_v16 = vmul.f32 %v3115_v19, %v3115_v19 }
0x1088   :  { %v3102_v13 = vpop.xlane.xlu0 %3101  ;;  %3125 = vadd.xlane.f32.xlu1 %v3124_v8 }
0x1089   :  { %v3111_v0 = vmul.f32 0.03125, %v3102_v13  ;;  %v3127_v46 = vsel %vm96_vm0, %v3120_v16, 0.0  ;;  %v4821_v13 = vld [vmem:[%s6814_s17 + $0x40] sm:$0xff]  }
0x108a   :  { %v3105_v53 = vpop.xlane.xlu1 %3104  ;;  %3128 = vadd.xlane.f32.xlu0 %v3127_v46  ;;  %4671 = vmatpush3.bf16.msra.mxu1 %v4821_v13  ;;  %v4823_v46 = vld [vmem:[%s6814_s17 + $0x50] sm:$0xff]  }
0x108b   :  { %v3116_v11 = vsub.f32 %v6555_v6, %v3111_v0  ;;  %v3112_v57 = vmul.f32 0.03125, %v3105_v53  ;;  %4672 = vmatprep.subr.bf16.mxu1 %v5117_v37  ;;  %v4822_v0 = vld [vmem:[%s6814_s17 + $0x48] sm:$0xff]   ;;  %v4824_v53 = vld [vmem:[%s6814_s17 + $0x58] sm:$0xff]  }
0x108d   :  { %v3117_v7 = vsub.f32 %v6558_v47, %v3112_v57  ;;  %v3121_v34 = vmul.f32 %v3116_v11, %v3116_v11  ;;  %v4826_v57 = vld [vmem:[%s6814_s17 + $0x68] sm:$0xff]  }
0x108e   :  { %4673 = vmatpush3.bf16.msra.mxu1 %v4822_v0 }
0x108f   :  { %v3130_v40 = vsel %vm96_vm0, %v3121_v34, 0.0  ;;  %v3122_v14 = vmul.f32 %v3117_v7, %v3117_v7  ;;  %4674 = vmatprep.subr.bf16.mxu1 %v5117_v37  ;;  %v4828_v34 = vld [vmem:[%s6814_s17 + $0x78] sm:$0xff]  }
0x1090   :  { %3131 = vadd.xlane.f32.xlu1 %v3130_v40  ;;  %v6636_v40 = vld [vmem:[%s6813_s16 + $0x1] ss:$0 sm:$0xff] }
0x1091   :  { %v3133_v25 = vsel %vm96_vm0, %v3122_v14, 0.0 }
0x1092   :  { %3134 = vadd.xlane.f32.xlu0 %v3133_v25  ;;  %4675 = vmatpush3.bf16.msra.mxu1 %v4823_v46 }
0x1093   :  { %4676 = vmatprep.subr.bf16.mxu1 %v5117_v37 }
0x1096   :  { %4677 = vmatpush3.bf16.msra.mxu1 %v4824_v53 }
0x1097   :  { %4678 = vmatprep.subr.bf16.mxu1 %v5117_v37 }
0x10de   :  { %v3108_v36 = vpop.xlane.xlu0 %3107 }
0x10df   :  { %v3113_v12 = vmul.f32 0.03125, %v3108_v36 }
0x10e1   :  { %v3118_v61 = vsub.f32 %v6565_v55, %v3113_v12 }
0x10e3   :  { %v3123_v60 = vmul.f32 %v3118_v61, %v3118_v61 }
0x10e5   :  { %v3136_v2 = vsel %vm109_vm1, %v3123_v60, 0.0 }
0x10e6   :  { %3137 = vadd.xlane.f32.xlu1 %v3136_v2 }
0x1115   :  { %v3126_v17 = vpop.xlane.xlu1 %3125 }
0x1116   :  { %v3139_v58 = vmul.f32 0.03125, %v3126_v17 }
0x1117   :  { %v3129_v20 = vpop.xlane.xlu0 %3128 }
0x1118   :  { %v3144_v63 = vadd.f32 1e-05, %v3139_v58  ;;  %v3140_v4 = vmul.f32 0.03125, %v3129_v20 }
0x111a   :  { %5041 = vrsqrt.f32 %v3144_v63  ;;  %v3145_v49 = vadd.f32 1e-05, %v3140_v4 }
0x111c   :  { %5043 = vrsqrt.f32 %v3145_v49 }
0x111d   :  { %v3132_v15 = vpop.xlane.xlu1 %3131 }
0x111e   :  { %v3141_v18 = vmul.f32 0.03125, %v3132_v15 }
0x111f   :  { %v3135_v62 = vpop.xlane.xlu0 %3134 }
0x1120   :  { %v3146_v28 = vadd.f32 1e-05, %v3141_v18  ;;  %v3142_v5 = vmul.f32 0.03125, %v3135_v62 }
0x1122   :  { %5045 = vrsqrt.f32 %v3146_v28  ;;  %v3147_v45 = vadd.f32 1e-05, %v3142_v5 }
0x1124   :  { %v5042_v10 = vpop.eup %5041  ;;  %5047 = vrsqrt.f32 %v3147_v45 }
0x1125   :  { %v3154_v52 = vmul.f32 %v5042_v10, %v3114_v3 }
0x1126   :  { %v5044_v26 = vpop.eup %5043 }
0x1127   :  { %v3165_v33 = vmul.f32 %v3974_v29, %v3154_v52  ;;  %v3155_v38 = vmul.f32 %v5044_v26, %v3115_v19 }
0x1129   :  { %v3166_v32 = vmul.f32 %v3974_v29, %v3155_v38  ;;  %v3176_v31 = vadd.f32 %v3975_v1, %v3165_v33 }
0x112b   :  { %v3177_v48 = vadd.f32 %v3975_v1, %v3166_v32 }
0x112c   :  { %v5046_v39 = vpop.eup %5045 }
0x112d   :  { %v3156_v50 = vmul.f32 %v5046_v39, %v3116_v11  ;;  %v3181_v54 = vpack.c.bf16 %v3177_v48, %v3176_v31  ;;  %v4825_v11 = vld [vmem:[%s6814_s17 + $0x60] sm:$0xff]  }
0x112e   :  { %v5048_v21 = vpop.eup %5047  ;;  %4679 = vmatpush3.bf16.msra.mxu1 %v4825_v11 }
0x112f   :  { %v3157_v27 = vmul.f32 %v5048_v21, %v3117_v7  ;;  %4659 = vmatmul.mubr.msk.bf16.vlgmr.msra.gmra.mrb[156].mxu0 %vm96_vm0, %v3181_v54  ;;  %v3167_v43 = vmul.f32 %v3974_v29, %v3156_v50  ;;  %4680 = vmatprep.subr.bf16.mxu1 %v5117_v37  ;;  %v4827_v7 = vld [vmem:[%s6814_s17 + $0x70] sm:$0xff]   ;;  %s6861_s17 = sld [smem:[#allocation16_spill]] }
0x1130   :  { %4662 = vmatprep.mubr.msk.bf16.mxu0 %vm5118_vm2, %v5117_v37 }
0x1131   :  { %v3168_v44 = vmul.f32 %v3974_v29, %v3157_v27  ;;  %v3178_v42 = vadd.f32 %v3975_v1, %v3167_v43 }
0x1132   :  { %4681 = vmatpush3.bf16.msra.mxu1 %v4826_v57 }
0x1133   :  { %v3179_v59 = vadd.f32 %v3975_v1, %v3168_v44  ;;  %4682 = vmatprep.subr.bf16.mxu1 %v5117_v37 }
0x1135   :  { %v3182_v30 = vpack.c.bf16 %v3179_v59, %v3178_v42 }
0x1136   :  { %4683 = vmatpush3.bf16.msra.mxu1 %v4827_v7 }
0x1137   :  { %4663 = vmatmul.mubr.msk.bf16.gmra.mrb[160].mxu0 %vm96_vm0, %v3182_v30  ;;  %4684 = vmatprep.subr.bf16.mxu1 %v5117_v37 }
0x1138   :  { %4666 = vmatprep.mubr.msk.bf16.mxu0 %vm5118_vm2, %v5117_v37 }
0x113a   :  { %4685 = vmatpush3.bf16.msra.mxu1 %v4828_v34 }
0x1173   :  { %v3138_v22 = vpop.xlane.xlu1 %3137 }
0x1174   :  { %v3143_v51 = vmul.f32 0.03125, %v3138_v22 }
0x1176   :  { %v3148_v3 = vadd.f32 1e-05, %v3143_v51 }
0x1178   :  { %5049 = vrsqrt.f32 %v3148_v3 }
0x1182   :  { %v5050_v56 = vpop.eup %5049 }
0x1183   :  { %v3158_v19 = vmul.f32 %v5050_v56, %v3118_v61 }
0x1185   :  { %v3169_v9 = vmul.f32 %v3974_v29, %v3158_v19 }
0x1187   :  { %v3180_v8 = vadd.f32 %v3975_v1, %v3169_v9 }
0x1189   :  { %v3183_v16 = vpack.c.bf16 %v3180_v8, %v3180_v8 }
0x118b   :  { %4667 = vmatmul.mubr.msk.bf16.gmra.mrb[164].mxu0 %vm96_vm0, %v3183_v16 }
0x118c   :  { %4702 = vmatprep.mubr.msk.bf16.mxu0 %vm5118_vm2, %v5117_v37 }
0x1202   :  { %v3252_v14 = vpop.f32.mrb[156].mxu0 }
0x1203   :  { %v6639_v25 = vadd.f32 %v6636_v40, %v3252_v14  ;;  %v4660_v41 = vpop.f32.mrb[157].mxu0 }
0x1204   :  { %v3255_v35 = vpop.f32.mrb[158].mxu0 }
0x1205   :  { %v6642_v36 = vmul.f32 0.70710677, %v6639_v25  ;;  %v6645_v12 = vadd.f32 %v6636_v40, %v3255_v35  ;;  %v4661_v61 = vpop.f32.mrb[159].mxu0 }
0x1207   :  { %v3284_v60 = vand.u32 2147483647, %v6642_v36  ;;  %v6649_v2 = vmul.f32 0.70710677, %v6645_v12  ;;  %vm3379_vm11 = vcmp.lt.f32.partialorder %v6642_v36, 0.0 }
0x1209   :  { %v3289_v17 = vmul.f32 0.3275911, %v3284_v60  ;;  %v3285_v58 = vand.u32 2147483647, %v6649_v2  ;;  %v3349_v26 = vsub.f32 0.0, %v3284_v60  ;;  %vm3380_vm12 = vcmp.lt.f32.partialorder %v6649_v2, 0.0 }
0x120a   :  { %v3260_v20 = vpop.f32.mrb[160].mxu0 }
0x120b   :  { %v3294_v63 = vadd.f32 1.0, %v3289_v17  ;;  %v3290_v4 = vmul.f32 0.3275911, %v3285_v58  ;;  %v4664_v49 = vpop.f32.mrb[161].mxu0  ;;  %v6653_v15 = vadd.f32 %v6636_v40, %v3260_v20  ;;  %v3350_v32 = vsub.f32 0.0, %v3285_v58 }
0x120c   :  { %v3263_v18 = vpop.f32.mrb[162].mxu0  ;;  %v3354_v48 = vmul.f32 %v3349_v26, %v3284_v60 }
0x120d   :  { %5051 = vrcp.f32 %v3294_v63  ;;  %v3295_v62 = vadd.f32 1.0, %v3290_v4  ;;  %v4665_v28 = vpop.f32.mrb[163].mxu0  ;;  %v6656_v5 = vmul.f32 0.70710677, %v6653_v15  ;;  %v6659_v45 = vadd.f32 %v6636_v40, %v3263_v18 }
0x120e   :  { %v3355_v27 = vmul.f32 %v3350_v32, %v3285_v58  ;;  %v3359_v43 = vmul.f32 1.442695, %v3354_v48 }
0x120f   :  { %5053 = vrcp.f32 %v3295_v62  ;;  %v3286_v10 = vand.u32 2147483647, %v6656_v5  ;;  %v6663_v29 = vmul.f32 0.70710677, %v6659_v45  ;;  %vm3381_vm13 = vcmp.lt.f32.partialorder %v6656_v5, 0.0 }
0x1210   :  { %v3361_v51 = vmul.f32 1.442695, %v3355_v27 }
0x1211   :  { %v3291_v52 = vmul.f32 0.3275911, %v3286_v10  ;;  %v3287_v33 = vand.u32 2147483647, %v6663_v29  ;;  %v3351_v59 = vsub.f32 0.0, %v3286_v10  ;;  %vm3382_vm14 = vcmp.lt.f32.partialorder %v6663_v29, 0.0 }
0x1213   :  { %v3296_v38 = vadd.f32 1.0, %v3291_v52  ;;  %v3292_v1 = vmul.f32 0.3275911, %v3287_v33  ;;  %v3352_v56 = vsub.f32 0.0, %v3287_v33  ;;  %v3356_v8 = vmul.f32 %v3351_v59, %v3286_v10 }
0x1215   :  { %5055 = vrcp.f32 %v3296_v38  ;;  %v3297_v39 = vadd.f32 1.0, %v3292_v1  ;;  %v3357_v57 = vmul.f32 %v3352_v56, %v3287_v33  ;;  %v3363_v34 = vmul.f32 1.442695, %v3356_v8 }
0x1216   :  { %v3275_v56 = vmul.f32 0.5, %v6645_v12  ;;  %v3276_v12 = vmul.f32 0.5, %v6653_v15 }
0x1217   :  { %v5052_v31 = vpop.eup %5051  ;;  %5057 = vrcp.f32 %v3297_v39  ;;  %v3365_v20 = vmul.f32 1.442695, %v3357_v57 }
0x1218   :  { %v3304_v50 = vmul.f32 1.0614054, %v5052_v31  ;;  %5059 = vpow2.f32 %v3359_v43 }
0x1219   :  { %v5054_v54 = vpop.eup %5053  ;;  %5061 = vpow2.f32 %v3361_v51 }
0x121a   :  { %v3309_v21 = vadd.f32 -1.4531521, %v3304_v50  ;;  %v3305_v44 = vmul.f32 1.0614054, %v5054_v54  ;;  %5063 = vpow2.f32 %v3363_v34 }
0x121b   :  { %5065 = vpow2.f32 %v3365_v20 }
0x121c   :  { %v3314_v42 = vmul.f32 %v5052_v31, %v3309_v21  ;;  %v3310_v30 = vadd.f32 -1.4531521, %v3305_v44 }
0x121e   :  { %v3319_v22 = vadd.f32 1.4214138, %v3314_v42  ;;  %v3315_v3 = vmul.f32 %v5054_v54, %v3310_v30 }
0x121f   :  { %v5056_v19 = vpop.eup %5055 }
0x1220   :  { %v3324_v9 = vmul.f32 %v5052_v31, %v3319_v22  ;;  %v3320_v16 = vadd.f32 1.4214138, %v3315_v3  ;;  %v3306_v13 = vmul.f32 1.0614054, %v5056_v19  ;;  %v3274_v3 = vmul.f32 0.5, %v6639_v25 }
0x1221   :  { %v5058_v46 = vpop.eup %5057 }
0x1222   :  { %v3329_v0 = vadd.f32 -0.28449672, %v3324_v9  ;;  %v3325_v53 = vmul.f32 %v5054_v54, %v3320_v16  ;;  %v3311_v11 = vadd.f32 -1.4531521, %v3306_v13  ;;  %v3307_v14 = vmul.f32 1.0614054, %v5058_v46  ;;  %v5060_v49 = vpop.eup %5059 }
0x1223   :  { %v5062_v33 = vpop.eup %5061 }
0x1224   :  { %v3334_v7 = vmul.f32 %v5052_v31, %v3329_v0  ;;  %v3330_v41 = vadd.f32 -0.28449672, %v3325_v53  ;;  %v3316_v35 = vmul.f32 %v5056_v19, %v3311_v11  ;;  %v3312_v60 = vadd.f32 -1.4531521, %v3307_v14  ;;  %v5064_v59 = vpop.eup %5063 }
0x1225   :  { %v5066_v36 = vpop.eup %5065 }
0x1226   :  { %v3339_v61 = vadd.f32 0.2548296, %v3334_v7  ;;  %v3335_v17 = vmul.f32 %v5054_v54, %v3330_v41  ;;  %v3321_v58 = vadd.f32 1.4214138, %v3316_v35  ;;  %v3317_v4 = vmul.f32 %v5058_v46, %v3312_v60 }
0x1228   :  { %v3344_v63 = vmul.f32 %v5052_v31, %v3339_v61  ;;  %v3340_v18 = vadd.f32 0.2548296, %v3335_v17  ;;  %v3326_v62 = vmul.f32 %v5056_v19, %v3321_v58  ;;  %v3322_v10 = vadd.f32 1.4214138, %v3317_v4 }
0x122a   :  { %v3369_v28 = vmul.f32 %v5060_v49, %v3344_v63  ;;  %v3345_v52 = vmul.f32 %v5054_v54, %v3340_v18  ;;  %v3331_v26 = vadd.f32 -0.28449672, %v3326_v62  ;;  %v3327_v1 = vmul.f32 %v5058_v46, %v3322_v10 }
0x122c   :  { %v3374_v38 = vsub.f32 1.0, %v3369_v28  ;;  %v3370_v32 = vmul.f32 %v5062_v33, %v3345_v52  ;;  %v3336_v48 = vmul.f32 %v5056_v19, %v3331_v26  ;;  %v3332_v50 = vadd.f32 -0.28449672, %v3327_v1 }
0x122e   :  { %v3384_v39 = vsub.f32 0.0, %v3374_v38  ;;  %v3375_v31 = vsub.f32 1.0, %v3370_v32  ;;  %v3341_v21 = vadd.f32 0.2548296, %v3336_v48  ;;  %v3337_v43 = vmul.f32 %v5058_v46, %v3332_v50 }
0x1230   :  { %v3389_v27 = vsel %vm3379_vm11, %v3384_v39, %v3374_v38  ;;  %v3385_v44 = vsub.f32 0.0, %v3375_v31  ;;  %v3346_v42 = vmul.f32 %v5056_v19, %v3341_v21  ;;  %v3342_v54 = vadd.f32 0.2548296, %v3337_v43 }
0x1231   :  { %v3394_v30 = vadd.f32 1.0, %v3389_v27 }
0x1232   :  { %v3390_v22 = vsel %vm3380_vm12, %v3385_v44, %v3375_v31  ;;  %v3371_v51 = vmul.f32 %v5064_v59, %v3346_v42  ;;  %v3347_v8 = vmul.f32 %v5058_v46, %v3342_v54  ;;  %v3277_v46 = vmul.f32 0.5, %v6659_v45  ;;  %v4004_v59 = vld [vmem:[%s6815_s18 + $0x1] ss:$0 sm:$0xff] }
0x1233   :  { %v3395_v9 = vadd.f32 1.0, %v3390_v22  ;;  %v3399_v13 = vmul.f32 %v3394_v30, %v3274_v3 }
0x1234   :  { %v3376_v16 = vsub.f32 1.0, %v3371_v51  ;;  %v3372_v53 = vmul.f32 %v5066_v36, %v3347_v8 }
0x1235   :  { %v3400_v0 = vmul.f32 %v3395_v9, %v3275_v56 }
0x1236   :  { %v3386_v11 = vsub.f32 0.0, %v3376_v16  ;;  %v3377_v57 = vsub.f32 1.0, %v3372_v53 }
0x1237   :  { %v3404_v19 = vpack.c.bf16 %v3400_v0, %v3399_v13 }
0x1238   :  { %v3391_v2 = vsel %vm3381_vm13, %v3386_v11, %v3376_v16  ;;  %v3387_v7 = vsub.f32 0.0, %v3377_v57 }
0x1239   :  { %4687 = vmatmul.mubr.bf16.vlgmr.msra.gmra.mrb[84].mxu1 %v3404_v19  ;;  %v3396_v34 = vadd.f32 1.0, %v3391_v2 }
0x123a   :  { %4690 = vmatprep.mubr.msk.bf16.mxu1 %vm5118_vm2, %v5117_v37  ;;  %v3392_v25 = vsel %vm3382_vm14, %v3387_v7, %v3377_v57 }
0x123b   :  { %v3397_v14 = vadd.f32 1.0, %v3392_v25  ;;  %v3401_v41 = vmul.f32 %v3396_v34, %v3276_v12 }
0x123d   :  { %v3402_v35 = vmul.f32 %v3397_v14, %v3277_v46 }
0x123f   :  { %v3405_v61 = vpack.c.bf16 %v3402_v35, %v3401_v41 }
0x1241   :  { %4691 = vmatmul.mubr.bf16.gmra.mrb[88].mxu1 %v3405_v61 }
0x1242   :  { %4694 = vmatprep.mubr.msk.bf16.mxu1 %vm5118_vm2, %v5117_v37 }
0x125e   :  { %v3268_v5 = vpop.f32.mrb[164].mxu0 }
0x125f   :  { %v3269_v60 = vadd.f32 %v6636_v40, %v3268_v5  ;;  %v4668_v29 = vpop.f32.mrb[165].mxu0 }
0x1260   :  { %v3271_v17 = vpop.f32.mrb[166].mxu0 }
0x1261   :  { %v3283_v58 = vmul.f32 0.70710677, %v3269_v60  ;;  %v4669_v20 = vpop.f32.mrb[167].mxu0  ;;  %v3278_v27 = vmul.f32 0.5, %v3269_v60 }
0x1263   :  { %v3288_v63 = vand.u32 2147483647, %v3283_v58  ;;  %vm3383_vm15 = vcmp.lt.f32.partialorder %v3283_v58, 0.0 }
0x1265   :  { %v3293_v4 = vmul.f32 0.3275911, %v3288_v63  ;;  %v3353_v45 = vsub.f32 0.0, %v3288_v63 }
0x1267   :  { %v3298_v15 = vadd.f32 1.0, %v3293_v4  ;;  %v3358_v18 = vmul.f32 %v3353_v45, %v3288_v63 }
0x1269   :  { %5067 = vrcp.f32 %v3298_v15  ;;  %v3367_v10 = vmul.f32 1.442695, %v3358_v18 }
0x126b   :  { %5069 = vpow2.f32 %v3367_v10 }
0x1273   :  { %v5068_v49 = vpop.eup %5067 }
0x1274   :  { %v3308_v62 = vmul.f32 1.0614054, %v5068_v49 }
0x1275   :  { %v5070_v48 = vpop.eup %5069 }
0x1276   :  { %v3313_v28 = vadd.f32 -1.4531521, %v3308_v62 }
0x1278   :  { %v3318_v52 = vmul.f32 %v5068_v49, %v3313_v28 }
0x127a   :  { %v3323_v26 = vadd.f32 1.4214138, %v3318_v52 }
0x127c   :  { %v3328_v33 = vmul.f32 %v5068_v49, %v3323_v26  ;;  %v4829_v26 = vld [vmem:[%s6818_s21] sm:$0xff]  }
0x127d   :  { %4699 = vmatpush3.bf16.msra.mxu0 %v4829_v26 }
0x127e   :  { %v3333_v38 = vadd.f32 -0.28449672, %v3328_v33  ;;  %4700 = vmatprep.subr.bf16.mxu0 %v5117_v37  ;;  %v4830_v33 = vld [vmem:[%s6818_s21 + $0x8] sm:$0xff]  }
0x1280   :  { %v3338_v40 = vmul.f32 %v5068_v49, %v3333_v38 }
0x1281   :  { %4701 = vmatpush3.bf16.msra.mxu0 %v4830_v33 }
0x1282   :  { %v3343_v1 = vadd.f32 0.2548296, %v3338_v40 }
0x1284   :  { %v3348_v32 = vmul.f32 %v5068_v49, %v3343_v1 }
0x1286   :  { %v3373_v39 = vmul.f32 %v5070_v48, %v3348_v32 }
0x1288   :  { %v3378_v50 = vsub.f32 1.0, %v3373_v39 }
0x128a   :  { %v3388_v31 = vsub.f32 0.0, %v3378_v50 }
0x128c   :  { %v3393_v21 = vsel %vm3383_vm15, %v3388_v31, %v3378_v50 }
0x128d   :  { %v3398_v43 = vadd.f32 1.0, %v3393_v21 }
0x128f   :  { %v3403_v44 = vmul.f32 %v3398_v43, %v3278_v27 }
0x1291   :  { %v3406_v42 = vpack.c.bf16 %v3403_v44, %v3403_v44 }
0x1293   :  { %4695 = vmatmul.mubr.bf16.gmra.mrb[92].mxu1 %v3406_v42 }
0x130c   :  { %v3514_v30 = vpop.f32.mrb[84].mxu1 }
0x130d   :  { %v3515_v54 = vadd.f32 %v4004_v59, %v3514_v30  ;;  %v4688_v22 = vpop.f32.mrb[85].mxu1 }
0x130e   :  { %v3517_v51 = vpop.f32.mrb[86].mxu1 }
0x130f   :  { %v3536_v3 = vadd.f32 %v3515_v54, %v6545_v23  ;;  %v3518_v56 = vadd.f32 %v4004_v59, %v3517_v51  ;;  %v4689_v9 = vpop.f32.mrb[87].mxu1 }
0x1311   :  { %v3537_v8 = vadd.f32 %v3518_v56, %v6548_v24  ;;  %v3543_v36 = vsel %vm96_vm0, %v3536_v3, 0.0 }
0x1312   :  { %3544 = vadd.xlane.f32.xlu0 %v3543_v36 }
0x1313   :  { %v3546_v16 = vsel %vm96_vm0, %v3537_v8, 0.0 }
0x1314   :  { %3547 = vadd.xlane.f32.xlu1 %v3546_v16  ;;  %v3522_v13 = vpop.f32.mrb[88].mxu1  ;;  %v4014_v16 = vld [vmem:[%s6817_s20] ss:$0 sm:$0xff] }
0x1315   :  { %v3523_v0 = vadd.f32 %v4004_v59, %v3522_v13  ;;  %v4692_v53 = vpop.f32.mrb[89].mxu1 }
0x1316   :  { %v3525_v11 = vpop.f32.mrb[90].mxu1 }
0x1317   :  { %v3538_v19 = vadd.f32 %v3523_v0, %v6555_v6  ;;  %v3526_v57 = vadd.f32 %v4004_v59, %v3525_v11  ;;  %v4693_v2 = vpop.f32.mrb[91].mxu1 }
0x1319   :  { %v3539_v23 = vadd.f32 %v3526_v57, %v6558_v47  ;;  %v3549_v7 = vsel %vm96_vm0, %v3538_v19, 0.0 }
0x131a   :  { %3550 = vadd.xlane.f32.xlu0 %v3549_v7 }
0x131b   :  { %v3552_v24 = vsel %vm96_vm0, %v3539_v23, 0.0 }
0x131c   :  { %3553 = vadd.xlane.f32.xlu1 %v3552_v24 }
0x1366   :  { %v3530_v34 = vpop.f32.mrb[92].mxu1 }
0x1367   :  { %v3531_v25 = vadd.f32 %v4004_v59, %v3530_v34  ;;  %v4696_v12 = vpop.f32.mrb[93].mxu1 }
0x1368   :  { %v3533_v46 = vpop.f32.mrb[94].mxu1 }
0x1369   :  { %v3540_v14 = vadd.f32 %v3531_v25, %v6565_v55  ;;  %v4697_v41 = vpop.f32.mrb[95].mxu1 }
0x136b   :  { %v3555_v35 = vsel %vm109_vm1, %v3540_v14, 0.0 }
0x136c   :  { %3556 = vadd.xlane.f32.xlu0 %v3555_v35 }
0x139f   :  { %v3545_v6 = vpop.xlane.xlu0 %3544 }
0x13a0   :  { %v3558_v61 = vmul.f32 0.03125, %v3545_v6 }
0x13a1   :  { %v3548_v5 = vpop.xlane.xlu1 %3547 }
0x13a2   :  { %v3563_v47 = vsub.f32 %v3536_v3, %v3558_v61  ;;  %v3559_v60 = vmul.f32 0.03125, %v3548_v5  ;;  %v4013_v3 = vld [vmem:[%s6816_s19] ss:$0 sm:$0xff] }
0x13a4   :  { %v3564_v29 = vsub.f32 %v3537_v8, %v3559_v60  ;;  %v3568_v17 = vmul.f32 %v3563_v47, %v3563_v47  ;;  %v4015_v60 = vld [vmem:[%s6819_s22] ss:$0 sm:$0xff] }
0x13a6   :  { %v3573_v58 = vsel %vm96_vm0, %v3568_v17, 0.0  ;;  %v3569_v20 = vmul.f32 %v3564_v29, %v3564_v29 }
0x13a7   :  { %3574 = vadd.xlane.f32.xlu1 %v3573_v58  ;;  %v3551_v63 = vpop.xlane.xlu0 %3550 }
0x13a8   :  { %v3576_v4 = vsel %vm96_vm0, %v3569_v20, 0.0  ;;  %v3560_v15 = vmul.f32 0.03125, %v3551_v63  ;;  %v3729_v63 = vld [vmem:[%s6820_s23 + $0x8] sm:$0xff] }
0x13a9   :  { %3577 = vadd.xlane.f32.xlu0 %v3576_v4  ;;  %v3554_v55 = vpop.xlane.xlu1 %3553 }
0x13aa   :  { %v3565_v45 = vsub.f32 %v3538_v19, %v3560_v15  ;;  %v3561_v49 = vmul.f32 0.03125, %v3554_v55 }
0x13ac   :  { %v3566_v18 = vsub.f32 %v3539_v23, %v3561_v49  ;;  %v3570_v62 = vmul.f32 %v3565_v45, %v3565_v45 }
0x13ae   :  { %v3579_v28 = vsel %vm96_vm0, %v3570_v62, 0.0  ;;  %v3571_v10 = vmul.f32 %v3566_v18, %v3566_v18 }
0x13af   :  { %3580 = vadd.xlane.f32.xlu1 %v3579_v28 }
0x13b0   :  { %v3582_v52 = vsel %vm96_vm0, %v3571_v10, 0.0  ;;  %v3730_v10 = vld [vmem:[%s6820_s23 + $0x10] sm:$0xff] }
0x13b1   :  { %3583 = vadd.xlane.f32.xlu0 %v3582_v52 }
0x13f9   :  { %v3557_v38 = vpop.xlane.xlu0 %3556 }
0x13fa   :  { %v3562_v40 = vmul.f32 0.03125, %v3557_v38 }
0x13fc   :  { %v3567_v1 = vsub.f32 %v3540_v14, %v3562_v40  ;;  %v3731_v40 = vld [vmem:[%s6820_s23 + $0x18] sm:$0xff] }
0x13fe   :  { %v3572_v32 = vmul.f32 %v3567_v1, %v3567_v1 }
0x1400   :  { %v3585_v48 = vsel %vm109_vm1, %v3572_v32, 0.0  ;;  %vm3721_vm1 = vcmask 523264  }
0x1401   :  { %3586 = vadd.xlane.f32.xlu1 %v3585_v48 }
0x1434   :  { %v3575_v39 = vpop.xlane.xlu1 %3574 }
0x1435   :  { %v3588_v50 = vmul.f32 0.03125, %v3575_v39 }
0x1436   :  { %v3578_v31 = vpop.xlane.xlu0 %3577 }
0x1437   :  { %v3593_v21 = vadd.f32 1e-05, %v3588_v50  ;;  %v3589_v27 = vmul.f32 0.03125, %v3578_v31 }
0x1439   :  { %5071 = vrsqrt.f32 %v3593_v21  ;;  %v3594_v43 = vadd.f32 1e-05, %v3589_v27 }
0x143b   :  { %5073 = vrsqrt.f32 %v3594_v43  ;;  %v3758_v43 = vld [vmem:[%s6861_s17] sm:$0xff] }
0x143c   :  { %v3581_v44 = vpop.xlane.xlu1 %3580 }
0x143d   :  { %v3590_v42 = vmul.f32 0.03125, %v3581_v44  ;;  %v3759_v44 = vld [vmem:[%s6861_s17 + $0x8] sm:$0xff] }
0x143e   :  { %v3584_v59 = vpop.xlane.xlu0 %3583 }
0x143f   :  { %v3595_v30 = vadd.f32 1e-05, %v3590_v42  ;;  %v3591_v54 = vmul.f32 0.03125, %v3584_v59 }
0x1441   :  { %5075 = vrsqrt.f32 %v3595_v30  ;;  %v3596_v22 = vadd.f32 1e-05, %v3591_v54  ;;  %v3760_v54 = vld [vmem:[%s6861_s17 + $0x10] sm:$0xff] }
0x1443   :  { %v5072_v51 = vpop.eup %5071  ;;  %5077 = vrsqrt.f32 %v3596_v22 }
0x1444   :  { %v3603_v56 = vmul.f32 %v5072_v51, %v3563_v47 }
0x1445   :  { %v5074_v9 = vpop.eup %5073 }
0x1446   :  { %v3614_v8 = vmul.f32 %v4013_v3, %v3603_v56  ;;  %v3604_v36 = vmul.f32 %v5074_v9, %v3564_v29  ;;  %v3761_v9 = vld [vmem:[%s6861_s17 + $0x18] sm:$0xff] }
0x1448   :  { %v3615_v13 = vmul.f32 %v4013_v3, %v3604_v36  ;;  %v3625_v0 = vadd.f32 %v4014_v16, %v3614_v8 }
0x144a   :  { %v3626_v53 = vadd.f32 %v4014_v16, %v3615_v13 }
0x144b   :  { %v5076_v11 = vpop.eup %5075 }
0x144c   :  { %v3630_v19 = vpack.c.bf16 %v3626_v53, %v3625_v0  ;;  %v3605_v57 = vmul.f32 %v5076_v11, %v3565_v45  ;;  %v3762_v0 = vld [vmem:[%s6861_s17 + $0x20] sm:$0x3] }
0x144d   :  { %v5078_v2 = vpop.eup %5077 }
0x144e   :  { %4703 = vmatmul.mubr.msk.bf16.vlgmr.msra.gmra.mrb[168].mxu0 %vm96_vm0, %v3630_v19  ;;  %v3606_v23 = vmul.f32 %v5078_v2, %v3566_v18  ;;  %v3616_v7 = vmul.f32 %v4013_v3, %v3605_v57  ;;  %v3796_v2 = vsel %vm3776_vm3, %v3762_v0, 0.0 }
0x144f   :  { %4706 = vmatprep.mubr.msk.bf16.mxu0 %vm5118_vm2, %v5117_v37 }
0x1450   :  { %v3617_v24 = vmul.f32 %v4013_v3, %v3606_v23  ;;  %v3627_v34 = vadd.f32 %v4014_v16, %v3616_v7 }
0x1452   :  { %v3628_v25 = vadd.f32 %v4014_v16, %v3617_v24 }
0x1454   :  { %v3631_v12 = vpack.c.bf16 %v3628_v25, %v3627_v34 }
0x1456   :  { %4707 = vmatmul.mubr.msk.bf16.gmra.mrb[172].mxu0 %vm96_vm0, %v3631_v12 }
0x1457   :  { %4710 = vmatprep.mubr.msk.bf16.mxu0 %vm5118_vm2, %v5117_v37  ;;  %v3728_v37 = vld [vmem:[%s6820_s23] sm:$0xff]  ;;  %vm3726_vm2 = vcmask 517120  }
0x148e   :  { %v3587_v46 = vpop.xlane.xlu1 %3586 }
0x148f   :  { %v3592_v14 = vmul.f32 0.03125, %v3587_v46 }
0x1491   :  { %v3597_v41 = vadd.f32 1e-05, %v3592_v14 }
0x1493   :  { %5079 = vrsqrt.f32 %v3597_v41 }
0x149d   :  { %v5080_v35 = vpop.eup %5079 }
0x149e   :  { %v3607_v6 = vmul.f32 %v5080_v35, %v3567_v1 }
0x14a0   :  { %v3618_v61 = vmul.f32 %v4013_v3, %v3607_v6  ;;  %v3732_v3 = vld [vmem:[%s6820_s23 + $0x20] sm:$0x3] }
0x14a2   :  { %v3629_v5 = vadd.f32 %v4014_v16, %v3618_v61 }
0x14a4   :  { %v3632_v47 = vpack.c.bf16 %v3629_v5, %v3629_v5 }
0x14a6   :  { %4711 = vmatmul.mubr.msk.bf16.gmra.mrb[176].mxu0 %vm96_vm0, %v3632_v47  ;;  %vm3768_vm0 = vcmask 7168  }
0x14a7   :  { %v3789_v42 = vsel %vm3768_vm0, %v3758_v43, 0.0  ;;  %v3790_v59 = vsel %vm3768_vm0, %v3759_v44, 0.0  ;;  %v3792_v22 = vsel %vm3768_vm0, %v3760_v54, 0.0  ;;  %v3794_v16 = vsel %vm3768_vm0, %v3761_v9, 0.0 }
0x14a8   :  { %v3791_v30 = vadd.f32 %v3790_v59, %v3789_v42 }
0x14aa   :  { %v3793_v56 = vadd.f32 %v3792_v22, %v3791_v30 }
0x14ac   :  { %v3795_v19 = vadd.f32 %v3794_v16, %v3793_v56 }
0x14ae   :  { %v3797_v7 = vadd.f32 %v3796_v2, %v3795_v19 }
0x1521   :  { %v3699_v29 = vpop.f32.mrb[168].mxu0 }
0x1522   :  { %v3700_v17 = vadd.f32 %v4015_v60, %v3699_v29  ;;  %v4704_v58 = vpop.f32.mrb[169].mxu0 }
0x1523   :  { %v3702_v20 = vpop.f32.mrb[170].mxu0 }
0x1524   :  { %3722 = vst.msk [vmem:[%s6822_s25] sm:$0xff] %vm3721_vm1, %v3700_v17  ;;  %v3733_v4 = vsub.f32 %v3700_v17, %v3728_v37  ;;  %v3703_v15 = vadd.f32 %v4015_v60, %v3702_v20  ;;  %v4705_v55 = vpop.f32.mrb[171].mxu0 }
0x1526   :  { %v3738_v45 = vmul.f32 %v3733_v4, %v3733_v4  ;;  %3723 = vst.msk [vmem:[%s6822_s25 + $0x8] sm:$0xff] %vm3721_vm1, %v3703_v15  ;;  %v3734_v49 = vsub.f32 %v3703_v15, %v3729_v63 }
0x1528   :  { %v3739_v18 = vmul.f32 %v3734_v49, %v3734_v49  ;;  %v3743_v62 = vsel %vm3721_vm1, %v3738_v45, 0.0 }
0x1529   :  { %3744 = vadd.xlane.f32.xlu0 %v3743_v62  ;;  %v3707_v28 = vpop.f32.mrb[172].mxu0 }
0x152a   :  { %v3746_v52 = vsel %vm3721_vm1, %v3739_v18, 0.0  ;;  %v3708_v26 = vadd.f32 %v4015_v60, %v3707_v28  ;;  %v4708_v33 = vpop.f32.mrb[173].mxu0 }
0x152b   :  { %3747 = vadd.xlane.f32.xlu1 %v3746_v52  ;;  %v3710_v38 = vpop.f32.mrb[174].mxu0 }
0x152c   :  { %3724 = vst.msk [vmem:[%s6822_s25 + $0x10] sm:$0xff] %vm3721_vm1, %v3708_v26  ;;  %v3735_v1 = vsub.f32 %v3708_v26, %v3730_v10  ;;  %v3711_v32 = vadd.f32 %v4015_v60, %v3710_v38  ;;  %v4709_v48 = vpop.f32.mrb[175].mxu0 }
0x152e   :  { %v3740_v39 = vmul.f32 %v3735_v1, %v3735_v1  ;;  %3725 = vst.msk [vmem:[%s6822_s25 + $0x18] sm:$0xff] %vm3721_vm1, %v3711_v32  ;;  %v3736_v50 = vsub.f32 %v3711_v32, %v3731_v40 }
0x1530   :  { %v3741_v31 = vmul.f32 %v3736_v50, %v3736_v50  ;;  %v3749_v21 = vsel %vm3721_vm1, %v3740_v39, 0.0 }
0x1531   :  { %3750 = vadd.xlane.f32.xlu0 %v3749_v21 }
0x1532   :  { %v3752_v27 = vsel %vm3721_vm1, %v3741_v31, 0.0 }
0x1533   :  { %3753 = vadd.xlane.f32.xlu1 %v3752_v27 }
0x1579   :  { %v3715_v51 = vpop.f32.mrb[176].mxu0 }
0x157a   :  { %v3716_v8 = vadd.f32 %v4015_v60, %v3715_v51  ;;  %v4712_v36 = vpop.f32.mrb[177].mxu0 }
0x157b   :  { %v3718_v13 = vpop.f32.mrb[178].mxu0 }
0x157c   :  { %3727 = vst.msk [vmem:[%s6822_s25 + $0x20] sm:$0x3] %vm3726_vm2, %v3716_v8  ;;  %v3737_v53 = vsub.f32 %v3716_v8, %v3732_v3  ;;  %v4713_v11 = vpop.f32.mrb[179].mxu0 }
0x157e   :  { %v3742_v57 = vmul.f32 %v3737_v53, %v3737_v53 }
0x1580   :  { %v3755_v23 = vsel %vm3726_vm2, %v3742_v57, 0.0 }
0x1581   :  { %3756 = vadd.xlane.f32.xlu0 %v3755_v23 }
0x1585   :  { %3798 = vadd.xlane.f32.xlu0 %v3797_v7 }
0x15b6   :  { %v3745_v24 = vpop.xlane.xlu0 %3744 }
0x15b7   :  { %v3763_v46 = vmul.f32 %v3758_v43, %v3745_v24 }
0x15b8   :  { %v3748_v34 = vpop.xlane.xlu1 %3747 }
0x15b9   :  { %v3764_v12 = vmul.f32 %v3759_v44, %v3748_v34  ;;  %v3769_v6 = vsel %vm3768_vm0, %v3763_v46, 0.0 }
0x15bb   :  { %v3770_v35 = vsel %vm3768_vm0, %v3764_v12, 0.0 }
0x15bc   :  { %v3771_v47 = vadd.f32 %v3770_v35, %v3769_v6 }
0x15be   :  { %v3751_v25 = vpop.xlane.xlu0 %3750 }
0x15bf   :  { %v3765_v14 = vmul.f32 %v3760_v54, %v3751_v25 }
0x15c0   :  { %v3754_v41 = vpop.xlane.xlu1 %3753 }
0x15c1   :  { %v3772_v61 = vsel %vm3768_vm0, %v3765_v14, 0.0  ;;  %v3766_v5 = vmul.f32 %v3761_v9, %v3754_v41 }
0x15c2   :  { %v3773_v60 = vadd.f32 %v3772_v61, %v3771_v47 }
0x15c3   :  { %v3774_v29 = vsel %vm3768_vm0, %v3766_v5, 0.0 }
0x15c4   :  { %v3775_v58 = vadd.f32 %v3774_v29, %v3773_v60 }
0x160e   :  { %v3757_v37 = vpop.xlane.xlu0 %3756 }
0x160f   :  { %v3767_v17 = vmul.f32 %v3762_v0, %v3757_v37 }
0x1611   :  { %v3777_v20 = vsel %vm3776_vm3, %v3767_v17, 0.0 }
0x1612   :  { %v3778_v63 = vadd.f32 %v3777_v20, %v3775_v58  ;;  %v3799_v4 = vpop.xlane.xlu0 %3798 }
0x1613   :  { %v3800_v15 = vrot.slane %v3799_v4, 4 }
0x1614   :  { %3779 = vadd.xlane.f32.xlu1 %v3778_v63 }
0x1615   :  { %v3801_v55 = vadd.f32 %v3800_v15, %v3799_v4 }
0x1617   :  { %v3802_v45 = vrot.slane %v3801_v55, 2 }
0x1619   :  { %v3803_v28 = vadd.f32 %v3802_v45, %v3801_v55 }
0x161b   :  { %v3804_v26 = vrot.slane %v3803_v28, 1 }
0x161d   :  { %v3805_v40 = vadd.f32 %v3804_v26, %v3803_v28 }
0x16a1   :  { %v3780_v49 = vpop.xlane.xlu1 %3779 }
0x16a2   :  { %v3781_v18 = vrot.slane %v3780_v49, 4 }
0x16a4   :  { %v3782_v62 = vadd.f32 %v3781_v18, %v3780_v49 }
0x16a6   :  { %v3783_v10 = vrot.slane %v3782_v62, 2 }
0x16a8   :  { %v3784_v52 = vadd.f32 %v3783_v10, %v3782_v62 }
0x16aa   :  { %v3785_v33 = vrot.slane %v3784_v52, 1 }
0x16ac   :  { %v3786_v38 = vadd.f32 %v3785_v33, %v3784_v52 }
0x16ae   :  { %4786 = vpush %v3786_v38 }
0x16af   :  { %4788 = vpush %v3805_v40 }
0x16df   :  { %s4787_s23 = spop %4786 }
0x16e0   :  { %s4789_s25 = spop %4788  ;;  %v3788_v48 = vstv %s4787_s23 }
0x16e1   :  { %v3807_v1 = vstv %s4789_s25 }
0x16e2   :  { %5081 = vrcp.f32 %v3807_v1 }
0x16ec   :  { %v5082_v32 = vpop.eup %5081 }
0x16ed   :  { %v3809_v39 = vmul.f32 %v5082_v32, %v3788_v48 }
0x16ef   :  { %3811 = vst.msk [vmem:[#allocation2] sm:$0x1] %vm3810_vm4, %v3809_v39 }
0x16f0   :  { %5104 = shalt.err (!%p5101_p4)
}
0x16f1   :  { %s6862_s1 = sld [smem:[#allocation17_spill]] }
0x16f7   :  { %s5105_s26 = scalar_lea.hbm %s6862_s1, 16 }
0x16f8   :  { %p5106_p5 = scmp.ne.s32.totalorder %s6862_s1, %s5105_s26  ;;  %p5109_p6 = scmp.lt.u32.totalorder %s5105_s26, %s6862_s1 }
0x16fa   :  { %p5111_p7 = pnand %p5109_p6, %p5106_p5 }
0x16fc   :  { %5114 = shalt.err (!%p5111_p7)
}
0x16fd   :  { %3823 = dma.vmem_to_hbm [thread:$0]  %s3821_s4, 16, %s6862_s1, [#allocation3]  }
0x16fe   :  { %5115 = dma.done.wait [#allocation3], 16  }
0x16ff   :  { %5116 = vsyncadd [#allocation3], 4294967280 }
0x1700   :  { %3829 = vsyncpa [#allocation3], 1 }

</bundles_post_ra>
